<compile_context>
chip_gen: v5e
topology: v5e:2x2
jax: 0.10.0
libtpu: 0.0.40
codegen_flags: <defaults>
</compile_context>

<pallas_src>
import functools

import jax
import jax.numpy as jnp
from jax.experimental import pallas as pl
from jax.experimental.pallas import tpu as pltpu


KERNEL_SIZE = 5
STRIDE = 2
BN_EPS = 1e-5
TB = 16          # images per grid step (sublane dim of every activation tile)
LANE = 128


def conv2d_size_out(size, kernel_size=KERNEL_SIZE, stride=STRIDE):
    return (size - (kernel_size - 1) - 1) // stride + 1


def _round_up(v, m):
    return ((v + m - 1) // m) * m


# ----------------------------------------------------------------------------
# Fused whole-network Pallas kernel (one grid step == TB images)
# ----------------------------------------------------------------------------
def _dqn_kernel(x_ref, m1_ref, s1_ref, m2_ref, s2_ref, m3_ref, s3_ref,
                wh_ref, bh_ref, o_ref):
    tb = x_ref.shape[1]

    def conv_bn_relu(a, m_ref, s_ref):
        # a: (H_in, TB, L_in_pad) bf16   (L_in_pad multiple of 128)
        h, _, lin = a.shape
        oh = conv2d_size_out(h)
        if h % 2:                                    # make H even (pad row unused)
            a = jnp.concatenate([a, jnp.zeros((1, tb, lin), a.dtype)], axis=0)
            h += 1
        # Split the (major) row dim by parity: a_r[j, p] == a[2*j + p].
        a_r = a.reshape(h // 2, 2, tb, lin)
        chunks = []
        for kh in range(KERNEL_SIZE):                # unrolled, KH == 5
            # rows h = 2*oh_i + kh  ->  contiguous slice, pure tile selection
            sel = a_r[kh // 2: kh // 2 + oh, kh % 2]          # (OH, TB, L_in)
            chunks.append(sel.reshape(oh * tb, lin))
        lhs = jnp.concatenate(chunks, axis=-1)                # (OH*TB, 5*L_in)
        # Stride-2 column selection + conv weights + BN scale folded into m_ref.
        acc = jnp.dot(lhs, m_ref[...], preferred_element_type=jnp.float32)
        y = jnp.maximum(acc + s_ref[...], 0.0)                # bias+BN shift, ReLU
        return y.reshape(oh, tb, -1).astype(jnp.bfloat16)     # (OH, TB, L_out_pad)

    a0 = x_ref[...]                                   # (H,  TB, 128)  bf16
    a1 = conv_bn_relu(a0, m1_ref, s1_ref)             # (H1, TB, 384)
    a2 = conv_bn_relu(a1, m2_ref, s2_ref)             # (H2, TB, 256)
    a3 = conv_bn_relu(a2, m3_ref, s3_ref)             # (H3, TB, 128)

    # Linear head: one contraction over (h, w*c).
    flat = jnp.concatenate([a3[hh] for hh in range(a3.shape[0])], axis=-1)
    q = jnp.dot(flat, wh_ref[...],
                preferred_element_type=jnp.float32) + bh_ref[...]
    o_ref[...] = q.astype(o_ref.dtype)                # lane-dense (TB, 128) store


@functools.partial(jax.jit, static_argnames=("outputs",))
def dqn_pallas(consts, x_nchw, *, outputs):
    """Fused DQN forward. x_nchw: (N, 3, H, W) f32 -> (N, outputs) f32."""
    n, c, h, w = x_nchw.shape
    lane_in = _round_up(w * c, LANE)
    grid_n = -(-n // TB)
    n_pad = grid_n * TB

    # NCHW -> (H, N, W*C) bf16; pad batch (sublanes) and fused (w, c) lanes.
    x2 = (jnp.transpose(x_nchw, (2, 0, 3, 1))
             .reshape(h, n, w * c)
             .astype(jnp.bfloat16))
    x2 = jnp.pad(x2, ((0, 0), (0, n_pad - n), (0, lane_in - w * c)))

    m1, m2, m3 = consts["m"]
    s1, s2, s3 = consts["shift"]
    wh, bh = consts["wh"], consts["bh"]
    out_pad = bh.shape[-1]

    def _const_spec(a):
        zeros = (0,) * a.ndim
        return pl.BlockSpec(a.shape, lambda i: zeros)   # DMA'd once, never revisited

    out = pl.pallas_call(
        _dqn_kernel,
        out_shape=jax.ShapeDtypeStruct((n_pad, out_pad), jnp.float32),
        grid_spec=pltpu.PrefetchScalarGridSpec(
            num_scalar_prefetch=0,
            grid=(grid_n,),
            in_specs=[
                pl.BlockSpec((h, TB, lane_in), lambda i: (0, i, 0)),
                _const_spec(m1), _const_spec(s1),
                _const_spec(m2), _const_spec(s2),
                _const_spec(m3), _const_spec(s3),
                _const_spec(wh), _const_spec(bh),
            ],
            out_specs=pl.BlockSpec((TB, out_pad), lambda i: (i, 0)),
        ),
        compiler_params=pltpu.CompilerParams(
            dimension_semantics=("parallel",)),       # both v7x TCs shard the batch
    )(x2, m1, s1, m2, s2, m3, s3, wh, bh)
    return out[:n, :outputs]


# ----------------------------------------------------------------------------
# One-time host-side weight preparation
# ----------------------------------------------------------------------------
def _build_tap_matrices(w_conv, bn_scale, w_in, k=KERNEL_SIZE, stride=STRIDE):
    # w_conv: (OC, IC, KH, KW) torch layout.  Returns (KH, W_in*IC, OW*OC) with
    # M[kh, w*IC+c, ow*OC+oc] = sum_kw [w == stride*ow+kw] * w_conv[oc,c,kh,kw]*scale[oc]
    oc, ic, khs, kws = w_conv.shape
    ow = conv2d_size_out(w_in, k, stride)
    ws = w_conv * bn_scale[:, None, None, None]
    kw = jnp.arange(kws)[:, None, None]
    w_i = jnp.arange(w_in)[None, :, None]
    ow_i = jnp.arange(ow)[None, None, :]
    sel = (w_i == stride * ow_i + kw).astype(jnp.float32)       # (KW, W_in, OW)
    m = jnp.einsum("qwz,ocpq->pwczo", sel, ws)                  # (KH, W_in, IC, OW, OC)
    return m.reshape(khs, w_in * ic, ow * oc)


def prepare_dqn_constants(params, h, w):
    """Fold BN scale into conv weights, build the per-layer K-concatenated tap
    matrices (lanes padded to multiples of 128), and permute/pad the head."""
    consts = {"m": [], "shift": []}
    cur_h, cur_w = h, w
    for name in ("1", "2", "3"):
        conv, bn = params["conv" + name], params["bn" + name]
        scale = bn["gamma"] / jnp.sqrt(bn["var"] + BN_EPS)
        shift = bn["beta"] + scale * (conv["b"] - bn["mean"])
        oc, ic = conv["W"].shape[0], conv["W"].shape[1]
        oh, ow = conv2d_size_out(cur_h), conv2d_size_out(cur_w)
        k_in, l_out = cur_w * ic, ow * oc
        k_pad, l_pad = _round_up(k_in, LANE), _round_up(l_out, LANE)

        m = _build_tap_matrices(conv["W"], scale, cur_w)        # (KH, k_in, l_out)
        m = jnp.pad(m, ((0, 0), (0, k_pad - k_in), (0, l_pad - l_out)))
        consts["m"].append(
            m.reshape(KERNEL_SIZE * k_pad, l_pad).astype(jnp.bfloat16))

        sh = jnp.pad(jnp.tile(shift, ow), (0, l_pad - l_out))
        consts["shift"].append(sh.reshape(1, l_pad).astype(jnp.float32))
        cur_h, cur_w = oh, ow

    c3 = params["conv3"]["W"].shape[0]
    wh = params["head"]["W"]                    # (outputs, c3*H3*W3), torch (c,h,w) order
    outputs = wh.shape[0]
    l3, l3_pad = cur_w * c3, _round_up(cur_w * c3, LANE)
    out_pad = _round_up(outputs, LANE)
    wh3 = (wh.reshape(outputs, c3, cur_h, cur_w)
             .transpose(2, 3, 1, 0)                             # (h, w, c, o)
             .reshape(cur_h, l3, outputs))
    wh3 = jnp.pad(wh3, ((0, 0), (0, l3_pad - l3), (0, out_pad - outputs)))
    consts["wh"] = wh3.reshape(cur_h * l3_pad, out_pad).astype(jnp.bfloat16)
    consts["bh"] = jnp.pad(params["head"]["b"],
                           (0, out_pad - outputs)).reshape(1, out_pad).astype(jnp.float32)
    return consts


# ----------------------------------------------------------------------------
# Parameters (deterministic, synthetic) and pure-JAX f32 reference
# ----------------------------------------------------------------------------
def init_dqn_params(key, h, w, outputs):
    convw = conv2d_size_out(conv2d_size_out(conv2d_size_out(w)))
    convh = conv2d_size_out(conv2d_size_out(conv2d_size_out(h)))
    linear_in = convw * convh * 32

    def conv_p(key, oc, ic):
        k1, k2 = jax.random.split(key)
        std = 1.0 / jnp.sqrt(ic * 25)
        return {"W": jax.random.normal(k1, (oc, ic, 5, 5), jnp.float32) * std,
                "b": jax.random.normal(k2, (oc,), jnp.float32) * std}

    def bn_p(key, c):
        k1, k2, k3, k4 = jax.random.split(key, 4)
        return {"gamma": 1.0 + 0.1 * jax.random.normal(k1, (c,), jnp.float32),
                "beta": 0.1 * jax.random.normal(k2, (c,), jnp.float32),
                "mean": 0.1 * jax.random.normal(k3, (c,), jnp.float32),
                "var": jax.random.uniform(k4, (c,), jnp.float32, 0.5, 1.5)}

    ks = jax.random.split(key, 7)
    std_head = 1.0 / jnp.sqrt(linear_in)
    return {
        "conv1": conv_p(ks[0], 16, 3), "bn1": bn_p(ks[1], 16),
        "conv2": conv_p(ks[2], 32, 16), "bn2": bn_p(ks[3], 32),
        "conv3": conv_p(ks[4], 32, 32), "bn3": bn_p(ks[5], 32),
        "head": {"W": jax.random.normal(ks[6], (outputs, linear_in), jnp.float32) * std_head,
                 "b": jnp.linspace(-0.1, 0.1, outputs, dtype=jnp.float32)},
    }


def dqn_reference(params, x_nchw):
    hp = jax.lax.Precision.HIGHEST

    def conv_bn_relu(x, conv, bn):
        y = jax.lax.conv_general_dilated(
            x, conv["W"], window_strides=(STRIDE, STRIDE), padding="VALID",
            dimension_numbers=("NCHW", "OIHW", "NCHW"), precision=hp)
        y = y + conv["b"][None, :, None, None]
        scale = bn["gamma"] / jnp.sqrt(bn["var"] + BN_EPS)
        y = (y - bn["mean"][None, :, None, None]) * scale[None, :, None, None] \
            + bn["beta"][None, :, None, None]
        return jnp.maximum(y, 0.0)

    x = conv_bn_relu(x_nchw, params["conv1"], params["bn1"])
    x = conv_bn_relu(x, params["conv2"], params["bn2"])
    x = conv_bn_relu(x, params["conv3"], params["bn3"])
    xf = x.reshape(x.shape[0], -1)
    return jnp.dot(xf, params["head"]["W"].T, precision=hp) + params["head"]["b"]


if __name__ == "__main__":
    H, W, OUTPUTS, BATCH = 40, 40, 4, 20     # batch padded to 32 -> grid of 2 steps
    key = jax.random.PRNGKey(0)
    kp, kx = jax.random.split(key)
    params = init_dqn_params(kp, H, W, OUTPUTS)
    x = jax.random.normal(kx, (BATCH, 3, H, W), jnp.float32)   # NCHW, like PyTorch

    consts = prepare_dqn_constants(params, H, W)   # one-time weight prep
    q_values = dqn_pallas(consts, x, outputs=OUTPUTS)
    jax.block_until_ready(q_values)

    assert q_values.shape == (BATCH, OUTPUTS)
    assert bool(jnp.all(jnp.isfinite(q_values)))

    # loose tolerance: kernel runs the MXU in bf16 (f32 accumulation)
    q_ref = dqn_reference(params, x)
    max_err = float(jnp.max(jnp.abs(q_values - q_ref)))
    assert max_err < 0.1, f"mismatch vs f32 reference: {max_err}"

    print("KERNEL_OK")
</pallas_src>

<mosaic_0001>
module attributes {stable_mosaic.version = 11 : i64} {
  func.func @_dqn_kernel(%arg0: i32, %arg1: memref<40x16x128xbf16, #tpu.memory_space<vmem>>, %arg2: memref<640x384xbf16, #tpu.memory_space<vmem>>, %arg3: memref<1x384xf32, #tpu.memory_space<vmem>>, %arg4: memref<1920x256xbf16, #tpu.memory_space<vmem>>, %arg5: memref<1x256xf32, #tpu.memory_space<vmem>>, %arg6: memref<1280x128xbf16, #tpu.memory_space<vmem>>, %arg7: memref<1x128xf32, #tpu.memory_space<vmem>>, %arg8: memref<256x128xbf16, #tpu.memory_space<vmem>>, %arg9: memref<1x128xf32, #tpu.memory_space<vmem>>, %arg10: memref<16x128xf32, #tpu.memory_space<vmem>>) attributes {dimension_semantics = [#tpu.dimension_semantics<parallel>], iteration_bounds = array<i64: 2>, scalar_prefetch = 0 : i64, scratch_operands = 0 : i64, tpu.core_type = #tpu.core_type<tc>, window_params = [{transform_indices = @transform_0, window_bounds = array<i64: 40, 16, 128>}, {pipeline_mode = #tpu.pipeline_mode<synchronous>, transform_indices = @transform_1, window_bounds = array<i64: 640, 384>}, {pipeline_mode = #tpu.pipeline_mode<synchronous>, transform_indices = @transform_2, window_bounds = array<i64: 1, 384>}, {pipeline_mode = #tpu.pipeline_mode<synchronous>, transform_indices = @transform_3, window_bounds = array<i64: 1920, 256>}, {pipeline_mode = #tpu.pipeline_mode<synchronous>, transform_indices = @transform_4, window_bounds = array<i64: 1, 256>}, {pipeline_mode = #tpu.pipeline_mode<synchronous>, transform_indices = @transform_5, window_bounds = array<i64: 1280, 128>}, {pipeline_mode = #tpu.pipeline_mode<synchronous>, transform_indices = @transform_6, window_bounds = array<i64: 1, 128>}, {pipeline_mode = #tpu.pipeline_mode<synchronous>, transform_indices = @transform_7, window_bounds = array<i64: 256, 128>}, {pipeline_mode = #tpu.pipeline_mode<synchronous>, transform_indices = @transform_8, window_bounds = array<i64: 1, 128>}, {transform_indices = @transform_9, window_bounds = array<i64: 16, 128>}]} {
    %c0 = arith.constant 0 : index
    %c0_0 = arith.constant 0 : index
    %c0_1 = arith.constant 0 : index
    %0 = vector.load %arg1[%c0, %c0_0, %c0_1] : memref<40x16x128xbf16, #tpu.memory_space<vmem>>, vector<40x16x128xbf16>
    %1 = vector.shape_cast %0 : vector<40x16x128xbf16> to vector<20x2x16x128xbf16>
    %2 = vector.extract_strided_slice %1 {offsets = [0, 0, 0, 0], sizes = [18, 1, 16, 128], strides = [1, 1, 1, 1]} : vector<20x2x16x128xbf16> to vector<18x1x16x128xbf16>
    %3 = vector.shape_cast %2 : vector<18x1x16x128xbf16> to vector<18x16x128xbf16>
    %4 = vector.shape_cast %3 : vector<18x16x128xbf16> to vector<288x128xbf16>
    %5 = vector.extract_strided_slice %1 {offsets = [0, 1, 0, 0], sizes = [18, 1, 16, 128], strides = [1, 1, 1, 1]} : vector<20x2x16x128xbf16> to vector<18x1x16x128xbf16>
    %6 = vector.shape_cast %5 : vector<18x1x16x128xbf16> to vector<18x16x128xbf16>
    %7 = vector.shape_cast %6 : vector<18x16x128xbf16> to vector<288x128xbf16>
    %8 = vector.extract_strided_slice %1 {offsets = [1, 0, 0, 0], sizes = [18, 1, 16, 128], strides = [1, 1, 1, 1]} : vector<20x2x16x128xbf16> to vector<18x1x16x128xbf16>
    %9 = vector.shape_cast %8 : vector<18x1x16x128xbf16> to vector<18x16x128xbf16>
    %10 = vector.shape_cast %9 : vector<18x16x128xbf16> to vector<288x128xbf16>
    %11 = vector.extract_strided_slice %1 {offsets = [1, 1, 0, 0], sizes = [18, 1, 16, 128], strides = [1, 1, 1, 1]} : vector<20x2x16x128xbf16> to vector<18x1x16x128xbf16>
    %12 = vector.shape_cast %11 : vector<18x1x16x128xbf16> to vector<18x16x128xbf16>
    %13 = vector.shape_cast %12 : vector<18x16x128xbf16> to vector<288x128xbf16>
    %14 = vector.extract_strided_slice %1 {offsets = [2, 0, 0, 0], sizes = [18, 1, 16, 128], strides = [1, 1, 1, 1]} : vector<20x2x16x128xbf16> to vector<18x1x16x128xbf16>
    %15 = vector.shape_cast %14 : vector<18x1x16x128xbf16> to vector<18x16x128xbf16>
    %16 = vector.shape_cast %15 : vector<18x16x128xbf16> to vector<288x128xbf16>
    %17 = tpu.concatenate %4, %7, %10, %13, %16 in 1 : vector<288x128xbf16>, vector<288x128xbf16>, vector<288x128xbf16>, vector<288x128xbf16>, vector<288x128xbf16> -> vector<288x640xbf16>
    %c0_2 = arith.constant 0 : index
    %c0_3 = arith.constant 0 : index
    %18 = vector.load %arg2[%c0_2, %c0_3] : memref<640x384xbf16, #tpu.memory_space<vmem>>, vector<640x384xbf16>
    %cst = arith.constant dense<0.000000e+00> : vector<288x384xf32>
    %19 = tpu.matmul %17, %18, %cst {dimension_numbers = #tpu.dot_dimension_numbers<[1], [0], [0], [1], [0, 0, 1, 1], [], []>} : vector<288x640xbf16>, vector<640x384xbf16>, vector<288x384xf32> -> vector<288x384xf32>
    %c0_4 = arith.constant 0 : index
    %c0_5 = arith.constant 0 : index
    %20 = vector.load %arg3[%c0_4, %c0_5] : memref<1x384xf32, #tpu.memory_space<vmem>>, vector<1x384xf32>
    %21 = vector.broadcast %20 : vector<1x384xf32> to vector<288x384xf32>
    %22 = arith.addf %19, %21 : vector<288x384xf32>
    %cst_6 = arith.constant 0.000000e+00 : f32
    %23 = vector.broadcast %cst_6 : f32 to vector<288x384xf32>
    %24 = arith.maximumf %22, %23 : vector<288x384xf32>
    %25 = vector.shape_cast %24 : vector<288x384xf32> to vector<18x16x384xf32>
    %26 = arith.truncf %25 : vector<18x16x384xf32> to vector<18x16x384xbf16>
    %27 = vector.shape_cast %26 : vector<18x16x384xbf16> to vector<9x2x16x384xbf16>
    %28 = vector.extract_strided_slice %27 {offsets = [0, 0, 0, 0], sizes = [7, 1, 16, 384], strides = [1, 1, 1, 1]} : vector<9x2x16x384xbf16> to vector<7x1x16x384xbf16>
    %29 = vector.shape_cast %28 : vector<7x1x16x384xbf16> to vector<7x16x384xbf16>
    %30 = vector.shape_cast %29 : vector<7x16x384xbf16> to vector<112x384xbf16>
    %31 = vector.extract_strided_slice %27 {offsets = [0, 1, 0, 0], sizes = [7, 1, 16, 384], strides = [1, 1, 1, 1]} : vector<9x2x16x384xbf16> to vector<7x1x16x384xbf16>
    %32 = vector.shape_cast %31 : vector<7x1x16x384xbf16> to vector<7x16x384xbf16>
    %33 = vector.shape_cast %32 : vector<7x16x384xbf16> to vector<112x384xbf16>
    %34 = vector.extract_strided_slice %27 {offsets = [1, 0, 0, 0], sizes = [7, 1, 16, 384], strides = [1, 1, 1, 1]} : vector<9x2x16x384xbf16> to vector<7x1x16x384xbf16>
    %35 = vector.shape_cast %34 : vector<7x1x16x384xbf16> to vector<7x16x384xbf16>
    %36 = vector.shape_cast %35 : vector<7x16x384xbf16> to vector<112x384xbf16>
    %37 = vector.extract_strided_slice %27 {offsets = [1, 1, 0, 0], sizes = [7, 1, 16, 384], strides = [1, 1, 1, 1]} : vector<9x2x16x384xbf16> to vector<7x1x16x384xbf16>
    %38 = vector.shape_cast %37 : vector<7x1x16x384xbf16> to vector<7x16x384xbf16>
    %39 = vector.shape_cast %38 : vector<7x16x384xbf16> to vector<112x384xbf16>
    %40 = vector.extract_strided_slice %27 {offsets = [2, 0, 0, 0], sizes = [7, 1, 16, 384], strides = [1, 1, 1, 1]} : vector<9x2x16x384xbf16> to vector<7x1x16x384xbf16>
    %41 = vector.shape_cast %40 : vector<7x1x16x384xbf16> to vector<7x16x384xbf16>
    %42 = vector.shape_cast %41 : vector<7x16x384xbf16> to vector<112x384xbf16>
    %43 = tpu.concatenate %30, %33, %36, %39, %42 in 1 : vector<112x384xbf16>, vector<112x384xbf16>, vector<112x384xbf16>, vector<112x384xbf16>, vector<112x384xbf16> -> vector<112x1920xbf16>
    %c0_7 = arith.constant 0 : index
    %c0_8 = arith.constant 0 : index
    %44 = vector.load %arg4[%c0_7, %c0_8] : memref<1920x256xbf16, #tpu.memory_space<vmem>>, vector<1920x256xbf16>
    %cst_9 = arith.constant dense<0.000000e+00> : vector<112x256xf32>
    %45 = tpu.matmul %43, %44, %cst_9 {dimension_numbers = #tpu.dot_dimension_numbers<[1], [0], [0], [1], [0, 0, 1, 1], [], []>} : vector<112x1920xbf16>, vector<1920x256xbf16>, vector<112x256xf32> -> vector<112x256xf32>
    %c0_10 = arith.constant 0 : index
    %c0_11 = arith.constant 0 : index
    %46 = vector.load %arg5[%c0_10, %c0_11] : memref<1x256xf32, #tpu.memory_space<vmem>>, vector<1x256xf32>
    %47 = vector.broadcast %46 : vector<1x256xf32> to vector<112x256xf32>
    %48 = arith.addf %45, %47 : vector<112x256xf32>
    %cst_12 = arith.constant 0.000000e+00 : f32
    %49 = vector.broadcast %cst_12 : f32 to vector<112x256xf32>
    %50 = arith.maximumf %48, %49 : vector<112x256xf32>
    %51 = vector.shape_cast %50 : vector<112x256xf32> to vector<7x16x256xf32>
    %52 = arith.truncf %51 : vector<7x16x256xf32> to vector<7x16x256xbf16>
    %cst_13 = arith.constant 0.000000e+00 : bf16
    %53 = vector.broadcast %cst_13 : bf16 to vector<1x16x256xbf16>
    %54 = tpu.concatenate %52, %53 in 0 : vector<7x16x256xbf16>, vector<1x16x256xbf16> -> vector<8x16x256xbf16>
    %55 = vector.shape_cast %54 : vector<8x16x256xbf16> to vector<4x2x16x256xbf16>
    %56 = vector.extract_strided_slice %55 {offsets = [0, 0, 0, 0], sizes = [2, 1, 16, 256], strides = [1, 1, 1, 1]} : vector<4x2x16x256xbf16> to vector<2x1x16x256xbf16>
    %57 = vector.shape_cast %56 : vector<2x1x16x256xbf16> to vector<2x16x256xbf16>
    %58 = vector.shape_cast %57 : vector<2x16x256xbf16> to vector<32x256xbf16>
    %59 = vector.extract_strided_slice %55 {offsets = [0, 1, 0, 0], sizes = [2, 1, 16, 256], strides = [1, 1, 1, 1]} : vector<4x2x16x256xbf16> to vector<2x1x16x256xbf16>
    %60 = vector.shape_cast %59 : vector<2x1x16x256xbf16> to vector<2x16x256xbf16>
    %61 = vector.shape_cast %60 : vector<2x16x256xbf16> to vector<32x256xbf16>
    %62 = vector.extract_strided_slice %55 {offsets = [1, 0, 0, 0], sizes = [2, 1, 16, 256], strides = [1, 1, 1, 1]} : vector<4x2x16x256xbf16> to vector<2x1x16x256xbf16>
    %63 = vector.shape_cast %62 : vector<2x1x16x256xbf16> to vector<2x16x256xbf16>
    %64 = vector.shape_cast %63 : vector<2x16x256xbf16> to vector<32x256xbf16>
    %65 = vector.extract_strided_slice %55 {offsets = [1, 1, 0, 0], sizes = [2, 1, 16, 256], strides = [1, 1, 1, 1]} : vector<4x2x16x256xbf16> to vector<2x1x16x256xbf16>
    %66 = vector.shape_cast %65 : vector<2x1x16x256xbf16> to vector<2x16x256xbf16>
    %67 = vector.shape_cast %66 : vector<2x16x256xbf16> to vector<32x256xbf16>
    %68 = vector.extract_strided_slice %55 {offsets = [2, 0, 0, 0], sizes = [2, 1, 16, 256], strides = [1, 1, 1, 1]} : vector<4x2x16x256xbf16> to vector<2x1x16x256xbf16>
    %69 = vector.shape_cast %68 : vector<2x1x16x256xbf16> to vector<2x16x256xbf16>
    %70 = vector.shape_cast %69 : vector<2x16x256xbf16> to vector<32x256xbf16>
    %71 = tpu.concatenate %58, %61, %64, %67, %70 in 1 : vector<32x256xbf16>, vector<32x256xbf16>, vector<32x256xbf16>, vector<32x256xbf16>, vector<32x256xbf16> -> vector<32x1280xbf16>
    %c0_14 = arith.constant 0 : index
    %c0_15 = arith.constant 0 : index
    %72 = vector.load %arg6[%c0_14, %c0_15] : memref<1280x128xbf16, #tpu.memory_space<vmem>>, vector<1280x128xbf16>
    %cst_16 = arith.constant dense<0.000000e+00> : vector<32x128xf32>
    %73 = tpu.matmul %71, %72, %cst_16 {dimension_numbers = #tpu.dot_dimension_numbers<[1], [0], [0], [1], [0, 0, 1, 1], [], []>} : vector<32x1280xbf16>, vector<1280x128xbf16>, vector<32x128xf32> -> vector<32x128xf32>
    %c0_17 = arith.constant 0 : index
    %c0_18 = arith.constant 0 : index
    %74 = vector.load %arg7[%c0_17, %c0_18] : memref<1x128xf32, #tpu.memory_space<vmem>>, vector<1x128xf32>
    %75 = vector.broadcast %74 : vector<1x128xf32> to vector<32x128xf32>
    %76 = arith.addf %73, %75 : vector<32x128xf32>
    %cst_19 = arith.constant 0.000000e+00 : f32
    %77 = vector.broadcast %cst_19 : f32 to vector<32x128xf32>
    %78 = arith.maximumf %76, %77 : vector<32x128xf32>
    %79 = vector.shape_cast %78 : vector<32x128xf32> to vector<2x16x128xf32>
    %80 = arith.truncf %79 : vector<2x16x128xf32> to vector<2x16x128xbf16>
    %81 = vector.extract_strided_slice %80 {offsets = [0, 0, 0], sizes = [1, 16, 128], strides = [1, 1, 1]} : vector<2x16x128xbf16> to vector<1x16x128xbf16>
    %82 = vector.shape_cast %81 : vector<1x16x128xbf16> to vector<16x128xbf16>
    %83 = vector.extract_strided_slice %80 {offsets = [1, 0, 0], sizes = [1, 16, 128], strides = [1, 1, 1]} : vector<2x16x128xbf16> to vector<1x16x128xbf16>
    %84 = vector.shape_cast %83 : vector<1x16x128xbf16> to vector<16x128xbf16>
    %85 = tpu.concatenate %82, %84 in 1 : vector<16x128xbf16>, vector<16x128xbf16> -> vector<16x256xbf16>
    %c0_20 = arith.constant 0 : index
    %c0_21 = arith.constant 0 : index
    %86 = vector.load %arg8[%c0_20, %c0_21] : memref<256x128xbf16, #tpu.memory_space<vmem>>, vector<256x128xbf16>
    %cst_22 = arith.constant dense<0.000000e+00> : vector<16x128xf32>
    %87 = tpu.matmul %85, %86, %cst_22 {dimension_numbers = #tpu.dot_dimension_numbers<[1], [0], [0], [1], [0, 0, 1, 1], [], []>} : vector<16x256xbf16>, vector<256x128xbf16>, vector<16x128xf32> -> vector<16x128xf32>
    %c0_23 = arith.constant 0 : index
    %c0_24 = arith.constant 0 : index
    %88 = vector.load %arg9[%c0_23, %c0_24] : memref<1x128xf32, #tpu.memory_space<vmem>>, vector<1x128xf32>
    %89 = vector.broadcast %88 : vector<1x128xf32> to vector<16x128xf32>
    %90 = arith.addf %87, %89 : vector<16x128xf32>
    %c0_25 = arith.constant 0 : index
    %c0_26 = arith.constant 0 : index
    %91 = vector.load %arg10[%c0_25, %c0_26] : memref<16x128xf32, #tpu.memory_space<vmem>>, vector<16x128xf32>
    tpu.vector_store %arg10[%c0_25, %c0_26], %90 {strides = array<i32>} : memref<16x128xf32, #tpu.memory_space<vmem>>, vector<16x128xf32>,
    return
  }
  func.func @transform_0(%arg0: i32) -> (i32, i32, i32) {
    %c0_i32 = arith.constant 0 : i32
    %c0_i32_0 = arith.constant 0 : i32
    %c0_i32_1 = arith.constant 0 : i32
    return %c0_i32, %arg0, %c0_i32_0 : i32, i32, i32
  }
  func.func @transform_1(%arg0: i32) -> (i32, i32) {
    %c0_i32 = arith.constant 0 : i32
    %c0_i32_0 = arith.constant 0 : i32
    %c0_i32_1 = arith.constant 0 : i32
    return %c0_i32, %c0_i32_0 : i32, i32
  }
  func.func @transform_2(%arg0: i32) -> (i32, i32) {
    %c0_i32 = arith.constant 0 : i32
    %c0_i32_0 = arith.constant 0 : i32
    %c0_i32_1 = arith.constant 0 : i32
    return %c0_i32, %c0_i32_0 : i32, i32
  }
  func.func @transform_3(%arg0: i32) -> (i32, i32) {
    %c0_i32 = arith.constant 0 : i32
    %c0_i32_0 = arith.constant 0 : i32
    %c0_i32_1 = arith.constant 0 : i32
    return %c0_i32, %c0_i32_0 : i32, i32
  }
  func.func @transform_4(%arg0: i32) -> (i32, i32) {
    %c0_i32 = arith.constant 0 : i32
    %c0_i32_0 = arith.constant 0 : i32
    %c0_i32_1 = arith.constant 0 : i32
    return %c0_i32, %c0_i32_0 : i32, i32
  }
  func.func @transform_5(%arg0: i32) -> (i32, i32) {
    %c0_i32 = arith.constant 0 : i32
    %c0_i32_0 = arith.constant 0 : i32
    %c0_i32_1 = arith.constant 0 : i32
    return %c0_i32, %c0_i32_0 : i32, i32
  }
  func.func @transform_6(%arg0: i32) -> (i32, i32) {
    %c0_i32 = arith.constant 0 : i32
    %c0_i32_0 = arith.constant 0 : i32
    %c0_i32_1 = arith.constant 0 : i32
    return %c0_i32, %c0_i32_0 : i32, i32
  }
  func.func @transform_7(%arg0: i32) -> (i32, i32) {
    %c0_i32 = arith.constant 0 : i32
    %c0_i32_0 = arith.constant 0 : i32
    %c0_i32_1 = arith.constant 0 : i32
    return %c0_i32, %c0_i32_0 : i32, i32
  }
  func.func @transform_8(%arg0: i32) -> (i32, i32) {
    %c0_i32 = arith.constant 0 : i32
    %c0_i32_0 = arith.constant 0 : i32
    %c0_i32_1 = arith.constant 0 : i32
    return %c0_i32, %c0_i32_0 : i32, i32
  }
  func.func @transform_9(%arg0: i32) -> (i32, i32) {
    %c0_i32 = arith.constant 0 : i32
    %c0_i32_0 = arith.constant 0 : i32
    return %arg0, %c0_i32 : i32, i32
  }
}

</mosaic_0001>

<bundles_post_ra>
// kernel: dqn_pallas.1
= control target key start
LH: loop header
LB: loop body
LE: loop exit
PB: predicated region body
PF: predicated region fallthrough
CT: control target
= control target key end

     0   :  { %s10349_s30 = smov 0   ;;  %s10351_s10 = smov 0   ;;  %s14767_s0 = inlined_call_operand.vmem [shape: bf16[40,32,128], index: 0, kind: input, shape index: {}]   ;;  %s14768_s1 = inlined_call_operand.vmem [shape: bf16[640,384], index: 1, kind: input, shape index: {}]   ;;  %s14769_s2 = inlined_call_operand.vmem [shape: f32[1,384], index: 2, kind: input, shape index: {}]   ;;  %s14770_s3 = inlined_call_operand.vmem [shape: bf16[1920,256], index: 3, kind: input, shape index: {}]   ;;  %s14771_s4 = inlined_call_operand.vmem [shape: f32[1,256], index: 4, kind: input, shape index: {}]   ;;  %s14772_s5 = inlined_call_operand.vmem [shape: bf16[1280,128], index: 5, kind: input, shape index: {}]   ;;  %s14773_s6 = inlined_call_operand.vmem [shape: f32[1,128], index: 6, kind: input, shape index: {}]   ;;  %s14774_s7 = inlined_call_operand.vmem [shape: bf16[256,128], index: 7, kind: input, shape index: {}]   ;;  %s14775_s8 = inlined_call_operand.vmem [shape: f32[1,128], index: 8, kind: input, shape index: {}]   ;;  %s14776_s9 = inlined_call_operand.vmem [shape: f32[32,128], index: 9, kind: output, shape index: {}]  }
   0x1   :  { %s10353_s11 = smov 0  }
   0x2 LB: > { %s7668_s12 = sadd.s32 4294967295, %s10297_s11   ;;  %s10366_s13 = sadd.s32 1, %s10297_s11   ;;  %s10297_s11 = sphi %s10353_s11, %s15031_s11   ;;  %s10293_s10 = sphi %s10351_s10, %s15030_s10   ;;  %s10289_s30 = sphi %s10349_s30, %s15029_s30  }
   0x3   : > { %s23_s14 = ssub.s32 %s10297_s11, %s10366_s13  ;;  %s26_s15 = sadd.s32 1, %s10293_s10 }
   0x4   : > { %p24_p0 = scmp.eq.s32.totalorder %s23_s14, 0  ;;  %p33_p1 = scmp.ne.s32.totalorder %s10293_s10, %s10289_s30 }
   0x5   : > { %p34_p2 = scmp.eq.s32.totalorder %s10297_s11, 0  ;;  %p7671_p4 = scmp.ge.s32.totalorder %s10297_s11, 2 }
   0x6   : > { %s10375_s16 = scalar_select %p24_p0, %s10293_s10, %s26_s15  }
   0x7   : > { %p35_p3 = por %p34_p2, %p33_p1  ;;  %277 = sbr.rel (%p7671_p4) target bundleno = 56 (0x38), region = 48 }
   0xc   : > { %280 = sbr.rel (!%p35_p3) target bundleno = 56 (0x38), region = 52  ;;  %s282_s17 = sand.u32 (%p35_p3), 1, %s10293_s10  }
   0xd   : > { %s9659_s18 = sshll.u32 (%p35_p3), %s10297_s11, 3  ;;  %s10155_s19 = smul.u32 (%p35_p3), 320, %s282_s17 }
   0xe   : > { %s10383_s22 = scalar_lea.vmem (%p35_p3), %s14767_s0, %s9659_s18 }
   0xf   : > { %v304_v0 = vld [vmem:[%s10383_s22] sm:$0xff] (%p35_p3)   ;;  %v308_v1 = vld [vmem:[%s10383_s22 + $0x10] sm:$0xff] (%p35_p3)   ;;  %s10388_s23 = scalar_lea.vmem (%p35_p3), [#allocation2], %s10155_s19 }
  0x10   : > { %v312_v2 = vld [vmem:[%s10383_s22 + $0x20] sm:$0xff] (%p35_p3)   ;;  %305 = vst [vmem:[%s10388_s23] sm:$0xff] (%p35_p3), %v304_v0   ;;  %v316_v3 = vld [vmem:[%s10383_s22 + $0x30] sm:$0xff] (%p35_p3)  }
  0x11   : > { %309 = vst [vmem:[%s10388_s23 + $0x8] sm:$0xff] %v308_v1   ;;  %v320_v4 = vld [vmem:[%s10383_s22 + $0x40] sm:$0xff]   ;;  %v324_v5 = vld [vmem:[%s10383_s22 + $0x50] sm:$0xff]  }
  0x12   : > { %313 = vst [vmem:[%s10388_s23 + $0x10] sm:$0xff] %v312_v2   ;;  %v328_v6 = vld [vmem:[%s10383_s22 + $0x60] sm:$0xff]   ;;  %v332_v7 = vld [vmem:[%s10383_s22 + $0x70] sm:$0xff]  }
  0x13   : > { %317 = vst [vmem:[%s10388_s23 + $0x18] sm:$0xff] %v316_v3   ;;  %v336_v8 = vld [vmem:[%s10383_s22 + $0x80] sm:$0xff]   ;;  %v340_v9 = vld [vmem:[%s10383_s22 + $0x90] sm:$0xff]  }
  0x14   : > { %321 = vst [vmem:[%s10388_s23 + $0x20] sm:$0xff] %v320_v4   ;;  %v344_v10 = vld [vmem:[%s10383_s22 + $0xa0] sm:$0xff]   ;;  %v348_v11 = vld [vmem:[%s10383_s22 + $0xb0] sm:$0xff]  }
  0x15   : > { %325 = vst [vmem:[%s10388_s23 + $0x28] sm:$0xff] %v324_v5   ;;  %v352_v12 = vld [vmem:[%s10383_s22 + $0xc0] sm:$0xff]   ;;  %v356_v13 = vld [vmem:[%s10383_s22 + $0xd0] sm:$0xff]  }
  0x16   : > { %329 = vst [vmem:[%s10388_s23 + $0x30] sm:$0xff] %v328_v6   ;;  %v360_v14 = vld [vmem:[%s10383_s22 + $0xe0] sm:$0xff]   ;;  %v364_v15 = vld [vmem:[%s10383_s22 + $0xf0] sm:$0xff]  }
  0x17   : > { %333 = vst [vmem:[%s10388_s23 + $0x38] sm:$0xff] %v332_v7   ;;  %v368_v16 = vld [vmem:[%s10383_s22 + $0x100] sm:$0xff]   ;;  %v372_v17 = vld [vmem:[%s10383_s22 + $0x110] sm:$0xff]  }
  0x18   : > { %337 = vst [vmem:[%s10388_s23 + $0x40] sm:$0xff] %v336_v8   ;;  %v376_v18 = vld [vmem:[%s10383_s22 + $0x120] sm:$0xff]   ;;  %v380_v19 = vld [vmem:[%s10383_s22 + $0x130] sm:$0xff]  }
  0x19   : > { %341 = vst [vmem:[%s10388_s23 + $0x48] sm:$0xff] %v340_v9   ;;  %v384_v20 = vld [vmem:[%s10383_s22 + $0x140] sm:$0xff]   ;;  %v388_v21 = vld [vmem:[%s10383_s22 + $0x150] sm:$0xff]  }
  0x1a   : > { %345 = vst [vmem:[%s10388_s23 + $0x50] sm:$0xff] %v344_v10   ;;  %v392_v22 = vld [vmem:[%s10383_s22 + $0x160] sm:$0xff]   ;;  %v396_v23 = vld [vmem:[%s10383_s22 + $0x170] sm:$0xff]  }
  0x1b   : > { %349 = vst [vmem:[%s10388_s23 + $0x58] sm:$0xff] %v348_v11   ;;  %v400_v24 = vld [vmem:[%s10383_s22 + $0x180] sm:$0xff]   ;;  %v404_v25 = vld [vmem:[%s10383_s22 + $0x190] sm:$0xff]  }
  0x1c   : > { %353 = vst [vmem:[%s10388_s23 + $0x60] sm:$0xff] %v352_v12   ;;  %v408_v26 = vld [vmem:[%s10383_s22 + $0x1a0] sm:$0xff]   ;;  %v412_v27 = vld [vmem:[%s10383_s22 + $0x1b0] sm:$0xff]  }
  0x1d   : > { %357 = vst [vmem:[%s10388_s23 + $0x68] sm:$0xff] %v356_v13   ;;  %v416_v28 = vld [vmem:[%s10383_s22 + $0x1c0] sm:$0xff]   ;;  %v420_v29 = vld [vmem:[%s10383_s22 + $0x1d0] sm:$0xff]  }
  0x1e   : > { %361 = vst [vmem:[%s10388_s23 + $0x70] sm:$0xff] %v360_v14   ;;  %v424_v30 = vld [vmem:[%s10383_s22 + $0x1e0] sm:$0xff]   ;;  %v428_v31 = vld [vmem:[%s10383_s22 + $0x1f0] sm:$0xff]  }
  0x1f   : > { %365 = vst [vmem:[%s10388_s23 + $0x78] sm:$0xff] %v364_v15   ;;  %v432_v32 = vld [vmem:[%s10383_s22 + $0x200] sm:$0xff]   ;;  %v436_v33 = vld [vmem:[%s10383_s22 + $0x210] sm:$0xff]  }
  0x20   : > { %369 = vst [vmem:[%s10388_s23 + $0x80] sm:$0xff] %v368_v16   ;;  %v440_v34 = vld [vmem:[%s10383_s22 + $0x220] sm:$0xff]   ;;  %v444_v35 = vld [vmem:[%s10383_s22 + $0x230] sm:$0xff]  }
  0x21   : > { %373 = vst [vmem:[%s10388_s23 + $0x88] sm:$0xff] %v372_v17   ;;  %v448_v36 = vld [vmem:[%s10383_s22 + $0x240] sm:$0xff]   ;;  %v452_v37 = vld [vmem:[%s10383_s22 + $0x250] sm:$0xff]  }
  0x22   : > { %377 = vst [vmem:[%s10388_s23 + $0x90] sm:$0xff] %v376_v18   ;;  %v456_v38 = vld [vmem:[%s10383_s22 + $0x260] sm:$0xff]   ;;  %v460_v39 = vld [vmem:[%s10383_s22 + $0x270] sm:$0xff]  }
  0x23   : > { %381 = vst [vmem:[%s10388_s23 + $0x98] sm:$0xff] %v380_v19  }
  0x24   : > { %385 = vst [vmem:[%s10388_s23 + $0xa0] sm:$0xff] %v384_v20  }
  0x25   : > { %389 = vst [vmem:[%s10388_s23 + $0xa8] sm:$0xff] %v388_v21  }
  0x26   : > { %393 = vst [vmem:[%s10388_s23 + $0xb0] sm:$0xff] %v392_v22  }
  0x27   : > { %397 = vst [vmem:[%s10388_s23 + $0xb8] sm:$0xff] %v396_v23  }
  0x28   : > { %401 = vst [vmem:[%s10388_s23 + $0xc0] sm:$0xff] %v400_v24  }
  0x29   : > { %405 = vst [vmem:[%s10388_s23 + $0xc8] sm:$0xff] %v404_v25  }
  0x2a   : > { %409 = vst [vmem:[%s10388_s23 + $0xd0] sm:$0xff] %v408_v26  }
  0x2b   : > { %413 = vst [vmem:[%s10388_s23 + $0xd8] sm:$0xff] %v412_v27  }
  0x2c   : > { %417 = vst [vmem:[%s10388_s23 + $0xe0] sm:$0xff] %v416_v28  }
  0x2d   : > { %421 = vst [vmem:[%s10388_s23 + $0xe8] sm:$0xff] %v420_v29  }
  0x2e   : > { %425 = vst [vmem:[%s10388_s23 + $0xf0] sm:$0xff] %v424_v30  }
  0x2f   : > { %429 = vst [vmem:[%s10388_s23 + $0xf8] sm:$0xff] %v428_v31  }
  0x30   : > { %433 = vst [vmem:[%s10388_s23 + $0x100] sm:$0xff] %v432_v32  }
  0x31   : > { %437 = vst [vmem:[%s10388_s23 + $0x108] sm:$0xff] %v436_v33  }
  0x32   : > { %441 = vst [vmem:[%s10388_s23 + $0x110] sm:$0xff] %v440_v34  }
  0x33   : > { %445 = vst [vmem:[%s10388_s23 + $0x118] sm:$0xff] %v444_v35  }
  0x34   : > { %449 = vst [vmem:[%s10388_s23 + $0x120] sm:$0xff] %v448_v36  }
  0x35   : > { %453 = vst [vmem:[%s10388_s23 + $0x128] sm:$0xff] %v452_v37  }
  0x36   : > { %457 = vst [vmem:[%s10388_s23 + $0x130] sm:$0xff] %v456_v38  }
  0x37   : > { %461 = vst [vmem:[%s10388_s23 + $0x138] sm:$0xff] %v460_v39  }
  0x38 PF: > { %p7674_p5 = scmp.ge.s32.totalorder %s10297_s11, 1  ;;  %p646_p6 = scmp.lt.s32.totalorder %s10297_s11, 3 }
  0x3a   : > { %p647_p7 = pnand %p7674_p5, %p646_p6 }
  0x3c   : > { %650 = sbr.rel (%p647_p7) target bundleno = 2490 (0x9ba), region = 93 }
  0x41   : > { %v7919_v40 = vld [vmem:[%s14768_s1 + $0xa8] sm:$0xf]  ;;  %v9721_v41 = vld [vmem:[%s14768_s1 + $0xb0] sm:$0xf0]  ;;  %v7907_v51 = vld [vmem:[%s14768_s1 + $0x90] sm:$0xf] }
  0x42   : > { %v8015_v42 = vld [vmem:[%s14768_s1 + $0x168] sm:$0xf]  ;;  %v7920_v43 = vor.u32 %v9721_v41, %v7919_v40  ;;  %v9745_v44 = vld [vmem:[%s14768_s1 + $0x170] sm:$0xf0]  ;;  %v9718_v53 = vld [vmem:[%s14768_s1 + $0x98] sm:$0xf0] }
  0x43   : > { %v8111_v45 = vld [vmem:[%s14768_s1 + $0x228] sm:$0xf]  ;;  %v9769_v46 = vld [vmem:[%s14768_s1 + $0x230] sm:$0xf0]  ;;  %v8016_v47 = vor.u32 %v9745_v44, %v8015_v42  ;;  %v8003_v54 = vld [vmem:[%s14768_s1 + $0x150] sm:$0xf]  ;;  %v7908_v56 = vor.u32 %v9718_v53, %v7907_v51 }
  0x44   : > { %v8112_v48 = vor.u32 %v9769_v46, %v8111_v45  ;;  %v8207_v49 = vld [vmem:[%s14768_s1 + $0x2e8] sm:$0xf]  ;;  %v9793_v50 = vld [vmem:[%s14768_s1 + $0x2f0] sm:$0xf0]  ;;  %1815 = vmatpush.bf16.msra.mxu0 %v7920_v43  ;;  %v9742_v55 = vld [vmem:[%s14768_s1 + $0x158] sm:$0xf0] }
  0x45   : > { %v8208_v52 = vor.u32 %v9793_v50, %v8207_v49  ;;  %1912 = vmatpush.bf16.msra.mxu1 %v8016_v47  ;;  %v8004_v57 = vor.u32 %v9742_v55, %v8003_v54  ;;  %v8099_v58 = vld [vmem:[%s14768_s1 + $0x210] sm:$0xf]  ;;  %v9766_v59 = vld [vmem:[%s14768_s1 + $0x218] sm:$0xf0]  ;;  %v7895_v63 = vld [vmem:[%s14768_s1 + $0x78] sm:$0xf] }
  0x46   : > { %2009 = vmatpush.bf16.msra.mxu2 %v8112_v48  ;;  %v8195_v60 = vld [vmem:[%s14768_s1 + $0x2d0] sm:$0xf]  ;;  %v8100_v61 = vor.u32 %v9766_v59, %v8099_v58  ;;  %v9790_v62 = vld [vmem:[%s14768_s1 + $0x2d8] sm:$0xf0]  ;;  %v9715_v0 = vld [vmem:[%s14768_s1 + $0x80] sm:$0xf0] }
  0x47   : > { %2106 = vmatpush.bf16.msra.mxu3 %v8208_v52  ;;  %v8196_v1 = vor.u32 %v9790_v62, %v8195_v60  ;;  %v7991_v2 = vld [vmem:[%s14768_s1 + $0x138] sm:$0xf]  ;;  %v9739_v3 = vld [vmem:[%s14768_s1 + $0x140] sm:$0xf0]  ;;  %v7896_v5 = vor.u32 %v9715_v0, %v7895_v63  ;;  %v7883_v11 = vld [vmem:[%s14768_s1 + $0x60] sm:$0xf] }
  0x48   : > { %v8087_v4 = vld [vmem:[%s14768_s1 + $0x1f8] sm:$0xf]  ;;  %1816 = vmatpush.bf16.msra.mxu0 %v7908_v56  ;;  %v9763_v6 = vld [vmem:[%s14768_s1 + $0x200] sm:$0xf0]  ;;  %v7992_v9 = vor.u32 %v9739_v3, %v7991_v2  ;;  %v9712_v12 = vld [vmem:[%s14768_s1 + $0x68] sm:$0xf0] }
  0x49   : > { %v8183_v7 = vld [vmem:[%s14768_s1 + $0x2b8] sm:$0xf]  ;;  %v9787_v8 = vld [vmem:[%s14768_s1 + $0x2c0] sm:$0xf0]  ;;  %1913 = vmatpush.bf16.msra.mxu1 %v8004_v57  ;;  %v8088_v10 = vor.u32 %v9763_v6, %v8087_v4  ;;  %v7979_v13 = vld [vmem:[%s14768_s1 + $0x120] sm:$0xf]  ;;  %v7884_v20 = vor.u32 %v9712_v12, %v7883_v11 }
  0x4a   : > { %2010 = vmatpush.bf16.msra.mxu2 %v8100_v61  ;;  %v8184_v14 = vor.u32 %v9787_v8, %v8183_v7  ;;  %v9736_v15 = vld [vmem:[%s14768_s1 + $0x128] sm:$0xf0]  ;;  %v8075_v16 = vld [vmem:[%s14768_s1 + $0x1e0] sm:$0xf]  ;;  %v7871_v23 = vld [vmem:[%s14768_s1 + $0x48] sm:$0xf] }
  0x4b   : > { %2107 = vmatpush.bf16.msra.mxu3 %v8196_v1  ;;  %v9760_v17 = vld [vmem:[%s14768_s1 + $0x1e8] sm:$0xf0]  ;;  %v8171_v18 = vld [vmem:[%s14768_s1 + $0x2a0] sm:$0xf]  ;;  %v7980_v21 = vor.u32 %v9736_v15, %v7979_v13  ;;  %v9709_v24 = vld [vmem:[%s14768_s1 + $0x50] sm:$0xf0] }
  0x4c   : > { %v9784_v19 = vld [vmem:[%s14768_s1 + $0x2a8] sm:$0xf0]  ;;  %1817 = vmatpush.bf16.msra.mxu0 %v7896_v5  ;;  %v8076_v22 = vor.u32 %v9760_v17, %v8075_v16  ;;  %v7967_v25 = vld [vmem:[%s14768_s1 + $0x108] sm:$0xf]  ;;  %v9733_v27 = vld [vmem:[%s14768_s1 + $0x110] sm:$0xf0]  ;;  %v7872_v32 = vor.u32 %v9709_v24, %v7871_v23 }
  0x4d   : > { %1914 = vmatpush.bf16.msra.mxu1 %v7992_v9  ;;  %v8172_v26 = vor.u32 %v9784_v19, %v8171_v18  ;;  %v8063_v28 = vld [vmem:[%s14768_s1 + $0x1c8] sm:$0xf]  ;;  %v9757_v29 = vld [vmem:[%s14768_s1 + $0x1d0] sm:$0xf0]  ;;  %v7968_v33 = vor.u32 %v9733_v27, %v7967_v25  ;;  %v7859_v35 = vld [vmem:[%s14768_s1 + $0x30] sm:$0xf] }
  0x4e   : > { %2011 = vmatpush.bf16.msra.mxu2 %v8088_v10  ;;  %v8159_v30 = vld [vmem:[%s14768_s1 + $0x288] sm:$0xf]  ;;  %v9781_v31 = vld [vmem:[%s14768_s1 + $0x290] sm:$0xf0]  ;;  %v8064_v34 = vor.u32 %v9757_v29, %v8063_v28  ;;  %v9706_v36 = vld [vmem:[%s14768_s1 + $0x38] sm:$0xf0] }
  0x4f   : > { %2108 = vmatpush.bf16.msra.mxu3 %v8184_v14  ;;  %v7955_v37 = vld [vmem:[%s14768_s1 + $0xf0] sm:$0xf]  ;;  %v8160_v38 = vor.u32 %v9781_v31, %v8159_v30  ;;  %v9730_v39 = vld [vmem:[%s14768_s1 + $0xf8] sm:$0xf0]  ;;  %v7860_v44 = vor.u32 %v9706_v36, %v7859_v35  ;;  %v7847_v45 = vld [vmem:[%s14768_s1 + $0x18] sm:$0xf] }
  0x50   : > { %1818 = vmatpush.bf16.msra.mxu0 %v7884_v20  ;;  %v8051_v40 = vld [vmem:[%s14768_s1 + $0x1b0] sm:$0xf]  ;;  %v9754_v41 = vld [vmem:[%s14768_s1 + $0x1b8] sm:$0xf0]  ;;  %v7956_v46 = vor.u32 %v9730_v39, %v7955_v37  ;;  %v9703_v48 = vld [vmem:[%s14768_s1 + $0x20] sm:$0xf0] }
  0x51   : > { %1915 = vmatpush.bf16.msra.mxu1 %v7980_v21  ;;  %v8147_v42 = vld [vmem:[%s14768_s1 + $0x270] sm:$0xf]  ;;  %v9778_v43 = vld [vmem:[%s14768_s1 + $0x278] sm:$0xf0]  ;;  %v8052_v47 = vor.u32 %v9754_v41, %v8051_v40  ;;  %v7943_v49 = vld [vmem:[%s14768_s1 + $0xd8] sm:$0xf]  ;;  %v7848_v57 = vor.u32 %v9703_v48, %v7847_v45 }
  0x52   : > { %2012 = vmatpush.bf16.msra.mxu2 %v8076_v22  ;;  %v9727_v50 = vld [vmem:[%s14768_s1 + $0xe0] sm:$0xf0]  ;;  %v8148_v51 = vor.u32 %v9778_v43, %v8147_v42  ;;  %v8039_v52 = vld [vmem:[%s14768_s1 + $0x198] sm:$0xf]  ;;  %s653_s27 = sand.u32 1, %s10289_s30   ;;  %s7675_s18 = sshll.u32 %s7668_s12, 1 }
  0x53   : > { %2109 = vmatpush.bf16.msra.mxu3 %v8172_v26  ;;  %v9751_v53 = vld [vmem:[%s14768_s1 + $0x1a0] sm:$0xf0]  ;;  %v8135_v54 = vld [vmem:[%s14768_s1 + $0x258] sm:$0xf]  ;;  %v7835_v56 = vld [vmem:[%s14768_s1] sm:$0xf]  ;;  %v7944_v60 = vor.u32 %v9727_v50, %v7943_v49 }
  0x54   : > { %1819 = vmatpush.bf16.msra.mxu0 %v7872_v32  ;;  %v9775_v55 = vld [vmem:[%s14768_s1 + $0x260] sm:$0xf0]  ;;  %v9700_v58 = vld [vmem:[%s14768_s1 + $0x8] sm:$0xf0]  ;;  %v7931_v59 = vld [vmem:[%s14768_s1 + $0xc0] sm:$0xf]  ;;  %v8040_v61 = vor.u32 %v9751_v53, %v8039_v52 }
  0x55   : > { %1916 = vmatpush.bf16.msra.mxu1 %v7968_v33  ;;  %s10156_s22 = smul.u32 320, %s653_s27  ;;  %v9724_v62 = vld [vmem:[%s14768_s1 + $0xc8] sm:$0xf0]  ;;  %v8136_v63 = vor.u32 %v9775_v55, %v8135_v54  ;;  %v8027_v0 = vld [vmem:[%s14768_s1 + $0x180] sm:$0xf]  ;;  %v7836_v6 = vor.u32 %v9700_v58, %v7835_v56  ;;  %p690_p8 = scmp.lt.s32.totalorder %s7675_s18, 3 }
  0x56   : > { %2013 = vmatpush.bf16.msra.mxu2 %v8064_v34  ;;  %v9748_v1 = vld [vmem:[%s14768_s1 + $0x188] sm:$0xf0]  ;;  %v8123_v2 = vld [vmem:[%s14768_s1 + $0x240] sm:$0xf]  ;;  %v8017_v5 = vld [vmem:[%s14768_s1 + $0x174] sm:$0xf0]  ;;  %v7932_v9 = vor.u32 %v9724_v62, %v7931_v59 }
  0x57   : > { %2110 = vmatpush.bf16.msra.mxu3 %v8160_v38  ;;  %v9772_v3 = vld [vmem:[%s14768_s1 + $0x248] sm:$0xf0]  ;;  %v7921_v8 = vld [vmem:[%s14768_s1 + $0xb4] sm:$0xf0]  ;;  %v8028_v10 = vor.u32 %v9748_v1, %v8027_v0  ;;  %v8303_v13 = vld [vmem:[%s14768_s1 + $0x3a8] sm:$0xf] }
  0x58   : > { %1820 = vmatpush.bf16.msra.mxu0 %v7860_v44  ;;  %v9744_v4 = vld [vmem:[%s14768_s1 + $0x16c] sm:$0xf]  ;;  %v8124_v11 = vor.u32 %v9772_v3, %v8123_v2  ;;  %v9817_v14 = vld [vmem:[%s14768_s1 + $0x3b0] sm:$0xf0]  ;;  %s10680_s27 = scalar_lea.vmem [#allocation2], %s10156_s22  ;;  %s15033_s18 = smov (!%p690_p8, %s7675_s18), 3 }
  0x59   : > { %1917 = vmatpush.bf16.msra.mxu1 %v7956_v46  ;;  %v9720_v7 = vld [vmem:[%s14768_s1 + $0xac] sm:$0xf]  ;;  %v8020_v12 = vor.u32 %v9744_v4, %v8017_v5  ;;  %v10683_v15 = vld [vmem:[%s10680_s27] sm:$0xff]  ;;  %v10689_v18 = vld [vmem:[%s10680_s27 + $0x10] sm:$0xff]  ;;  %v8304_v20 = vor.u32 %v9817_v14, %v8303_v13 }
  0x5a   : > { %2014 = vmatpush.bf16.msra.mxu2 %v8052_v47  ;;  %v7924_v16 = vor.u32 %v9720_v7, %v7921_v8  ;;  %v10686_v17 = vld [vmem:[%s10680_s27 + $0x8] sm:$0xff]  ;;  %v10692_v19 = vld [vmem:[%s10680_s27 + $0x18] sm:$0xff]  ;;  %v9741_v21 = vld [vmem:[%s14768_s1 + $0x154] sm:$0xf] }
  0x5b   : > { %2111 = vmatpush.bf16.msra.mxu3 %v8148_v51  ;;  %v8005_v22 = vld [vmem:[%s14768_s1 + $0x15c] sm:$0xf0]  ;;  %v8291_v23 = vld [vmem:[%s14768_s1 + $0x390] sm:$0xf]  ;;  %v9814_v25 = vld [vmem:[%s14768_s1 + $0x398] sm:$0xf0] }
  0x5c   : > { %1821 = vmatpush.bf16.msra.mxu0 %v7848_v57  ;;  %v8008_v24 = vor.u32 %v9741_v21, %v8005_v22  ;;  %v9717_v26 = vld [vmem:[%s14768_s1 + $0x94] sm:$0xf]  ;;  %v7909_v27 = vld [vmem:[%s14768_s1 + $0x9c] sm:$0xf0]  ;;  %v8292_v28 = vor.u32 %v9814_v25, %v8291_v23  ;;  %v10720_v31 = vld [vmem:[%s10680_s27 + $0x28] sm:$0xff] }
  0x5d   : > { %1918 = vmatpush.bf16.msra.mxu1 %v7944_v60  ;;  %v7912_v29 = vor.u32 %v9717_v26, %v7909_v27  ;;  %v10717_v30 = vld [vmem:[%s10680_s27 + $0x20] sm:$0xff]  ;;  %v9768_v32 = vld [vmem:[%s14768_s1 + $0x22c] sm:$0xf]  ;;  %v8113_v33 = vld [vmem:[%s14768_s1 + $0x234] sm:$0xf0] }
  0x5e   : > { %2015 = vmatpush.bf16.msra.mxu2 %v8040_v61  ;;  %v8116_v34 = vor.u32 %v9768_v32, %v8113_v33  ;;  %v10733_v35 = vld [vmem:[%s10680_s27 + $0x30] sm:$0xff]  ;;  %v10736_v36 = vld [vmem:[%s10680_s27 + $0x38] sm:$0xff]  ;;  %v7993_v38 = vld [vmem:[%s14768_s1 + $0x144] sm:$0xf0] }
  0x5f   : > { %2112 = vmatpush.bf16.msra.mxu3 %v8136_v63  ;;  %v9738_v37 = vld [vmem:[%s14768_s1 + $0x13c] sm:$0xf]  ;;  %v8279_v39 = vld [vmem:[%s14768_s1 + $0x378] sm:$0xf]  ;;  %v9811_v41 = vld [vmem:[%s14768_s1 + $0x380] sm:$0xf0] }
  0x60   : > { %1822 = vmatpush.bf16.msra.mxu0 %v7836_v6  ;;  %v7996_v40 = vor.u32 %v9738_v37, %v7993_v38  ;;  %v9714_v42 = vld [vmem:[%s14768_s1 + $0x7c] sm:$0xf]  ;;  %v7897_v43 = vld [vmem:[%s14768_s1 + $0x84] sm:$0xf0]  ;;  %v8280_v44 = vor.u32 %v9811_v41, %v8279_v39  ;;  %v10761_v46 = vld [vmem:[%s10680_s27 + $0x40] sm:$0xff] }
  0x61   : > { %1919 = vmatpush.bf16.msra.mxu1 %v7932_v9  ;;  %v7900_v45 = vor.u32 %v9714_v42, %v7897_v43  ;;  %v10764_v47 = vld [vmem:[%s10680_s27 + $0x48] sm:$0xff]  ;;  %v9765_v48 = vld [vmem:[%s14768_s1 + $0x214] sm:$0xf]  ;;  %v8101_v49 = vld [vmem:[%s14768_s1 + $0x21c] sm:$0xf0] }
  0x62   : > { %2016 = vmatpush.bf16.msra.mxu2 %v8028_v10  ;;  %v8104_v50 = vor.u32 %v9765_v48, %v8101_v49  ;;  %v10777_v51 = vld [vmem:[%s10680_s27 + $0x50] sm:$0xff]  ;;  %v10780_v52 = vld [vmem:[%s10680_s27 + $0x58] sm:$0xff]  ;;  %v9735_v53 = vld [vmem:[%s14768_s1 + $0x124] sm:$0xf] }
  0x63   : > { %2113 = vmatpush.bf16.msra.mxu3 %v8124_v11  ;;  %1823 = vmatmul.bf16.vlgmr.msra.gmra.mxu0 %v10683_v15  ;;  %v7981_v54 = vld [vmem:[%s14768_s1 + $0x12c] sm:$0xf0]  ;;  %v8267_v55 = vld [vmem:[%s14768_s1 + $0x360] sm:$0xf]  ;;  %v9808_v57 = vld [vmem:[%s14768_s1 + $0x368] sm:$0xf0] }
  0x64   : > { %1920 = vmatmul.bf16.vlgmr.msra.gmra.mxu1 %v10686_v17  ;;  %2203 = vmatpush.bf16.msrb.mxu0 %v8304_v20  ;;  %v7984_v56 = vor.u32 %v9735_v53, %v7981_v54  ;;  %v8268_v58 = vor.u32 %v9808_v57, %v8267_v55  ;;  %v10799_v59 = vld [vmem:[%s10680_s27 + $0x60] sm:$0xff]  ;;  %v10802_v60 = vld [vmem:[%s10680_s27 + $0x68] sm:$0xff]  ;;  %v7885_v62 = vld [vmem:[%s14768_s1 + $0x6c] sm:$0xf0] }
  0x65   : > { %2300 = vmatpush.bf16.msrb.mxu1 %v7924_v16  ;;  %2017 = vmatmul.bf16.vlgmr.msra.gmra.mxu2 %v10689_v18  ;;  %v9711_v61 = vld [vmem:[%s14768_s1 + $0x64] sm:$0xf]  ;;  %v10815_v0 = vld [vmem:[%s10680_s27 + $0x70] sm:$0xff]  ;;  %v10818_v1 = vld [vmem:[%s10680_s27 + $0x78] sm:$0xff] }
  0x66   : > { %2397 = vmatpush.bf16.msrb.mxu2 %v8020_v12  ;;  %2114 = vmatmul.bf16.vlgmr.msra.gmra.mxu3 %v10692_v19  ;;  %v7888_v63 = vor.u32 %v9711_v61, %v7885_v62  ;;  %v9762_v2 = vld [vmem:[%s14768_s1 + $0x1fc] sm:$0xf]  ;;  %v8089_v3 = vld [vmem:[%s14768_s1 + $0x204] sm:$0xf0]  ;;  %v10831_v5 = vld [vmem:[%s10680_s27 + $0x80] sm:$0xff] }
  0x67   : > { %2494 = vmatpush.bf16.msrb.mxu3 %v8116_v34  ;;  %v8092_v4 = vor.u32 %v9762_v2, %v8089_v3  ;;  %v9677_v6 = vld [vmem:[%s10680_s27 + $0x88] sm:$0xff]  ;;  %v7969_v8 = vld [vmem:[%s14768_s1 + $0x114] sm:$0xf0]  ;;  %v9805_v11 = vld [vmem:[%s14768_s1 + $0x350] sm:$0xf0] }
  0x68   : > { %2204 = vmatpush.bf16.msrb.mxu0 %v8292_v28  ;;  %v9732_v7 = vld [vmem:[%s14768_s1 + $0x10c] sm:$0xf]  ;;  %v8255_v9 = vld [vmem:[%s14768_s1 + $0x348] sm:$0xf]  ;;  %v10852_v13 = vld [vmem:[%s14769_s2] sm:$0x7] }
  0x69   : > { %2301 = vmatpush.bf16.msrb.mxu1 %v7912_v29  ;;  %v7972_v10 = vor.u32 %v9732_v7, %v7969_v8  ;;  %v8256_v12 = vor.u32 %v9805_v11, %v8255_v9  ;;  %v9708_v14 = vld [vmem:[%s14768_s1 + $0x4c] sm:$0xf]  ;;  %v7873_v16 = vld [vmem:[%s14768_s1 + $0x54] sm:$0xf0]  ;;  %v10861_v21 = vperm.slane %v10852_v13, 0  ;;  %v10864_v23 = vld [vmem:[%s10680_s27 + $0x90] sm:$0xff] }
  0x6a   : > { %2398 = vmatpush.bf16.msrb.mxu2 %v8008_v24  ;;  %v7876_v20 = vor.u32 %v9708_v14, %v7873_v16  ;;  %v9679_v26 = vld [vmem:[%s10680_s27 + $0x98] sm:$0xff]  ;;  %v8077_v41 = vld [vmem:[%s14768_s1 + $0x1ec] sm:$0xf0]  ;;  %v10880_v49 = vld [vmem:[%s10680_s27 + $0xa0] sm:$0xff] }
  0x6b   : > { %2495 = vmatpush.bf16.msrb.mxu3 %v8104_v50  ;;  %v9681_v54 = vld [vmem:[%s10680_s27 + $0xa8] sm:$0xff]  ;;  %v8243_v9 = vld [vmem:[%s14768_s1 + $0x330] sm:$0xf]  ;;  %v9705_v11 = vld [vmem:[%s14768_s1 + $0x34] sm:$0xf] }
  0x6c   : > { %2205 = vmatpush.bf16.msrb.mxu0 %v8280_v44  ;;  %v7861_v14 = vld [vmem:[%s14768_s1 + $0x3c] sm:$0xf0] }
  0x6d   : > { %2302 = vmatpush.bf16.msrb.mxu1 %v7900_v45  ;;  %v7864_v16 = vor.u32 %v9705_v11, %v7861_v14 }
  0x6e   : > { %2399 = vmatpush.bf16.msrb.mxu2 %v7996_v40  ;;  %v9759_v40 = vld [vmem:[%s14768_s1 + $0x1e4] sm:$0xf] }
  0x6f   : > { %2496 = vmatpush.bf16.msrb.mxu3 %v8092_v4  ;;  %v8080_v42 = vor.u32 %v9759_v40, %v8077_v41  ;;  %v9729_v4 = vld [vmem:[%s14768_s1 + $0xf4] sm:$0xf] }
  0x70   : > { %2206 = vmatpush.bf16.msrb.mxu0 %v8268_v58 }
  0x71   : > { %2303 = vmatpush.bf16.msrb.mxu1 %v7888_v63 }
  0x72   : > { %2400 = vmatpush.bf16.msrb.mxu2 %v7984_v56 }
  0x73   : > { %1828 = vmatmul.bf16.gmra.mxu0 %v10689_v18  ;;  %2497 = vmatpush.bf16.msrb.mxu3 %v8080_v42 }
  0x74   : > { %1925 = vmatmul.bf16.gmra.mxu1 %v10692_v19  ;;  %2207 = vmatpush.bf16.msrb.mxu0 %v8256_v12 }
  0x75   : > { %2022 = vmatmul.bf16.gmra.mxu2 %v10717_v30  ;;  %2304 = vmatpush.bf16.msrb.mxu1 %v7876_v20 }
  0x76   : > { %2119 = vmatmul.bf16.gmra.mxu3 %v10720_v31  ;;  %2401 = vmatpush.bf16.msrb.mxu2 %v7972_v10  ;;  %v9802_v10 = vld [vmem:[%s14768_s1 + $0x338] sm:$0xf0] }
  0x77   : > { %v8244_v12 = vor.u32 %v9802_v10, %v8243_v9 }
  0x79   : > { %2208 = vmatpush.bf16.msrb.mxu0 %v8244_v12  ;;  %2305 = vmatpush.bf16.msrb.mxu1 %v7864_v16  ;;  %v9726_v16 = vld [vmem:[%s14768_s1 + $0xdc] sm:$0xf] }
  0x83   : > { %1833 = vmatmul.bf16.gmra.mxu0 %v10717_v30 }
  0x84   : > { %1930 = vmatmul.bf16.gmra.mxu1 %v10720_v31 }
  0x85   : > { %2027 = vmatmul.bf16.gmra.mxu2 %v10733_v35 }
  0x86   : > { %2124 = vmatmul.bf16.gmra.mxu3 %v10736_v36 }
  0x93   : > { %1838 = vmatmul.bf16.gmra.mxu0 %v10733_v35 }
  0x94   : > { %1935 = vmatmul.bf16.gmra.mxu1 %v10736_v36 }
  0x95   : > { %2032 = vmatmul.bf16.gmra.mxu2 %v10761_v46 }
  0x96   : > { %2129 = vmatmul.bf16.gmra.mxu3 %v10764_v47 }
  0xa3   : > { %1843 = vmatmul.bf16.gmra.mxu0 %v10761_v46 }
  0xa4   : > { %1940 = vmatmul.bf16.gmra.mxu1 %v10764_v47 }
  0xa5   : > { %2037 = vmatmul.bf16.gmra.mxu2 %v10777_v51 }
  0xa6   : > { %2134 = vmatmul.bf16.gmra.mxu3 %v10780_v52 }
  0xb3   : > { %1848 = vmatmul.bf16.gmra.mxu0 %v10777_v51 }
  0xb4   : > { %1945 = vmatmul.bf16.gmra.mxu1 %v10780_v52 }
  0xb5   : > { %2042 = vmatmul.bf16.gmra.mxu2 %v10799_v59 }
  0xb6   : > { %2139 = vmatmul.bf16.gmra.mxu3 %v10802_v60 }
  0xc3   : > { %1853 = vmatmul.bf16.gmra.mxu0 %v10799_v59 }
  0xc4   : > { %1950 = vmatmul.bf16.gmra.mxu1 %v10802_v60 }
  0xc5   : > { %2047 = vmatmul.bf16.gmra.mxu2 %v10815_v0 }
  0xc6   : > { %2144 = vmatmul.bf16.gmra.mxu3 %v10818_v1 }
  0xd3   : > { %1858 = vmatmul.bf16.gmra.mxu0 %v10815_v0 }
  0xd4   : > { %1955 = vmatmul.bf16.gmra.mxu1 %v10818_v1 }
  0xd5   : > { %2052 = vmatmul.bf16.gmra.mxu2 %v10831_v5 }
  0xd6   : > { %2149 = vmatmul.bf16.gmra.mxu3 %v9677_v6 }
  0xe0   : > { %v1824_v22 = vpop.f32.mrf.mxu0 }
  0xe1   : > { %v1825_v24 = vadd.f32 %v1824_v22, %v10861_v21  ;;  %v1921_v25 = vpop.f32.mrf.mxu1 }
  0xe3   : > { %v1922_v27 = vadd.f32 %v1921_v25, %v1825_v24  ;;  %1863 = vmatmul.bf16.gmra.mxu0 %v10831_v5 }
  0xe4   : > { %1960 = vmatmul.bf16.gmra.mxu1 %v9677_v6  ;;  %v7957_v6 = vld [vmem:[%s14768_s1 + $0xfc] sm:$0xf0] }
  0xe5   : > { %2057 = vmatmul.bf16.gmra.mxu2 %v10864_v23  ;;  %v7960_v8 = vor.u32 %v9729_v4, %v7957_v6 }
  0xe6   : > { %2154 = vmatmul.bf16.gmra.mxu3 %v9679_v26 }
  0xe7   : > { %2402 = vmatpush.bf16.msrb.mxu2 %v7960_v8 }
  0xe8   : > { %v2018_v28 = vpop.f32.mrf.mxu2  ;;  %v1826_v33 = vpop.f32.mrf.mxu0 }
  0xe9   : > { %v2019_v29 = vadd.f32 %v2018_v28, %v1922_v27  ;;  %v2115_v32 = vpop.f32.mrf.mxu3  ;;  %v1827_v34 = vadd.f32 %v1826_v33, %v10861_v21  ;;  %v1923_v37 = vpop.f32.mrf.mxu1 }
  0xeb   : > { %v10871_v38 = vadd.f32 %v2115_v32, %v2019_v29  ;;  %v1924_v39 = vadd.f32 %v1923_v37, %v1827_v34  ;;  %v9683_v29 = vld [vmem:[%s10680_s27 + $0xb8] sm:$0xff] }
  0xf0   : > { %v2020_v43 = vpop.f32.mrf.mxu2  ;;  %v1829_v48 = vpop.f32.mrf.mxu0 }
  0xf1   : > { %v2021_v44 = vadd.f32 %v2020_v43, %v1924_v39  ;;  %v2117_v45 = vpop.f32.mrf.mxu3  ;;  %v1830_v50 = vadd.f32 %v1829_v48, %v10861_v21  ;;  %v1926_v53 = vpop.f32.mrf.mxu1  ;;  %v8065_v48 = vld [vmem:[%s14768_s1 + $0x1d4] sm:$0xf0] }
  0xf3   : > { %v10884_v55 = vadd.f32 %v2117_v45, %v2021_v44  ;;  %v1927_v56 = vadd.f32 %v1926_v53, %v1830_v50  ;;  %1868 = vmatmul.bf16.gmra.mxu0 %v10864_v23  ;;  %v9756_v45 = vld [vmem:[%s14768_s1 + $0x1cc] sm:$0xf] }
  0xf4   : > { %1965 = vmatmul.bf16.gmra.mxu1 %v9679_v26  ;;  %v10910_v26 = vld [vmem:[%s10680_s27 + $0xb0] sm:$0xff]  ;;  %v8068_v50 = vor.u32 %v9756_v45, %v8065_v48  ;;  %v7849_v45 = vld [vmem:[%s14768_s1 + $0x24] sm:$0xf0] }
  0xf5   : > { %2062 = vmatmul.bf16.gmra.mxu2 %v10880_v49 }
  0xf6   : > { %2159 = vmatmul.bf16.gmra.mxu3 %v9681_v54 }
  0xf7   : > { %2498 = vmatpush.bf16.msrb.mxu3 %v8068_v50 }
  0xf8   : > { %v2023_v57 = vpop.f32.mrf.mxu2  ;;  %v1831_v62 = vpop.f32.mrf.mxu0 }
  0xf9   : > { %v2024_v58 = vadd.f32 %v2023_v57, %v1927_v56  ;;  %v2120_v61 = vpop.f32.mrf.mxu3  ;;  %v1832_v63 = vadd.f32 %v1831_v62, %v10861_v21  ;;  %v1928_v2 = vpop.f32.mrf.mxu1 }
  0xfb   : > { %v10889_v3 = vadd.f32 %v2120_v61, %v2024_v58  ;;  %v1929_v7 = vadd.f32 %v1928_v2, %v1832_v63  ;;  %v10928_v58 = vld [vmem:[%s10680_s27 + $0xc0] sm:$0xff]  ;;  %v9685_v63 = vld [vmem:[%s10680_s27 + $0xc8] sm:$0xff] }
 0x100   : > { %v2025_v20 = vpop.f32.mrf.mxu2  ;;  %v1834_v25 = vpop.f32.mrf.mxu0 }
 0x101   : > { %v2026_v22 = vadd.f32 %v2025_v20, %v1929_v7  ;;  %v2122_v24 = vpop.f32.mrf.mxu3  ;;  %v1835_v27 = vadd.f32 %v1834_v25, %v10861_v21  ;;  %v1931_v28 = vpop.f32.mrf.mxu1  ;;  %v7945_v20 = vld [vmem:[%s14768_s1 + $0xe4] sm:$0xf0]  ;;  %v9799_v25 = vld [vmem:[%s14768_s1 + $0x320] sm:$0xf0] }
 0x103   : > { %v10914_v32 = vadd.f32 %v2122_v24, %v2026_v22  ;;  %v1932_v33 = vadd.f32 %v1931_v28, %v1835_v27  ;;  %1873 = vmatmul.bf16.gmra.mxu0 %v10880_v49  ;;  %v8231_v22 = vld [vmem:[%s14768_s1 + $0x318] sm:$0xf]  ;;  %v7948_v24 = vor.u32 %v9726_v16, %v7945_v20  ;;  %v9689_v16 = vld [vmem:[%s10680_s27 + $0xe8] sm:$0xff] }
 0x104   : > { %1970 = vmatmul.bf16.gmra.mxu1 %v9681_v54  ;;  %v8232_v27 = vor.u32 %v9799_v25, %v8231_v22  ;;  %v8053_v25 = vld [vmem:[%s14768_s1 + $0x1bc] sm:$0xf0] }
 0x105   : > { %2067 = vmatmul.bf16.gmra.mxu2 %v10910_v26 }
 0x106   : > { %2164 = vmatmul.bf16.gmra.mxu3 %v9683_v29  ;;  %2403 = vmatpush.bf16.msrb.mxu2 %v7948_v24  ;;  %v9753_v24 = vld [vmem:[%s14768_s1 + $0x1b4] sm:$0xf] }
 0x107   : > { %2209 = vmatpush.bf16.msrb.mxu0 %v8232_v27  ;;  %v8056_v27 = vor.u32 %v9753_v24, %v8053_v25  ;;  %v7837_v24 = vld [vmem:[%s14768_s1 + $0xc] sm:$0xf0] }
 0x108   : > { %v2028_v34 = vpop.f32.mrf.mxu2  ;;  %v1836_v40 = vpop.f32.mrf.mxu0 }
 0x109   : > { %v2029_v37 = vadd.f32 %v2028_v34, %v1932_v33  ;;  %v2125_v39 = vpop.f32.mrf.mxu3  ;;  %v1837_v41 = vadd.f32 %v1836_v40, %v10861_v21  ;;  %v1933_v42 = vpop.f32.mrf.mxu1  ;;  %2499 = vmatpush.bf16.msrb.mxu3 %v8056_v27 }
 0x10b   : > { %v10919_v43 = vadd.f32 %v2125_v39, %v2029_v37  ;;  %v1934_v44 = vadd.f32 %v1933_v42, %v1837_v41  ;;  %v10952_v37 = vld [vmem:[%s10680_s27 + $0xd0] sm:$0xff]  ;;  %v9687_v41 = vld [vmem:[%s10680_s27 + $0xd8] sm:$0xff] }
 0x110   : > { %v2030_v53 = vpop.f32.mrf.mxu2  ;;  %v1839_v57 = vpop.f32.mrf.mxu0 }
 0x111   : > { %v2031_v54 = vadd.f32 %v2030_v53, %v1934_v44  ;;  %v2127_v56 = vpop.f32.mrf.mxu3  ;;  %v1840_v61 = vadd.f32 %v1839_v57, %v10861_v21  ;;  %v1936_v62 = vpop.f32.mrf.mxu1  ;;  %v9702_v44 = vld [vmem:[%s14768_s1 + $0x1c] sm:$0xf] }
 0x112   : > { %v7852_v50 = vor.u32 %v9702_v44, %v7849_v45 }
 0x113   : > { %v10932_v2 = vadd.f32 %v2127_v56, %v2031_v54  ;;  %v1937_v4 = vadd.f32 %v1936_v62, %v1840_v61  ;;  %1878 = vmatmul.bf16.gmra.mxu0 %v10910_v26 }
 0x114   : > { %1975 = vmatmul.bf16.gmra.mxu1 %v9683_v29 }
 0x115   : > { %2072 = vmatmul.bf16.gmra.mxu2 %v10928_v58  ;;  %2306 = vmatpush.bf16.msrb.mxu1 %v7852_v50 }
 0x116   : > { %2169 = vmatmul.bf16.gmra.mxu3 %v9685_v63 }
 0x118   : > { %v2033_v6 = vpop.f32.mrf.mxu2  ;;  %v1841_v9 = vpop.f32.mrf.mxu0 }
 0x119   : > { %v2034_v7 = vadd.f32 %v2033_v6, %v1937_v4  ;;  %v2130_v8 = vpop.f32.mrf.mxu3  ;;  %v1842_v10 = vadd.f32 %v1841_v9, %v10861_v21  ;;  %v1938_v11 = vpop.f32.mrf.mxu1 }
 0x11b   : > { %v10937_v12 = vadd.f32 %v2130_v8, %v2034_v7  ;;  %v1939_v14 = vadd.f32 %v1938_v11, %v1842_v10  ;;  %v10970_v10 = vld [vmem:[%s10680_s27 + $0xe0] sm:$0xff] }
 0x120   : > { %v2035_v28 = vpop.f32.mrf.mxu2  ;;  %v1844_v34 = vpop.f32.mrf.mxu0 }
 0x121   : > { %v2036_v29 = vadd.f32 %v2035_v28, %v1939_v14  ;;  %v2132_v33 = vpop.f32.mrf.mxu3  ;;  %v1845_v39 = vadd.f32 %v1844_v34, %v10861_v21  ;;  %v1941_v40 = vpop.f32.mrf.mxu1 }
 0x123   : > { %v10956_v42 = vadd.f32 %v2132_v33, %v2036_v29  ;;  %v1942_v48 = vadd.f32 %v1941_v40, %v1845_v39  ;;  %1883 = vmatmul.bf16.gmra.mxu0 %v10928_v58 }
 0x124   : > { %1980 = vmatmul.bf16.gmra.mxu1 %v9685_v63 }
 0x125   : > { %2077 = vmatmul.bf16.gmra.mxu2 %v10952_v37 }
 0x126   : > { %2174 = vmatmul.bf16.gmra.mxu3 %v9687_v41 }
 0x128   : > { %v2038_v53 = vpop.f32.mrf.mxu2  ;;  %v1846_v57 = vpop.f32.mrf.mxu0 }
 0x129   : > { %v2039_v54 = vadd.f32 %v2038_v53, %v1942_v48  ;;  %v2135_v56 = vpop.f32.mrf.mxu3  ;;  %v1847_v61 = vadd.f32 %v1846_v57, %v10861_v21  ;;  %v1943_v62 = vpop.f32.mrf.mxu1 }
 0x12b   : > { %v10967_v4 = vadd.f32 %v2135_v56, %v2039_v54  ;;  %v1944_v6 = vadd.f32 %v1943_v62, %v1847_v61  ;;  %v10988_v54 = vld [vmem:[%s10680_s27 + $0xf0] sm:$0xff]  ;;  %v9691_v61 = vld [vmem:[%s10680_s27 + $0xf8] sm:$0xff] }
 0x130   : > { %v2040_v7 = vpop.f32.mrf.mxu2  ;;  %v1849_v63 = vpop.f32.mrf.mxu0 }
 0x131   : > { %v2041_v8 = vadd.f32 %v2040_v7, %v1944_v6  ;;  %v2137_v9 = vpop.f32.mrf.mxu3  ;;  %v1850_v11 = vadd.f32 %v1849_v63, %v10861_v21  ;;  %v1946_v14 = vpop.f32.mrf.mxu1  ;;  %v9723_v6 = vld [vmem:[%s14768_s1 + $0xc4] sm:$0xf]  ;;  %v7933_v7 = vld [vmem:[%s14768_s1 + $0xcc] sm:$0xf0]  ;;  %v8219_v63 = vld [vmem:[%s14768_s1 + $0x300] sm:$0xf] }
 0x133   : > { %v10974_v20 = vadd.f32 %v2137_v9, %v2041_v8  ;;  %v1947_v22 = vadd.f32 %v1946_v14, %v1850_v11  ;;  %1888 = vmatmul.bf16.gmra.mxu0 %v10952_v37  ;;  %v7936_v9 = vor.u32 %v9723_v6, %v7933_v7  ;;  %v9796_v11 = vld [vmem:[%s14768_s1 + $0x308] sm:$0xf0] }
 0x134   : > { %1985 = vmatmul.bf16.gmra.mxu1 %v9687_v41  ;;  %v8220_v14 = vor.u32 %v9796_v11, %v8219_v63  ;;  %v9693_v6 = vld [vmem:[%s10680_s27 + $0x108] sm:$0xff] }
 0x135   : > { %2082 = vmatmul.bf16.gmra.mxu2 %v10970_v10  ;;  %v8041_v63 = vld [vmem:[%s14768_s1 + $0x1a4] sm:$0xf0] }
 0x136   : > { %2179 = vmatmul.bf16.gmra.mxu3 %v9689_v16  ;;  %2404 = vmatpush.bf16.msrb.mxu2 %v7936_v9  ;;  %v9750_v9 = vld [vmem:[%s14768_s1 + $0x19c] sm:$0xf] }
 0x137   : > { %2210 = vmatpush.bf16.msrb.mxu0 %v8220_v14  ;;  %v8044_v11 = vor.u32 %v9750_v9, %v8041_v63 }
 0x138   : > { %v2043_v28 = vpop.f32.mrf.mxu2  ;;  %v1851_v34 = vpop.f32.mrf.mxu0 }
 0x139   : > { %v2044_v29 = vadd.f32 %v2043_v28, %v1947_v22  ;;  %v2140_v33 = vpop.f32.mrf.mxu3  ;;  %v1852_v39 = vadd.f32 %v1851_v34, %v10861_v21  ;;  %v1948_v40 = vpop.f32.mrf.mxu1  ;;  %v9699_v22 = vld [vmem:[%s14768_s1 + $0x4] sm:$0xf]  ;;  %2500 = vmatpush.bf16.msrb.mxu3 %v8044_v11  ;;  %v7927_v11 = vld [vmem:[%s14768_s1 + $0xb0] sm:$0xf] }
 0x13a   : > { %v7840_v25 = vor.u32 %v9699_v22, %v7837_v24 }
 0x13b   : > { %v10985_v44 = vadd.f32 %v2140_v33, %v2044_v29  ;;  %v1949_v45 = vadd.f32 %v1948_v40, %v1852_v39 }
 0x13c   : > { %2307 = vmatpush.bf16.msrb.mxu1 %v7840_v25 }
 0x140   : > { %v2045_v48 = vpop.f32.mrf.mxu2  ;;  %v1854_v53 = vpop.f32.mrf.mxu0 }
 0x141   : > { %v2046_v50 = vadd.f32 %v2045_v48, %v1949_v45  ;;  %v2142_v41 = vpop.f32.mrf.mxu3  ;;  %v1855_v56 = vadd.f32 %v1854_v53, %v10861_v21  ;;  %v1951_v57 = vpop.f32.mrf.mxu1  ;;  %v11018_v53 = vld [vmem:[%s10680_s27 + $0x100] sm:$0xff] }
 0x143   : > { %v10992_v62 = vadd.f32 %v2142_v41, %v2046_v50  ;;  %v1952_v8 = vadd.f32 %v1951_v57, %v1855_v56  ;;  %1893 = vmatmul.bf16.gmra.mxu0 %v10970_v10 }
 0x144   : > { %1990 = vmatmul.bf16.gmra.mxu1 %v9689_v16 }
 0x145   : > { %2087 = vmatmul.bf16.gmra.mxu2 %v10988_v54 }
 0x146   : > { %2184 = vmatmul.bf16.gmra.mxu3 %v9691_v61 }
 0x148   : > { %v2048_v27 = vpop.f32.mrf.mxu2  ;;  %v1856_v29 = vpop.f32.mrf.mxu0 }
 0x149   : > { %v2049_v28 = vadd.f32 %v2048_v27, %v1952_v8  ;;  %v2145_v16 = vpop.f32.mrf.mxu3  ;;  %v1857_v33 = vadd.f32 %v1856_v29, %v10861_v21  ;;  %v1953_v34 = vpop.f32.mrf.mxu1 }
 0x14b   : > { %v11015_v39 = vadd.f32 %v2145_v16, %v2049_v28  ;;  %v1954_v40 = vadd.f32 %v1953_v34, %v1857_v33  ;;  %v9747_v33 = vld [vmem:[%s14768_s1 + $0x184] sm:$0xf]  ;;  %v8029_v34 = vld [vmem:[%s14768_s1 + $0x18c] sm:$0xf0] }
 0x150   : > { %v2050_v45 = vpop.f32.mrf.mxu2  ;;  %v1859_v41 = vpop.f32.mrf.mxu0 }
 0x151   : > { %v2051_v48 = vadd.f32 %v2050_v45, %v1954_v40  ;;  %v2147_v50 = vpop.f32.mrf.mxu3  ;;  %v1860_v56 = vadd.f32 %v1859_v41, %v10861_v21  ;;  %v1956_v57 = vpop.f32.mrf.mxu1  ;;  %v8032_v41 = vor.u32 %v9747_v33, %v8029_v34 }
 0x153   : > { %v11022_v7 = vadd.f32 %v2147_v50, %v2051_v48  ;;  %v1957_v8 = vadd.f32 %v1956_v57, %v1860_v56  ;;  %1898 = vmatmul.bf16.gmra.mxu0 %v10988_v54  ;;  %v11042_v50 = vld [vmem:[%s10680_s27 + $0x110] sm:$0xff]  ;;  %2501 = vmatpush.bf16.msrb.mxu3 %v8032_v41 }
 0x154   : > { %1995 = vmatmul.bf16.gmra.mxu1 %v9691_v61 }
 0x155   : > { %2092 = vmatmul.bf16.gmra.mxu2 %v11018_v53 }
 0x156   : > { %2189 = vmatmul.bf16.gmra.mxu3 %v9693_v6 }
 0x158   : > { %v2053_v14 = vpop.f32.mrf.mxu2  ;;  %v1861_v25 = vpop.f32.mrf.mxu0 }
 0x159   : > { %v2054_v22 = vadd.f32 %v2053_v14, %v1957_v8  ;;  %v2150_v24 = vpop.f32.mrf.mxu3  ;;  %v1862_v61 = vadd.f32 %v1861_v25, %v10861_v21  ;;  %v1958_v27 = vpop.f32.mrf.mxu1  ;;  %v9695_v8 = vld [vmem:[%s10680_s27 + $0x118] sm:$0xff] }
 0x15a   : > { %v9722_v14 = vld [vmem:[%s14768_s1 + $0xb8] sm:$0xf0] }
 0x15b   : > { %v11033_v28 = vadd.f32 %v2150_v24, %v2054_v22  ;;  %v1959_v16 = vadd.f32 %v1958_v27, %v1862_v61  ;;  %v9792_v22 = vld [vmem:[%s14768_s1 + $0x2ec] sm:$0xf]  ;;  %v7928_v24 = vor.u32 %v9722_v14, %v7927_v11 }
 0x15d   : > { %2785 = vmatpush.bf16.msra.mxu2 %v7928_v24 }
 0x160   : > { %v2055_v29 = vpop.f32.mrf.mxu2  ;;  %v1864_v48 = vpop.f32.mrf.mxu0 }
 0x161   : > { %v2056_v40 = vadd.f32 %v2055_v29, %v1959_v16  ;;  %v2152_v45 = vpop.f32.mrf.mxu3  ;;  %v1865_v56 = vadd.f32 %v1864_v48, %v10861_v21  ;;  %v1961_v57 = vpop.f32.mrf.mxu1  ;;  %v8305_v48 = vld [vmem:[%s14768_s1 + $0x3b4] sm:$0xf0] }
 0x163   : > { %v11046_v9 = vadd.f32 %v2152_v45, %v2056_v40  ;;  %v1962_v63 = vadd.f32 %v1961_v57, %v1865_v56  ;;  %1903 = vmatmul.bf16.gmra.mxu0 %v11018_v53  ;;  %v9816_v45 = vld [vmem:[%s14768_s1 + $0x3ac] sm:$0xf] }
 0x164   : > { %2000 = vmatmul.bf16.gmra.mxu1 %v9693_v6  ;;  %v8209_v6 = vld [vmem:[%s14768_s1 + $0x2f4] sm:$0xf0]  ;;  %v8308_v56 = vor.u32 %v9816_v45, %v8305_v48 }
 0x165   : > { %2097 = vmatmul.bf16.gmra.mxu2 %v11042_v50  ;;  %v8212_v61 = vor.u32 %v9792_v22, %v8209_v6  ;;  %v11072_v22 = vld [vmem:[%s10680_s27 + $0x120] sm:$0xff] }
 0x166   : > { %2194 = vmatmul.bf16.gmra.mxu3 %v9695_v8  ;;  %2688 = vmatpush.bf16.msra.mxu1 %v8308_v56 }
 0x167   : > { %2591 = vmatpush.bf16.msra.mxu0 %v8212_v61 }
 0x168   : > { %v2058_v25 = vpop.f32.mrf.mxu2  ;;  %v1866_v29 = vpop.f32.mrf.mxu0 }
 0x169   : > { %v2059_v27 = vadd.f32 %v2058_v25, %v1962_v63  ;;  %v2155_v16 = vpop.f32.mrf.mxu3  ;;  %v1867_v33 = vadd.f32 %v1866_v29, %v10861_v21  ;;  %v1963_v34 = vpop.f32.mrf.mxu1  ;;  %v9697_v25 = vld [vmem:[%s10680_s27 + $0x128] sm:$0xff] }
 0x16b   : > { %v11063_v40 = vadd.f32 %v2155_v16, %v2059_v27  ;;  %v1964_v41 = vadd.f32 %v1963_v34, %v1867_v33 }
 0x170   : > { %v2060_v57 = vpop.f32.mrf.mxu2  ;;  %v1869_v14 = vpop.f32.mrf.mxu0 }
 0x171   : > { %v2061_v63 = vadd.f32 %v2060_v57, %v1964_v41  ;;  %v2157_v11 = vpop.f32.mrf.mxu3  ;;  %v1870_v24 = vadd.f32 %v1869_v14, %v10861_v21  ;;  %v1966_v6 = vpop.f32.mrf.mxu1 }
 0x173   : > { %v11076_v61 = vadd.f32 %v2157_v11, %v2061_v63  ;;  %v1967_v27 = vadd.f32 %v1966_v6, %v1870_v24  ;;  %1908 = vmatmul.bf16.gmra.mxu0 %v11042_v50 }
 0x174   : > { %2005 = vmatmul.bf16.gmra.mxu1 %v9695_v8 }
 0x175   : > { %2102 = vmatmul.bf16.gmra.mxu2 %v11072_v22 }
 0x176   : > { %2199 = vmatmul.bf16.gmra.mxu3 %v9697_v25 }
 0x178   : > { %v2063_v16 = vpop.f32.mrf.mxu2  ;;  %v1871_v34 = vpop.f32.mrf.mxu0 }
 0x179   : > { %v2064_v29 = vadd.f32 %v2063_v16, %v1967_v27  ;;  %v2160_v33 = vpop.f32.mrf.mxu3  ;;  %v1872_v45 = vadd.f32 %v1871_v34, %v10861_v21  ;;  %v1968_v48 = vpop.f32.mrf.mxu1 }
 0x17b   : > { %v11081_v41 = vadd.f32 %v2160_v33, %v2064_v29  ;;  %v1969_v56 = vadd.f32 %v1968_v48, %v1872_v45 }
 0x180   : > { %v2065_v57 = vpop.f32.mrf.mxu2  ;;  %v1874_v14 = vpop.f32.mrf.mxu0 }
 0x181   : > { %v2066_v63 = vadd.f32 %v2065_v57, %v1969_v56  ;;  %v2162_v11 = vpop.f32.mrf.mxu3  ;;  %v1875_v24 = vadd.f32 %v1874_v14, %v10861_v21  ;;  %v1971_v8 = vpop.f32.mrf.mxu1  ;;  %v7915_v56 = vld [vmem:[%s14768_s1 + $0x98] sm:$0xf]  ;;  %v9813_v14 = vld [vmem:[%s14768_s1 + $0x394] sm:$0xf] }
 0x183   : > { %v11084_v6 = vadd.f32 %v2162_v11, %v2066_v63  ;;  %v1972_v25 = vadd.f32 %v1971_v8, %v1875_v24  ;;  %2211 = vmatmul.bf16.vlgmr.msrb.gmra.mxu0 %v10717_v30  ;;  %v9789_v63 = vld [vmem:[%s14768_s1 + $0x2d4] sm:$0xf]  ;;  %v8197_v11 = vld [vmem:[%s14768_s1 + $0x2dc] sm:$0xf0] }
 0x184   : > { %2308 = vmatmul.bf16.vlgmr.msrb.gmra.mxu1 %v10683_v15  ;;  %v9719_v15 = vld [vmem:[%s14768_s1 + $0xa0] sm:$0xf0]  ;;  %v8200_v24 = vor.u32 %v9789_v63, %v8197_v11  ;;  %v8293_v8 = vld [vmem:[%s14768_s1 + $0x39c] sm:$0xf0] }
 0x185   : > { %2405 = vmatmul.bf16.vlgmr.msrb.gmra.mxu2 %v10686_v17  ;;  %v7916_v57 = vor.u32 %v9719_v15, %v7915_v56 }
 0x186   : > { %2502 = vmatmul.bf16.vlgmr.msrb.gmra.mxu3 %v10689_v18  ;;  %2592 = vmatpush.bf16.msra.mxu0 %v8200_v24 }
 0x187   : > { %2786 = vmatpush.bf16.msra.mxu2 %v7916_v57 }
 0x188   : > { %v2068_v27 = vpop.f32.mrf.mxu2  ;;  %v1876_v33 = vpop.f32.mrf.mxu0 }
 0x189   : > { %v2069_v16 = vadd.f32 %v2068_v27, %v1972_v25  ;;  %v2165_v29 = vpop.f32.mrf.mxu3  ;;  %v1877_v34 = vadd.f32 %v1876_v33, %v10861_v21  ;;  %v1973_v45 = vpop.f32.mrf.mxu1  ;;  %v8296_v25 = vor.u32 %v9813_v14, %v8293_v8 }
 0x18b   : > { %v11091_v48 = vadd.f32 %v2165_v29, %v2069_v16  ;;  %v1974_v17 = vadd.f32 %v1973_v45, %v1877_v34  ;;  %2689 = vmatpush.bf16.msra.mxu1 %v8296_v25 }
 0x190   : > { %v2070_v27 = vpop.f32.mrf.mxu2  ;;  %v1879_v33 = vpop.f32.mrf.mxu0 }
 0x191   : > { %v2071_v16 = vadd.f32 %v2070_v27, %v1974_v17  ;;  %v2167_v29 = vpop.f32.mrf.mxu3  ;;  %v1880_v34 = vadd.f32 %v1879_v33, %v10861_v21  ;;  %v1976_v45 = vpop.f32.mrf.mxu1  ;;  %v8023_v27 = vld [vmem:[%s14768_s1 + $0x170] sm:$0xf] }
 0x193   : > { %v11112_v56 = vadd.f32 %v2167_v29, %v2071_v16  ;;  %v1977_v15 = vadd.f32 %v1976_v45, %v1880_v34  ;;  %2216 = vmatmul.bf16.gmra.mxu0 %v10733_v35 }
 0x194   : > { %2313 = vmatmul.bf16.gmra.mxu1 %v10689_v18  ;;  %v9746_v18 = vld [vmem:[%s14768_s1 + $0x178] sm:$0xf0] }
 0x195   : > { %2410 = vmatmul.bf16.gmra.mxu2 %v10692_v19  ;;  %v8024_v19 = vor.u32 %v9746_v18, %v8023_v27 }
 0x196   : > { %2507 = vmatmul.bf16.gmra.mxu3 %v10717_v30 }
 0x197   : > { %2882 = vmatpush.bf16.msra.mxu3 %v8024_v19 }
 0x198   : > { %v2073_v57 = vpop.f32.mrf.mxu2  ;;  %v1881_v17 = vpop.f32.mrf.mxu0 }
 0x199   : > { %v2074_v63 = vadd.f32 %v2073_v57, %v1977_v15  ;;  %v2170_v11 = vpop.f32.mrf.mxu3  ;;  %v1882_v14 = vadd.f32 %v1881_v17, %v10861_v21  ;;  %v1978_v24 = vpop.f32.mrf.mxu1 }
 0x19b   : > { %v11119_v8 = vadd.f32 %v2170_v11, %v2074_v63  ;;  %v1979_v25 = vadd.f32 %v1978_v24, %v1882_v14 }
 0x1a0   : > { %v2075_v16 = vpop.f32.mrf.mxu2  ;;  %v1884_v34 = vpop.f32.mrf.mxu0 }
 0x1a1   : > { %v2076_v29 = vadd.f32 %v2075_v16, %v1979_v25  ;;  %v2172_v33 = vpop.f32.mrf.mxu3  ;;  %v1885_v45 = vadd.f32 %v1884_v34, %v10861_v21  ;;  %v1981_v15 = vpop.f32.mrf.mxu1  ;;  %v7903_v16 = vld [vmem:[%s14768_s1 + $0x80] sm:$0xf] }
 0x1a3   : > { %v11128_v57 = vadd.f32 %v2172_v33, %v2076_v29  ;;  %v1982_v63 = vadd.f32 %v1981_v15, %v1885_v45  ;;  %2221 = vmatmul.bf16.gmra.mxu0 %v10761_v46  ;;  %v8185_v33 = vld [vmem:[%s14768_s1 + $0x2c4] sm:$0xf0] }
 0x1a4   : > { %2318 = vmatmul.bf16.gmra.mxu1 %v10717_v30  ;;  %v9716_v30 = vld [vmem:[%s14768_s1 + $0x88] sm:$0xf0] }
 0x1a5   : > { %2415 = vmatmul.bf16.gmra.mxu2 %v10720_v31  ;;  %v9786_v31 = vld [vmem:[%s14768_s1 + $0x2bc] sm:$0xf]  ;;  %v7904_v29 = vor.u32 %v9716_v30, %v7903_v16 }
 0x1a6   : > { %2512 = vmatmul.bf16.gmra.mxu3 %v10733_v35  ;;  %v8188_v34 = vor.u32 %v9786_v31, %v8185_v33 }
 0x1a7   : > { %2787 = vmatpush.bf16.msra.mxu2 %v7904_v29 }
 0x1a8   : > { %v2078_v11 = vpop.f32.mrf.mxu2  ;;  %v1886_v24 = vpop.f32.mrf.mxu0  ;;  %2593 = vmatpush.bf16.msra.mxu0 %v8188_v34 }
 0x1a9   : > { %v2079_v17 = vadd.f32 %v2078_v11, %v1982_v63  ;;  %v2175_v14 = vpop.f32.mrf.mxu3  ;;  %v1887_v25 = vadd.f32 %v1886_v24, %v10861_v21  ;;  %v1983_v27 = vpop.f32.mrf.mxu1 }
 0x1ab   : > { %v11135_v18 = vadd.f32 %v2175_v14, %v2079_v17  ;;  %v1984_v19 = vadd.f32 %v1983_v27, %v1887_v25  ;;  %v9810_v25 = vld [vmem:[%s14768_s1 + $0x37c] sm:$0xf]  ;;  %v8281_v27 = vld [vmem:[%s14768_s1 + $0x384] sm:$0xf0] }
 0x1ac   : > { %v8284_v30 = vor.u32 %v9810_v25, %v8281_v27 }
 0x1ae   : > { %2690 = vmatpush.bf16.msra.mxu1 %v8284_v30 }
 0x1b0   : > { %v2080_v45 = vpop.f32.mrf.mxu2  ;;  %v1889_v11 = vpop.f32.mrf.mxu0 }
 0x1b1   : > { %v2081_v15 = vadd.f32 %v2080_v45, %v1984_v19  ;;  %v2177_v63 = vpop.f32.mrf.mxu3  ;;  %v1890_v17 = vadd.f32 %v1889_v11, %v10861_v21  ;;  %v1986_v14 = vpop.f32.mrf.mxu1 }
 0x1b3   : > { %v11150_v24 = vadd.f32 %v2177_v63, %v2081_v15  ;;  %v1987_v16 = vadd.f32 %v1986_v14, %v1890_v17  ;;  %2226 = vmatmul.bf16.gmra.mxu0 %v10777_v51 }
 0x1b4   : > { %2323 = vmatmul.bf16.gmra.mxu1 %v10733_v35 }
 0x1b5   : > { %2420 = vmatmul.bf16.gmra.mxu2 %v10736_v36 }
 0x1b6   : > { %2517 = vmatmul.bf16.gmra.mxu3 %v10761_v46 }
 0x1b8   : > { %v2083_v19 = vpop.f32.mrf.mxu2  ;;  %v1891_v33 = vpop.f32.mrf.mxu0 }
 0x1b9   : > { %v2084_v31 = vadd.f32 %v2083_v19, %v1987_v16  ;;  %v2180_v29 = vpop.f32.mrf.mxu3  ;;  %v1892_v34 = vadd.f32 %v1891_v33, %v10861_v21  ;;  %v1988_v45 = vpop.f32.mrf.mxu1  ;;  %v8011_v16 = vld [vmem:[%s14768_s1 + $0x158] sm:$0xf]  ;;  %v9743_v19 = vld [vmem:[%s14768_s1 + $0x160] sm:$0xf0] }
 0x1bb   : > { %v11163_v15 = vadd.f32 %v2180_v29, %v2084_v31  ;;  %v1989_v63 = vadd.f32 %v1988_v45, %v1892_v34  ;;  %v8012_v31 = vor.u32 %v9743_v19, %v8011_v16 }
 0x1bd   : > { %2883 = vmatpush.bf16.msra.mxu3 %v8012_v31  ;;  %v9713_v31 = vld [vmem:[%s14768_s1 + $0x70] sm:$0xf0] }
 0x1c0   : > { %v2085_v11 = vpop.f32.mrf.mxu2  ;;  %v1894_v25 = vpop.f32.mrf.mxu0 }
 0x1c1   : > { %v2086_v17 = vadd.f32 %v2085_v11, %v1989_v63  ;;  %v2182_v14 = vpop.f32.mrf.mxu3  ;;  %v1895_v35 = vadd.f32 %v1894_v25, %v10861_v21  ;;  %v1991_v36 = vpop.f32.mrf.mxu1 }
 0x1c3   : > { %v11166_v27 = vadd.f32 %v2182_v14, %v2086_v17  ;;  %v1992_v30 = vadd.f32 %v1991_v36, %v1895_v35  ;;  %2231 = vmatmul.bf16.gmra.mxu0 %v10799_v59 }
 0x1c4   : > { %2328 = vmatmul.bf16.gmra.mxu1 %v10761_v46 }
 0x1c5   : > { %2425 = vmatmul.bf16.gmra.mxu2 %v10764_v47 }
 0x1c6   : > { %2522 = vmatmul.bf16.gmra.mxu3 %v10777_v51 }
 0x1c8   : > { %v2088_v29 = vpop.f32.mrf.mxu2  ;;  %v1896_v45 = vpop.f32.mrf.mxu0 }
 0x1c9   : > { %v2089_v33 = vadd.f32 %v2088_v29, %v1992_v30  ;;  %v2185_v34 = vpop.f32.mrf.mxu3  ;;  %v1897_v63 = vadd.f32 %v1896_v45, %v10861_v21  ;;  %v1993_v11 = vpop.f32.mrf.mxu1  ;;  %v7891_v30 = vld [vmem:[%s14768_s1 + $0x68] sm:$0xf]  ;;  %v9783_v29 = vld [vmem:[%s14768_s1 + $0x2a4] sm:$0xf]  ;;  %v8173_v45 = vld [vmem:[%s14768_s1 + $0x2ac] sm:$0xf0] }
 0x1cb   : > { %v11179_v17 = vadd.f32 %v2185_v34, %v2089_v33  ;;  %v1994_v14 = vadd.f32 %v1993_v11, %v1897_v63  ;;  %v7892_v34 = vor.u32 %v9713_v31, %v7891_v30  ;;  %v8176_v63 = vor.u32 %v9783_v29, %v8173_v45  ;;  %v9807_v11 = vld [vmem:[%s14768_s1 + $0x364] sm:$0xf] }
 0x1cd   : > { %14828 = vst [vmem:[#allocation3_spill] sm:$0xff] %v11179_v17  ;;  %2788 = vmatpush.bf16.msra.mxu2 %v7892_v34  ;;  %2594 = vmatpush.bf16.msra.mxu0 %v8176_v63 }
 0x1d0   : > { %v2090_v25 = vpop.f32.mrf.mxu2  ;;  %v1899_v46 = vpop.f32.mrf.mxu0 }
 0x1d1   : > { %v2091_v35 = vadd.f32 %v2090_v25, %v1994_v14  ;;  %v2187_v36 = vpop.f32.mrf.mxu3  ;;  %v1900_v47 = vadd.f32 %v1899_v46, %v10861_v21  ;;  %v1996_v16 = vpop.f32.mrf.mxu1  ;;  %v8269_v14 = vld [vmem:[%s14768_s1 + $0x36c] sm:$0xf0] }
 0x1d2   : > { %v8272_v25 = vor.u32 %v9807_v11, %v8269_v14  ;;  %v9740_v14 = vld [vmem:[%s14768_s1 + $0x148] sm:$0xf0] }
 0x1d3   : > { %v11182_v19 = vadd.f32 %v2187_v36, %v2091_v35  ;;  %v1997_v33 = vadd.f32 %v1996_v16, %v1900_v47  ;;  %2236 = vmatmul.bf16.gmra.mxu0 %v10815_v0 }
 0x1d4   : > { %2333 = vmatmul.bf16.gmra.mxu1 %v10777_v51 }
 0x1d5   : > { %14829 = vst [vmem:[#allocation4_spill] sm:$0xff] %v11182_v19  ;;  %2430 = vmatmul.bf16.gmra.mxu2 %v10780_v52  ;;  %2691 = vmatpush.bf16.msra.mxu1 %v8272_v25 }
 0x1d6   : > { %2527 = vmatmul.bf16.gmra.mxu3 %v10799_v59 }
 0x1d8   : > { %v2093_v35 = vpop.f32.mrf.mxu2  ;;  %v1901_v51 = vpop.f32.mrf.mxu0 }
 0x1d9   : > { %v2094_v36 = vadd.f32 %v2093_v35, %v1997_v33  ;;  %v2190_v46 = vpop.f32.mrf.mxu3  ;;  %v1902_v52 = vadd.f32 %v1901_v51, %v10861_v21  ;;  %v1998_v47 = vpop.f32.mrf.mxu1  ;;  %v7999_v33 = vld [vmem:[%s14768_s1 + $0x140] sm:$0xf] }
 0x1da   : > { %v8000_v25 = vor.u32 %v9740_v14, %v7999_v33 }
 0x1db   : > { %v11207_v16 = vadd.f32 %v2190_v46, %v2094_v36  ;;  %v1999_v30 = vadd.f32 %v1998_v47, %v1902_v52 }
 0x1dc   : > { %2884 = vmatpush.bf16.msra.mxu3 %v8000_v25 }
 0x1e0   : > { %v2095_v31 = vpop.f32.mrf.mxu2  ;;  %v1904_v45 = vpop.f32.mrf.mxu0 }
 0x1e1   : > { %v2096_v29 = vadd.f32 %v2095_v31, %v1999_v30  ;;  %v2192_v34 = vpop.f32.mrf.mxu3  ;;  %v1905_v19 = vadd.f32 %v1904_v45, %v10861_v21  ;;  %v2001_v17 = vpop.f32.mrf.mxu1  ;;  %v9710_v45 = vld [vmem:[%s14768_s1 + $0x58] sm:$0xf0] }
 0x1e3   : > { %v11210_v63 = vadd.f32 %v2192_v34, %v2096_v29  ;;  %v2002_v11 = vadd.f32 %v2001_v17, %v1905_v19  ;;  %2241 = vmatmul.bf16.gmra.mxu0 %v10831_v5 }
 0x1e4   : > { %2338 = vmatmul.bf16.gmra.mxu1 %v10799_v59 }
 0x1e5   : > { %2435 = vmatmul.bf16.gmra.mxu2 %v10802_v60 }
 0x1e6   : > { %2532 = vmatmul.bf16.gmra.mxu3 %v10815_v0 }
 0x1e8   : > { %v2098_v35 = vpop.f32.mrf.mxu2  ;;  %v1906_v19 = vpop.f32.mrf.mxu0 }
 0x1e9   : > { %v2099_v36 = vadd.f32 %v2098_v35, %v2002_v11  ;;  %v2195_v17 = vpop.f32.mrf.mxu3  ;;  %v1907_v59 = vadd.f32 %v1906_v19, %v10861_v21  ;;  %v2003_v46 = vpop.f32.mrf.mxu1  ;;  %v7879_v21 = vld [vmem:[%s14768_s1 + $0x50] sm:$0xf]  ;;  %v9780_v11 = vld [vmem:[%s14768_s1 + $0x28c] sm:$0xf] }
 0x1ea   : > { %v7880_v33 = vor.u32 %v9710_v45, %v7879_v21  ;;  %v11262_v21 = vld [vmem:[%s10680_s27 + $0x88] sm:$0xff] }
 0x1eb   : > { %v11223_v60 = vadd.f32 %v2195_v17, %v2099_v36  ;;  %v2004_v51 = vadd.f32 %v2003_v46, %v1907_v59  ;;  %v9804_v36 = vld [vmem:[%s14768_s1 + $0x34c] sm:$0xf]  ;;  %v8257_v17 = vld [vmem:[%s14768_s1 + $0x354] sm:$0xf0] }
 0x1ec   : > { %2789 = vmatpush.bf16.msra.mxu2 %v7880_v33  ;;  %v8260_v19 = vor.u32 %v9804_v36, %v8257_v17 }
 0x1ee   : > { %2692 = vmatpush.bf16.msra.mxu1 %v8260_v19 }
 0x1f0   : > { %v2100_v52 = vpop.f32.mrf.mxu2  ;;  %v1909_v31 = vpop.f32.mrf.mxu0 }
 0x1f1   : > { %v2101_v47 = vadd.f32 %v2100_v52, %v2004_v51  ;;  %v2197_v30 = vpop.f32.mrf.mxu3  ;;  %v2006_v29 = vpop.f32.mrf.mxu1  ;;  %v11250_v52 = vperm.slane %v10852_v13, 1 }
 0x1f2   : > { %v11258_v29 = vld [vmem:[%s10680_s27 + $0x80] sm:$0xff] }
 0x1f3   : > { %v11225_v34 = vadd.f32 %v2197_v30, %v2101_v47  ;;  %2246 = vmatmul.bf16.gmra.mxu0 %v10864_v23 }
 0x1f4   : > { %2343 = vmatmul.bf16.gmra.mxu1 %v10815_v0  ;;  %v8161_v0 = vld [vmem:[%s14768_s1 + $0x294] sm:$0xf0] }
 0x1f5   : > { %2440 = vmatmul.bf16.gmra.mxu2 %v10818_v1  ;;  %v8164_v14 = vor.u32 %v9780_v11, %v8161_v0 }
 0x1f6   : > { %2537 = vmatmul.bf16.gmra.mxu3 %v10831_v5 }
 0x1f7   : > { %2595 = vmatpush.bf16.msra.mxu0 %v8164_v14  ;;  %v7987_v14 = vld [vmem:[%s14768_s1 + $0x128] sm:$0xf] }
 0x1f8   : > { %v2103_v1 = vpop.f32.mrf.mxu2  ;;  %v1910_v25 = vpop.f32.mrf.mxu0 }
 0x1f9   : > { %v2200_v5 = vpop.f32.mrf.mxu3  ;;  %v2007_v35 = vpop.f32.mrf.mxu1 }
 0x200   : > { %v2104_v59 = vpop.f32.mrf.mxu2  ;;  %v2212_v51 = vpop.f32.mrf.mxu0 }
 0x201   : > { %v2201_v46 = vpop.f32.mrf.mxu3  ;;  %v11253_v47 = vadd.f32 %v2212_v51, %v10871_v38  ;;  %v2309_v30 = vpop.f32.mrf.mxu1 }
 0x202   : > { %v2310_v31 = vadd.f32 %v2309_v30, %v11250_v52  ;;  %v11286_v30 = vld [vmem:[%s10680_s27 + $0x90] sm:$0xff] }
 0x203   : > { %2251 = vmatmul.bf16.gmra.mxu0 %v10880_v49 }
 0x204   : > { %2348 = vmatmul.bf16.gmra.mxu1 %v11258_v29 }
 0x205   : > { %2445 = vmatmul.bf16.gmra.mxu2 %v11262_v21 }
 0x206   : > { %2542 = vmatmul.bf16.gmra.mxu3 %v10864_v23  ;;  %v9737_v23 = vld [vmem:[%s14768_s1 + $0x130] sm:$0xf0] }
 0x207   : > { %v7988_v5 = vor.u32 %v9737_v23, %v7987_v14  ;;  %v7867_v23 = vld [vmem:[%s14768_s1 + $0x38] sm:$0xf] }
 0x208   : > { %v2406_v13 = vpop.f32.mrf.mxu2  ;;  %v2214_v38 = vpop.f32.mrf.mxu0 }
 0x209   : > { %v2407_v45 = vadd.f32 %v2406_v13, %v2310_v31  ;;  %v2503_v11 = vpop.f32.mrf.mxu3  ;;  %v11267_v33 = vadd.f32 %v2214_v38, %v10884_v55  ;;  %v2311_v0 = vpop.f32.mrf.mxu1  ;;  %2885 = vmatpush.bf16.msra.mxu3 %v7988_v5  ;;  %v11290_v31 = vld [vmem:[%s10680_s27 + $0x98] sm:$0xff]  ;;  %v9707_v5 = vld [vmem:[%s14768_s1 + $0x40] sm:$0xf0] }
 0x20a   : > { %v2312_v25 = vadd.f32 %v2311_v0, %v11250_v52 }
 0x20b   : > { %v11269_v1 = vadd.f32 %v2503_v11, %v2407_v45 }
 0x210   : > { %v2408_v35 = vpop.f32.mrf.mxu2  ;;  %v2217_v17 = vpop.f32.mrf.mxu0 }
 0x211   : > { %v2409_v55 = vadd.f32 %v2408_v35, %v2312_v25  ;;  %v2505_v36 = vpop.f32.mrf.mxu3  ;;  %v11279_v19 = vadd.f32 %v2217_v17, %v10889_v3  ;;  %v2314_v59 = vpop.f32.mrf.mxu1  ;;  %v7868_v25 = vor.u32 %v9707_v5, %v7867_v23 }
 0x212   : > { %v2315_v51 = vadd.f32 %v2314_v59, %v11250_v52 }
 0x213   : > { %v11281_v46 = vadd.f32 %v2505_v36, %v2409_v55  ;;  %2256 = vmatmul.bf16.gmra.mxu0 %v10910_v26  ;;  %v9801_v55 = vld [vmem:[%s14768_s1 + $0x334] sm:$0xf]  ;;  %v8245_v36 = vld [vmem:[%s14768_s1 + $0x33c] sm:$0xf0]  ;;  %2790 = vmatpush.bf16.msra.mxu2 %v7868_v25 }
 0x214   : > { %2353 = vmatmul.bf16.gmra.mxu1 %v11286_v30  ;;  %v8248_v17 = vor.u32 %v9801_v55, %v8245_v36 }
 0x215   : > { %2450 = vmatmul.bf16.gmra.mxu2 %v11290_v31 }
 0x216   : > { %2547 = vmatmul.bf16.gmra.mxu3 %v10880_v49  ;;  %v9777_v49 = vld [vmem:[%s14768_s1 + $0x274] sm:$0xf]  ;;  %2693 = vmatpush.bf16.msra.mxu1 %v8248_v17 }
 0x218   : > { %v2411_v13 = vpop.f32.mrf.mxu2  ;;  %v2219_v11 = vpop.f32.mrf.mxu0 }
 0x219   : > { %v2412_v3 = vadd.f32 %v2411_v13, %v2315_v51  ;;  %v2508_v45 = vpop.f32.mrf.mxu3  ;;  %v11295_v38 = vadd.f32 %v2219_v11, %v10914_v32  ;;  %v2316_v0 = vpop.f32.mrf.mxu1  ;;  %v8149_v32 = vld [vmem:[%s14768_s1 + $0x27c] sm:$0xf0] }
 0x21a   : > { %v8152_v35 = vor.u32 %v9777_v49, %v8149_v32  ;;  %v2317_v59 = vadd.f32 %v2316_v0, %v11250_v52  ;;  %v11326_v49 = vld [vmem:[%s10680_s27 + $0xa0] sm:$0xff]  ;;  %v11330_v0 = vld [vmem:[%s10680_s27 + $0xa8] sm:$0xff] }
 0x21b   : > { %v11297_v14 = vadd.f32 %v2508_v45, %v2412_v3 }
 0x21c   : > { %2596 = vmatpush.bf16.msra.mxu0 %v8152_v35 }
 0x220   : > { %v2413_v51 = vpop.f32.mrf.mxu2  ;;  %v2222_v45 = vpop.f32.mrf.mxu0 }
 0x221   : > { %v2414_v13 = vadd.f32 %v2413_v51, %v2317_v59  ;;  %v2510_v3 = vpop.f32.mrf.mxu3  ;;  %v11319_v11 = vadd.f32 %v2222_v45, %v10919_v43  ;;  %v2319_v23 = vpop.f32.mrf.mxu1  ;;  %v7975_v51 = vld [vmem:[%s14768_s1 + $0x110] sm:$0xf] }
 0x222   : > { %v2320_v25 = vadd.f32 %v2319_v23, %v11250_v52 }
 0x223   : > { %v11321_v5 = vadd.f32 %v2510_v3, %v2414_v13  ;;  %2261 = vmatmul.bf16.gmra.mxu0 %v10928_v58 }
 0x224   : > { %2358 = vmatmul.bf16.gmra.mxu1 %v11326_v49 }
 0x225   : > { %2455 = vmatmul.bf16.gmra.mxu2 %v11330_v0 }
 0x226   : > { %2552 = vmatmul.bf16.gmra.mxu3 %v10910_v26  ;;  %v9734_v26 = vld [vmem:[%s14768_s1 + $0x118] sm:$0xf0] }
 0x227   : > { %v7976_v13 = vor.u32 %v9734_v26, %v7975_v51 }
 0x228   : > { %v2416_v32 = vpop.f32.mrf.mxu2  ;;  %v2224_v55 = vpop.f32.mrf.mxu0 }
 0x229   : > { %v2417_v43 = vadd.f32 %v2416_v32, %v2320_v25  ;;  %v2513_v35 = vpop.f32.mrf.mxu3  ;;  %v11335_v36 = vadd.f32 %v2224_v55, %v10932_v2  ;;  %v2321_v17 = vpop.f32.mrf.mxu1  ;;  %2886 = vmatpush.bf16.msra.mxu3 %v7976_v13 }
 0x22a   : > { %v2322_v3 = vadd.f32 %v2321_v17, %v11250_v52  ;;  %v11358_v17 = vld [vmem:[%s10680_s27 + $0xb8] sm:$0xff] }
 0x22b   : > { %14830 = vst [vmem:[#allocation5_spill] sm:$0xff] %v11335_v36  ;;  %v11337_v59 = vadd.f32 %v2513_v35, %v2417_v43  ;;  %v11354_v36 = vld [vmem:[%s10680_s27 + $0xb0] sm:$0xff] }
 0x230   : > { %v2418_v45 = vpop.f32.mrf.mxu2  ;;  %v2227_v25 = vpop.f32.mrf.mxu0 }
 0x231   : > { %v2419_v2 = vadd.f32 %v2418_v45, %v2322_v3  ;;  %v2515_v23 = vpop.f32.mrf.mxu3  ;;  %v11347_v32 = vadd.f32 %v2227_v25, %v10937_v12  ;;  %v2324_v43 = vpop.f32.mrf.mxu1  ;;  %v9704_v25 = vld [vmem:[%s14768_s1 + $0x28] sm:$0xf0] }
 0x232   : > { %v2325_v55 = vadd.f32 %v2324_v43, %v11250_v52 }
 0x233   : > { %14831 = vst [vmem:[#allocation6_spill] sm:$0xff] %v11347_v32  ;;  %v11349_v35 = vadd.f32 %v2515_v23, %v2419_v2  ;;  %2266 = vmatmul.bf16.gmra.mxu0 %v10952_v37  ;;  %v7855_v23 = vld [vmem:[%s14768_s1 + $0x20] sm:$0xf] }
 0x234   : > { %2363 = vmatmul.bf16.gmra.mxu1 %v11354_v36  ;;  %v7856_v43 = vor.u32 %v9704_v25, %v7855_v23 }
 0x235   : > { %2460 = vmatmul.bf16.gmra.mxu2 %v11358_v17 }
 0x236   : > { %2557 = vmatmul.bf16.gmra.mxu3 %v10928_v58  ;;  %v9774_v58 = vld [vmem:[%s14768_s1 + $0x25c] sm:$0xf]  ;;  %2791 = vmatpush.bf16.msra.mxu2 %v7856_v43 }
 0x238   : > { %v2421_v51 = vpop.f32.mrf.mxu2  ;;  %v2229_v13 = vpop.f32.mrf.mxu0 }
 0x239   : > { %v2422_v12 = vadd.f32 %v2421_v51, %v2325_v55  ;;  %v2518_v26 = vpop.f32.mrf.mxu3  ;;  %v11363_v3 = vadd.f32 %v2229_v13, %v10956_v42  ;;  %v2326_v45 = vpop.f32.mrf.mxu1  ;;  %v8137_v42 = vld [vmem:[%s14768_s1 + $0x264] sm:$0xf0] }
 0x23a   : > { %v8140_v55 = vor.u32 %v9774_v58, %v8137_v42  ;;  %v2327_v51 = vadd.f32 %v2326_v45, %v11250_v52  ;;  %v9798_v58 = vld [vmem:[%s14768_s1 + $0x31c] sm:$0xf]  ;;  %v8233_v45 = vld [vmem:[%s14768_s1 + $0x324] sm:$0xf0] }
 0x23b   : > { %14832 = vst [vmem:[#allocation7_spill] sm:$0xff] %v11363_v3  ;;  %v11365_v2 = vadd.f32 %v2518_v26, %v2422_v12  ;;  %v8236_v43 = vor.u32 %v9798_v58, %v8233_v45 }
 0x23c   : > { %2597 = vmatpush.bf16.msra.mxu0 %v8140_v55  ;;  %v11394_v55 = vld [vmem:[%s10680_s27 + $0xc0] sm:$0xff] }
 0x23d   : > { %14833 = vst [vmem:[#allocation8_spill] sm:$0xff] %v11365_v2  ;;  %2694 = vmatpush.bf16.msra.mxu1 %v8236_v43 }
 0x240   : > { %v2423_v12 = vpop.f32.mrf.mxu2  ;;  %v2232_v3 = vpop.f32.mrf.mxu0 }
 0x241   : > { %v2424_v26 = vadd.f32 %v2423_v12, %v2327_v51  ;;  %v2520_v13 = vpop.f32.mrf.mxu3  ;;  %v11381_v23 = vadd.f32 %v2232_v3, %v10967_v4  ;;  %v2329_v25 = vpop.f32.mrf.mxu1  ;;  %v11398_v4 = vld [vmem:[%s10680_s27 + $0xc8] sm:$0xff] }
 0x242   : > { %v2330_v42 = vadd.f32 %v2329_v25, %v11250_v52  ;;  %14836 = vst [vmem:[#allocation11_spill] sm:$0xff] %v11398_v4 }
 0x243   : > { %14834 = vst [vmem:[#allocation9_spill] sm:$0xff] %v11381_v23  ;;  %v11383_v32 = vadd.f32 %v2520_v13, %v2424_v26  ;;  %2271 = vmatmul.bf16.gmra.mxu0 %v10970_v10 }
 0x244   : > { %2368 = vmatmul.bf16.gmra.mxu1 %v11394_v55 }
 0x245   : > { %14835 = vst [vmem:[#allocation10_spill] sm:$0xff] %v11383_v32  ;;  %2465 = vmatmul.bf16.gmra.mxu2 %v11398_v4 }
 0x246   : > { %2562 = vmatmul.bf16.gmra.mxu3 %v10952_v37 }
 0x248   : > { %v2426_v3 = vpop.f32.mrf.mxu2  ;;  %v2234_v26 = vpop.f32.mrf.mxu0 }
 0x249   : > { %v2427_v51 = vadd.f32 %v2426_v3, %v2330_v42  ;;  %v2523_v12 = vpop.f32.mrf.mxu3  ;;  %v11403_v13 = vadd.f32 %v2234_v26, %v10974_v20  ;;  %v2331_v25 = vpop.f32.mrf.mxu1  ;;  %v7963_v20 = vld [vmem:[%s14768_s1 + $0xf8] sm:$0xf]  ;;  %v9731_v3 = vld [vmem:[%s14768_s1 + $0x100] sm:$0xf0] }
 0x24a   : > { %v2332_v45 = vadd.f32 %v2331_v25, %v11250_v52 }
 0x24b   : > { %14837 = vst [vmem:[#allocation12_spill] sm:$0xff] %v11403_v13  ;;  %v11405_v58 = vadd.f32 %v2523_v12, %v2427_v51  ;;  %v11422_v51 = vld [vmem:[%s10680_s27 + $0xd0] sm:$0xff] }
 0x250   : > { %v2428_v23 = vpop.f32.mrf.mxu2  ;;  %v2237_v2 = vpop.f32.mrf.mxu0 }
 0x251   : > { %v2429_v32 = vadd.f32 %v2428_v23, %v2332_v45  ;;  %v2525_v4 = vpop.f32.mrf.mxu3  ;;  %v11409_v37 = vadd.f32 %v2237_v2, %v10985_v44  ;;  %v2334_v43 = vpop.f32.mrf.mxu1  ;;  %v11426_v44 = vld [vmem:[%s10680_s27 + $0xd8] sm:$0xff] }
 0x252   : > { %v2335_v23 = vadd.f32 %v2334_v43, %v11250_v52 }
 0x253   : > { %14838 = vst [vmem:[#allocation13_spill] sm:$0xff] %v11409_v37  ;;  %v11411_v42 = vadd.f32 %v2525_v4, %v2429_v32  ;;  %2276 = vmatmul.bf16.gmra.mxu0 %v10988_v54  ;;  %v7964_v32 = vor.u32 %v9731_v3, %v7963_v20 }
 0x254   : > { %2373 = vmatmul.bf16.gmra.mxu1 %v11422_v51 }
 0x255   : > { %14839 = vst [vmem:[#allocation14_spill] sm:$0xff] %v11411_v42  ;;  %2470 = vmatmul.bf16.gmra.mxu2 %v11426_v44  ;;  %2887 = vmatpush.bf16.msra.mxu3 %v7964_v32 }
 0x256   : > { %2567 = vmatmul.bf16.gmra.mxu3 %v10970_v10 }
 0x258   : > { %v2431_v2 = vpop.f32.mrf.mxu2  ;;  %v2239_v26 = vpop.f32.mrf.mxu0 }
 0x259   : > { %v2432_v4 = vadd.f32 %v2431_v2, %v2335_v23  ;;  %v2528_v12 = vpop.f32.mrf.mxu3  ;;  %v11431_v25 = vadd.f32 %v2239_v26, %v10992_v62  ;;  %v2336_v45 = vpop.f32.mrf.mxu1  ;;  %v7843_v62 = vld [vmem:[%s14768_s1 + $0x8] sm:$0xf]  ;;  %v9701_v2 = vld [vmem:[%s14768_s1 + $0x10] sm:$0xf0] }
 0x25a   : > { %v2337_v37 = vadd.f32 %v2336_v45, %v11250_v52  ;;  %v9795_v45 = vld [vmem:[%s14768_s1 + $0x304] sm:$0xf] }
 0x25b   : > { %14840 = vst [vmem:[#allocation15_spill] sm:$0xff] %v11431_v25  ;;  %v11433_v43 = vadd.f32 %v2528_v12, %v2432_v4  ;;  %v7844_v4 = vor.u32 %v9701_v2, %v7843_v62  ;;  %v11460_v12 = vld [vmem:[%s10680_s27 + $0xe8] sm:$0xff] }
 0x25c   : > { %14843 = vst [vmem:[#allocation18_spill] sm:$0xff] %v11460_v12 }
 0x25d   : > { %2792 = vmatpush.bf16.msra.mxu2 %v7844_v4 }
 0x260   : > { %v2433_v13 = vpop.f32.mrf.mxu2  ;;  %v2242_v3 = vpop.f32.mrf.mxu0 }
 0x261   : > { %v2434_v42 = vadd.f32 %v2433_v13, %v2337_v37  ;;  %v2530_v20 = vpop.f32.mrf.mxu3  ;;  %v11437_v10 = vadd.f32 %v2242_v3, %v11015_v39  ;;  %v2339_v23 = vpop.f32.mrf.mxu1  ;;  %v9771_v13 = vld [vmem:[%s14768_s1 + $0x244] sm:$0xf]  ;;  %v8125_v39 = vld [vmem:[%s14768_s1 + $0x24c] sm:$0xf0] }
 0x262   : > { %v2340_v37 = vadd.f32 %v2339_v23, %v11250_v52  ;;  %v8128_v26 = vor.u32 %v9771_v13, %v8125_v39 }
 0x263   : > { %14841 = vst [vmem:[#allocation16_spill] sm:$0xff] %v11437_v10  ;;  %v11439_v32 = vadd.f32 %v2530_v20, %v2434_v42  ;;  %2281 = vmatmul.bf16.gmra.mxu0 %v11018_v53  ;;  %v11456_v42 = vld [vmem:[%s10680_s27 + $0xe0] sm:$0xff]  ;;  %v8221_v20 = vld [vmem:[%s14768_s1 + $0x30c] sm:$0xf0] }
 0x264   : > { %2378 = vmatmul.bf16.gmra.mxu1 %v11456_v42  ;;  %2598 = vmatpush.bf16.msra.mxu0 %v8128_v26  ;;  %v8224_v3 = vor.u32 %v9795_v45, %v8221_v20 }
 0x265   : > { %14842 = vst [vmem:[#allocation17_spill] sm:$0xff] %v11439_v32  ;;  %2475 = vmatmul.bf16.gmra.mxu2 %v11460_v12 }
 0x266   : > { %2572 = vmatmul.bf16.gmra.mxu3 %v10988_v54  ;;  %2695 = vmatpush.bf16.msra.mxu1 %v8224_v3  ;;  %v10198_v3 = vld [vmem:[%s10680_s27 + $0xf8] sm:$0xff] }
 0x268   : > { %v2436_v23 = vpop.f32.mrf.mxu2  ;;  %v2244_v10 = vpop.f32.mrf.mxu0 }
 0x269   : > { %v2437_v62 = vadd.f32 %v2436_v23, %v2340_v37  ;;  %v2533_v2 = vpop.f32.mrf.mxu3  ;;  %v11471_v54 = vadd.f32 %v2244_v10, %v11022_v7  ;;  %v2341_v4 = vpop.f32.mrf.mxu1  ;;  %v11484_v10 = vld [vmem:[%s10680_s27 + $0xf0] sm:$0xff] }
 0x26a   : > { %v2342_v39 = vadd.f32 %v2341_v4, %v11250_v52 }
 0x26b   : > { %v11473_v13 = vadd.f32 %v2533_v2, %v2437_v62 }
 0x270   : > { %v2438_v25 = vpop.f32.mrf.mxu2  ;;  %v2247_v26 = vpop.f32.mrf.mxu0 }
 0x271   : > { %v2439_v32 = vadd.f32 %v2438_v25, %v2342_v39  ;;  %v2535_v12 = vpop.f32.mrf.mxu3  ;;  %v11477_v45 = vadd.f32 %v2247_v26, %v11033_v28  ;;  %v2344_v37 = vpop.f32.mrf.mxu1  ;;  %v7951_v28 = vld [vmem:[%s14768_s1 + $0xe0] sm:$0xf]  ;;  %v9728_v25 = vld [vmem:[%s14768_s1 + $0xe8] sm:$0xf0] }
 0x272   : > { %v2345_v7 = vadd.f32 %v2344_v37, %v11250_v52 }
 0x273   : > { %v11479_v20 = vadd.f32 %v2535_v12, %v2439_v32  ;;  %2286 = vmatmul.bf16.gmra.mxu0 %v11042_v50  ;;  %v7952_v32 = vor.u32 %v9728_v25, %v7951_v28 }
 0x274   : > { %2383 = vmatmul.bf16.gmra.mxu1 %v11484_v10 }
 0x275   : > { %2480 = vmatmul.bf16.gmra.mxu2 %v10198_v3  ;;  %2888 = vmatpush.bf16.msra.mxu3 %v7952_v32  ;;  %v7939_v3 = vld [vmem:[%s14768_s1 + $0xc8] sm:$0xf] }
 0x276   : > { %2577 = vmatmul.bf16.gmra.mxu3 %v11018_v53 }
 0x278   : > { %v2441_v12 = vpop.f32.mrf.mxu2  ;;  %v2249_v2 = vpop.f32.mrf.mxu0 }
 0x279   : > { %v2442_v23 = vadd.f32 %v2441_v12, %v2345_v7  ;;  %v2538_v62 = vpop.f32.mrf.mxu3  ;;  %v11496_v4 = vadd.f32 %v2249_v2, %v11046_v9  ;;  %v2346_v39 = vpop.f32.mrf.mxu1  ;;  %v9725_v7 = vld [vmem:[%s14768_s1 + $0xd0] sm:$0xf0] }
 0x27a   : > { %v2347_v26 = vadd.f32 %v2346_v39, %v11250_v52  ;;  %v7940_v32 = vor.u32 %v9725_v7, %v7939_v3  ;;  %v11515_v39 = vld [vmem:[%s10680_s27 + $0x100] sm:$0xff]  ;;  %v9770_v7 = vld [vmem:[%s14768_s1 + $0x238] sm:$0xf0] }
 0x27b   : > { %14844 = vst [vmem:[#allocation19_spill] sm:$0xff] %v11496_v4  ;;  %v11498_v53 = vadd.f32 %v2538_v62, %v2442_v23  ;;  %v10200_v4 = vld [vmem:[%s10680_s27 + $0x108] sm:$0xff] }
 0x27c   : > { %2889 = vmatpush.bf16.msra.mxu3 %v7940_v32 }
 0x280   : > { %v2443_v37 = vpop.f32.mrf.mxu2  ;;  %v2252_v9 = vpop.f32.mrf.mxu0 }
 0x281   : > { %v2444_v28 = vadd.f32 %v2443_v37, %v2347_v26  ;;  %v2540_v25 = vpop.f32.mrf.mxu3  ;;  %v11508_v12 = vadd.f32 %v2252_v9, %v11063_v40  ;;  %v2349_v23 = vpop.f32.mrf.mxu1  ;;  %v8311_v40 = vld [vmem:[%s14768_s1 + $0x3b0] sm:$0xf]  ;;  %v9818_v26 = vld [vmem:[%s14768_s1 + $0x3b8] sm:$0xf0] }
 0x282   : > { %v2350_v2 = vadd.f32 %v2349_v23, %v11250_v52  ;;  %v8119_v37 = vld [vmem:[%s14768_s1 + $0x230] sm:$0xf]  ;;  %v8312_v3 = vor.u32 %v9818_v26, %v8311_v40  ;;  %v9794_v26 = vld [vmem:[%s14768_s1 + $0x2f8] sm:$0xf0] }
 0x283   : > { %14845 = vst [vmem:[#allocation20_spill] sm:$0xff] %v11508_v12  ;;  %v11510_v62 = vadd.f32 %v2540_v25, %v2444_v28  ;;  %2291 = vmatmul.bf16.gmra.mxu0 %v11072_v22  ;;  %v8215_v40 = vld [vmem:[%s14768_s1 + $0x2f0] sm:$0xf] }
 0x284   : > { %2388 = vmatmul.bf16.gmra.mxu1 %v11515_v39  ;;  %3173 = vmatpush.bf16.msrb.mxu2 %v8312_v3  ;;  %v9698_v3 = vld [vmem:[%s10680_s27 + $0x130] sm:$0xff] }
 0x285   : > { %2485 = vmatmul.bf16.gmra.mxu2 %v10200_v4 }
 0x286   : > { %2582 = vmatmul.bf16.gmra.mxu3 %v11042_v50  ;;  %v8120_v50 = vor.u32 %v9770_v7, %v8119_v37 }
 0x288   : > { %v2446_v4 = vpop.f32.mrf.mxu2  ;;  %v2254_v9 = vpop.f32.mrf.mxu0  ;;  %2979 = vmatpush.bf16.msrb.mxu0 %v8120_v50 }
 0x289   : > { %v2447_v28 = vadd.f32 %v2446_v4, %v2350_v2  ;;  %v2543_v25 = vpop.f32.mrf.mxu3  ;;  %v11533_v32 = vadd.f32 %v2254_v9, %v11076_v61  ;;  %v2351_v23 = vpop.f32.mrf.mxu1  ;;  %v8216_v2 = vor.u32 %v9794_v26, %v8215_v40  ;;  %v10202_v40 = vld [vmem:[%s10680_s27 + $0x118] sm:$0xff] }
 0x28a   : > { %v2352_v37 = vadd.f32 %v2351_v23, %v11250_v52 }
 0x28b   : > { %14846 = vst [vmem:[#allocation21_spill] sm:$0xff] %v11533_v32  ;;  %v11535_v12 = vadd.f32 %v2543_v25, %v2447_v28  ;;  %3076 = vmatpush.bf16.msrb.mxu1 %v8216_v2 }
 0x28d   : > { %14847 = vst [vmem:[#allocation22_spill] sm:$0xff] %v11535_v12  ;;  %v11552_v12 = vld [vmem:[%s10680_s27 + $0x110] sm:$0xff] }
 0x290   : > { %v2448_v61 = vpop.f32.mrf.mxu2  ;;  %v2257_v50 = vpop.f32.mrf.mxu0 }
 0x291   : > { %v2449_v7 = vadd.f32 %v2448_v61, %v2352_v37  ;;  %v2545_v4 = vpop.f32.mrf.mxu3  ;;  %v11546_v28 = vadd.f32 %v2257_v50, %v11081_v41  ;;  %v2354_v25 = vpop.f32.mrf.mxu1 }
 0x292   : > { %v2355_v32 = vadd.f32 %v2354_v25, %v11250_v52 }
 0x293   : > { %14848 = vst [vmem:[#allocation23_spill] sm:$0xff] %v11546_v28  ;;  %v11548_v9 = vadd.f32 %v2545_v4, %v2449_v7  ;;  %2296 = vmatmul.bf16.gmra.mxu0 %v9698_v3  ;;  %v10203_v28 = vld [vmem:[%s10680_s27 + $0x18] sm:$0xff] }
 0x294   : > { %2393 = vmatmul.bf16.gmra.mxu1 %v11552_v12 }
 0x295   : > { %2490 = vmatmul.bf16.gmra.mxu2 %v10202_v40 }
 0x296   : > { %2587 = vmatmul.bf16.gmra.mxu3 %v11072_v22 }
 0x298   : > { %v2451_v23 = vpop.f32.mrf.mxu2  ;;  %v2259_v41 = vpop.f32.mrf.mxu0 }
 0x299   : > { %v2452_v26 = vadd.f32 %v2451_v23, %v2355_v32  ;;  %v2548_v2 = vpop.f32.mrf.mxu3  ;;  %v11558_v37 = vadd.f32 %v2259_v41, %v11084_v6  ;;  %v2356_v61 = vpop.f32.mrf.mxu1  ;;  %v11571_v41 = vld [vmem:[%s10680_s27 + $0x20] sm:$0xff] }
 0x29a   : > { %v2357_v7 = vadd.f32 %v2356_v61, %v11250_v52 }
 0x29b   : > { %14849 = vst [vmem:[#allocation24_spill] sm:$0xff] %v11558_v37  ;;  %v11560_v3 = vadd.f32 %v2548_v2, %v2452_v26  ;;  %v10205_v26 = vld [vmem:[%s10680_s27] sm:$0xff]  ;;  %v10206_v2 = vld [vmem:[%s10680_s27 + $0x8] sm:$0xff] }
 0x2a0   : > { %v2453_v4 = vpop.f32.mrf.mxu2  ;;  %v2262_v22 = vpop.f32.mrf.mxu0 }
 0x2a1   : > { %v2454_v50 = vadd.f32 %v2453_v4, %v2357_v7  ;;  %v2550_v25 = vpop.f32.mrf.mxu3  ;;  %v11564_v40 = vadd.f32 %v2262_v22, %v11091_v48  ;;  %v2359_v32 = vpop.f32.mrf.mxu1 }
 0x2a2   : > { %v2360_v6 = vadd.f32 %v2359_v32, %v11250_v52  ;;  %v8299_v32 = vld [vmem:[%s14768_s1 + $0x398] sm:$0xf] }
 0x2a3   : > { %14850 = vst [vmem:[#allocation25_spill] sm:$0xff] %v11564_v40  ;;  %v11566_v23 = vadd.f32 %v2550_v25, %v2454_v50  ;;  %2599 = vmatmul.bf16.vlgmr.msra.gmra.mxu0 %v10203_v28 }
 0x2a4   : > { %2696 = vmatmul.bf16.vlgmr.msra.gmra.mxu1 %v11571_v41 }
 0x2a5   : > { %14851 = vst [vmem:[#allocation26_spill] sm:$0xff] %v11566_v23  ;;  %2793 = vmatmul.bf16.vlgmr.msra.gmra.mxu2 %v10205_v26  ;;  %v9815_v26 = vld [vmem:[%s14768_s1 + $0x3a0] sm:$0xf0]  ;;  %v10207_v23 = vld [vmem:[%s10680_s27 + $0x28] sm:$0xff] }
 0x2a6   : > { %2890 = vmatmul.bf16.vlgmr.msra.gmra.mxu3 %v10206_v2  ;;  %v8300_v40 = vor.u32 %v9815_v26, %v8299_v32 }
 0x2a8   : > { %v2456_v61 = vpop.f32.mrf.mxu2  ;;  %v2264_v48 = vpop.f32.mrf.mxu0  ;;  %3174 = vmatpush.bf16.msrb.mxu2 %v8300_v40 }
 0x2a9   : > { %v2457_v7 = vadd.f32 %v2456_v61, %v2360_v6  ;;  %v2553_v4 = vpop.f32.mrf.mxu3  ;;  %v11577_v22 = vadd.f32 %v2264_v48, %v11112_v56  ;;  %v2361_v50 = vpop.f32.mrf.mxu1  ;;  %v8107_v6 = vld [vmem:[%s14768_s1 + $0x218] sm:$0xf]  ;;  %v9767_v56 = vld [vmem:[%s14768_s1 + $0x220] sm:$0xf0] }
 0x2aa   : > { %v8108_v2 = vor.u32 %v9767_v56, %v8107_v6  ;;  %v8203_v61 = vld [vmem:[%s14768_s1 + $0x2d8] sm:$0xf]  ;;  %v2362_v48 = vadd.f32 %v2361_v50, %v11250_v52 }
 0x2ab   : > { %14852 = vst [vmem:[#allocation27_spill] sm:$0xff] %v11577_v22  ;;  %v11579_v25 = vadd.f32 %v2553_v4, %v2457_v7  ;;  %v9791_v7 = vld [vmem:[%s14768_s1 + $0x2e0] sm:$0xf0] }
 0x2ac   : > { %v8204_v4 = vor.u32 %v9791_v7, %v8203_v61  ;;  %2980 = vmatpush.bf16.msrb.mxu0 %v8108_v2  ;;  %v10208_v61 = vld [vmem:[%s10680_s27 + $0x30] sm:$0xff] }
 0x2ad   : > { %14853 = vst [vmem:[#allocation28_spill] sm:$0xff] %v11579_v25  ;;  %v10209_v7 = vld [vmem:[%s10680_s27 + $0x10] sm:$0xff] }
 0x2ae   : > { %3077 = vmatpush.bf16.msrb.mxu1 %v8204_v4 }
 0x2b0   : > { %v2458_v32 = vpop.f32.mrf.mxu2  ;;  %v2267_v6 = vpop.f32.mrf.mxu0 }
 0x2b1   : > { %v2459_v26 = vadd.f32 %v2458_v32, %v2362_v48  ;;  %v2555_v22 = vpop.f32.mrf.mxu3  ;;  %v11601_v56 = vadd.f32 %v2267_v6, %v11119_v8  ;;  %v2364_v25 = vpop.f32.mrf.mxu1 }
 0x2b2   : > { %v2365_v40 = vadd.f32 %v2364_v25, %v11250_v52  ;;  %v8371_v25 = vld [vmem:[%s14770_s3 + $0x70] sm:$0xf] }
 0x2b3   : > { %14854 = vst [vmem:[#allocation29_spill] sm:$0xff] %v11601_v56  ;;  %v11603_v37 = vadd.f32 %v2555_v22, %v2459_v26  ;;  %2604 = vmatmul.bf16.gmra.mxu0 %v10207_v23 }
 0x2b4   : > { %2701 = vmatmul.bf16.gmra.mxu1 %v10208_v61 }
 0x2b5   : > { %2798 = vmatmul.bf16.gmra.mxu2 %v10209_v7 }
 0x2b6   : > { %2895 = vmatmul.bf16.gmra.mxu3 %v10203_v28  ;;  %v9834_v28 = vld [vmem:[%s14770_s3 + $0x74] sm:$0xf0] }
 0x2b7   : > { %v8372_v26 = vor.u32 %v9834_v28, %v8371_v25 }
 0x2b8   : > { %v2461_v50 = vpop.f32.mrf.mxu2  ;;  %v2269_v48 = vpop.f32.mrf.mxu0 }
 0x2b9   : > { %v2462_v2 = vadd.f32 %v2461_v50, %v2365_v40  ;;  %v2558_v4 = vpop.f32.mrf.mxu3  ;;  %v11610_v8 = vadd.f32 %v2269_v48, %v11128_v57  ;;  %v2366_v32 = vpop.f32.mrf.mxu1  ;;  %5158 = vmatpush.bf16.msrb.mxu3 %v8372_v26 }
 0x2ba   : > { %v2367_v6 = vadd.f32 %v2366_v32, %v11250_v52 }
 0x2bb   : > { %14855 = vst [vmem:[#allocation30_spill] sm:$0xff] %v11610_v8  ;;  %v11612_v22 = vadd.f32 %v2558_v4, %v2462_v2  ;;  %v10210_v8 = vld [vmem:[%s10680_s27 + $0x38] sm:$0xff] }
 0x2bd   : > { %14856 = vst [vmem:[#allocation31_spill] sm:$0xff] %v11612_v22  ;;  %v10211_v22 = vld [vmem:[%s10680_s27 + $0x40] sm:$0xff] }
 0x2c0   : > { %v2463_v40 = vpop.f32.mrf.mxu2  ;;  %v2272_v50 = vpop.f32.mrf.mxu0 }
 0x2c1   : > { %v2464_v7 = vadd.f32 %v2463_v40, %v2367_v6  ;;  %v2560_v57 = vpop.f32.mrf.mxu3  ;;  %v11622_v2 = vadd.f32 %v2272_v50, %v11135_v18  ;;  %v2369_v4 = vpop.f32.mrf.mxu1 }
 0x2c2   : > { %v2370_v56 = vadd.f32 %v2369_v4, %v11250_v52 }
 0x2c3   : > { %14857 = vst [vmem:[#allocation32_spill] sm:$0xff] %v11622_v2  ;;  %v11624_v48 = vadd.f32 %v2560_v57, %v2464_v7  ;;  %2609 = vmatmul.bf16.gmra.mxu0 %v10210_v8  ;;  %v8287_v7 = vld [vmem:[%s14768_s1 + $0x380] sm:$0xf]  ;;  %v9812_v57 = vld [vmem:[%s14768_s1 + $0x388] sm:$0xf0] }
 0x2c4   : > { %2706 = vmatmul.bf16.gmra.mxu1 %v10211_v22 }
 0x2c5   : > { %2803 = vmatmul.bf16.gmra.mxu2 %v11571_v41  ;;  %v8288_v41 = vor.u32 %v9812_v57, %v8287_v7 }
 0x2c6   : > { %2900 = vmatmul.bf16.gmra.mxu3 %v10207_v23  ;;  %v8095_v23 = vld [vmem:[%s14768_s1 + $0x200] sm:$0xf] }
 0x2c7   : > { %3175 = vmatpush.bf16.msrb.mxu2 %v8288_v41  ;;  %v10212_v41 = vld [vmem:[%s10680_s27 + $0x48] sm:$0xff] }
 0x2c8   : > { %v2466_v32 = vpop.f32.mrf.mxu2  ;;  %v2274_v26 = vpop.f32.mrf.mxu0 }
 0x2c9   : > { %v2467_v25 = vadd.f32 %v2466_v32, %v2370_v56  ;;  %v2563_v28 = vpop.f32.mrf.mxu3  ;;  %v11631_v6 = vadd.f32 %v2274_v26, %v11150_v24  ;;  %v2371_v18 = vpop.f32.mrf.mxu1  ;;  %v9764_v24 = vld [vmem:[%s14768_s1 + $0x208] sm:$0xf0] }
 0x2ca   : > { %v8096_v56 = vor.u32 %v9764_v24, %v8095_v23  ;;  %v2372_v50 = vadd.f32 %v2371_v18, %v11250_v52  ;;  %v9788_v18 = vld [vmem:[%s14768_s1 + $0x2c8] sm:$0xf0] }
 0x2cb   : > { %14858 = vst [vmem:[#allocation33_spill] sm:$0xff] %v11631_v6  ;;  %v11633_v40 = vadd.f32 %v2563_v28, %v2467_v25  ;;  %v8191_v6 = vld [vmem:[%s14768_s1 + $0x2c0] sm:$0xf] }
 0x2cc   : > { %2981 = vmatpush.bf16.msrb.mxu0 %v8096_v56  ;;  %v8192_v23 = vor.u32 %v9788_v18, %v8191_v6  ;;  %v10213_v56 = vld [vmem:[%s10680_s27 + $0x50] sm:$0xff] }
 0x2ce   : > { %3078 = vmatpush.bf16.msrb.mxu1 %v8192_v23 }
 0x2d0   : > { %v2468_v4 = vpop.f32.mrf.mxu2  ;;  %v2277_v28 = vpop.f32.mrf.mxu0 }
 0x2d1   : > { %v2469_v32 = vadd.f32 %v2468_v4, %v2372_v50  ;;  %v2565_v25 = vpop.f32.mrf.mxu3  ;;  %v11649_v26 = vadd.f32 %v2277_v28, %v11163_v15  ;;  %v2374_v7 = vpop.f32.mrf.mxu1 }
 0x2d2   : > { %v2375_v24 = vadd.f32 %v2374_v7, %v11250_v52 }
 0x2d3   : > { %14859 = vst [vmem:[#allocation34_spill] sm:$0xff] %v11649_v26  ;;  %v11651_v57 = vadd.f32 %v2565_v25, %v2469_v32  ;;  %2614 = vmatmul.bf16.gmra.mxu0 %v10212_v41 }
 0x2d4   : > { %2711 = vmatmul.bf16.gmra.mxu1 %v10213_v56 }
 0x2d5   : > { %14860 = vst [vmem:[#allocation35_spill] sm:$0xff] %v11651_v57  ;;  %2808 = vmatmul.bf16.gmra.mxu2 %v10208_v61 }
 0x2d6   : > { %2905 = vmatmul.bf16.gmra.mxu3 %v10210_v8  ;;  %v14863_v8 = vld [vmem:[#allocation3_spill] sm:$0xff] }
 0x2d8   : > { %v2471_v15 = vpop.f32.mrf.mxu2  ;;  %v2279_v32 = vpop.f32.mrf.mxu0 }
 0x2d9   : > { %v2472_v50 = vadd.f32 %v2471_v15, %v2375_v24  ;;  %v2568_v4 = vpop.f32.mrf.mxu3  ;;  %v11663_v25 = vadd.f32 %v2279_v32, %v11166_v27  ;;  %v2376_v28 = vpop.f32.mrf.mxu1  ;;  %v10214_v15 = vld [vmem:[%s10680_s27 + $0x58] sm:$0xff]  ;;  %v8363_v27 = vld [vmem:[%s14770_s3 + $0x60] sm:$0xf] }
 0x2da   : > { %v2377_v6 = vadd.f32 %v2376_v28, %v11250_v52  ;;  %v10215_v32 = vld [vmem:[%s10680_s27 + $0x60] sm:$0xff] }
 0x2db   : > { %14861 = vst [vmem:[#allocation36_spill] sm:$0xff] %v11663_v25  ;;  %v11665_v26 = vadd.f32 %v2568_v4, %v2472_v50  ;;  %v9832_v50 = vld [vmem:[%s14770_s3 + $0x64] sm:$0xf0] }
 0x2dc   : > { %v8364_v28 = vor.u32 %v9832_v50, %v8363_v27 }
 0x2dd   : > { %14862 = vst [vmem:[#allocation37_spill] sm:$0xff] %v11665_v26 }
 0x2de   : > { %5159 = vmatpush.bf16.msrb.mxu3 %v8364_v28  ;;  %v8275_v28 = vld [vmem:[%s14768_s1 + $0x368] sm:$0xf] }
 0x2e0   : > { %v2473_v7 = vpop.f32.mrf.mxu2  ;;  %v2282_v61 = vpop.f32.mrf.mxu0 }
 0x2e1   : > { %v2474_v18 = vadd.f32 %v2473_v7, %v2377_v6  ;;  %v2570_v57 = vpop.f32.mrf.mxu3  ;;  %v11669_v23 = vadd.f32 %v2282_v61, %v14863_v8  ;;  %v2379_v2 = vpop.f32.mrf.mxu1  ;;  %v14866_v61 = vld [vmem:[#allocation4_spill] sm:$0xff] }
 0x2e2   : > { %v2380_v4 = vadd.f32 %v2379_v2, %v11250_v52 }
 0x2e3   : > { %14864 = vst [vmem:[#allocation3_spill] sm:$0xff] %v11669_v23  ;;  %v11671_v24 = vadd.f32 %v2570_v57, %v2474_v18  ;;  %2619 = vmatmul.bf16.gmra.mxu0 %v10214_v15 }
 0x2e4   : > { %2716 = vmatmul.bf16.gmra.mxu1 %v10215_v32 }
 0x2e5   : > { %14865 = vst [vmem:[#allocation38_spill] sm:$0xff] %v11671_v24  ;;  %2813 = vmatmul.bf16.gmra.mxu2 %v10211_v22 }
 0x2e6   : > { %2910 = vmatmul.bf16.gmra.mxu3 %v10212_v41 }
 0x2e8   : > { %v2476_v57 = vpop.f32.mrf.mxu2  ;;  %v2284_v18 = vpop.f32.mrf.mxu0 }
 0x2e9   : > { %v2477_v6 = vadd.f32 %v2476_v57, %v2380_v4  ;;  %v2573_v7 = vpop.f32.mrf.mxu3  ;;  %v11683_v8 = vadd.f32 %v2284_v18, %v14866_v61  ;;  %v2381_v23 = vpop.f32.mrf.mxu1  ;;  %v9809_v57 = vld [vmem:[%s14768_s1 + $0x370] sm:$0xf0]  ;;  %v8179_v61 = vld [vmem:[%s14768_s1 + $0x2a8] sm:$0xf] }
 0x2ea   : > { %v2382_v24 = vadd.f32 %v2381_v23, %v11250_v52  ;;  %v8083_v23 = vld [vmem:[%s14768_s1 + $0x1e8] sm:$0xf] }
 0x2eb   : > { %14867 = vst [vmem:[#allocation4_spill] sm:$0xff] %v11683_v8  ;;  %v11685_v25 = vadd.f32 %v2573_v7, %v2477_v6  ;;  %v8276_v6 = vor.u32 %v9809_v57, %v8275_v28  ;;  %v10217_v7 = vld [vmem:[%s10680_s27 + $0x70] sm:$0xff] }
 0x2ed   : > { %3176 = vmatpush.bf16.msrb.mxu2 %v8276_v6 }
 0x2f0   : > { %v2478_v2 = vpop.f32.mrf.mxu2  ;;  %v2287_v27 = vpop.f32.mrf.mxu0 }
 0x2f1   : > { %v2479_v26 = vadd.f32 %v2478_v2, %v2382_v24  ;;  %v2575_v22 = vpop.f32.mrf.mxu3  ;;  %v11689_v41 = vadd.f32 %v2287_v27, %v11207_v16  ;;  %v2384_v50 = vpop.f32.mrf.mxu1  ;;  %v10216_v24 = vld [vmem:[%s10680_s27 + $0x68] sm:$0xff]  ;;  %v9761_v16 = vld [vmem:[%s14768_s1 + $0x1f0] sm:$0xf0] }
 0x2f2   : > { %v8084_v18 = vor.u32 %v9761_v16, %v8083_v23  ;;  %v9785_v2 = vld [vmem:[%s14768_s1 + $0x2b0] sm:$0xf0] }
 0x2f3   : > { %14868 = vst [vmem:[#allocation39_spill] sm:$0xff] %v11689_v41  ;;  %v11691_v4 = vadd.f32 %v2575_v22, %v2479_v26  ;;  %2624 = vmatmul.bf16.gmra.mxu0 %v10216_v24  ;;  %v2385_v26 = vadd.f32 %v2384_v50, %v11250_v52  ;;  %v8180_v22 = vor.u32 %v9785_v2, %v8179_v61  ;;  %v10218_v2 = vld [vmem:[%s10680_s27 + $0x78] sm:$0xff] }
 0x2f4   : > { %2721 = vmatmul.bf16.gmra.mxu1 %v10217_v7  ;;  %2982 = vmatpush.bf16.msrb.mxu0 %v8084_v18 }
 0x2f5   : > { %14869 = vst [vmem:[#allocation40_spill] sm:$0xff] %v11691_v4  ;;  %2818 = vmatmul.bf16.gmra.mxu2 %v10213_v56  ;;  %3079 = vmatpush.bf16.msrb.mxu1 %v8180_v22 }
 0x2f6   : > { %2915 = vmatmul.bf16.gmra.mxu3 %v10214_v15 }
 0x2f8   : > { %v2481_v27 = vpop.f32.mrf.mxu2  ;;  %v2289_v57 = vpop.f32.mrf.mxu0 }
 0x2f9   : > { %v2482_v28 = vadd.f32 %v2481_v27, %v2385_v26  ;;  %v2578_v50 = vpop.f32.mrf.mxu3  ;;  %v11715_v56 = vadd.f32 %v2289_v57, %v11210_v63  ;;  %v2386_v15 = vpop.f32.mrf.mxu1 }
 0x2fa   : > { %v2387_v6 = vadd.f32 %v2386_v15, %v11250_v52 }
 0x2fb   : > { %v11717_v23 = vadd.f32 %v2578_v50, %v2482_v28 }
 0x300   : > { %v2483_v16 = vpop.f32.mrf.mxu2  ;;  %v2292_v4 = vpop.f32.mrf.mxu0 }
 0x301   : > { %v2484_v41 = vadd.f32 %v2483_v16, %v2387_v6  ;;  %v2580_v8 = vpop.f32.mrf.mxu3  ;;  %v11721_v18 = vadd.f32 %v2292_v4, %v11223_v60  ;;  %v2389_v61 = vpop.f32.mrf.mxu1 }
 0x302   : > { %v2390_v63 = vadd.f32 %v2389_v61, %v11250_v52 }
 0x303   : > { %v11723_v26 = vadd.f32 %v2580_v8, %v2484_v41  ;;  %2629 = vmatmul.bf16.gmra.mxu0 %v10218_v2  ;;  %v8355_v8 = vld [vmem:[%s14770_s3 + $0x50] sm:$0xf]  ;;  %v9830_v41 = vld [vmem:[%s14770_s3 + $0x54] sm:$0xf0] }
 0x304   : > { %2726 = vmatmul.bf16.gmra.mxu1 %v11258_v29 }
 0x305   : > { %2823 = vmatmul.bf16.gmra.mxu2 %v10215_v32  ;;  %v8356_v32 = vor.u32 %v9830_v41, %v8355_v8  ;;  %v8071_v8 = vld [vmem:[%s14768_s1 + $0x1d0] sm:$0xf] }
 0x306   : > { %2920 = vmatmul.bf16.gmra.mxu3 %v10216_v24 }
 0x307   : > { %5160 = vmatpush.bf16.msrb.mxu3 %v8356_v32  ;;  %v9782_v32 = vld [vmem:[%s14768_s1 + $0x298] sm:$0xf0] }
 0x308   : > { %v2486_v22 = vpop.f32.mrf.mxu2  ;;  %v2294_v50 = vpop.f32.mrf.mxu0 }
 0x309   : > { %v2487_v27 = vadd.f32 %v2486_v22, %v2390_v63  ;;  %v2583_v28 = vpop.f32.mrf.mxu3  ;;  %v11729_v57 = vadd.f32 %v2294_v50, %v11225_v34  ;;  %v2391_v60 = vpop.f32.mrf.mxu1 }
 0x30a   : > { %v2392_v24 = vadd.f32 %v2391_v60, %v11250_v52  ;;  %v8263_v52 = vld [vmem:[%s14768_s1 + $0x350] sm:$0xf]  ;;  %v9806_v60 = vld [vmem:[%s14768_s1 + $0x358] sm:$0xf0] }
 0x30b   : > { %v11737_v4 = vadd.f32 %v2583_v28, %v2487_v27  ;;  %v8264_v41 = vor.u32 %v9806_v60, %v8263_v52  ;;  %v3270_v52 = vmax.f32 %v11253_v47, 0.0 }
 0x30d   : > { %3177 = vmatpush.bf16.msrb.mxu2 %v8264_v41 }
 0x310   : > { %v2488_v15 = vpop.f32.mrf.mxu2  ;;  %v2297_v34 = vpop.f32.mrf.mxu0 }
 0x311   : > { %v2489_v6 = vadd.f32 %v2488_v15, %v2392_v24  ;;  %v2585_v16 = vpop.f32.mrf.mxu3  ;;  %v2394_v61 = vpop.f32.mrf.mxu1 }
 0x313   : > { %v11740_v63 = vadd.f32 %v2585_v16, %v2489_v6  ;;  %2634 = vmatmul.bf16.gmra.mxu0 %v11262_v21 }
 0x314   : > { %2731 = vmatmul.bf16.gmra.mxu1 %v11286_v30 }
 0x315   : > { %2828 = vmatmul.bf16.gmra.mxu2 %v10217_v7  ;;  %v9758_v7 = vld [vmem:[%s14768_s1 + $0x1d8] sm:$0xf0] }
 0x316   : > { %2925 = vmatmul.bf16.gmra.mxu3 %v10218_v2  ;;  %v8167_v2 = vld [vmem:[%s14768_s1 + $0x290] sm:$0xf]  ;;  %v8072_v24 = vor.u32 %v9758_v7, %v8071_v8 }
 0x317   : > { %v8168_v15 = vor.u32 %v9782_v32, %v8167_v2 }
 0x318   : > { %v2491_v22 = vpop.f32.mrf.mxu2  ;;  %v2298_v28 = vpop.f32.mrf.mxu0  ;;  %2983 = vmatpush.bf16.msrb.mxu0 %v8072_v24 }
 0x319   : > { %v2588_v27 = vpop.f32.mrf.mxu3  ;;  %v2395_v50 = vpop.f32.mrf.mxu1  ;;  %3080 = vmatpush.bf16.msrb.mxu1 %v8168_v15  ;;  %v10219_v28 = vld [vmem:[%s14769_s2] sm:$0x7] }
 0x31a   : > { %v11769_v50 = vperm.slane %v10219_v28, 2 }
 0x320   : > { %v2492_v6 = vpop.f32.mrf.mxu2  ;;  %v2600_v34 = vpop.f32.mrf.mxu0 }
 0x321   : > { %v2589_v16 = vpop.f32.mrf.mxu3  ;;  %v2601_v61 = vadd.f32 %v2600_v34, %v11269_v1  ;;  %v2697_v22 = vpop.f32.mrf.mxu1  ;;  %v3273_v6 = vmax.f32 %v11267_v33, 0.0  ;;  %v9828_v33 = vld [vmem:[%s14770_s3 + $0x44] sm:$0xf0] }
 0x323   : > { %v2698_v27 = vadd.f32 %v2697_v22, %v2601_v61  ;;  %2639 = vmatmul.bf16.gmra.mxu0 %v11290_v31 }
 0x324   : > { %2736 = vmatmul.bf16.gmra.mxu1 %v11326_v49 }
 0x325   : > { %2833 = vmatmul.bf16.gmra.mxu2 %v11258_v29  ;;  %v3271_v60 = vmax.f32 %v2698_v27, 0.0 }
 0x326   : > { %2930 = vmatmul.bf16.gmra.mxu3 %v11262_v21 }
 0x327   : > { %v3372_v1 = vpack.c.bf16 %v3271_v60, %v3270_v52 }
 0x328   : > { %v2794_v8 = vpop.f32.mrf.mxu2  ;;  %v2602_v2 = vpop.f32.mrf.mxu0 }
 0x329   : > { %v2795_v41 = vadd.f32 %v2794_v8, %v11769_v50  ;;  %v2891_v7 = vpop.f32.mrf.mxu3  ;;  %v2603_v32 = vadd.f32 %v2602_v2, %v11281_v46  ;;  %v2699_v29 = vpop.f32.mrf.mxu1  ;;  %v3468_v61 = vunpack.c.l.b16 %v3372_v1  ;;  %v3469_v28 = vunpack.c.h.b16 %v3372_v1 }
 0x32b   : > { %v11775_v24 = vadd.f32 %v2891_v7, %v2795_v41  ;;  %v2700_v15 = vadd.f32 %v2699_v29, %v2603_v32  ;;  %v8347_v41 = vld [vmem:[%s14770_s3 + $0x40] sm:$0xf] }
 0x32c   : > { %v8348_v2 = vor.u32 %v9828_v33, %v8347_v41 }
 0x32d   : > { %v3274_v16 = vmax.f32 %v2700_v15, 0.0 }
 0x32e   : > { %5161 = vmatpush.bf16.msrb.mxu3 %v8348_v2 }
 0x32f   : > { %v3374_v34 = vpack.c.bf16 %v3274_v16, %v3273_v6 }
 0x330   : > { %v2796_v47 = vpop.f32.mrf.mxu2  ;;  %v2605_v27 = vpop.f32.mrf.mxu0 }
 0x331   : > { %v2797_v21 = vadd.f32 %v2796_v47, %v11769_v50  ;;  %v2893_v22 = vpop.f32.mrf.mxu3  ;;  %v3471_v52 = vunpack.c.l.b16 %v3374_v34  ;;  %v3472_v60 = vunpack.c.h.b16 %v3374_v34  ;;  %v2606_v8 = vadd.f32 %v2605_v27, %v11297_v14  ;;  %v2702_v46 = vpop.f32.mrf.mxu1 }
 0x332   : > { %v3276_v14 = vmax.f32 %v11279_v19, 0.0  ;;  %v9803_v19 = vld [vmem:[%s14768_s1 + $0x340] sm:$0xf0] }
 0x333   : > { %v11786_v7 = vadd.f32 %v2893_v22, %v2797_v21  ;;  %v11788_v32 = vpack.c.b16 %v3471_v52, %v3468_v61  ;;  %v11790_v29 = vpack.c.b16 %v3472_v60, %v3469_v28  ;;  %v2703_v1 = vadd.f32 %v2702_v46, %v2606_v8  ;;  %2644 = vmatmul.bf16.gmra.mxu0 %v11330_v0 }
 0x334   : > { %2741 = vmatmul.bf16.gmra.mxu1 %v11354_v36  ;;  %v3279_v28 = vmax.f32 %v11295_v38, 0.0  ;;  %v9755_v38 = vld [vmem:[%s14768_s1 + $0x1c0] sm:$0xf0] }
 0x335   : > { %14870 = vst [vmem:[#allocation41_spill] sm:$0xff] %v11788_v32  ;;  %2838 = vmatmul.bf16.gmra.mxu2 %v11286_v30  ;;  %v3277_v15 = vmax.f32 %v2703_v1, 0.0  ;;  %v8251_v30 = vld [vmem:[%s14768_s1 + $0x338] sm:$0xf] }
 0x336   : > { %14871 = vst [vmem:[#allocation42_spill] sm:$0xff] %v11790_v29  ;;  %2935 = vmatmul.bf16.gmra.mxu3 %v11290_v31  ;;  %v8252_v36 = vor.u32 %v9803_v19, %v8251_v30 }
 0x337   : > { %v3376_v6 = vpack.c.bf16 %v3277_v15, %v3276_v14 }
 0x338   : > { %v2799_v16 = vpop.f32.mrf.mxu2  ;;  %v2607_v61 = vpop.f32.mrf.mxu0  ;;  %3178 = vmatpush.bf16.msrb.mxu2 %v8252_v36 }
 0x339   : > { %v2800_v34 = vadd.f32 %v2799_v16, %v11769_v50  ;;  %v2896_v47 = vpop.f32.mrf.mxu3  ;;  %v2608_v21 = vadd.f32 %v2607_v61, %v11321_v5  ;;  %v2704_v22 = vpop.f32.mrf.mxu1  ;;  %v3580_v5 = vunpack.c.l.b16 %v3376_v6  ;;  %v3581_v2 = vunpack.c.h.b16 %v3376_v6 }
 0x33b   : > { %v11799_v27 = vadd.f32 %v2896_v47, %v2800_v34  ;;  %v2705_v31 = vadd.f32 %v2704_v22, %v2608_v21  ;;  %v8059_v34 = vld [vmem:[%s14768_s1 + $0x1b8] sm:$0xf] }
 0x33c   : > { %v8155_v47 = vld [vmem:[%s14768_s1 + $0x278] sm:$0xf]  ;;  %v8060_v6 = vor.u32 %v9755_v38, %v8059_v34 }
 0x33d   : > { %v3280_v52 = vmax.f32 %v2705_v31, 0.0  ;;  %v3282_v31 = vmax.f32 %v11319_v11, 0.0 }
 0x33e   : > { %2984 = vmatpush.bf16.msrb.mxu0 %v8060_v6  ;;  %v14875_v6 = vld [vmem:[#allocation8_spill] sm:$0xff] }
 0x33f   : > { %v3378_v60 = vpack.c.bf16 %v3280_v52, %v3279_v28 }
 0x340   : > { %v2801_v8 = vpop.f32.mrf.mxu2  ;;  %v2610_v33 = vpop.f32.mrf.mxu0 }
 0x341   : > { %v2802_v46 = vadd.f32 %v2801_v8, %v11769_v50  ;;  %v2898_v41 = vpop.f32.mrf.mxu3  ;;  %v3583_v1 = vunpack.c.l.b16 %v3378_v60  ;;  %v3584_v14 = vunpack.c.h.b16 %v3378_v60  ;;  %v2611_v15 = vadd.f32 %v2610_v33, %v11337_v59  ;;  %v2707_v16 = vpop.f32.mrf.mxu1  ;;  %v9779_v59 = vld [vmem:[%s14768_s1 + $0x280] sm:$0xf0] }
 0x342   : > { %v8156_v19 = vor.u32 %v9779_v59, %v8155_v47 }
 0x343   : > { %v11819_v61 = vadd.f32 %v2898_v41, %v2802_v46  ;;  %v11824_v21 = vpack.c.b16 %v3583_v1, %v3580_v5  ;;  %v11826_v22 = vpack.c.b16 %v3584_v14, %v3581_v2  ;;  %v2708_v30 = vadd.f32 %v2707_v16, %v2611_v15  ;;  %2649 = vmatmul.bf16.gmra.mxu0 %v11358_v17 }
 0x344   : > { %2746 = vmatmul.bf16.gmra.mxu1 %v11394_v55 }
 0x345   : > { %14872 = vst [vmem:[#allocation43_spill] sm:$0xff] %v11824_v21  ;;  %2843 = vmatmul.bf16.gmra.mxu2 %v11326_v49  ;;  %v3283_v36 = vmax.f32 %v2708_v30, 0.0  ;;  %3081 = vmatpush.bf16.msrb.mxu1 %v8156_v19  ;;  %v14874_v49 = vld [vmem:[#allocation5_spill] sm:$0xff] }
 0x346   : > { %14873 = vst [vmem:[#allocation44_spill] sm:$0xff] %v11826_v22  ;;  %2940 = vmatmul.bf16.gmra.mxu3 %v11330_v0  ;;  %v3285_v33 = vmax.f32 %v14874_v49, 0.0  ;;  %v10221_v49 = vld [vmem:[%s10680_s27 + $0xb8] sm:$0xff] }
 0x347   : > { %v3380_v28 = vpack.c.bf16 %v3283_v36, %v3282_v31  ;;  %v14876_v31 = vld [vmem:[#allocation11_spill] sm:$0xff]  ;;  %v8339_v36 = vld [vmem:[%s14770_s3 + $0x30] sm:$0xf] }
 0x348   : > { %v2804_v52 = vpop.f32.mrf.mxu2  ;;  %v2612_v5 = vpop.f32.mrf.mxu0 }
 0x349   : > { %v2805_v60 = vadd.f32 %v2804_v52, %v11769_v50  ;;  %v2901_v8 = vpop.f32.mrf.mxu3  ;;  %v2613_v17 = vadd.f32 %v2612_v5, %v11349_v35  ;;  %v2709_v46 = vpop.f32.mrf.mxu1  ;;  %v3474_v0 = vunpack.c.l.b16 %v3380_v28  ;;  %v3475_v34 = vunpack.c.h.b16 %v3380_v28  ;;  %v9826_v52 = vld [vmem:[%s14770_s3 + $0x34] sm:$0xf0] }
 0x34a   : > { %v8340_v5 = vor.u32 %v9826_v52, %v8339_v36 }
 0x34b   : > { %v11835_v41 = vadd.f32 %v2901_v8, %v2805_v60  ;;  %v2710_v55 = vadd.f32 %v2709_v46, %v2613_v17  ;;  %v10220_v8 = vld [vmem:[%s10680_s27 + $0xb0] sm:$0xff]  ;;  %v14878_v17 = vld [vmem:[#allocation6_spill] sm:$0xff] }
 0x34c   : > { %v3288_v46 = vmax.f32 %v14878_v17, 0.0  ;;  %5162 = vmatpush.bf16.msrb.mxu3 %v8340_v5 }
 0x34d   : > { %v3286_v11 = vmax.f32 %v2710_v55, 0.0 }
 0x34f   : > { %v3382_v2 = vpack.c.bf16 %v3286_v11, %v3285_v33 }
 0x350   : > { %v2806_v1 = vpop.f32.mrf.mxu2  ;;  %v2615_v16 = vpop.f32.mrf.mxu0 }
 0x351   : > { %v2807_v14 = vadd.f32 %v2806_v1, %v11769_v50  ;;  %v2903_v15 = vpop.f32.mrf.mxu3  ;;  %v3477_v38 = vunpack.c.l.b16 %v3382_v2  ;;  %v3478_v47 = vunpack.c.h.b16 %v3382_v2  ;;  %v2616_v35 = vadd.f32 %v2615_v16, %v14875_v6  ;;  %v2712_v59 = vpop.f32.mrf.mxu1 }
 0x353   : > { %v11840_v30 = vadd.f32 %v2903_v15, %v2807_v14  ;;  %v2713_v19 = vadd.f32 %v2712_v59, %v2616_v35  ;;  %2654 = vmatmul.bf16.gmra.mxu0 %v14876_v31  ;;  %v11849_v28 = vpack.c.b16 %v3477_v38, %v3474_v0  ;;  %v11851_v60 = vpack.c.b16 %v3478_v47, %v3475_v34  ;;  %v14879_v14 = vld [vmem:[#allocation10_spill] sm:$0xff]  ;;  %v14880_v38 = vld [vmem:[#allocation7_spill] sm:$0xff] }
 0x354   : > { %2751 = vmatmul.bf16.gmra.mxu1 %v11422_v51  ;;  %v3291_v47 = vmax.f32 %v14880_v38, 0.0 }
 0x355   : > { %14877 = vst [vmem:[#allocation5_spill] sm:$0xff] %v11849_v28  ;;  %2848 = vmatmul.bf16.gmra.mxu2 %v10220_v8  ;;  %v3289_v55 = vmax.f32 %v2713_v19, 0.0 }
 0x356   : > { %2945 = vmatmul.bf16.gmra.mxu3 %v10221_v49  ;;  %v9800_v49 = vld [vmem:[%s14768_s1 + $0x328] sm:$0xf0] }
 0x357   : > { %v3384_v33 = vpack.c.bf16 %v3289_v55, %v3288_v46  ;;  %v8239_v55 = vld [vmem:[%s14768_s1 + $0x320] sm:$0xf] }
 0x358   : > { %v2809_v11 = vpop.f32.mrf.mxu2  ;;  %v2617_v0 = vpop.f32.mrf.mxu0 }
 0x359   : > { %v2810_v2 = vadd.f32 %v2809_v11, %v11769_v50  ;;  %v2906_v1 = vpop.f32.mrf.mxu3  ;;  %v2618_v15 = vadd.f32 %v2617_v0, %v14879_v14  ;;  %v2714_v16 = vpop.f32.mrf.mxu1  ;;  %v3586_v52 = vunpack.c.l.b16 %v3384_v33  ;;  %v8047_v11 = vld [vmem:[%s14768_s1 + $0x1a0] sm:$0xf]  ;;  %v8240_v0 = vor.u32 %v9800_v49, %v8239_v55 }
 0x35a   : > { %v8143_v14 = vld [vmem:[%s14768_s1 + $0x260] sm:$0xf] }
 0x35b   : > { %v11859_v34 = vadd.f32 %v2906_v1, %v2810_v2  ;;  %v2715_v51 = vadd.f32 %v2714_v16, %v2618_v15  ;;  %v3587_v2 = vunpack.c.h.b16 %v3384_v33  ;;  %v9776_v15 = vld [vmem:[%s14768_s1 + $0x268] sm:$0xf0]  ;;  %3179 = vmatpush.bf16.msrb.mxu2 %v8240_v0 }
 0x35d   : > { %v3292_v6 = vmax.f32 %v2715_v51, 0.0  ;;  %v8144_v51 = vor.u32 %v9776_v15, %v8143_v14 }
 0x35f   : > { %v3386_v35 = vpack.c.bf16 %v3292_v6, %v3291_v47  ;;  %v10222_v47 = vld [vmem:[%s10680_s27 + $0xc0] sm:$0xff]  ;;  %3082 = vmatpush.bf16.msrb.mxu1 %v8144_v51 }
 0x360   : > { %v2811_v59 = vpop.f32.mrf.mxu2  ;;  %v2620_v36 = vpop.f32.mrf.mxu0 }
 0x361   : > { %v2812_v19 = vadd.f32 %v2811_v59, %v11769_v50  ;;  %v2908_v31 = vpop.f32.mrf.mxu3  ;;  %v3589_v8 = vunpack.c.l.b16 %v3386_v35  ;;  %v3590_v5 = vunpack.c.h.b16 %v3386_v35  ;;  %v2621_v17 = vadd.f32 %v2620_v36, %v11405_v58  ;;  %v2717_v46 = vpop.f32.mrf.mxu1  ;;  %v9752_v58 = vld [vmem:[%s14768_s1 + $0x1a8] sm:$0xf0]  ;;  %v14883_v35 = vld [vmem:[#allocation9_spill] sm:$0xff] }
 0x362   : > { %v8048_v33 = vor.u32 %v9752_v58, %v8047_v11  ;;  %v3294_v59 = vmax.f32 %v14883_v35, 0.0  ;;  %v14885_v11 = vld [vmem:[#allocation12_spill] sm:$0xff] }
 0x363   : > { %v11873_v1 = vadd.f32 %v2908_v31, %v2812_v19  ;;  %v2718_v16 = vadd.f32 %v2717_v46, %v2621_v17  ;;  %2659 = vmatmul.bf16.gmra.mxu0 %v11426_v44  ;;  %v11885_v38 = vpack.c.b16 %v3589_v8, %v3586_v52  ;;  %v11889_v6 = vpack.c.b16 %v3590_v5, %v3587_v2  ;;  %v10223_v31 = vld [vmem:[%s10680_s27 + $0xc8] sm:$0xff]  ;;  %v14884_v46 = vld [vmem:[#allocation14_spill] sm:$0xff] }
 0x364   : > { %2756 = vmatmul.bf16.gmra.mxu1 %v11456_v42  ;;  %2985 = vmatpush.bf16.msrb.mxu0 %v8048_v33  ;;  %v3297_v2 = vmax.f32 %v14885_v11, 0.0  ;;  %v10225_v11 = vld [vmem:[%s10680_s27 + $0xd8] sm:$0xff] }
 0x365   : > { %14881 = vst [vmem:[#allocation8_spill] sm:$0xff] %v11885_v38  ;;  %2853 = vmatmul.bf16.gmra.mxu2 %v10222_v47  ;;  %v3295_v19 = vmax.f32 %v2718_v16, 0.0 }
 0x366   : > { %14882 = vst [vmem:[#allocation11_spill] sm:$0xff] %v11889_v6  ;;  %2950 = vmatmul.bf16.gmra.mxu3 %v10223_v31  ;;  %v14908_v6 = vld [vmem:[#allocation25_spill] sm:$0xff] }
 0x367   : > { %v3388_v36 = vpack.c.bf16 %v3295_v19, %v3294_v59 }
 0x368   : > { %v2814_v44 = vpop.f32.mrf.mxu2  ;;  %v2622_v8 = vpop.f32.mrf.mxu0 }
 0x369   : > { %v2815_v17 = vadd.f32 %v2814_v44, %v11769_v50  ;;  %v2911_v52 = vpop.f32.mrf.mxu3  ;;  %v2623_v42 = vadd.f32 %v2622_v8, %v14884_v46  ;;  %v2719_v55 = vpop.f32.mrf.mxu1  ;;  %v3480_v0 = vunpack.c.l.b16 %v3388_v36  ;;  %v3481_v47 = vunpack.c.h.b16 %v3388_v36  ;;  %v14887_v46 = vld [vmem:[#allocation18_spill] sm:$0xff] }
 0x36b   : > { %v11895_v49 = vadd.f32 %v2911_v52, %v2815_v17  ;;  %v2720_v5 = vadd.f32 %v2719_v55, %v2623_v42  ;;  %v10224_v42 = vld [vmem:[%s10680_s27 + $0xd0] sm:$0xff] }
 0x36c   : > { %v14888_v55 = vld [vmem:[#allocation13_spill] sm:$0xff] }
 0x36d   : > { %v3298_v58 = vmax.f32 %v2720_v5, 0.0  ;;  %v3300_v36 = vmax.f32 %v14888_v55, 0.0 }
 0x36f   : > { %v3390_v14 = vpack.c.bf16 %v3298_v58, %v3297_v2 }
 0x370   : > { %v2816_v15 = vpop.f32.mrf.mxu2  ;;  %v2625_v51 = vpop.f32.mrf.mxu0 }
 0x371   : > { %v2817_v16 = vadd.f32 %v2816_v15, %v11769_v50  ;;  %v2913_v33 = vpop.f32.mrf.mxu3  ;;  %v3483_v35 = vunpack.c.l.b16 %v3390_v14  ;;  %v3484_v59 = vunpack.c.h.b16 %v3390_v14  ;;  %v2626_v19 = vadd.f32 %v2625_v51, %v11433_v43  ;;  %v2722_v31 = vpop.f32.mrf.mxu1  ;;  %v9824_v51 = vld [vmem:[%s14770_s3 + $0x24] sm:$0xf0] }
 0x373   : > { %v11900_v44 = vadd.f32 %v2913_v33, %v2817_v16  ;;  %v11902_v17 = vpack.c.b16 %v3483_v35, %v3480_v0  ;;  %v11904_v52 = vpack.c.b16 %v3484_v59, %v3481_v47  ;;  %v2723_v8 = vadd.f32 %v2722_v31, %v2626_v19  ;;  %2664 = vmatmul.bf16.gmra.mxu0 %v14887_v46  ;;  %v14889_v0 = vld [vmem:[#allocation17_spill] sm:$0xff]  ;;  %v14890_v19 = vld [vmem:[#allocation15_spill] sm:$0xff] }
 0x374   : > { %2761 = vmatmul.bf16.gmra.mxu1 %v11484_v10  ;;  %v8331_v10 = vld [vmem:[%s14770_s3 + $0x20] sm:$0xf]  ;;  %v3303_v31 = vmax.f32 %v14890_v19, 0.0 }
 0x375   : > { %14886 = vst [vmem:[#allocation6_spill] sm:$0xff] %v11902_v17  ;;  %2858 = vmatmul.bf16.gmra.mxu2 %v10224_v42  ;;  %v3301_v5 = vmax.f32 %v2723_v8, 0.0  ;;  %v8332_v35 = vor.u32 %v9824_v51, %v8331_v10  ;;  %v9797_v10 = vld [vmem:[%s14768_s1 + $0x310] sm:$0xf0] }
 0x376   : > { %2955 = vmatmul.bf16.gmra.mxu3 %v10225_v11 }
 0x377   : > { %v3392_v43 = vpack.c.bf16 %v3301_v5, %v3300_v36  ;;  %5163 = vmatpush.bf16.msrb.mxu3 %v8332_v35  ;;  %v10226_v35 = vld [vmem:[%s10680_s27 + $0xf8] sm:$0xff] }
 0x378   : > { %v2819_v2 = vpop.f32.mrf.mxu2  ;;  %v2627_v15 = vpop.f32.mrf.mxu0 }
 0x379   : > { %v2820_v58 = vadd.f32 %v2819_v2, %v11769_v50  ;;  %v2916_v14 = vpop.f32.mrf.mxu3  ;;  %v2628_v16 = vadd.f32 %v2627_v15, %v14889_v0  ;;  %v2724_v33 = vpop.f32.mrf.mxu1  ;;  %v3592_v55 = vunpack.c.l.b16 %v3392_v43  ;;  %v3593_v2 = vunpack.c.h.b16 %v3392_v43 }
 0x37b   : > { %v11919_v47 = vadd.f32 %v2916_v14, %v2820_v58  ;;  %v2725_v59 = vadd.f32 %v2724_v33, %v2628_v16  ;;  %v8227_v33 = vld [vmem:[%s14768_s1 + $0x308] sm:$0xf] }
 0x37c   : > { %v8228_v43 = vor.u32 %v9797_v10, %v8227_v33 }
 0x37d   : > { %v3304_v8 = vmax.f32 %v2725_v59, 0.0 }
 0x37e   : > { %3180 = vmatpush.bf16.msrb.mxu2 %v8228_v43 }
 0x37f   : > { %v3394_v46 = vpack.c.bf16 %v3304_v8, %v3303_v31  ;;  %v14893_v31 = vld [vmem:[#allocation16_spill] sm:$0xff] }
 0x380   : > { %v2821_v42 = vpop.f32.mrf.mxu2  ;;  %v2630_v11 = vpop.f32.mrf.mxu0  ;;  %v3306_v8 = vmax.f32 %v14893_v31, 0.0 }
 0x381   : > { %v2822_v36 = vadd.f32 %v2821_v42, %v11769_v50  ;;  %v2918_v5 = vpop.f32.mrf.mxu3  ;;  %v3595_v15 = vunpack.c.l.b16 %v3394_v46  ;;  %v3596_v0 = vunpack.c.h.b16 %v3394_v46  ;;  %v2631_v58 = vadd.f32 %v2630_v11, %v11473_v13  ;;  %v2727_v14 = vpop.f32.mrf.mxu1  ;;  %v10227_v13 = vld [vmem:[%s10680_s27 + $0xe0] sm:$0xff]  ;;  %v10228_v42 = vld [vmem:[%s10680_s27 + $0xe8] sm:$0xff] }
 0x383   : > { %v11924_v16 = vadd.f32 %v2918_v5, %v2822_v36  ;;  %v2728_v51 = vadd.f32 %v2727_v14, %v2631_v58  ;;  %2669 = vmatmul.bf16.gmra.mxu0 %v10226_v35  ;;  %v11933_v59 = vpack.c.b16 %v3595_v15, %v3592_v55  ;;  %v11935_v19 = vpack.c.b16 %v3596_v0, %v3593_v2  ;;  %v9749_v15 = vld [vmem:[%s14768_s1 + $0x190] sm:$0xf0]  ;;  %v8131_v0 = vld [vmem:[%s14768_s1 + $0x248] sm:$0xf] }
 0x384   : > { %2766 = vmatmul.bf16.gmra.mxu1 %v11515_v39  ;;  %v8035_v39 = vld [vmem:[%s14768_s1 + $0x188] sm:$0xf] }
 0x385   : > { %14891 = vst [vmem:[#allocation10_spill] sm:$0xff] %v11933_v59  ;;  %2863 = vmatmul.bf16.gmra.mxu2 %v10227_v13  ;;  %v3307_v46 = vmax.f32 %v2728_v51, 0.0  ;;  %v8036_v10 = vor.u32 %v9749_v15, %v8035_v39  ;;  %v3309_v13 = vmax.f32 %v11471_v54, 0.0  ;;  %v10233_v59 = vld [vmem:[%s10680_s27 + $0x100] sm:$0xff] }
 0x386   : > { %14892 = vst [vmem:[#allocation7_spill] sm:$0xff] %v11935_v19  ;;  %2960 = vmatmul.bf16.gmra.mxu3 %v10228_v42  ;;  %v10232_v19 = vld [vmem:[%s10680_s27 + $0x120] sm:$0xff] }
 0x387   : > { %v3396_v36 = vpack.c.bf16 %v3307_v46, %v3306_v8  ;;  %2986 = vmatpush.bf16.msrb.mxu0 %v8036_v10 }
 0x388   : > { %v2824_v5 = vpop.f32.mrf.mxu2  ;;  %v2632_v14 = vpop.f32.mrf.mxu0 }
 0x389   : > { %v2825_v11 = vadd.f32 %v2824_v5, %v11769_v50  ;;  %v2921_v58 = vpop.f32.mrf.mxu3  ;;  %v2633_v55 = vadd.f32 %v2632_v14, %v11479_v20  ;;  %v2729_v2 = vpop.f32.mrf.mxu1  ;;  %v9773_v20 = vld [vmem:[%s14768_s1 + $0x250] sm:$0xf0]  ;;  %v3486_v42 = vunpack.c.l.b16 %v3396_v36  ;;  %v3487_v14 = vunpack.c.h.b16 %v3396_v36 }
 0x38a   : > { %v8132_v43 = vor.u32 %v9773_v20, %v8131_v0  ;;  %v3312_v36 = vmax.f32 %v11477_v45, 0.0 }
 0x38b   : > { %v11952_v33 = vadd.f32 %v2921_v58, %v2825_v11  ;;  %v2730_v51 = vadd.f32 %v2729_v2, %v2633_v55 }
 0x38c   : > { %3083 = vmatpush.bf16.msrb.mxu1 %v8132_v43  ;;  %v10230_v43 = vld [vmem:[%s10680_s27 + $0xf0] sm:$0xff] }
 0x38d   : > { %v3310_v31 = vmax.f32 %v2730_v51, 0.0  ;;  %v10229_v51 = vld [vmem:[%s10680_s27 + $0x108] sm:$0xff] }
 0x38f   : > { %v3398_v8 = vpack.c.bf16 %v3310_v31, %v3309_v13 }
 0x390   : > { %v2826_v46 = vpop.f32.mrf.mxu2  ;;  %v2635_v58 = vpop.f32.mrf.mxu0 }
 0x391   : > { %v2827_v5 = vadd.f32 %v2826_v46, %v11769_v50  ;;  %v2923_v11 = vpop.f32.mrf.mxu3  ;;  %v3489_v39 = vunpack.c.l.b16 %v3398_v8  ;;  %v3490_v15 = vunpack.c.h.b16 %v3398_v8  ;;  %v2636_v55 = vadd.f32 %v2635_v58, %v11498_v53  ;;  %v2732_v2 = vpop.f32.mrf.mxu1  ;;  %v8323_v58 = vld [vmem:[%s14770_s3 + $0x10] sm:$0xf] }
 0x393   : > { %v11960_v0 = vadd.f32 %v2923_v11, %v2827_v5  ;;  %v11962_v54 = vpack.c.b16 %v3489_v39, %v3486_v42  ;;  %v11964_v10 = vpack.c.b16 %v3490_v15, %v3487_v14  ;;  %v2733_v20 = vadd.f32 %v2732_v2, %v2636_v55  ;;  %2674 = vmatmul.bf16.gmra.mxu0 %v10229_v51  ;;  %v14895_v39 = vld [vmem:[#allocation19_spill] sm:$0xff] }
 0x394   : > { %2771 = vmatmul.bf16.gmra.mxu1 %v11552_v12  ;;  %v9822_v12 = vld [vmem:[%s14770_s3 + $0x14] sm:$0xf0]  ;;  %v3315_v15 = vmax.f32 %v14895_v39, 0.0 }
 0x395   : > { %14894 = vst [vmem:[#allocation9_spill] sm:$0xff] %v11962_v54  ;;  %2868 = vmatmul.bf16.gmra.mxu2 %v10230_v43  ;;  %v3313_v13 = vmax.f32 %v2733_v20, 0.0  ;;  %v9820_v43 = vld [vmem:[%s14770_s3 + $0x4] sm:$0xf0] }
 0x396   : > { %2965 = vmatmul.bf16.gmra.mxu3 %v10226_v35  ;;  %v8324_v35 = vor.u32 %v9822_v12, %v8323_v58  ;;  %v14896_v58 = vld [vmem:[#allocation22_spill] sm:$0xff] }
 0x397   : > { %v3400_v31 = vpack.c.bf16 %v3313_v13, %v3312_v36 }
 0x398   : > { %v2829_v53 = vpop.f32.mrf.mxu2  ;;  %v2637_v42 = vpop.f32.mrf.mxu0  ;;  %5164 = vmatpush.bf16.msrb.mxu3 %v8324_v35 }
 0x399   : > { %v2830_v8 = vadd.f32 %v2829_v53, %v11769_v50  ;;  %v2926_v46 = vpop.f32.mrf.mxu3  ;;  %v2638_v5 = vadd.f32 %v2637_v42, %v11510_v62  ;;  %v2734_v11 = vpop.f32.mrf.mxu1  ;;  %v8315_v62 = vld [vmem:[%s14770_s3] sm:$0xf]  ;;  %v3598_v36 = vunpack.c.l.b16 %v3400_v31  ;;  %v3599_v42 = vunpack.c.h.b16 %v3400_v31  ;;  %v14899_v31 = vld [vmem:[#allocation20_spill] sm:$0xff] }
 0x39b   : > { %v11978_v45 = vadd.f32 %v2926_v46, %v2830_v8  ;;  %v2735_v14 = vadd.f32 %v2734_v11, %v2638_v5  ;;  %v8316_v46 = vor.u32 %v9820_v43, %v8315_v62  ;;  %v3318_v62 = vmax.f32 %v14899_v31, 0.0 }
 0x39d   : > { %v3316_v55 = vmax.f32 %v2735_v14, 0.0  ;;  %5165 = vmatpush.bf16.msrb.mxu3 %v8316_v46 }
 0x39f   : > { %v3402_v2 = vpack.c.bf16 %v3316_v55, %v3315_v15  ;;  %v10231_v15 = vld [vmem:[%s10680_s27 + $0x118] sm:$0xff] }
 0x3a0   : > { %v2831_v20 = vpop.f32.mrf.mxu2  ;;  %v2640_v8 = vpop.f32.mrf.mxu0 }
 0x3a1   : > { %v2832_v13 = vadd.f32 %v2831_v20, %v11769_v50  ;;  %v2928_v53 = vpop.f32.mrf.mxu3  ;;  %v3601_v5 = vunpack.c.l.b16 %v3402_v2  ;;  %v3602_v11 = vunpack.c.h.b16 %v3402_v2  ;;  %v2641_v12 = vadd.f32 %v2640_v8, %v14896_v58  ;;  %v2737_v35 = vpop.f32.mrf.mxu1 }
 0x3a3   : > { %v11989_v14 = vadd.f32 %v2928_v53, %v2832_v13  ;;  %v2738_v39 = vadd.f32 %v2737_v35, %v2641_v12  ;;  %2679 = vmatmul.bf16.gmra.mxu0 %v10231_v15  ;;  %v11992_v55 = vpack.c.b16 %v3601_v5, %v3598_v36  ;;  %v11994_v20 = vpack.c.b16 %v3602_v11, %v3599_v42  ;;  %v8691_v42 = vld [vmem:[%s14770_s3 + $0x2f0] sm:$0xf]  ;;  %v9898_v12 = vld [vmem:[%s14770_s3 + $0x274] sm:$0xf0] }
 0x3a4   : > { %2776 = vmatmul.bf16.gmra.mxu1 %v10232_v19  ;;  %v8563_v19 = vld [vmem:[%s14770_s3 + $0x1f0] sm:$0xf] }
 0x3a5   : > { %14897 = vst [vmem:[#allocation14_spill] sm:$0xff] %v11992_v55  ;;  %2873 = vmatmul.bf16.gmra.mxu2 %v10233_v59  ;;  %v3319_v2 = vmax.f32 %v2738_v39, 0.0  ;;  %v9914_v59 = vld [vmem:[%s14770_s3 + $0x2f4] sm:$0xf0]  ;;  %v8627_v11 = vld [vmem:[%s14770_s3 + $0x270] sm:$0xf] }
 0x3a6   : > { %14898 = vst [vmem:[#allocation12_spill] sm:$0xff] %v11994_v20  ;;  %2970 = vmatmul.bf16.gmra.mxu3 %v10229_v51  ;;  %v8692_v5 = vor.u32 %v9914_v59, %v8691_v42  ;;  %v8628_v31 = vor.u32 %v9898_v12, %v8627_v11 }
 0x3a7   : > { %v3404_v43 = vpack.c.bf16 %v3319_v2, %v3318_v62  ;;  %v14900_v62 = vld [vmem:[#allocation21_spill] sm:$0xff] }
 0x3a8   : > { %v2834_v8 = vpop.f32.mrf.mxu2  ;;  %v2642_v46 = vpop.f32.mrf.mxu0  ;;  %5378 = vmatpush.bf16.msra.mxu2 %v8692_v5  ;;  %v3321_v2 = vmax.f32 %v14900_v62, 0.0  ;;  %5334 = vmatpush.bf16.msra.mxu1 %v8628_v31  ;;  %v10235_v31 = vld [vmem:[%s10680_s27 + $0x130] sm:$0xff] }
 0x3a9   : > { %v2835_v13 = vadd.f32 %v2834_v8, %v11769_v50  ;;  %v2931_v53 = vpop.f32.mrf.mxu3  ;;  %v2643_v58 = vadd.f32 %v2642_v46, %v11548_v9  ;;  %v2739_v36 = vpop.f32.mrf.mxu1  ;;  %v9882_v9 = vld [vmem:[%s14770_s3 + $0x1f4] sm:$0xf0]  ;;  %v3492_v46 = vunpack.c.l.b16 %v3404_v43  ;;  %v3493_v55 = vunpack.c.h.b16 %v3404_v43  ;;  %v10236_v62 = vld [vmem:[%s10680_s27 + $0x110] sm:$0xff] }
 0x3aa   : > { %v8564_v39 = vor.u32 %v9882_v9, %v8563_v19 }
 0x3ab   : > { %v12010_v51 = vadd.f32 %v2931_v53, %v2835_v13  ;;  %v2740_v35 = vadd.f32 %v2739_v36, %v2643_v58 }
 0x3ac   : > { %5290 = vmatpush.bf16.msra.mxu0 %v8564_v39  ;;  %v10234_v39 = vld [vmem:[%s10680_s27 + $0x128] sm:$0xff] }
 0x3ad   : > { %v3322_v8 = vmax.f32 %v2740_v35, 0.0 }
 0x3af   : > { %v3406_v13 = vpack.c.bf16 %v3322_v8, %v3321_v2  ;;  %v14902_v2 = vld [vmem:[#allocation23_spill] sm:$0xff] }
 0x3b0   : > { %v2836_v53 = vpop.f32.mrf.mxu2  ;;  %v2645_v20 = vpop.f32.mrf.mxu0  ;;  %v3324_v43 = vmax.f32 %v14902_v2, 0.0 }
 0x3b1   : > { %v2837_v42 = vadd.f32 %v2836_v53, %v11769_v50  ;;  %v2933_v59 = vpop.f32.mrf.mxu3  ;;  %v3495_v58 = vunpack.c.l.b16 %v3406_v13  ;;  %v3496_v36 = vunpack.c.h.b16 %v3406_v13  ;;  %v2646_v19 = vadd.f32 %v2645_v20, %v11560_v3  ;;  %v2742_v5 = vpop.f32.mrf.mxu1 }
 0x3b3   : > { %v12024_v9 = vadd.f32 %v2933_v59, %v2837_v42  ;;  %v12026_v11 = vpack.c.b16 %v3495_v58, %v3492_v46  ;;  %v12028_v12 = vpack.c.b16 %v3496_v36, %v3493_v55  ;;  %v2743_v35 = vadd.f32 %v2742_v5, %v2646_v19  ;;  %2684 = vmatmul.bf16.gmra.mxu0 %v10234_v39  ;;  %v14903_v42 = vld [vmem:[#allocation26_spill] sm:$0xff]  ;;  %v14904_v19 = vld [vmem:[#allocation24_spill] sm:$0xff] }
 0x3b4   : > { %2781 = vmatmul.bf16.gmra.mxu1 %v10235_v31  ;;  %v3327_v5 = vmax.f32 %v14904_v19, 0.0  ;;  %v10237_v19 = vld [vmem:[%s10680_s27 + $0x10] sm:$0xff] }
 0x3b5   : > { %14901 = vst [vmem:[#allocation18_spill] sm:$0xff] %v12026_v11  ;;  %2878 = vmatmul.bf16.gmra.mxu2 %v10236_v62  ;;  %v3325_v8 = vmax.f32 %v2743_v35, 0.0 }
 0x3b6   : > { %2975 = vmatmul.bf16.gmra.mxu3 %v10231_v15 }
 0x3b7   : > { %v3408_v13 = vpack.c.bf16 %v3325_v8, %v3324_v43 }
 0x3b8   : > { %v2839_v3 = vpop.f32.mrf.mxu2  ;;  %v2647_v46 = vpop.f32.mrf.mxu0 }
 0x3b9   : > { %v2840_v20 = vadd.f32 %v2839_v3, %v11769_v50  ;;  %v2936_v53 = vpop.f32.mrf.mxu3  ;;  %v2648_v55 = vadd.f32 %v2647_v46, %v14903_v42  ;;  %v2744_v59 = vpop.f32.mrf.mxu1  ;;  %v3604_v15 = vunpack.c.l.b16 %v3408_v13  ;;  %v3605_v8 = vunpack.c.h.b16 %v3408_v13  ;;  %v14905_v42 = vld [vmem:[#allocation28_spill] sm:$0xff] }
 0x3ba   : > { %v3330_v13 = vmax.f32 %v14908_v6, 0.0  ;;  %v9912_v6 = vld [vmem:[%s14770_s3 + $0x2e4] sm:$0xf0] }
 0x3bb   : > { %v12036_v58 = vadd.f32 %v2936_v53, %v2840_v20  ;;  %v2745_v36 = vadd.f32 %v2744_v59, %v2648_v55 }
 0x3bd   : > { %v3328_v39 = vmax.f32 %v2745_v36, 0.0 }
 0x3bf   : > { %v3410_v31 = vpack.c.bf16 %v3328_v39, %v3327_v5  ;;  %v10238_v39 = vld [vmem:[%s10680_s27 + $0x18] sm:$0xff] }
 0x3c0   : > { %v2841_v62 = vpop.f32.mrf.mxu2  ;;  %v2650_v43 = vpop.f32.mrf.mxu0 }
 0x3c1   : > { %v2842_v35 = vadd.f32 %v2841_v62, %v11769_v50  ;;  %v2938_v2 = vpop.f32.mrf.mxu3  ;;  %v3607_v3 = vunpack.c.l.b16 %v3410_v31  ;;  %v3608_v46 = vunpack.c.h.b16 %v3410_v31  ;;  %v2651_v20 = vadd.f32 %v2650_v43, %v14905_v42  ;;  %v2747_v53 = vpop.f32.mrf.mxu1  ;;  %v10239_v62 = vld [vmem:[%s10680_s27 + $0x20] sm:$0xff] }
 0x3c3   : > { %v12041_v55 = vadd.f32 %v2938_v2, %v2842_v35  ;;  %v2748_v59 = vadd.f32 %v2747_v53, %v2651_v20  ;;  %2987 = vmatmul.bf16.vlgmr.msrb.gmra.mxu0 %v10237_v19  ;;  %v12044_v36 = vpack.c.b16 %v3607_v3, %v3604_v15  ;;  %v12046_v5 = vpack.c.b16 %v3608_v46, %v3605_v8  ;;  %v8683_v46 = vld [vmem:[%s14770_s3 + $0x2e0] sm:$0xf] }
 0x3c4   : > { %3084 = vmatmul.bf16.vlgmr.msrb.gmra.mxu1 %v10238_v39  ;;  %v14909_v53 = vld [vmem:[#allocation27_spill] sm:$0xff] }
 0x3c5   : > { %14906 = vst [vmem:[#allocation13_spill] sm:$0xff] %v12044_v36  ;;  %3181 = vmatmul.bf16.vlgmr.msrb.gmra.mxu2 %v10239_v62  ;;  %v3331_v38 = vmax.f32 %v2748_v59, 0.0  ;;  %v3333_v59 = vmax.f32 %v14909_v53, 0.0  ;;  %v14910_v36 = vld [vmem:[#allocation31_spill] sm:$0xff]  ;;  %v10240_v53 = vld [vmem:[%s10680_s27 + $0x28] sm:$0xff] }
 0x3c6   : > { %14907 = vst [vmem:[#allocation17_spill] sm:$0xff] %v12046_v5  ;;  %5166 = vmatmul.bf16.vlgmr.msrb.gmra.mxu3 %v11788_v32 }
 0x3c7   : > { %v3412_v31 = vpack.c.bf16 %v3331_v38, %v3330_v13  ;;  %v8684_v38 = vor.u32 %v9912_v6, %v8683_v46 }
 0x3c8   : > { %v2844_v43 = vpop.f32.mrf.mxu2  ;;  %v2652_v42 = vpop.f32.mrf.mxu0 }
 0x3c9   : > { %v2845_v35 = vadd.f32 %v2844_v43, %v11769_v50  ;;  %v2941_v2 = vpop.f32.mrf.mxu3  ;;  %v2653_v15 = vadd.f32 %v2652_v42, %v11603_v37  ;;  %v2749_v3 = vpop.f32.mrf.mxu1  ;;  %5379 = vmatpush.bf16.msra.mxu2 %v8684_v38  ;;  %v3498_v37 = vunpack.c.l.b16 %v3412_v31  ;;  %v3499_v42 = vunpack.c.h.b16 %v3412_v31  ;;  %v8555_v38 = vld [vmem:[%s14770_s3 + $0x1e0] sm:$0xf]  ;;  %v9880_v31 = vld [vmem:[%s14770_s3 + $0x1e4] sm:$0xf0] }
 0x3cb   : > { %v12054_v8 = vadd.f32 %v2941_v2, %v2845_v35  ;;  %v2750_v20 = vadd.f32 %v2749_v3, %v2653_v15 }
 0x3cd   : > { %v3334_v19 = vmax.f32 %v2750_v20, 0.0 }
 0x3cf   : > { %v3414_v39 = vpack.c.bf16 %v3334_v19, %v3333_v59 }
 0x3d0   : > { %v2846_v13 = vpop.f32.mrf.mxu2  ;;  %v2655_v2 = vpop.f32.mrf.mxu0 }
 0x3d1   : > { %v2847_v43 = vadd.f32 %v2846_v13, %v11769_v50  ;;  %v2943_v35 = vpop.f32.mrf.mxu3  ;;  %v3501_v32 = vunpack.c.l.b16 %v3414_v39  ;;  %v3502_v5 = vunpack.c.h.b16 %v3414_v39  ;;  %v2656_v22 = vadd.f32 %v2655_v2, %v14910_v36  ;;  %v2752_v15 = vpop.f32.mrf.mxu1  ;;  %v8619_v36 = vld [vmem:[%s14770_s3 + $0x260] sm:$0xf] }
 0x3d3   : > { %v12065_v3 = vadd.f32 %v2943_v35, %v2847_v43  ;;  %v12067_v46 = vpack.c.b16 %v3501_v32, %v3498_v37  ;;  %v12069_v6 = vpack.c.b16 %v3502_v5, %v3499_v42  ;;  %v2753_v20 = vadd.f32 %v2752_v15, %v2656_v22  ;;  %2992 = vmatmul.bf16.gmra.mxu0 %v10239_v62  ;;  %v10241_v32 = vld [vmem:[%s10680_s27 + $0x30] sm:$0xff]  ;;  %v9896_v22 = vld [vmem:[%s14770_s3 + $0x264] sm:$0xf0] }
 0x3d4   : > { %3089 = vmatmul.bf16.gmra.mxu1 %v10240_v53  ;;  %v8556_v5 = vor.u32 %v9880_v31, %v8555_v38  ;;  %v14913_v62 = vld [vmem:[#allocation29_spill] sm:$0xff]  ;;  %v8620_v39 = vor.u32 %v9896_v22, %v8619_v36  ;;  %v14915_v53 = vld [vmem:[#allocation30_spill] sm:$0xff] }
 0x3d5   : > { %14911 = vst [vmem:[#allocation15_spill] sm:$0xff] %v12065_v3  ;;  %3186 = vmatmul.bf16.gmra.mxu2 %v10241_v32  ;;  %v3336_v59 = vmax.f32 %v14913_v62, 0.0  ;;  %v3337_v19 = vmax.f32 %v2753_v20, 0.0  ;;  %v3339_v62 = vmax.f32 %v14915_v53, 0.0  ;;  %v14919_v53 = vld [vmem:[#allocation32_spill] sm:$0xff] }
 0x3d6   : > { %14912 = vst [vmem:[#allocation16_spill] sm:$0xff] %v12069_v6  ;;  %5171 = vmatmul.bf16.gmra.mxu3 %v11849_v28  ;;  %5291 = vmatpush.bf16.msra.mxu0 %v8556_v5 }
 0x3d7   : > { %v3416_v13 = vpack.c.bf16 %v3337_v19, %v3336_v59  ;;  %5335 = vmatpush.bf16.msra.mxu1 %v8620_v39 }
 0x3d8   : > { %v2849_v37 = vpop.f32.mrf.mxu2  ;;  %v2657_v2 = vpop.f32.mrf.mxu0 }
 0x3d9   : > { %v2850_v43 = vadd.f32 %v2849_v37, %v11769_v50  ;;  %v2946_v35 = vpop.f32.mrf.mxu3  ;;  %v2658_v42 = vadd.f32 %v2657_v2, %v11624_v48  ;;  %v2754_v15 = vpop.f32.mrf.mxu1  ;;  %v3610_v36 = vunpack.c.l.b16 %v3416_v13  ;;  %v3611_v19 = vunpack.c.h.b16 %v3416_v13  ;;  %v9850_v2 = vld [vmem:[%s14770_s3 + $0xf4] sm:$0xf0] }
 0x3db   : > { %v12089_v38 = vadd.f32 %v2946_v35, %v2850_v43  ;;  %v2755_v31 = vadd.f32 %v2754_v15, %v2658_v42  ;;  %v8435_v35 = vld [vmem:[%s14770_s3 + $0xf0] sm:$0xf] }
 0x3dd   : > { %14914 = vst [vmem:[#allocation19_spill] sm:$0xff] %v12089_v38  ;;  %v3340_v20 = vmax.f32 %v2755_v31, 0.0 }
 0x3df   : > { %v3418_v3 = vpack.c.bf16 %v3340_v20, %v3339_v62  ;;  %v3342_v62 = vmax.f32 %v14919_v53, 0.0 }
 0x3e0   : > { %v2851_v28 = vpop.f32.mrf.mxu2  ;;  %v2660_v59 = vpop.f32.mrf.mxu0 }
 0x3e1   : > { %v2852_v5 = vadd.f32 %v2851_v28, %v11769_v50  ;;  %v2948_v22 = vpop.f32.mrf.mxu3  ;;  %v3613_v39 = vunpack.c.l.b16 %v3418_v3  ;;  %v3614_v37 = vunpack.c.h.b16 %v3418_v3  ;;  %v2661_v48 = vadd.f32 %v2660_v59, %v11633_v40  ;;  %v2757_v43 = vpop.f32.mrf.mxu1  ;;  %v10242_v3 = vld [vmem:[%s10680_s27 + $0x38] sm:$0xff]  ;;  %v10243_v40 = vld [vmem:[%s10680_s27 + $0x40] sm:$0xff] }
 0x3e2   : > { %v8436_v28 = vor.u32 %v9850_v2, %v8435_v35  ;;  %v14921_v35 = vld [vmem:[#allocation33_spill] sm:$0xff] }
 0x3e3   : > { %v12100_v42 = vadd.f32 %v2948_v22, %v2852_v5  ;;  %v2758_v15 = vadd.f32 %v2757_v43, %v2661_v48  ;;  %2997 = vmatmul.bf16.gmra.mxu0 %v10241_v32  ;;  %v12102_v31 = vpack.c.b16 %v3613_v39, %v3610_v36  ;;  %v12104_v13 = vpack.c.b16 %v3614_v37, %v3611_v19  ;;  %v14920_v36 = vld [vmem:[#allocation35_spill] sm:$0xff] }
 0x3e4   : > { %3094 = vmatmul.bf16.gmra.mxu1 %v10242_v3  ;;  %5202 = vmatpush.bf16.msra.mxu3 %v8436_v28  ;;  %v3345_v2 = vmax.f32 %v14921_v35, 0.0 }
 0x3e5   : > { %14916 = vst [vmem:[#allocation22_spill] sm:$0xff] %v12100_v42  ;;  %3191 = vmatmul.bf16.gmra.mxu2 %v10243_v40  ;;  %v3343_v20 = vmax.f32 %v2758_v15, 0.0  ;;  %v14922_v42 = vld [vmem:[#allocation37_spill] sm:$0xff] }
 0x3e6   : > { %14917 = vst [vmem:[#allocation20_spill] sm:$0xff] %v12102_v31  ;;  %5176 = vmatmul.bf16.gmra.mxu3 %v11902_v17 }
 0x3e7   : > { %14918 = vst [vmem:[#allocation21_spill] sm:$0xff] %v12104_v13  ;;  %v3420_v59 = vpack.c.bf16 %v3343_v20, %v3342_v62 }
 0x3e8   : > { %v2854_v5 = vpop.f32.mrf.mxu2  ;;  %v2662_v32 = vpop.f32.mrf.mxu0 }
 0x3e9   : > { %v2855_v22 = vadd.f32 %v2854_v5, %v11769_v50  ;;  %v2951_v48 = vpop.f32.mrf.mxu3  ;;  %v2663_v39 = vadd.f32 %v2662_v32, %v14920_v36  ;;  %v2759_v19 = vpop.f32.mrf.mxu1  ;;  %v3504_v13 = vunpack.c.l.b16 %v3420_v59  ;;  %v3505_v17 = vunpack.c.h.b16 %v3420_v59  ;;  %v8675_v36 = vld [vmem:[%s14770_s3 + $0x2d0] sm:$0xf] }
 0x3eb   : > { %v12112_v37 = vadd.f32 %v2951_v48, %v2855_v22  ;;  %v2760_v43 = vadd.f32 %v2759_v19, %v2663_v39  ;;  %v8427_v22 = vld [vmem:[%s14770_s3 + $0xe0] sm:$0xf]  ;;  %v9848_v48 = vld [vmem:[%s14770_s3 + $0xe4] sm:$0xf0]  ;;  %v8547_v19 = vld [vmem:[%s14770_s3 + $0x1d0] sm:$0xf] }
 0x3ec   : > { %v8428_v39 = vor.u32 %v9848_v48, %v8427_v22 }
 0x3ed   : > { %v3346_v3 = vmax.f32 %v2760_v43, 0.0  ;;  %v9878_v43 = vld [vmem:[%s14770_s3 + $0x1d4] sm:$0xf0] }
 0x3ee   : > { %v8548_v22 = vor.u32 %v9878_v43, %v8547_v19  ;;  %5203 = vmatpush.bf16.msra.mxu3 %v8428_v39  ;;  %v9846_v39 = vld [vmem:[%s14770_s3 + $0xd4] sm:$0xf0] }
 0x3ef   : > { %v3422_v53 = vpack.c.bf16 %v3346_v3, %v3345_v2 }
 0x3f0   : > { %v2856_v15 = vpop.f32.mrf.mxu2  ;;  %v2665_v20 = vpop.f32.mrf.mxu0  ;;  %5292 = vmatpush.bf16.msra.mxu0 %v8548_v22 }
 0x3f1   : > { %v2857_v28 = vadd.f32 %v2856_v15, %v11769_v50  ;;  %v2953_v62 = vpop.f32.mrf.mxu3  ;;  %v3507_v5 = vunpack.c.l.b16 %v3422_v53  ;;  %v3508_v31 = vunpack.c.h.b16 %v3422_v53  ;;  %v2666_v38 = vadd.f32 %v2665_v20, %v14922_v42  ;;  %v2762_v32 = vpop.f32.mrf.mxu1  ;;  %v9910_v42 = vld [vmem:[%s14770_s3 + $0x2d4] sm:$0xf0]  ;;  %v8611_v15 = vld [vmem:[%s14770_s3 + $0x250] sm:$0xf] }
 0x3f2   : > { %v8676_v53 = vor.u32 %v9910_v42, %v8675_v36  ;;  %v10245_v20 = vld [vmem:[%s10680_s27 + $0x50] sm:$0xff]  ;;  %v14925_v42 = vld [vmem:[#allocation38_spill] sm:$0xff] }
 0x3f3   : > { %v12126_v59 = vadd.f32 %v2953_v62, %v2857_v28  ;;  %v12137_v35 = vpack.c.b16 %v3507_v5, %v3504_v13  ;;  %v12139_v2 = vpack.c.b16 %v3508_v31, %v3505_v17  ;;  %v2763_v3 = vadd.f32 %v2762_v32, %v2666_v38  ;;  %3002 = vmatmul.bf16.gmra.mxu0 %v10243_v40  ;;  %v9894_v28 = vld [vmem:[%s14770_s3 + $0x254] sm:$0xf0]  ;;  %v10244_v62 = vld [vmem:[%s10680_s27 + $0x48] sm:$0xff] }
 0x3f4   : > { %3099 = vmatmul.bf16.gmra.mxu1 %v10244_v62  ;;  %v8612_v13 = vor.u32 %v9894_v28, %v8611_v15  ;;  %v14924_v5 = vld [vmem:[#allocation34_spill] sm:$0xff]  ;;  %5380 = vmatpush.bf16.msra.mxu2 %v8676_v53  ;;  %v14926_v15 = vld [vmem:[#allocation36_spill] sm:$0xff] }
 0x3f5   : > { %14923 = vst [vmem:[#allocation23_spill] sm:$0xff] %v12126_v59  ;;  %3196 = vmatmul.bf16.gmra.mxu2 %v10245_v20  ;;  %v3348_v17 = vmax.f32 %v14924_v5, 0.0  ;;  %v3349_v31 = vmax.f32 %v2763_v3, 0.0  ;;  %v8419_v3 = vld [vmem:[%s14770_s3 + $0xd0] sm:$0xf]  ;;  %v3351_v28 = vmax.f32 %v14926_v15, 0.0 }
 0x3f6   : > { %5181 = vmatmul.bf16.gmra.mxu3 %v11962_v54  ;;  %5336 = vmatpush.bf16.msra.mxu1 %v8612_v13  ;;  %v8420_v53 = vor.u32 %v9846_v39, %v8419_v3  ;;  %v14933_v54 = vld [vmem:[#allocation39_spill] sm:$0xff] }
 0x3f7   : > { %v3424_v38 = vpack.c.bf16 %v3349_v31, %v3348_v17  ;;  %v8411_v17 = vld [vmem:[%s14770_s3 + $0xc0] sm:$0xf] }
 0x3f8   : > { %v2859_v40 = vpop.f32.mrf.mxu2  ;;  %v2667_v36 = vpop.f32.mrf.mxu0  ;;  %5204 = vmatpush.bf16.msra.mxu3 %v8420_v53 }
 0x3f9   : > { %v2860_v32 = vadd.f32 %v2859_v40, %v11769_v50  ;;  %v2956_v48 = vpop.f32.mrf.mxu3  ;;  %v2668_v62 = vadd.f32 %v2667_v36, %v14925_v42  ;;  %v2764_v59 = vpop.f32.mrf.mxu1  ;;  %v3616_v31 = vunpack.c.l.b16 %v3424_v38  ;;  %v3617_v42 = vunpack.c.h.b16 %v3424_v38 }
 0x3fb   : > { %v12153_v19 = vadd.f32 %v2956_v48, %v2860_v32  ;;  %v2765_v43 = vadd.f32 %v2764_v59, %v2668_v62  ;;  %v9844_v59 = vld [vmem:[%s14770_s3 + $0xc4] sm:$0xf0] }
 0x3fc   : > { %v8412_v36 = vor.u32 %v9844_v59, %v8411_v17  ;;  %v14929_v59 = vld [vmem:[#allocation3_spill] sm:$0xff] }
 0x3fd   : > { %v3352_v22 = vmax.f32 %v2765_v43, 0.0 }
 0x3fe   : > { %5205 = vmatpush.bf16.msra.mxu3 %v8412_v36  ;;  %v9840_v36 = vld [vmem:[%s14770_s3 + $0xa4] sm:$0xf0] }
 0x3ff   : > { %v3426_v13 = vpack.c.bf16 %v3352_v22, %v3351_v28  ;;  %v8403_v28 = vld [vmem:[%s14770_s3 + $0xb0] sm:$0xf]  ;;  %v9842_v22 = vld [vmem:[%s14770_s3 + $0xb4] sm:$0xf0] }
 0x400   : > { %v2861_v5 = vpop.f32.mrf.mxu2  ;;  %v2670_v48 = vpop.f32.mrf.mxu0  ;;  %v8404_v17 = vor.u32 %v9842_v22, %v8403_v28 }
 0x401   : > { %v2862_v40 = vadd.f32 %v2861_v5, %v11769_v50  ;;  %v2958_v32 = vpop.f32.mrf.mxu3  ;;  %v3619_v62 = vunpack.c.l.b16 %v3426_v13  ;;  %v3620_v43 = vunpack.c.h.b16 %v3426_v13  ;;  %v2671_v3 = vadd.f32 %v2670_v48, %v11685_v25  ;;  %v2767_v39 = vpop.f32.mrf.mxu1  ;;  %v10246_v13 = vld [vmem:[%s10680_s27 + $0x58] sm:$0xff]  ;;  %v10247_v25 = vld [vmem:[%s10680_s27 + $0x60] sm:$0xff] }
 0x402   : > { %5206 = vmatpush.bf16.msra.mxu3 %v8404_v17  ;;  %v8387_v17 = vld [vmem:[%s14770_s3 + $0x90] sm:$0xf] }
 0x403   : > { %v12170_v53 = vadd.f32 %v2958_v32, %v2862_v40  ;;  %v2768_v15 = vadd.f32 %v2767_v39, %v2671_v3  ;;  %3007 = vmatmul.bf16.gmra.mxu0 %v10245_v20  ;;  %v12178_v5 = vpack.c.b16 %v3619_v62, %v3616_v31  ;;  %v12180_v38 = vpack.c.b16 %v3620_v43, %v3617_v42  ;;  %v8395_v31 = vld [vmem:[%s14770_s3 + $0xa0] sm:$0xf]  ;;  %v14930_v39 = vld [vmem:[#allocation40_spill] sm:$0xff] }
 0x404   : > { %3104 = vmatmul.bf16.gmra.mxu1 %v10246_v13  ;;  %v3354_v40 = vmax.f32 %v14929_v59, 0.0  ;;  %v8396_v3 = vor.u32 %v9840_v36, %v8395_v31  ;;  %v9838_v59 = vld [vmem:[%s14770_s3 + $0x94] sm:$0xf0] }
 0x405   : > { %14927 = vst [vmem:[#allocation26_spill] sm:$0xff] %v12178_v5  ;;  %3201 = vmatmul.bf16.gmra.mxu2 %v10247_v25  ;;  %v3355_v20 = vmax.f32 %v2768_v15, 0.0 }
 0x406   : > { %14928 = vst [vmem:[#allocation24_spill] sm:$0xff] %v12180_v38  ;;  %5186 = vmatmul.bf16.gmra.mxu3 %v12026_v11  ;;  %v3360_v38 = vmax.f32 %v14933_v54, 0.0 }
 0x407   : > { %v3428_v32 = vpack.c.bf16 %v3355_v20, %v3354_v40  ;;  %5207 = vmatpush.bf16.msra.mxu3 %v8396_v3  ;;  %v8388_v40 = vor.u32 %v9838_v59, %v8387_v17  ;;  %v14931_v20 = vld [vmem:[#allocation4_spill] sm:$0xff] }
 0x408   : > { %v2864_v48 = vpop.f32.mrf.mxu2  ;;  %v2672_v43 = vpop.f32.mrf.mxu0 }
 0x409   : > { %v2865_v42 = vadd.f32 %v2864_v48, %v11769_v50  ;;  %v2961_v62 = vpop.f32.mrf.mxu3  ;;  %v2673_v15 = vadd.f32 %v2672_v43, %v14930_v39  ;;  %v2769_v28 = vpop.f32.mrf.mxu1  ;;  %v3357_v48 = vmax.f32 %v14931_v20, 0.0  ;;  %v3668_v43 = vunpack.c.l.b16 %v3428_v32 }
 0x40a   : > { %v3669_v17 = vunpack.c.h.b16 %v3428_v32  ;;  %v8539_v32 = vld [vmem:[%s14770_s3 + $0x1c0] sm:$0xf] }
 0x40b   : > { %v12194_v22 = vadd.f32 %v2961_v62, %v2865_v42  ;;  %v2770_v13 = vadd.f32 %v2769_v28, %v2673_v15  ;;  %5208 = vmatpush.bf16.msra.mxu3 %v8388_v40  ;;  %v8379_v42 = vld [vmem:[%s14770_s3 + $0x80] sm:$0xf]  ;;  %v9836_v62 = vld [vmem:[%s14770_s3 + $0x84] sm:$0xf0] }
 0x40c   : > { %v8380_v28 = vor.u32 %v9836_v62, %v8379_v42 }
 0x40d   : > { %v3358_v11 = vmax.f32 %v2770_v13, 0.0 }
 0x40f   : > { %v3430_v31 = vpack.c.bf16 %v3358_v11, %v3357_v48  ;;  %v8667_v48 = vld [vmem:[%s14770_s3 + $0x2c0] sm:$0xf]  ;;  %5209 = vmatpush.bf16.msra.mxu3 %v8380_v28 }
 0x410   : > { %v2866_v36 = vpop.f32.mrf.mxu2  ;;  %v2675_v15 = vpop.f32.mrf.mxu0 }
 0x411   : > { %v2867_v3 = vadd.f32 %v2866_v36, %v11769_v50  ;;  %v2963_v39 = vpop.f32.mrf.mxu3  ;;  %v3671_v13 = vunpack.c.l.b16 %v3430_v31  ;;  %v3672_v59 = vunpack.c.h.b16 %v3430_v31  ;;  %v2676_v11 = vadd.f32 %v2675_v15, %v11717_v23  ;;  %v2772_v40 = vpop.f32.mrf.mxu1  ;;  %v9908_v36 = vld [vmem:[%s14770_s3 + $0x2c4] sm:$0xf0]  ;;  %v10249_v15 = vld [vmem:[%s10680_s27 + $0x70] sm:$0xff] }
 0x412   : > { %v8668_v42 = vor.u32 %v9908_v36, %v8667_v48  ;;  %v9876_v23 = vld [vmem:[%s14770_s3 + $0x1c4] sm:$0xf0] }
 0x413   : > { %v12211_v20 = vadd.f32 %v2963_v39, %v2867_v3  ;;  %v2773_v31 = vadd.f32 %v2772_v40, %v2676_v11  ;;  %3012 = vmatmul.bf16.gmra.mxu0 %v10247_v25  ;;  %v12225_v62 = vpack.c.b16 %v3671_v13, %v3668_v43  ;;  %v12227_v3 = vpack.c.b16 %v3672_v59, %v3669_v17  ;;  %v10248_v39 = vld [vmem:[%s10680_s27 + $0x68] sm:$0xff]  ;;  %v8603_v25 = vld [vmem:[%s14770_s3 + $0x240] sm:$0xf] }
 0x414   : > { %3109 = vmatmul.bf16.gmra.mxu1 %v10248_v39  ;;  %v8540_v28 = vor.u32 %v9876_v23, %v8539_v32  ;;  %5381 = vmatpush.bf16.msra.mxu2 %v8668_v42  ;;  %v9892_v43 = vld [vmem:[%s14770_s3 + $0x244] sm:$0xf0]  ;;  %v3363_v42 = vmax.f32 %v11715_v56, 0.0 }
 0x415   : > { %14932 = vst [vmem:[#allocation28_spill] sm:$0xff] %v12227_v3  ;;  %3206 = vmatmul.bf16.gmra.mxu2 %v10249_v15  ;;  %v3361_v5 = vmax.f32 %v2773_v31, 0.0  ;;  %v8604_v17 = vor.u32 %v9892_v43, %v8603_v25 }
 0x416   : > { %5191 = vmatmul.bf16.gmra.mxu3 %v12067_v46  ;;  %5293 = vmatpush.bf16.msra.mxu0 %v8540_v28 }
 0x417   : > { %v3432_v13 = vpack.c.bf16 %v3361_v5, %v3360_v38  ;;  %5337 = vmatpush.bf16.msra.mxu1 %v8604_v17 }
 0x418   : > { %v2869_v59 = vpop.f32.mrf.mxu2  ;;  %v2677_v54 = vpop.f32.mrf.mxu0 }
 0x419   : > { %v2870_v11 = vadd.f32 %v2869_v59, %v11769_v50  ;;  %v2966_v40 = vpop.f32.mrf.mxu3  ;;  %v2678_v48 = vadd.f32 %v2677_v54, %v11723_v26  ;;  %v2774_v36 = vpop.f32.mrf.mxu1  ;;  %v3684_v25 = vunpack.c.l.b16 %v3432_v13  ;;  %v3685_v59 = vunpack.c.h.b16 %v3432_v13 }
 0x41b   : > { %v12241_v32 = vadd.f32 %v2966_v40, %v2870_v11  ;;  %v2775_v31 = vadd.f32 %v2774_v36, %v2678_v48 }
 0x41d   : > { %v3364_v23 = vmax.f32 %v2775_v31, 0.0  ;;  %v10250_v31 = vld [vmem:[%s10680_s27 + $0x78] sm:$0xff] }
 0x41f   : > { %v3434_v39 = vpack.c.bf16 %v3364_v23, %v3363_v42  ;;  %v10251_v42 = vld [vmem:[%s10680_s27 + $0x80] sm:$0xff]  ;;  %v3366_v23 = vmax.f32 %v11721_v18, 0.0 }
 0x420   : > { %v2871_v28 = vpop.f32.mrf.mxu2  ;;  %v2680_v43 = vpop.f32.mrf.mxu0 }
 0x421   : > { %v2872_v5 = vadd.f32 %v2871_v28, %v11769_v50  ;;  %v2968_v38 = vpop.f32.mrf.mxu3  ;;  %v2681_v17 = vadd.f32 %v2680_v43, %v11737_v4  ;;  %v2777_v26 = vpop.f32.mrf.mxu1  ;;  %v3687_v54 = vunpack.c.l.b16 %v3434_v39  ;;  %v3688_v11 = vunpack.c.h.b16 %v3434_v39 }
 0x423   : > { %v12246_v40 = vadd.f32 %v2968_v38, %v2872_v5  ;;  %v2778_v48 = vadd.f32 %v2777_v26, %v2681_v17  ;;  %3017 = vmatmul.bf16.gmra.mxu0 %v10249_v15  ;;  %v12248_v56 = vpack.c.b16 %v3687_v54, %v3684_v25  ;;  %v12250_v36 = vpack.c.b16 %v3688_v11, %v3685_v59 }
 0x424   : > { %3114 = vmatmul.bf16.gmra.mxu1 %v10250_v31  ;;  %v3369_v17 = vmax.f32 %v11729_v57, 0.0 }
 0x425   : > { %14934 = vst [vmem:[#allocation25_spill] sm:$0xff] %v12248_v56  ;;  %3211 = vmatmul.bf16.gmra.mxu2 %v10251_v42  ;;  %v3367_v13 = vmax.f32 %v2778_v48, 0.0  ;;  %v10263_v56 = vld [vmem:[%s10680_s27 + $0xe0] sm:$0xff] }
 0x426   : > { %14935 = vst [vmem:[#allocation27_spill] sm:$0xff] %v12250_v36  ;;  %5196 = vmatmul.bf16.gmra.mxu3 %v12137_v35 }
 0x427   : > { %v3436_v4 = vpack.c.bf16 %v3367_v13, %v3366_v23 }
 0x428   : > { %v2874_v28 = vpop.f32.mrf.mxu2  ;;  %v2682_v38 = vpop.f32.mrf.mxu0 }
 0x429   : > { %v2875_v39 = vadd.f32 %v2874_v28, %v11769_v50  ;;  %v2971_v5 = vpop.f32.mrf.mxu3  ;;  %v2683_v15 = vadd.f32 %v2682_v38, %v11740_v63  ;;  %v2779_v25 = vpop.f32.mrf.mxu1  ;;  %v3700_v23 = vunpack.c.l.b16 %v3436_v4  ;;  %v3701_v13 = vunpack.c.h.b16 %v3436_v4  ;;  %v8659_v4 = vld [vmem:[%s14770_s3 + $0x2b0] sm:$0xf] }
 0x42b   : > { %v12258_v43 = vadd.f32 %v2971_v5, %v2875_v39  ;;  %v2780_v59 = vadd.f32 %v2779_v25, %v2683_v15  ;;  %v10252_v5 = vld [vmem:[%s10680_s27 + $0x88] sm:$0xff]  ;;  %v10253_v15 = vld [vmem:[%s10680_s27 + $0x90] sm:$0xff] }
 0x42d   : > { %v3370_v26 = vmax.f32 %v2780_v59, 0.0 }
 0x42f   : > { %v3438_v18 = vpack.c.bf16 %v3370_v26, %v3369_v17 }
 0x430   : > { %v2876_v54 = vpop.f32.mrf.mxu2  ;;  %v2685_v31 = vpop.f32.mrf.mxu0 }
 0x431   : > { %v2877_v11 = vadd.f32 %v2876_v54, %v11769_v50  ;;  %v2973_v48 = vpop.f32.mrf.mxu3  ;;  %v2782_v28 = vpop.f32.mrf.mxu1  ;;  %v3703_v36 = vunpack.c.l.b16 %v3438_v18  ;;  %v3704_v63 = vunpack.c.h.b16 %v3438_v18  ;;  %v9874_v18 = vld [vmem:[%s14770_s3 + $0x1b4] sm:$0xf0] }
 0x433   : > { %v12262_v38 = vadd.f32 %v2973_v48, %v2877_v11  ;;  %3022 = vmatmul.bf16.gmra.mxu0 %v10251_v42  ;;  %v12264_v39 = vpack.c.b16 %v3703_v36, %v3700_v23  ;;  %v12266_v57 = vpack.c.b16 %v3704_v63, %v3701_v13  ;;  %v9906_v36 = vld [vmem:[%s14770_s3 + $0x2b4] sm:$0xf0]  ;;  %v8531_v42 = vld [vmem:[%s14770_s3 + $0x1b0] sm:$0xf] }
 0x434   : > { %3119 = vmatmul.bf16.gmra.mxu1 %v10252_v5  ;;  %v8660_v26 = vor.u32 %v9906_v36, %v8659_v4  ;;  %v8532_v54 = vor.u32 %v9874_v18, %v8531_v42  ;;  %v8595_v11 = vld [vmem:[%s14770_s3 + $0x230] sm:$0xf]  ;;  %v9890_v48 = vld [vmem:[%s14770_s3 + $0x234] sm:$0xf0] }
 0x435   : > { %14936 = vst [vmem:[#allocation31_spill] sm:$0xff] %v12264_v39  ;;  %3216 = vmatmul.bf16.gmra.mxu2 %v10253_v15  ;;  %v8596_v23 = vor.u32 %v9890_v48, %v8595_v11  ;;  %v9866_v11 = vld [vmem:[%s14770_s3 + $0x174] sm:$0xf0] }
 0x436   : > { %14937 = vst [vmem:[#allocation29_spill] sm:$0xff] %v12266_v57  ;;  %5210 = vmatmul.bf16.vlgmr.msra.gmra.mxu3 %v11790_v29  ;;  %5382 = vmatpush.bf16.msra.mxu2 %v8660_v26  ;;  %v10262_v39 = vld [vmem:[%s10680_s27 + $0xd8] sm:$0xff] }
 0x437   : > { %5294 = vmatpush.bf16.msra.mxu0 %v8532_v54  ;;  %5338 = vmatpush.bf16.msra.mxu1 %v8596_v23 }
 0x438   : > { %v2879_v50 = vpop.f32.mrf.mxu2  ;;  %v2686_v59 = vpop.f32.mrf.mxu0 }
 0x439   : > { %v2976_v25 = vpop.f32.mrf.mxu3  ;;  %v2783_v17 = vpop.f32.mrf.mxu1  ;;  %v10255_v59 = vld [vmem:[%s10680_s27 + $0xa0] sm:$0xff] }
 0x43a   : > { %v10254_v25 = vld [vmem:[%s10680_s27 + $0x98] sm:$0xff] }
 0x440   : > { %v2880_v31 = vpop.f32.mrf.mxu2  ;;  %v2988_v28 = vpop.f32.mrf.mxu0 }
 0x441   : > { %v2977_v13 = vpop.f32.mrf.mxu3  ;;  %v2989_v63 = vadd.f32 %v2988_v28, %v11775_v24  ;;  %v3085_v5 = vpop.f32.mrf.mxu1 }
 0x443   : > { %v3086_v50 = vadd.f32 %v3085_v5, %v2989_v63  ;;  %3027 = vmatmul.bf16.gmra.mxu0 %v10253_v15  ;;  %v8499_v15 = vld [vmem:[%s14770_s3 + $0x170] sm:$0xf] }
 0x444   : > { %3124 = vmatmul.bf16.gmra.mxu1 %v10254_v25  ;;  %v8500_v31 = vor.u32 %v9866_v11, %v8499_v15 }
 0x445   : > { %3221 = vmatmul.bf16.gmra.mxu2 %v10255_v59 }
 0x446   : > { %5215 = vmatmul.bf16.gmra.mxu3 %v11851_v60 }
 0x447   : > { %5246 = vmatpush.bf16.msrb.mxu3 %v8500_v31 }
 0x448   : > { %v3182_v4 = vpop.f32.mrf.mxu2  ;;  %v2990_v17 = vpop.f32.mrf.mxu0 }
 0x449   : > { %v3183_v36 = vadd.f32 %v3182_v4, %v3086_v50  ;;  %v12293_v42 = vpop.f32.mrf.mxu3  ;;  %v2991_v26 = vadd.f32 %v2990_v17, %v11786_v7  ;;  %v3087_v18 = vpop.f32.mrf.mxu1  ;;  %v10257_v17 = vld [vmem:[%s10680_s27 + $0xb0] sm:$0xff] }
 0x44b   : > { %v3088_v54 = vadd.f32 %v3087_v18, %v2991_v26  ;;  %v3272_v24 = vmax.f32 %v3183_v36, 0.0  ;;  %v10256_v36 = vld [vmem:[%s10680_s27 + $0xa8] sm:$0xff] }
 0x44d   : > { %v3373_v5 = vpack.c.bf16 %v3272_v24, %v3272_v24 }
 0x44f   : > { %v3470_v26 = vunpack.c.l.b16 %v3373_v5 }
 0x450   : > { %v3184_v48 = vpop.f32.mrf.mxu2  ;;  %v2993_v28 = vpop.f32.mrf.mxu0 }
 0x451   : > { %v3185_v23 = vadd.f32 %v3184_v48, %v3088_v54  ;;  %v12302_v13 = vpop.f32.mrf.mxu3  ;;  %v2994_v7 = vadd.f32 %v2993_v28, %v11799_v27  ;;  %v3090_v63 = vpop.f32.mrf.mxu1  ;;  %v8651_v28 = vld [vmem:[%s14770_s3 + $0x2a0] sm:$0xf] }
 0x453   : > { %v3275_v50 = vmax.f32 %v3185_v23, 0.0  ;;  %v3091_v25 = vadd.f32 %v3090_v63, %v2994_v7  ;;  %3032 = vmatmul.bf16.gmra.mxu0 %v10255_v59  ;;  %v9904_v7 = vld [vmem:[%s14770_s3 + $0x2a4] sm:$0xf0]  ;;  %v8523_v63 = vld [vmem:[%s14770_s3 + $0x1a0] sm:$0xf] }
 0x454   : > { %3129 = vmatmul.bf16.gmra.mxu1 %v10256_v36 }
 0x455   : > { %v3375_v4 = vpack.c.bf16 %v3275_v50, %v3275_v50  ;;  %3226 = vmatmul.bf16.gmra.mxu2 %v10257_v17  ;;  %v8652_v50 = vor.u32 %v9904_v7, %v8651_v28 }
 0x456   : > { %5220 = vmatmul.bf16.gmra.mxu3 %v11904_v52 }
 0x457   : > { %v3473_v18 = vunpack.c.l.b16 %v3375_v4  ;;  %v9864_v4 = vld [vmem:[%s14770_s3 + $0x164] sm:$0xf0]  ;;  %5383 = vmatpush.bf16.msra.mxu2 %v8652_v50 }
 0x458   : > { %v3187_v54 = vpop.f32.mrf.mxu2  ;;  %v2995_v48 = vpop.f32.mrf.mxu0 }
 0x459   : > { %v12308_v15 = vpack.c.b16 %v3473_v18, %v3470_v26  ;;  %v3188_v11 = vadd.f32 %v3187_v54, %v3091_v25  ;;  %v12310_v27 = vpop.f32.mrf.mxu3  ;;  %v2996_v24 = vadd.f32 %v2995_v48, %v11819_v61  ;;  %v3092_v31 = vpop.f32.mrf.mxu1  ;;  %v9872_v61 = vld [vmem:[%s14770_s3 + $0x1a4] sm:$0xf0]  ;;  %v8491_v25 = vld [vmem:[%s14770_s3 + $0x160] sm:$0xf] }
 0x45a   : > { %v8524_v54 = vor.u32 %v9872_v61, %v8523_v63  ;;  %v8587_v48 = vld [vmem:[%s14770_s3 + $0x220] sm:$0xf] }
 0x45b   : > { %14938 = vst [vmem:[#allocation30_spill] sm:$0xff] %v12308_v15  ;;  %v3093_v59 = vadd.f32 %v3092_v31, %v2996_v24  ;;  %v3278_v23 = vmax.f32 %v3188_v11, 0.0  ;;  %v8492_v11 = vor.u32 %v9864_v4, %v8491_v25  ;;  %v9888_v24 = vld [vmem:[%s14770_s3 + $0x224] sm:$0xf0]  ;;  %v10258_v25 = vld [vmem:[%s10680_s27 + $0xb8] sm:$0xff]  ;;  %v10259_v4 = vld [vmem:[%s10680_s27 + $0xc0] sm:$0xff] }
 0x45c   : > { %5295 = vmatpush.bf16.msra.mxu0 %v8524_v54 }
 0x45d   : > { %v3377_v7 = vpack.c.bf16 %v3278_v23, %v3278_v23  ;;  %5247 = vmatpush.bf16.msrb.mxu3 %v8492_v11  ;;  %v8483_v11 = vld [vmem:[%s14770_s3 + $0x150] sm:$0xf] }
 0x45f   : > { %v3582_v29 = vunpack.c.l.b16 %v3377_v7 }
 0x460   : > { %v3189_v5 = vpop.f32.mrf.mxu2  ;;  %v2998_v18 = vpop.f32.mrf.mxu0 }
 0x461   : > { %v3190_v36 = vadd.f32 %v3189_v5, %v3093_v59  ;;  %v12331_v26 = vpop.f32.mrf.mxu3  ;;  %v2999_v31 = vadd.f32 %v2998_v18, %v11835_v41  ;;  %v3095_v28 = vpop.f32.mrf.mxu1  ;;  %v8588_v59 = vor.u32 %v9888_v24, %v8587_v48  ;;  %v9862_v48 = vld [vmem:[%s14770_s3 + $0x154] sm:$0xf0] }
 0x462   : > { %v8484_v24 = vor.u32 %v9862_v48, %v8483_v11  ;;  %v10260_v48 = vld [vmem:[%s10680_s27 + $0xc8] sm:$0xff] }
 0x463   : > { %v3281_v5 = vmax.f32 %v3190_v36, 0.0  ;;  %v3096_v63 = vadd.f32 %v3095_v28, %v2999_v31  ;;  %3037 = vmatmul.bf16.gmra.mxu0 %v10257_v17  ;;  %5339 = vmatpush.bf16.msra.mxu1 %v8588_v59 }
 0x464   : > { %3134 = vmatmul.bf16.gmra.mxu1 %v10258_v25  ;;  %5248 = vmatpush.bf16.msrb.mxu3 %v8484_v24  ;;  %v10261_v24 = vld [vmem:[%s10680_s27 + $0xd0] sm:$0xff] }
 0x465   : > { %v3379_v61 = vpack.c.bf16 %v3281_v5, %v3281_v5  ;;  %3231 = vmatmul.bf16.gmra.mxu2 %v10259_v4 }
 0x466   : > { %5225 = vmatmul.bf16.gmra.mxu3 %v11964_v10 }
 0x467   : > { %v3585_v57 = vunpack.c.l.b16 %v3379_v61 }
 0x468   : > { %v3192_v41 = vpop.f32.mrf.mxu2  ;;  %v3000_v36 = vpop.f32.mrf.mxu0 }
 0x469   : > { %v12343_v18 = vpack.c.b16 %v3585_v57, %v3582_v29  ;;  %v3193_v50 = vadd.f32 %v3192_v41, %v3096_v63  ;;  %v12345_v23 = vpop.f32.mrf.mxu3  ;;  %v3097_v54 = vpop.f32.mrf.mxu1  ;;  %v3001_v17 = vadd.f32 %v3000_v36, %v11840_v30  ;;  %v8475_v57 = vld [vmem:[%s14770_s3 + $0x140] sm:$0xf]  ;;  %v9860_v30 = vld [vmem:[%s14770_s3 + $0x144] sm:$0xf0] }
 0x46a   : > { %v8476_v63 = vor.u32 %v9860_v30, %v8475_v57  ;;  %v9856_v57 = vld [vmem:[%s14770_s3 + $0x124] sm:$0xf0] }
 0x46b   : > { %14939 = vst [vmem:[#allocation32_spill] sm:$0xff] %v12343_v18  ;;  %v3284_v31 = vmax.f32 %v3193_v50, 0.0  ;;  %v3098_v28 = vadd.f32 %v3097_v54, %v3001_v17  ;;  %v8467_v54 = vld [vmem:[%s14770_s3 + $0x130] sm:$0xf]  ;;  %v9858_v17 = vld [vmem:[%s14770_s3 + $0x134] sm:$0xf0] }
 0x46c   : > { %5249 = vmatpush.bf16.msrb.mxu3 %v8476_v63 }
 0x46d   : > { %v3381_v41 = vpack.c.bf16 %v3284_v31, %v3284_v31 }
 0x46f   : > { %v3476_v31 = vunpack.c.l.b16 %v3381_v41 }
 0x470   : > { %v3194_v29 = vpop.f32.mrf.mxu2  ;;  %v3003_v5 = vpop.f32.mrf.mxu0 }
 0x471   : > { %v3195_v59 = vadd.f32 %v3194_v29, %v3098_v28  ;;  %v12360_v7 = vpop.f32.mrf.mxu3  ;;  %v3004_v61 = vadd.f32 %v3003_v5, %v11859_v34  ;;  %v3100_v25 = vpop.f32.mrf.mxu1  ;;  %v8468_v34 = vor.u32 %v9858_v17, %v8467_v54  ;;  %v8459_v29 = vld [vmem:[%s14770_s3 + $0x120] sm:$0xf]  ;;  %v8451_v54 = vld [vmem:[%s14770_s3 + $0x110] sm:$0xf]  ;;  %v9854_v17 = vld [vmem:[%s14770_s3 + $0x114] sm:$0xf0] }
 0x473   : > { %v3287_v50 = vmax.f32 %v3195_v59, 0.0  ;;  %v3101_v36 = vadd.f32 %v3100_v25, %v3004_v61  ;;  %3042 = vmatmul.bf16.gmra.mxu0 %v10259_v4  ;;  %5250 = vmatpush.bf16.msrb.mxu3 %v8468_v34  ;;  %v8460_v61 = vor.u32 %v9856_v57, %v8459_v29  ;;  %v8515_v34 = vld [vmem:[%s14770_s3 + $0x190] sm:$0xf]  ;;  %v8443_v29 = vld [vmem:[%s14770_s3 + $0x100] sm:$0xf] }
 0x474   : > { %3139 = vmatmul.bf16.gmra.mxu1 %v10260_v48  ;;  %v9852_v57 = vld [vmem:[%s14770_s3 + $0x104] sm:$0xf0] }
 0x475   : > { %v3383_v11 = vpack.c.bf16 %v3287_v50, %v3287_v50  ;;  %3236 = vmatmul.bf16.gmra.mxu2 %v10261_v24 }
 0x476   : > { %5230 = vmatmul.bf16.gmra.mxu3 %v12028_v12 }
 0x477   : > { %v3479_v28 = vunpack.c.l.b16 %v3383_v11  ;;  %5251 = vmatpush.bf16.msrb.mxu3 %v8460_v61  ;;  %v8452_v11 = vor.u32 %v9854_v17, %v8451_v54 }
 0x478   : > { %v3197_v4 = vpop.f32.mrf.mxu2  ;;  %v3005_v63 = vpop.f32.mrf.mxu0 }
 0x479   : > { %v12378_v30 = vpack.c.b16 %v3479_v28, %v3476_v31  ;;  %v3198_v59 = vadd.f32 %v3197_v4, %v3101_v36  ;;  %v12380_v5 = vpop.f32.mrf.mxu3  ;;  %v3006_v25 = vadd.f32 %v3005_v63, %v11873_v1  ;;  %v3102_v41 = vpop.f32.mrf.mxu1  ;;  %v8643_v36 = vld [vmem:[%s14770_s3 + $0x290] sm:$0xf]  ;;  %v9902_v1 = vld [vmem:[%s14770_s3 + $0x294] sm:$0xf0] }
 0x47a   : > { %v8644_v28 = vor.u32 %v9902_v1, %v8643_v36  ;;  %v9870_v4 = vld [vmem:[%s14770_s3 + $0x194] sm:$0xf0] }
 0x47b   : > { %14940 = vst [vmem:[#allocation35_spill] sm:$0xff] %v12378_v30  ;;  %v3103_v50 = vadd.f32 %v3102_v41, %v3006_v25  ;;  %v3290_v48 = vmax.f32 %v3198_v59, 0.0  ;;  %5252 = vmatpush.bf16.msrb.mxu3 %v8452_v11  ;;  %v8516_v25 = vor.u32 %v9870_v4, %v8515_v34  ;;  %v8444_v41 = vor.u32 %v9852_v57, %v8443_v29 }
 0x47c   : > { %5384 = vmatpush.bf16.msra.mxu2 %v8644_v28 }
 0x47d   : > { %v3385_v17 = vpack.c.bf16 %v3290_v48, %v3290_v48  ;;  %5296 = vmatpush.bf16.msra.mxu0 %v8516_v25 }
 0x47f   : > { %5253 = vmatpush.bf16.msrb.mxu3 %v8444_v41 }
 0x480   : > { %v3199_v31 = vpop.f32.mrf.mxu2  ;;  %v3008_v61 = vpop.f32.mrf.mxu0 }
 0x481   : > { %v3200_v59 = vadd.f32 %v3199_v31, %v3103_v50  ;;  %v12407_v63 = vpop.f32.mrf.mxu3  ;;  %v3105_v54 = vpop.f32.mrf.mxu1  ;;  %v3009_v1 = vadd.f32 %v3008_v61, %v11895_v49  ;;  %v3588_v50 = vunpack.c.l.b16 %v3385_v17  ;;  %v9886_v49 = vld [vmem:[%s14770_s3 + $0x214] sm:$0xf0] }
 0x483   : > { %v3293_v11 = vmax.f32 %v3200_v59, 0.0  ;;  %3047 = vmatmul.bf16.gmra.mxu0 %v10261_v24  ;;  %v3106_v28 = vadd.f32 %v3105_v54, %v3009_v1  ;;  %v8579_v24 = vld [vmem:[%s14770_s3 + $0x210] sm:$0xf] }
 0x484   : > { %3144 = vmatmul.bf16.gmra.mxu1 %v10262_v39  ;;  %v8580_v57 = vor.u32 %v9886_v49, %v8579_v24 }
 0x485   : > { %v3387_v36 = vpack.c.bf16 %v3293_v11, %v3293_v11  ;;  %3241 = vmatmul.bf16.gmra.mxu2 %v10263_v56 }
 0x486   : > { %5235 = vmatmul.bf16.gmra.mxu3 %v12069_v6  ;;  %5340 = vmatpush.bf16.msra.mxu1 %v8580_v57 }
 0x487   : > { %v3591_v31 = vunpack.c.l.b16 %v3387_v36 }
 0x488   : > { %v3202_v34 = vpop.f32.mrf.mxu2  ;;  %v3010_v29 = vpop.f32.mrf.mxu0 }
 0x489   : > { %v12413_v4 = vpack.c.b16 %v3591_v31, %v3588_v50  ;;  %v12415_v48 = vpop.f32.mrf.mxu3  ;;  %v3107_v39 = vpop.f32.mrf.mxu1  ;;  %v3203_v59 = vadd.f32 %v3202_v34, %v3106_v28  ;;  %v3011_v61 = vadd.f32 %v3010_v29, %v11900_v44  ;;  %v10264_v28 = vld [vmem:[%s10680_s27 + $0xe8] sm:$0xff]  ;;  %v10265_v44 = vld [vmem:[%s10680_s27 + $0xf0] sm:$0xff] }
 0x48b   : > { %14941 = vst [vmem:[#allocation33_spill] sm:$0xff] %v12413_v4  ;;  %v3296_v25 = vmax.f32 %v3203_v59, 0.0  ;;  %v3108_v41 = vadd.f32 %v3107_v39, %v3011_v61 }
 0x48d   : > { %v3389_v31 = vpack.c.bf16 %v3296_v25, %v3296_v25 }
 0x48f   : > { %v3482_v29 = vunpack.c.l.b16 %v3389_v31 }
 0x490   : > { %v3204_v54 = vpop.f32.mrf.mxu2  ;;  %v3013_v36 = vpop.f32.mrf.mxu0 }
 0x491   : > { %v3205_v17 = vadd.f32 %v3204_v54, %v3108_v41  ;;  %v12424_v11 = vpop.f32.mrf.mxu3  ;;  %v3014_v1 = vadd.f32 %v3013_v36, %v11919_v47  ;;  %v3110_v50 = vpop.f32.mrf.mxu1 }
 0x493   : > { %v3299_v3 = vmax.f32 %v3205_v17, 0.0  ;;  %v3111_v6 = vadd.f32 %v3110_v50, %v3014_v1  ;;  %3052 = vmatmul.bf16.gmra.mxu0 %v10263_v56 }
 0x494   : > { %3149 = vmatmul.bf16.gmra.mxu1 %v10264_v28  ;;  %v10266_v28 = vld [vmem:[%s10680_s27 + $0xf8] sm:$0xff] }
 0x495   : > { %v3391_v34 = vpack.c.bf16 %v3299_v3, %v3299_v3  ;;  %3246 = vmatmul.bf16.gmra.mxu2 %v10265_v44 }
 0x496   : > { %5240 = vmatmul.bf16.gmra.mxu3 %v12139_v2 }
 0x497   : > { %v3485_v24 = vunpack.c.l.b16 %v3391_v34 }
 0x498   : > { %v3207_v49 = vpop.f32.mrf.mxu2  ;;  %v3015_v47 = vpop.f32.mrf.mxu0 }
 0x499   : > { %v12430_v39 = vpack.c.b16 %v3485_v24, %v3482_v29  ;;  %v3208_v57 = vadd.f32 %v3207_v49, %v3111_v6  ;;  %v12432_v59 = vpop.f32.mrf.mxu3  ;;  %v3016_v61 = vadd.f32 %v3015_v47, %v11924_v16  ;;  %v3112_v3 = vpop.f32.mrf.mxu1  ;;  %v10267_v29 = vld [vmem:[%s10680_s27 + $0x100] sm:$0xff] }
 0x49b   : > { %v3113_v56 = vadd.f32 %v3112_v3, %v3016_v61  ;;  %v3302_v25 = vmax.f32 %v3208_v57, 0.0 }
 0x49d   : > { %v3393_v50 = vpack.c.bf16 %v3302_v25, %v3302_v25 }
 0x49f   : > { %v3594_v16 = vunpack.c.l.b16 %v3393_v50 }
 0x4a0   : > { %v3209_v41 = vpop.f32.mrf.mxu2  ;;  %v3018_v36 = vpop.f32.mrf.mxu0 }
 0x4a1   : > { %v3210_v54 = vadd.f32 %v3209_v41, %v3113_v56  ;;  %v12435_v17 = vpop.f32.mrf.mxu3  ;;  %v3115_v1 = vpop.f32.mrf.mxu1  ;;  %v3019_v34 = vadd.f32 %v3018_v36, %v11952_v33  ;;  %v9900_v33 = vld [vmem:[%s14770_s3 + $0x284] sm:$0xf0]  ;;  %v8507_v56 = vld [vmem:[%s14770_s3 + $0x180] sm:$0xf] }
 0x4a2   : > { %14942 = vst [vmem:[#allocation37_spill] sm:$0xff] %v12435_v17  ;;  %v8571_v36 = vld [vmem:[%s14770_s3 + $0x200] sm:$0xf]  ;;  %v14958_v17 = vld [vmem:[#allocation14_spill] sm:$0xff] }
 0x4a3   : > { %v3305_v31 = vmax.f32 %v3210_v54, 0.0  ;;  %3057 = vmatmul.bf16.gmra.mxu0 %v10265_v44  ;;  %v3116_v47 = vadd.f32 %v3115_v1, %v3019_v34  ;;  %v8635_v44 = vld [vmem:[%s14770_s3 + $0x280] sm:$0xf]  ;;  %v9868_v54 = vld [vmem:[%s14770_s3 + $0x184] sm:$0xf0] }
 0x4a4   : > { %3154 = vmatmul.bf16.gmra.mxu1 %v10266_v28  ;;  %v8636_v41 = vor.u32 %v9900_v33, %v8635_v44  ;;  %v9884_v1 = vld [vmem:[%s14770_s3 + $0x204] sm:$0xf0]  ;;  %v3952_v44 = vld [vmem:[%s14771_s4] sm:$0x3] }
 0x4a5   : > { %v3395_v6 = vpack.c.bf16 %v3305_v31, %v3305_v31  ;;  %3251 = vmatmul.bf16.gmra.mxu2 %v10267_v29  ;;  %v8572_v34 = vor.u32 %v9884_v1, %v8571_v36  ;;  %v10268_v36 = vld [vmem:[%s10680_s27 + $0x108] sm:$0xff]  ;;  %v10269_v1 = vld [vmem:[%s10680_s27 + $0x110] sm:$0xff] }
 0x4a6   : > { %5254 = vmatmul.bf16.vlgmr.msrb.gmra.mxu3 %v12308_v15  ;;  %5385 = vmatpush.bf16.msra.mxu2 %v8636_v41  ;;  %v12470_v41 = vperm.slane %v3952_v44, 0 }
 0x4a7   : > { %v3597_v24 = vunpack.c.l.b16 %v3395_v6  ;;  %v8508_v6 = vor.u32 %v9868_v54, %v8507_v56  ;;  %5341 = vmatpush.bf16.msra.mxu1 %v8572_v34 }
 0x4a8   : > { %v3212_v49 = vpop.f32.mrf.mxu2  ;;  %v3020_v3 = vpop.f32.mrf.mxu0 }
 0x4a9   : > { %v12441_v57 = vpack.c.b16 %v3597_v24, %v3594_v16  ;;  %v12443_v61 = vpop.f32.mrf.mxu3  ;;  %v3117_v25 = vpop.f32.mrf.mxu1  ;;  %v3213_v50 = vadd.f32 %v3212_v49, %v3116_v47  ;;  %v3021_v31 = vadd.f32 %v3020_v3, %v11960_v0  ;;  %5297 = vmatpush.bf16.msra.mxu0 %v8508_v6  ;;  %v5168_v6 = vadd.f32 %v12293_v42, %v12470_v41  ;;  %v9930_v42 = vld [vmem:[%s14770_s3 + $0x374] sm:$0xf0] }
 0x4ab   : > { %14943 = vst [vmem:[#allocation34_spill] sm:$0xff] %v12441_v57  ;;  %v3308_v28 = vmax.f32 %v3213_v50, 0.0  ;;  %v3118_v16 = vadd.f32 %v3117_v25, %v3021_v31 }
 0x4ad   : > { %v3397_v3 = vpack.c.bf16 %v3308_v28, %v3308_v28 }
 0x4af   : > { %v3488_v50 = vunpack.c.l.b16 %v3397_v3  ;;  %v5170_v3 = vadd.f32 %v12302_v13, %v12470_v41 }
 0x4b0   : > { %v3214_v24 = vpop.f32.mrf.mxu2  ;;  %v3023_v49 = vpop.f32.mrf.mxu0 }
 0x4b1   : > { %v3215_v33 = vadd.f32 %v3214_v24, %v3118_v16  ;;  %v12467_v15 = vpop.f32.mrf.mxu3  ;;  %v3024_v0 = vadd.f32 %v3023_v49, %v11978_v45  ;;  %v3120_v47 = vpop.f32.mrf.mxu1 }
 0x4b3   : > { %v3311_v56 = vmax.f32 %v3215_v33, 0.0  ;;  %v3121_v54 = vadd.f32 %v3120_v47, %v3024_v0  ;;  %3062 = vmatmul.bf16.gmra.mxu0 %v10267_v29  ;;  %v8755_v47 = vld [vmem:[%s14770_s3 + $0x370] sm:$0xf] }
 0x4b4   : > { %3159 = vmatmul.bf16.gmra.mxu1 %v10268_v36 }
 0x4b5   : > { %v3399_v25 = vpack.c.bf16 %v3311_v56, %v3311_v56  ;;  %3256 = vmatmul.bf16.gmra.mxu2 %v10269_v1 }
 0x4b6   : > { %5259 = vmatmul.bf16.gmra.mxu3 %v12378_v30 }
 0x4b7   : > { %v3491_v31 = vunpack.c.l.b16 %v3399_v25 }
 0x4b8   : > { %v3217_v45 = vpop.f32.mrf.mxu2  ;;  %v3025_v24 = vpop.f32.mrf.mxu0 }
 0x4b9   : > { %v12477_v34 = vpack.c.b16 %v3491_v31, %v3488_v50  ;;  %v3218_v28 = vadd.f32 %v3217_v45, %v3121_v54  ;;  %v5211_v16 = vpop.f32.mrf.mxu3  ;;  %v3026_v29 = vadd.f32 %v3025_v24, %v11989_v14  ;;  %v3122_v33 = vpop.f32.mrf.mxu1  ;;  %v8756_v54 = vor.u32 %v9930_v42, %v8755_v47  ;;  %v10270_v24 = vld [vmem:[%s10680_s27 + $0x118] sm:$0xff] }
 0x4ba   : > { %v12479_v44 = vadd.f32 %v5211_v16, %v5168_v6 }
 0x4bb   : > { %v3123_v49 = vadd.f32 %v3122_v33, %v3026_v29  ;;  %v3314_v0 = vmax.f32 %v3218_v28, 0.0  ;;  %5422 = vmatpush.bf16.msra.mxu3 %v8756_v54  ;;  %v10271_v29 = vld [vmem:[%s10680_s27 + $0x120] sm:$0xff]  ;;  %v8819_v54 = vld [vmem:[%s14770_s3 + $0x3f0] sm:$0xf] }
 0x4bd   : > { %v3401_v6 = vpack.c.bf16 %v3314_v0, %v3314_v0 }
 0x4bf   : > { %v3600_v13 = vunpack.c.l.b16 %v3401_v6 }
 0x4c0   : > { %v3219_v56 = vpop.f32.mrf.mxu2  ;;  %v3028_v36 = vpop.f32.mrf.mxu0 }
 0x4c1   : > { %v3220_v25 = vadd.f32 %v3219_v56, %v3123_v49  ;;  %v5213_v14 = vpop.f32.mrf.mxu3  ;;  %v3125_v31 = vpop.f32.mrf.mxu1  ;;  %v3029_v28 = vadd.f32 %v3028_v36, %v12010_v51  ;;  %v5173_v49 = vadd.f32 %v12310_v27, %v12470_v41  ;;  %v8947_v51 = vld [vmem:[%s14770_s3 + $0x4f0] sm:$0xf] }
 0x4c2   : > { %v12490_v50 = vadd.f32 %v5213_v14, %v5170_v3 }
 0x4c3   : > { %v3317_v45 = vmax.f32 %v3220_v25, 0.0  ;;  %3067 = vmatmul.bf16.gmra.mxu0 %v10269_v1  ;;  %v3126_v47 = vadd.f32 %v3125_v31, %v3029_v28  ;;  %v9978_v1 = vld [vmem:[%s14770_s3 + $0x4f4] sm:$0xf0] }
 0x4c4   : > { %3164 = vmatmul.bf16.gmra.mxu1 %v10270_v24  ;;  %v8948_v36 = vor.u32 %v9978_v1, %v8947_v51  ;;  %v9946_v31 = vld [vmem:[%s14770_s3 + $0x3f4] sm:$0xf0]  ;;  %v8883_v24 = vld [vmem:[%s14770_s3 + $0x470] sm:$0xf] }
 0x4c5   : > { %v3403_v16 = vpack.c.bf16 %v3317_v45, %v3317_v45  ;;  %3261 = vmatmul.bf16.gmra.mxu2 %v10271_v29  ;;  %v8820_v45 = vor.u32 %v9946_v31, %v8819_v54 }
 0x4c6   : > { %5264 = vmatmul.bf16.gmra.mxu3 %v12430_v39  ;;  %5554 = vmatpush.bf16.msrb.mxu2 %v8948_v36 }
 0x4c7   : > { %v3603_v33 = vunpack.c.l.b16 %v3403_v16  ;;  %5466 = vmatpush.bf16.msrb.mxu0 %v8820_v45  ;;  %v10273_v45 = vld [vmem:[%s10680_s27 + $0x130] sm:$0xff] }
 0x4c8   : > { %v3222_v42 = vpop.f32.mrf.mxu2  ;;  %v3030_v56 = vpop.f32.mrf.mxu0 }
 0x4c9   : > { %v12498_v3 = vpack.c.b16 %v3603_v33, %v3600_v13  ;;  %v5216_v0 = vpop.f32.mrf.mxu3  ;;  %v3223_v25 = vadd.f32 %v3222_v42, %v3126_v47  ;;  %v3127_v14 = vpop.f32.mrf.mxu1  ;;  %v3031_v6 = vadd.f32 %v3030_v56, %v12024_v9  ;;  %v9962_v13 = vld [vmem:[%s14770_s3 + $0x474] sm:$0xf0]  ;;  %v8747_v33 = vld [vmem:[%s14770_s3 + $0x360] sm:$0xf]  ;;  %v9928_v47 = vld [vmem:[%s14770_s3 + $0x364] sm:$0xf0] }
 0x4ca   : > { %v12509_v27 = vadd.f32 %v5216_v0, %v5173_v49  ;;  %v8884_v9 = vor.u32 %v9962_v13, %v8883_v24  ;;  %v8748_v51 = vor.u32 %v9928_v47, %v8747_v33  ;;  %v5178_v13 = vadd.f32 %v12345_v23, %v12470_v41  ;;  %v9976_v47 = vld [vmem:[%s14770_s3 + $0x4e4] sm:$0xf0] }
 0x4cb   : > { %14944 = vst [vmem:[#allocation38_spill] sm:$0xff] %v12498_v3  ;;  %v3320_v28 = vmax.f32 %v3223_v25, 0.0  ;;  %v3128_v16 = vadd.f32 %v3127_v14, %v3031_v6  ;;  %v10272_v6 = vld [vmem:[%s10680_s27 + $0x128] sm:$0xff]  ;;  %s7676_s27 = sshll.u32 %s15033_s18, 3 }
 0x4cc   : > { %5510 = vmatpush.bf16.msrb.mxu1 %v8884_v9  ;;  %5423 = vmatpush.bf16.msra.mxu3 %v8748_v51  ;;  %s693_s23 = scalar_lea.vmem %s14776_s9, %s7676_s27 }
 0x4cd   : > { %v3405_v25 = vpack.c.bf16 %v3320_v28, %v3320_v28 }
 0x4d0   : > { %v3224_v49 = vpop.f32.mrf.mxu2  ;;  %v3033_v56 = vpop.f32.mrf.mxu0 }
 0x4d1   : > { %v3225_v42 = vadd.f32 %v3224_v49, %v3128_v16  ;;  %v12527_v0 = vpop.f32.mrf.mxu3  ;;  %v3034_v1 = vadd.f32 %v3033_v56, %v12036_v58  ;;  %v3130_v54 = vpop.f32.mrf.mxu1  ;;  %v3494_v16 = vunpack.c.l.b16 %v3405_v25  ;;  %v9960_v25 = vld [vmem:[%s14770_s3 + $0x464] sm:$0xf0] }
 0x4d3   : > { %v3323_v14 = vmax.f32 %v3225_v42, 0.0  ;;  %v3131_v36 = vadd.f32 %v3130_v54, %v3034_v1  ;;  %3072 = vmatmul.bf16.gmra.mxu0 %v10271_v29  ;;  %v8939_v29 = vld [vmem:[%s14770_s3 + $0x4e0] sm:$0xf]  ;;  %v9944_v1 = vld [vmem:[%s14770_s3 + $0x3e4] sm:$0xf0] }
 0x4d4   : > { %3169 = vmatmul.bf16.gmra.mxu1 %v10272_v6  ;;  %v8811_v42 = vld [vmem:[%s14770_s3 + $0x3e0] sm:$0xf]  ;;  %v8940_v51 = vor.u32 %v9976_v47, %v8939_v29 }
 0x4d5   : > { %v3407_v31 = vpack.c.bf16 %v3323_v14, %v3323_v14  ;;  %3266 = vmatmul.bf16.gmra.mxu2 %v10273_v45  ;;  %v8875_v54 = vld [vmem:[%s14770_s3 + $0x460] sm:$0xf] }
 0x4d6   : > { %5269 = vmatmul.bf16.gmra.mxu3 %v12477_v34  ;;  %5555 = vmatpush.bf16.msrb.mxu2 %v8940_v51  ;;  %v14945_v51 = vld [vmem:[#allocation44_spill] sm:$0xff] }
 0x4d7   : > { %v3497_v24 = vunpack.c.l.b16 %v3407_v31  ;;  %v8876_v31 = vor.u32 %v9960_v25, %v8875_v54  ;;  %v5183_v25 = vadd.f32 %v12380_v5, %v12470_v41 }
 0x4d8   : > { %v3227_v58 = vpop.f32.mrf.mxu2  ;;  %v3035_v9 = vpop.f32.mrf.mxu0 }
 0x4d9   : > { %v12535_v33 = vpack.c.b16 %v3497_v24, %v3494_v16  ;;  %v3228_v28 = vadd.f32 %v3227_v58, %v3131_v36  ;;  %v5221_v49 = vpop.f32.mrf.mxu3  ;;  %v3132_v23 = vpop.f32.mrf.mxu1  ;;  %v3036_v14 = vadd.f32 %v3035_v9, %v12041_v55  ;;  %v8812_v36 = vor.u32 %v9944_v1, %v8811_v42  ;;  %5511 = vmatpush.bf16.msrb.mxu1 %v8876_v31  ;;  %v8739_v16 = vld [vmem:[%s14770_s3 + $0x350] sm:$0xf]  ;;  %v9926_v24 = vld [vmem:[%s14770_s3 + $0x354] sm:$0xf0] }
 0x4da   : > { %v12546_v56 = vadd.f32 %v5221_v49, %v5178_v13  ;;  %v8740_v58 = vor.u32 %v9926_v24, %v8739_v16  ;;  %v9974_v16 = vld [vmem:[%s14770_s3 + $0x4d4] sm:$0xf0]  ;;  %v8803_v24 = vld [vmem:[%s14770_s3 + $0x3d0] sm:$0xf] }
 0x4db   : > { %5467 = vmatpush.bf16.msrb.mxu0 %v8812_v36  ;;  %v3326_v6 = vmax.f32 %v3228_v28, 0.0  ;;  %v3133_v45 = vadd.f32 %v3132_v23, %v3036_v14 }
 0x4dc   : > { %5424 = vmatpush.bf16.msra.mxu3 %v8740_v58 }
 0x4dd   : > { %v3409_v47 = vpack.c.bf16 %v3326_v6, %v3326_v6 }
 0x4df   : > { %v3606_v1 = vunpack.c.l.b16 %v3409_v47  ;;  %v9958_v47 = vld [vmem:[%s14770_s3 + $0x454] sm:$0xf0] }
 0x4e0   : > { %v3229_v13 = vpop.f32.mrf.mxu2  ;;  %v3038_v55 = vpop.f32.mrf.mxu0 }
 0x4e1   : > { %v3230_v49 = vadd.f32 %v3229_v13, %v3133_v45  ;;  %v12564_v29 = vpop.f32.mrf.mxu3  ;;  %v3135_v9 = vpop.f32.mrf.mxu1  ;;  %v3039_v28 = vadd.f32 %v3038_v55, %v12054_v8  ;;  %v8931_v45 = vld [vmem:[%s14770_s3 + $0x4d0] sm:$0xf]  ;;  %v9942_v55 = vld [vmem:[%s14770_s3 + $0x3d4] sm:$0xf0] }
 0x4e3   : > { %v3329_v42 = vmax.f32 %v3230_v49, 0.0  ;;  %5298 = vmatmul.bf16.vlgmr.msra.gmra.mxu0 %v11824_v21  ;;  %v3136_v14 = vadd.f32 %v3135_v9, %v3039_v28  ;;  %v8932_v49 = vor.u32 %v9974_v16, %v8931_v45  ;;  %v8867_v9 = vld [vmem:[%s14770_s3 + $0x450] sm:$0xf]  ;;  %v9972_v16 = vld [vmem:[%s14770_s3 + $0x4c4] sm:$0xf0] }
 0x4e4   : > { %5342 = vmatmul.bf16.vlgmr.msra.gmra.mxu1 %v14945_v51  ;;  %v8707_v51 = vld [vmem:[%s14770_s3 + $0x310] sm:$0xf] }
 0x4e5   : > { %v3411_v23 = vpack.c.bf16 %v3329_v42, %v3329_v42  ;;  %5386 = vmatmul.bf16.vlgmr.msra.gmra.mxu2 %v12343_v18  ;;  %v14947_v42 = vld [vmem:[#allocation15_spill] sm:$0xff]  ;;  %v8851_v21 = vld [vmem:[%s14770_s3 + $0x430] sm:$0xf] }
 0x4e6   : > { %5274 = vmatmul.bf16.gmra.mxu3 %v12535_v33  ;;  %5556 = vmatpush.bf16.msrb.mxu2 %v8932_v49 }
 0x4e7   : > { %v3609_v54 = vunpack.c.l.b16 %v3411_v23  ;;  %v8804_v23 = vor.u32 %v9942_v55, %v8803_v24 }
 0x4e8   : > { %v3232_v36 = vpop.f32.mrf.mxu2  ;;  %v3040_v8 = vpop.f32.mrf.mxu0 }
 0x4e9   : > { %v12573_v31 = vpack.c.b16 %v3609_v54, %v3606_v1  ;;  %v5226_v6 = vpop.f32.mrf.mxu3  ;;  %v3233_v13 = vadd.f32 %v3232_v36, %v3136_v14  ;;  %v3137_v58 = vpop.f32.mrf.mxu1  ;;  %v3041_v28 = vadd.f32 %v3040_v8, %v14947_v42  ;;  %v8868_v1 = vor.u32 %v9958_v47, %v8867_v9  ;;  %5468 = vmatpush.bf16.msrb.mxu0 %v8804_v23  ;;  %v8731_v14 = vld [vmem:[%s14770_s3 + $0x340] sm:$0xf]  ;;  %v9924_v36 = vld [vmem:[%s14770_s3 + $0x344] sm:$0xf0] }
 0x4ea   : > { %v12584_v5 = vadd.f32 %v5226_v6, %v5183_v25  ;;  %v8923_v6 = vld [vmem:[%s14770_s3 + $0x4c0] sm:$0xf]  ;;  %v8732_v45 = vor.u32 %v9924_v36, %v8731_v14  ;;  %v14949_v23 = vld [vmem:[#allocation8_spill] sm:$0xff] }
 0x4eb   : > { %14946 = vst [vmem:[#allocation36_spill] sm:$0xff] %v12573_v31  ;;  %5512 = vmatpush.bf16.msrb.mxu1 %v8868_v1  ;;  %v3332_v54 = vmax.f32 %v3233_v13, 0.0  ;;  %v3138_v25 = vadd.f32 %v3137_v58, %v3041_v28  ;;  %v8924_v49 = vor.u32 %v9972_v16, %v8923_v6  ;;  %v14948_v42 = vld [vmem:[#allocation19_spill] sm:$0xff] }
 0x4ec   : > { %5425 = vmatpush.bf16.msra.mxu3 %v8732_v45  ;;  %v14950_v14 = vld [vmem:[#allocation11_spill] sm:$0xff] }
 0x4ed   : > { %v3413_v9 = vpack.c.bf16 %v3332_v54, %v3332_v54  ;;  %5557 = vmatpush.bf16.msrb.mxu2 %v8924_v49  ;;  %v9940_v49 = vld [vmem:[%s14770_s3 + $0x3c4] sm:$0xf0] }
 0x4ef   : > { %v3500_v36 = vunpack.c.l.b16 %v3413_v9  ;;  %v8859_v9 = vld [vmem:[%s14770_s3 + $0x440] sm:$0xf] }
 0x4f0   : > { %v3234_v8 = vpop.f32.mrf.mxu2  ;;  %v3043_v58 = vpop.f32.mrf.mxu0 }
 0x4f1   : > { %v3235_v24 = vadd.f32 %v3234_v8, %v3138_v25  ;;  %v12608_v13 = vpop.f32.mrf.mxu3  ;;  %v3140_v55 = vpop.f32.mrf.mxu1  ;;  %v3044_v28 = vadd.f32 %v3043_v58, %v14948_v42  ;;  %v5188_v8 = vadd.f32 %v12415_v48, %v12470_v41  ;;  %v8795_v58 = vld [vmem:[%s14770_s3 + $0x3c0] sm:$0xf] }
 0x4f2   : > { %v8796_v42 = vor.u32 %v9940_v49, %v8795_v58  ;;  %v9920_v58 = vld [vmem:[%s14770_s3 + $0x324] sm:$0xf0] }
 0x4f3   : > { %v3335_v47 = vmax.f32 %v3235_v24, 0.0  ;;  %5303 = vmatmul.bf16.gmra.mxu0 %v14949_v23  ;;  %v3141_v6 = vadd.f32 %v3140_v55, %v3044_v28  ;;  %v9956_v28 = vld [vmem:[%s14770_s3 + $0x444] sm:$0xf0] }
 0x4f4   : > { %5347 = vmatmul.bf16.gmra.mxu1 %v14950_v14  ;;  %5469 = vmatpush.bf16.msrb.mxu0 %v8796_v42 }
 0x4f5   : > { %v3415_v1 = vpack.c.bf16 %v3335_v47, %v3335_v47  ;;  %5391 = vmatmul.bf16.gmra.mxu2 %v12413_v4  ;;  %v9968_v4 = vld [vmem:[%s14770_s3 + $0x4a4] sm:$0xf0] }
 0x4f7   : > { %v3503_v25 = vunpack.c.l.b16 %v3415_v1  ;;  %v8723_v1 = vld [vmem:[%s14770_s3 + $0x330] sm:$0xf] }
 0x4f8   : > { %v3237_v16 = vpop.f32.mrf.mxu2  ;;  %v3045_v24 = vpop.f32.mrf.mxu0 }
 0x4f9   : > { %v12616_v45 = vpack.c.b16 %v3503_v25, %v3500_v36  ;;  %v5231_v54 = vpop.f32.mrf.mxu3  ;;  %v3238_v47 = vadd.f32 %v3237_v16, %v3141_v6  ;;  %v3142_v55 = vpop.f32.mrf.mxu1  ;;  %v9922_v36 = vld [vmem:[%s14770_s3 + $0x334] sm:$0xf0] }
 0x4fa   : > { %v12627_v48 = vadd.f32 %v5231_v54, %v5188_v8  ;;  %v14951_v25 = vld [vmem:[#allocation22_spill] sm:$0xff]  ;;  %v8860_v8 = vor.u32 %v9956_v28, %v8859_v9  ;;  %v8724_v6 = vor.u32 %v9922_v36, %v8723_v1  ;;  %v8715_v54 = vld [vmem:[%s14770_s3 + $0x320] sm:$0xf] }
 0x4fb   : > { %v3046_v18 = vadd.f32 %v3045_v24, %v14951_v25  ;;  %5279 = vmatmul.bf16.gmra.mxu3 %v12616_v45  ;;  %v3338_v16 = vmax.f32 %v3238_v47, 0.0  ;;  %v8915_v24 = vld [vmem:[%s14770_s3 + $0x4b0] sm:$0xf]  ;;  %v9970_v9 = vld [vmem:[%s14770_s3 + $0x4b4] sm:$0xf0]  ;;  %v8716_v42 = vor.u32 %v9920_v58, %v8715_v54 }
 0x4fc   : > { %5513 = vmatpush.bf16.msrb.mxu1 %v8860_v8  ;;  %5426 = vmatpush.bf16.msra.mxu3 %v8724_v6  ;;  %v8787_v47 = vld [vmem:[%s14770_s3 + $0x3b0] sm:$0xf]  ;;  %v8916_v1 = vor.u32 %v9970_v9, %v8915_v24  ;;  %v9938_v36 = vld [vmem:[%s14770_s3 + $0x3b4] sm:$0xf0] }
 0x4fd   : > { %v3143_v49 = vadd.f32 %v3142_v55, %v3046_v18  ;;  %v8788_v8 = vor.u32 %v9938_v36, %v8787_v47  ;;  %v9918_v54 = vld [vmem:[%s14770_s3 + $0x314] sm:$0xf0]  ;;  %v3417_v58 = vpack.c.bf16 %v3338_v16, %v3338_v16  ;;  %v9916_v16 = vld [vmem:[%s14770_s3 + $0x304] sm:$0xf0] }
 0x4fe   : > { %5558 = vmatpush.bf16.msrb.mxu2 %v8916_v1  ;;  %v8708_v9 = vor.u32 %v9918_v54, %v8707_v51  ;;  %v8699_v1 = vld [vmem:[%s14770_s3 + $0x300] sm:$0xf] }
 0x4ff   : > { %5470 = vmatpush.bf16.msrb.mxu0 %v8788_v8  ;;  %v3612_v36 = vunpack.c.l.b16 %v3417_v58 }
 0x500   : > { %v3239_v28 = vpop.f32.mrf.mxu2  ;;  %v3048_v25 = vpop.f32.mrf.mxu0  ;;  %5427 = vmatpush.bf16.msra.mxu3 %v8716_v42  ;;  %v14954_v42 = vld [vmem:[#allocation7_spill] sm:$0xff] }
 0x501   : > { %v3240_v18 = vadd.f32 %v3239_v28, %v3143_v49  ;;  %v12658_v55 = vpop.f32.mrf.mxu3  ;;  %v3145_v6 = vpop.f32.mrf.mxu1  ;;  %v3049_v49 = vadd.f32 %v3048_v25, %v12112_v37  ;;  %v14953_v28 = vld [vmem:[#allocation10_spill] sm:$0xff]  ;;  %v5193_v37 = vadd.f32 %v12432_v59, %v12470_v41  ;;  %v14956_v59 = vld [vmem:[#allocation23_spill] sm:$0xff] }
 0x502   : > { %14952 = vst [vmem:[#allocation3_spill] sm:$0xff] %v12658_v55  ;;  %v14959_v55 = vld [vmem:[#allocation12_spill] sm:$0xff] }
 0x503   : > { %v3341_v24 = vmax.f32 %v3240_v18, 0.0  ;;  %5308 = vmatmul.bf16.gmra.mxu0 %v14953_v28  ;;  %v8700_v18 = vor.u32 %v9916_v16, %v8699_v1  ;;  %v3146_v25 = vadd.f32 %v3145_v6, %v3049_v49 }
 0x504   : > { %5352 = vmatmul.bf16.gmra.mxu1 %v14954_v42  ;;  %5428 = vmatpush.bf16.msra.mxu3 %v8708_v9 }
 0x505   : > { %v3419_v47 = vpack.c.bf16 %v3341_v24, %v3341_v24  ;;  %5396 = vmatmul.bf16.gmra.mxu2 %v12441_v57  ;;  %v9954_v57 = vld [vmem:[%s14770_s3 + $0x434] sm:$0xf0] }
 0x506   : > { %v8852_v16 = vor.u32 %v9954_v57, %v8851_v21  ;;  %v9936_v57 = vld [vmem:[%s14770_s3 + $0x3a4] sm:$0xf0] }
 0x507   : > { %v3615_v51 = vunpack.c.l.b16 %v3419_v47 }
 0x508   : > { %v3242_v8 = vpop.f32.mrf.mxu2  ;;  %v3050_v9 = vpop.f32.mrf.mxu0  ;;  %5429 = vmatpush.bf16.msra.mxu3 %v8700_v18  ;;  %5514 = vmatpush.bf16.msrb.mxu1 %v8852_v16  ;;  %v8843_v18 = vld [vmem:[%s14770_s3 + $0x420] sm:$0xf] }
 0x509   : > { %v12678_v54 = vpack.c.b16 %v3615_v51, %v3612_v36  ;;  %v5236_v24 = vpop.f32.mrf.mxu3  ;;  %v3243_v58 = vadd.f32 %v3242_v8, %v3146_v25  ;;  %v3147_v1 = vpop.f32.mrf.mxu1  ;;  %v3051_v6 = vadd.f32 %v3050_v9, %v14956_v59  ;;  %v8907_v51 = vld [vmem:[%s14770_s3 + $0x4a0] sm:$0xf]  ;;  %v9952_v8 = vld [vmem:[%s14770_s3 + $0x424] sm:$0xf0] }
 0x50a   : > { %v12686_v47 = vadd.f32 %v5236_v24, %v5193_v37  ;;  %v8779_v37 = vld [vmem:[%s14770_s3 + $0x3a0] sm:$0xf]  ;;  %v8908_v21 = vor.u32 %v9968_v4, %v8907_v51  ;;  %v8844_v16 = vor.u32 %v9952_v8, %v8843_v18 }
 0x50b   : > { %14955 = vst [vmem:[#allocation40_spill] sm:$0xff] %v12678_v54  ;;  %v3344_v49 = vmax.f32 %v3243_v58, 0.0  ;;  %v3148_v36 = vadd.f32 %v3147_v1, %v3051_v6  ;;  %v8780_v1 = vor.u32 %v9936_v57, %v8779_v37  ;;  %v5198_v37 = vadd.f32 %v12443_v61, %v12470_v41  ;;  %v8899_v61 = vld [vmem:[%s14770_s3 + $0x490] sm:$0xf] }
 0x50c   : > { %5559 = vmatpush.bf16.msrb.mxu2 %v8908_v21  ;;  %5515 = vmatpush.bf16.msrb.mxu1 %v8844_v16 }
 0x50d   : > { %v3421_v4 = vpack.c.bf16 %v3344_v49, %v3344_v49  ;;  %5471 = vmatpush.bf16.msrb.mxu0 %v8780_v1 }
 0x510   : > { %v3244_v25 = vpop.f32.mrf.mxu2  ;;  %v3053_v58 = vpop.f32.mrf.mxu0 }
 0x511   : > { %v3245_v24 = vadd.f32 %v3244_v25, %v3148_v36  ;;  %v12707_v9 = vpop.f32.mrf.mxu3  ;;  %v3150_v59 = vpop.f32.mrf.mxu1  ;;  %v3054_v51 = vadd.f32 %v3053_v58, %v12153_v19  ;;  %v3506_v36 = vunpack.c.l.b16 %v3421_v4 }
 0x512   : > { %14957 = vst [vmem:[#allocation4_spill] sm:$0xff] %v12707_v9  ;;  %v14961_v9 = vld [vmem:[#allocation17_spill] sm:$0xff] }
 0x513   : > { %v3347_v6 = vmax.f32 %v3245_v24, 0.0  ;;  %5313 = vmatmul.bf16.gmra.mxu0 %v14958_v17  ;;  %v3151_v57 = vadd.f32 %v3150_v59, %v3054_v51  ;;  %v8771_v59 = vld [vmem:[%s14770_s3 + $0x390] sm:$0xf] }
 0x514   : > { %5357 = vmatmul.bf16.gmra.mxu1 %v14959_v55 }
 0x515   : > { %v3423_v42 = vpack.c.bf16 %v3347_v6, %v3347_v6  ;;  %5401 = vmatmul.bf16.gmra.mxu2 %v12498_v3  ;;  %v14960_v3 = vld [vmem:[#allocation13_spill] sm:$0xff] }
 0x517   : > { %v3509_v25 = vunpack.c.l.b16 %v3423_v42  ;;  %v9966_v42 = vld [vmem:[%s14770_s3 + $0x494] sm:$0xf0] }
 0x518   : > { %v3247_v21 = vpop.f32.mrf.mxu2  ;;  %v3055_v8 = vpop.f32.mrf.mxu0  ;;  %v8900_v51 = vor.u32 %v9966_v42, %v8899_v61 }
 0x519   : > { %v12715_v49 = vpack.c.b16 %v3509_v25, %v3506_v36  ;;  %v5241_v18 = vpop.f32.mrf.mxu3  ;;  %v3248_v24 = vadd.f32 %v3247_v21, %v3151_v57  ;;  %v3152_v58 = vpop.f32.mrf.mxu1  ;;  %v3056_v1 = vadd.f32 %v3055_v8, %v12170_v53  ;;  %v9934_v53 = vld [vmem:[%s14770_s3 + $0x394] sm:$0xf0]  ;;  %v8835_v36 = vld [vmem:[%s14770_s3 + $0x410] sm:$0xf] }
 0x51a   : > { %v12717_v19 = vadd.f32 %v5241_v18, %v5198_v37  ;;  %v9950_v25 = vld [vmem:[%s14770_s3 + $0x414] sm:$0xf0]  ;;  %v8772_v18 = vor.u32 %v9934_v53, %v8771_v59  ;;  %5560 = vmatpush.bf16.msrb.mxu2 %v8900_v51 }
 0x51b   : > { %5284 = vmatmul.bf16.gmra.mxu3 %v12715_v49  ;;  %v3350_v16 = vmax.f32 %v3248_v24, 0.0  ;;  %v3153_v4 = vadd.f32 %v3152_v58, %v3056_v1  ;;  %v8836_v8 = vor.u32 %v9950_v25, %v8835_v36 }
 0x51c   : > { %5472 = vmatpush.bf16.msrb.mxu0 %v8772_v18 }
 0x51d   : > { %v3425_v1 = vpack.c.bf16 %v3350_v16, %v3350_v16  ;;  %5516 = vmatpush.bf16.msrb.mxu1 %v8836_v8  ;;  %v9964_v16 = vld [vmem:[%s14770_s3 + $0x484] sm:$0xf0]  ;;  %v14963_v8 = vld [vmem:[#allocation5_spill] sm:$0xff] }
 0x520   : > { %v3249_v6 = vpop.f32.mrf.mxu2  ;;  %v3058_v21 = vpop.f32.mrf.mxu0 }
 0x521   : > { %v3250_v37 = vadd.f32 %v3249_v6, %v3153_v4  ;;  %v12739_v57 = vpop.f32.mrf.mxu3  ;;  %v3059_v24 = vadd.f32 %v3058_v21, %v12194_v22  ;;  %v3155_v58 = vpop.f32.mrf.mxu1  ;;  %v3618_v4 = vunpack.c.l.b16 %v3425_v1  ;;  %v8891_v22 = vld [vmem:[%s14770_s3 + $0x480] sm:$0xf] }
 0x522   : > { %v8892_v51 = vor.u32 %v9964_v16, %v8891_v22  ;;  %v8763_v1 = vld [vmem:[%s14770_s3 + $0x380] sm:$0xf]  ;;  %v9994_v22 = vld [vmem:[%s14770_s3 + $0x574] sm:$0xf0] }
 0x523   : > { %v3353_v61 = vmax.f32 %v3250_v37, 0.0  ;;  %v3156_v42 = vadd.f32 %v3155_v58, %v3059_v24  ;;  %5318 = vmatmul.bf16.gmra.mxu0 %v14960_v3 }
 0x524   : > { %5362 = vmatmul.bf16.gmra.mxu1 %v14961_v9  ;;  %5561 = vmatpush.bf16.msrb.mxu2 %v8892_v51  ;;  %v14965_v9 = vld [vmem:[#allocation21_spill] sm:$0xff] }
 0x525   : > { %v3427_v55 = vpack.c.bf16 %v3353_v61, %v3353_v61  ;;  %5406 = vmatmul.bf16.gmra.mxu2 %v12573_v31  ;;  %v9932_v61 = vld [vmem:[%s14770_s3 + $0x384] sm:$0xf0] }
 0x527   : > { %v3621_v6 = vunpack.c.l.b16 %v3427_v55 }
 0x528   : > { %v3252_v59 = vpop.f32.mrf.mxu2  ;;  %v3060_v37 = vpop.f32.mrf.mxu0 }
 0x529   : > { %v12751_v53 = vpack.c.b16 %v3621_v6, %v3618_v4  ;;  %v3253_v36 = vadd.f32 %v3252_v59, %v3156_v42  ;;  %v5255_v25 = vpop.f32.mrf.mxu3  ;;  %v3061_v55 = vadd.f32 %v3060_v37, %v12211_v20  ;;  %v3157_v18 = vpop.f32.mrf.mxu1  ;;  %v8764_v20 = vor.u32 %v9932_v61, %v8763_v1  ;;  %v9948_v4 = vld [vmem:[%s14770_s3 + $0x404] sm:$0xf0]  ;;  %v9011_v6 = vld [vmem:[%s14770_s3 + $0x570] sm:$0xf] }
 0x52a   : > { %v12754_v21 = vadd.f32 %v5255_v25, %v12479_v44  ;;  %v8827_v44 = vld [vmem:[%s14770_s3 + $0x400] sm:$0xf]  ;;  %v9012_v25 = vor.u32 %v9994_v22, %v9011_v6  ;;  %v10010_v6 = vld [vmem:[%s14770_s3 + $0x5f4] sm:$0xf0] }
 0x52b   : > { %14962 = vst [vmem:[#allocation39_spill] sm:$0xff] %v12751_v53  ;;  %5430 = vmatmul.bf16.vlgmr.msra.gmra.mxu3 %v14963_v8  ;;  %v3158_v24 = vadd.f32 %v3157_v18, %v3061_v55  ;;  %v3356_v58 = vmax.f32 %v3253_v36, 0.0  ;;  %v8828_v36 = vor.u32 %v9948_v4, %v8827_v44  ;;  %5473 = vmatpush.bf16.msrb.mxu0 %v8764_v20  ;;  %v14964_v8 = vld [vmem:[#allocation20_spill] sm:$0xff]  ;;  %v9075_v44 = vld [vmem:[%s14770_s3 + $0x5f0] sm:$0xf] }
 0x52c   : > { %5598 = vmatpush.bf16.msrb.mxu3 %v9012_v25 }
 0x52d   : > { %v3429_v18 = vpack.c.bf16 %v3356_v58, %v3356_v58  ;;  %5517 = vmatpush.bf16.msrb.mxu1 %v8828_v36  ;;  %v10042_v58 = vld [vmem:[%s14770_s3 + $0x6f4] sm:$0xf0]  ;;  %v9076_v36 = vor.u32 %v10010_v6, %v9075_v44 }
 0x52f   : > { %5642 = vmatpush.bf16.msra.mxu0 %v9076_v36 }
 0x530   : > { %v3254_v42 = vpop.f32.mrf.mxu2  ;;  %v3063_v51 = vpop.f32.mrf.mxu0 }
 0x531   : > { %v3255_v16 = vadd.f32 %v3254_v42, %v3158_v24  ;;  %v12776_v59 = vpop.f32.mrf.mxu3  ;;  %v3064_v37 = vadd.f32 %v3063_v51, %v12241_v32  ;;  %v3160_v55 = vpop.f32.mrf.mxu1  ;;  %v3670_v24 = vunpack.c.l.b16 %v3429_v18  ;;  %v9203_v32 = vld [vmem:[%s14770_s3 + $0x6f0] sm:$0xf] }
 0x532   : > { %v9204_v4 = vor.u32 %v10042_v58, %v9203_v32  ;;  %v9139_v18 = vld [vmem:[%s14770_s3 + $0x670] sm:$0xf] }
 0x533   : > { %v3359_v1 = vmax.f32 %v3255_v16, 0.0  ;;  %v3161_v61 = vadd.f32 %v3160_v55, %v3064_v37  ;;  %5323 = vmatmul.bf16.gmra.mxu0 %v14964_v8 }
 0x534   : > { %5367 = vmatmul.bf16.gmra.mxu1 %v14965_v9  ;;  %5730 = vmatpush.bf16.msra.mxu2 %v9204_v4 }
 0x535   : > { %v3431_v31 = vpack.c.bf16 %v3359_v1, %v3359_v1  ;;  %5411 = vmatmul.bf16.gmra.mxu2 %v12678_v54  ;;  %v10026_v1 = vld [vmem:[%s14770_s3 + $0x674] sm:$0xf0] }
 0x536   : > { %v14967_v54 = vld [vmem:[#allocation26_spill] sm:$0xff] }
 0x537   : > { %v3673_v42 = vunpack.c.l.b16 %v3431_v31 }
 0x538   : > { %v3257_v20 = vpop.f32.mrf.mxu2  ;;  %v3065_v51 = vpop.f32.mrf.mxu0 }
 0x539   : > { %v12794_v22 = vpack.c.b16 %v3673_v42, %v3670_v24  ;;  %v3258_v31 = vadd.f32 %v3257_v20, %v3161_v61  ;;  %v5260_v16 = vpop.f32.mrf.mxu3  ;;  %v3066_v37 = vadd.f32 %v3065_v51, %v12246_v40  ;;  %v3162_v55 = vpop.f32.mrf.mxu1  ;;  %v14966_v24 = vld [vmem:[#allocation6_spill] sm:$0xff]  ;;  %v9140_v61 = vor.u32 %v10026_v1, %v9139_v18  ;;  %v9992_v40 = vld [vmem:[%s14770_s3 + $0x564] sm:$0xf0] }
 0x53a   : > { %v12797_v25 = vadd.f32 %v5260_v16, %v12509_v27  ;;  %v9003_v27 = vld [vmem:[%s14770_s3 + $0x560] sm:$0xf] }
 0x53b   : > { %5435 = vmatmul.bf16.gmra.mxu3 %v14966_v24  ;;  %v3163_v42 = vadd.f32 %v3162_v55, %v3066_v37  ;;  %v9004_v32 = vor.u32 %v9992_v40, %v9003_v27  ;;  %5686 = vmatpush.bf16.msra.mxu1 %v9140_v61  ;;  %v3362_v58 = vmax.f32 %v3258_v31, 0.0  ;;  %v9195_v37 = vld [vmem:[%s14770_s3 + $0x6e0] sm:$0xf]  ;;  %v10040_v31 = vld [vmem:[%s14770_s3 + $0x6e4] sm:$0xf0] }
 0x53c   : > { %v14968_v61 = vld [vmem:[#allocation24_spill] sm:$0xff]  ;;  %v9067_v27 = vld [vmem:[%s14770_s3 + $0x5e0] sm:$0xf] }
 0x53d   : > { %5599 = vmatpush.bf16.msrb.mxu3 %v9004_v32  ;;  %v3433_v36 = vpack.c.bf16 %v3362_v58, %v3362_v58  ;;  %v10008_v40 = vld [vmem:[%s14770_s3 + $0x5e4] sm:$0xf0] }
 0x53e   : > { %v9068_v32 = vor.u32 %v10008_v40, %v9067_v27  ;;  %v10024_v58 = vld [vmem:[%s14770_s3 + $0x664] sm:$0xf0] }
 0x540   : > { %v3259_v44 = vpop.f32.mrf.mxu2  ;;  %v3068_v6 = vpop.f32.mrf.mxu0  ;;  %5643 = vmatpush.bf16.msra.mxu0 %v9068_v32 }
 0x541   : > { %v3260_v20 = vadd.f32 %v3259_v44, %v3163_v42  ;;  %v12813_v4 = vpop.f32.mrf.mxu3  ;;  %v3069_v16 = vadd.f32 %v3068_v6, %v12258_v43  ;;  %v3165_v51 = vpop.f32.mrf.mxu1  ;;  %v9196_v43 = vor.u32 %v10040_v31, %v9195_v37  ;;  %v9131_v42 = vld [vmem:[%s14770_s3 + $0x660] sm:$0xf]  ;;  %v3686_v44 = vunpack.c.l.b16 %v3433_v36 }
 0x542   : > { %v9132_v6 = vor.u32 %v10024_v58, %v9131_v42 }
 0x543   : > { %v3365_v18 = vmax.f32 %v3260_v20, 0.0  ;;  %v3166_v1 = vadd.f32 %v3165_v51, %v3069_v16  ;;  %5328 = vmatmul.bf16.gmra.mxu0 %v14967_v54  ;;  %5731 = vmatpush.bf16.msra.mxu2 %v9196_v43 }
 0x544   : > { %5372 = vmatmul.bf16.gmra.mxu1 %v14968_v61  ;;  %v14970_v61 = vld [vmem:[#allocation9_spill] sm:$0xff] }
 0x545   : > { %v3435_v55 = vpack.c.bf16 %v3365_v18, %v3365_v18  ;;  %5416 = vmatmul.bf16.gmra.mxu2 %v12751_v53  ;;  %5687 = vmatpush.bf16.msra.mxu1 %v9132_v6  ;;  %v10038_v6 = vld [vmem:[%s14770_s3 + $0x6d4] sm:$0xf0] }
 0x547   : > { %v3689_v20 = vunpack.c.l.b16 %v3435_v55  ;;  %v8995_v55 = vld [vmem:[%s14770_s3 + $0x550] sm:$0xf] }
 0x548   : > { %v3262_v16 = vpop.f32.mrf.mxu2  ;;  %v3070_v37 = vpop.f32.mrf.mxu0 }
 0x549   : > { %v3263_v51 = vadd.f32 %v3262_v16, %v3166_v1  ;;  %v5265_v18 = vpop.f32.mrf.mxu3  ;;  %v12837_v31 = vpack.c.b16 %v3689_v20, %v3686_v44  ;;  %v3071_v27 = vadd.f32 %v3070_v37, %v12262_v38  ;;  %v3167_v40 = vpop.f32.mrf.mxu1  ;;  %v9990_v1 = vld [vmem:[%s14770_s3 + $0x554] sm:$0xf0]  ;;  %v9187_v20 = vld [vmem:[%s14770_s3 + $0x6d0] sm:$0xf] }
 0x54a   : > { %v12840_v53 = vadd.f32 %v5265_v18, %v12546_v56  ;;  %v8996_v43 = vor.u32 %v9990_v1, %v8995_v55  ;;  %v9188_v37 = vor.u32 %v10038_v6, %v9187_v20  ;;  %v9123_v55 = vld [vmem:[%s14770_s3 + $0x650] sm:$0xf]  ;;  %v10022_v1 = vld [vmem:[%s14770_s3 + $0x654] sm:$0xf0]  ;;  %v8987_v20 = vld [vmem:[%s14770_s3 + $0x540] sm:$0xf] }
 0x54b   : > { %14969 = vst [vmem:[#allocation15_spill] sm:$0xff] %v12837_v31  ;;  %5440 = vmatmul.bf16.gmra.mxu3 %v14970_v61  ;;  %v3168_v36 = vadd.f32 %v3167_v40, %v3071_v27  ;;  %v3368_v42 = vmax.f32 %v3263_v51, 0.0  ;;  %v9059_v51 = vld [vmem:[%s14770_s3 + $0x5d0] sm:$0xf]  ;;  %v10006_v27 = vld [vmem:[%s14770_s3 + $0x5d4] sm:$0xf0] }
 0x54c   : > { %5600 = vmatpush.bf16.msrb.mxu3 %v8996_v43  ;;  %5732 = vmatpush.bf16.msra.mxu2 %v9188_v37  ;;  %v9124_v43 = vor.u32 %v10022_v1, %v9123_v55  ;;  %v9988_v6 = vld [vmem:[%s14770_s3 + $0x544] sm:$0xf0] }
 0x54d   : > { %v3437_v16 = vpack.c.bf16 %v3368_v42, %v3368_v42 }
 0x54e   : > { %5688 = vmatpush.bf16.msra.mxu1 %v9124_v43 }
 0x54f   : > { %v3702_v42 = vunpack.c.l.b16 %v3437_v16 }
 0x550   : > { %v3264_v32 = vpop.f32.mrf.mxu2  ;;  %v3073_v38 = vpop.f32.mrf.mxu0 }
 0x551   : > { %v3265_v56 = vadd.f32 %v3264_v32, %v3168_v36  ;;  %v12850_v58 = vpop.f32.mrf.mxu3  ;;  %v3170_v44 = vpop.f32.mrf.mxu1  ;;  %v9060_v36 = vor.u32 %v10006_v27, %v9059_v51  ;;  %v8988_v51 = vor.u32 %v9988_v6, %v8987_v20  ;;  %v14971_v27 = vld [vmem:[#allocation18_spill] sm:$0xff]  ;;  %v9115_v6 = vld [vmem:[%s14770_s3 + $0x640] sm:$0xf] }
 0x553   : > { %v3371_v18 = vmax.f32 %v3265_v56, 0.0  ;;  %5474 = vmatmul.bf16.vlgmr.msrb.gmra.mxu0 %v11851_v60  ;;  %5601 = vmatpush.bf16.msrb.mxu3 %v8988_v51 }
 0x554   : > { %5518 = vmatmul.bf16.vlgmr.msrb.gmra.mxu1 %v12378_v30  ;;  %5644 = vmatpush.bf16.msra.mxu0 %v9060_v36  ;;  %v10036_v36 = vld [vmem:[%s14770_s3 + $0x6c4] sm:$0xf0] }
 0x555   : > { %v3439_v40 = vpack.c.bf16 %v3371_v18, %v3371_v18  ;;  %5562 = vmatmul.bf16.vlgmr.msrb.gmra.mxu2 %v14949_v23 }
 0x557   : > { %v3705_v32 = vunpack.c.l.b16 %v3439_v40  ;;  %v9179_v40 = vld [vmem:[%s14770_s3 + $0x6c0] sm:$0xf] }
 0x558   : > { %v3267_v56 = vpop.f32.mrf.mxu2  ;;  %v3074_v44 = vpop.f32.mrf.mxu0  ;;  %v9180_v1 = vor.u32 %v10036_v36, %v9179_v40  ;;  %v9986_v40 = vld [vmem:[%s14770_s3 + $0x534] sm:$0xf0]  ;;  %v5258_v36 = vadd.f32 %v12776_v59, %v12490_v50  ;;  %v9043_v59 = vld [vmem:[%s14770_s3 + $0x5b0] sm:$0xf] }
 0x559   : > { %v5270_v38 = vpop.f32.mrf.mxu3  ;;  %v12879_v18 = vpack.c.b16 %v3705_v32, %v3702_v42  ;;  %v3171_v16 = vpop.f32.mrf.mxu1  ;;  %v10004_v32 = vld [vmem:[%s14770_s3 + $0x5c4] sm:$0xf0]  ;;  %v10034_v50 = vld [vmem:[%s14770_s3 + $0x6b4] sm:$0xf0] }
 0x55a   : > { %v12882_v37 = vadd.f32 %v5270_v38, %v12584_v5  ;;  %v9051_v5 = vld [vmem:[%s14770_s3 + $0x5c0] sm:$0xf]  ;;  %5733 = vmatpush.bf16.msra.mxu2 %v9180_v1  ;;  %v10020_v16 = vld [vmem:[%s14770_s3 + $0x644] sm:$0xf0] }
 0x55b   : > { %5445 = vmatmul.bf16.gmra.mxu3 %v14971_v27  ;;  %v9052_v44 = vor.u32 %v10004_v32, %v9051_v5  ;;  %v9116_v51 = vor.u32 %v10020_v16, %v9115_v6  ;;  %v9171_v16 = vld [vmem:[%s14770_s3 + $0x6b0] sm:$0xf] }
 0x55d   : > { %5645 = vmatpush.bf16.msra.mxu0 %v9052_v44  ;;  %5689 = vmatpush.bf16.msra.mxu1 %v9116_v51 }
 0x560   : > { %v3268_v55 = vpop.f32.mrf.mxu2  ;;  %v5299_v42 = vpop.f32.mrf.mxu0 }
 0x561   : > { %v12891_v43 = vpop.f32.mrf.mxu3  ;;  %v5300_v56 = vadd.f32 %v5299_v42, %v12754_v21  ;;  %v5343_v38 = vpop.f32.mrf.mxu1  ;;  %v8979_v21 = vld [vmem:[%s14770_s3 + $0x530] sm:$0xf] }
 0x562   : > { %v8980_v1 = vor.u32 %v9986_v40, %v8979_v21  ;;  %v8971_v21 = vld [vmem:[%s14770_s3 + $0x520] sm:$0xf]  ;;  %v9984_v40 = vld [vmem:[%s14770_s3 + $0x524] sm:$0xf0] }
 0x563   : > { %v5344_v20 = vadd.f32 %v5343_v38, %v5300_v56  ;;  %5479 = vmatmul.bf16.gmra.mxu0 %v11904_v52 }
 0x564   : > { %5523 = vmatmul.bf16.gmra.mxu1 %v12430_v39  ;;  %5602 = vmatpush.bf16.msrb.mxu3 %v8980_v1 }
 0x565   : > { %5567 = vmatmul.bf16.gmra.mxu2 %v14953_v28 }
 0x568   : > { %v5387_v55 = vpop.f32.mrf.mxu2  ;;  %v5301_v32 = vpop.f32.mrf.mxu0 }
 0x569   : > { %v5275_v42 = vpop.f32.mrf.mxu3  ;;  %v12917_v5 = vadd.f32 %v5387_v55, %v5344_v20  ;;  %v5302_v38 = vadd.f32 %v5301_v32, %v5258_v36  ;;  %v5345_v44 = vpop.f32.mrf.mxu1  ;;  %v10002_v20 = vld [vmem:[%s14770_s3 + $0x5b4] sm:$0xf0]  ;;  %v8972_v36 = vor.u32 %v9984_v40, %v8971_v21  ;;  %v9107_v32 = vld [vmem:[%s14770_s3 + $0x630] sm:$0xf]  ;;  %v8955_v40 = vld [vmem:[%s14770_s3 + $0x500] sm:$0xf] }
 0x56a   : > { %v12920_v56 = vadd.f32 %v5275_v42, %v12627_v48  ;;  %v9172_v48 = vor.u32 %v10034_v50, %v9171_v16  ;;  %v9044_v51 = vor.u32 %v10002_v20, %v9043_v59  ;;  %v8963_v59 = vld [vmem:[%s14770_s3 + $0x510] sm:$0xf]  ;;  %v5175_v20 = vadd.f32 %v12331_v26, %v12470_v41  ;;  %v9980_v26 = vld [vmem:[%s14770_s3 + $0x504] sm:$0xf0] }
 0x56b   : > { %5450 = vmatmul.bf16.gmra.mxu3 %v12067_v46  ;;  %v5346_v6 = vadd.f32 %v5345_v44, %v5302_v38  ;;  %v10018_v38 = vld [vmem:[%s14770_s3 + $0x634] sm:$0xf0] }
 0x56c   : > { %5734 = vmatpush.bf16.msra.mxu2 %v9172_v48  ;;  %5646 = vmatpush.bf16.msra.mxu0 %v9044_v51  ;;  %v9108_v50 = vor.u32 %v10018_v38, %v9107_v32 }
 0x56d   : > { %5603 = vmatpush.bf16.msrb.mxu3 %v8972_v36  ;;  %v8956_v36 = vor.u32 %v9980_v26, %v8955_v40  ;;  %v9099_v40 = vld [vmem:[%s14770_s3 + $0x620] sm:$0xf]  ;;  %v10016_v26 = vld [vmem:[%s14770_s3 + $0x624] sm:$0xf0] }
 0x56e   : > { %5690 = vmatpush.bf16.msra.mxu1 %v9108_v50  ;;  %v9163_v50 = vld [vmem:[%s14770_s3 + $0x6a0] sm:$0xf] }
 0x570   : > { %v5389_v55 = vpop.f32.mrf.mxu2  ;;  %v5304_v42 = vpop.f32.mrf.mxu0 }
 0x571   : > { %v12941_v1 = vadd.f32 %v5389_v55, %v5346_v6  ;;  %v5305_v44 = vadd.f32 %v5304_v42, %v12797_v25  ;;  %v5348_v16 = vpop.f32.mrf.mxu1  ;;  %v9982_v6 = vld [vmem:[%s14770_s3 + $0x514] sm:$0xf0]  ;;  %v5219_v25 = vadd.f32 %v12527_v0, %v5175_v20  ;;  %v12962_v21 = vpop.f32.mrf.mxu3 }
 0x572   : > { %v8964_v48 = vor.u32 %v9982_v6, %v8963_v59  ;;  %v10032_v59 = vld [vmem:[%s14770_s3 + $0x6a4] sm:$0xf0] }
 0x573   : > { %v5349_v51 = vadd.f32 %v5348_v16, %v5305_v44  ;;  %5484 = vmatmul.bf16.gmra.mxu0 %v11964_v10  ;;  %v5263_v55 = vadd.f32 %v12813_v4, %v5219_v25  ;;  %v9035_v4 = vld [vmem:[%s14770_s3 + $0x5a0] sm:$0xf]  ;;  %v9164_v6 = vor.u32 %v10032_v59, %v9163_v50 }
 0x574   : > { %5528 = vmatmul.bf16.gmra.mxu1 %v12477_v34  ;;  %5604 = vmatpush.bf16.msrb.mxu3 %v8964_v48  ;;  %v10000_v48 = vld [vmem:[%s14770_s3 + $0x5a4] sm:$0xf0] }
 0x575   : > { %5572 = vmatmul.bf16.gmra.mxu2 %v14958_v17 }
 0x576   : > { %5735 = vmatpush.bf16.msra.mxu2 %v9164_v6 }
 0x578   : > { %v5392_v42 = vpop.f32.mrf.mxu2  ;;  %v5306_v38 = vpop.f32.mrf.mxu0  ;;  %5605 = vmatpush.bf16.msrb.mxu3 %v8956_v36 }
 0x579   : > { %v12971_v32 = vadd.f32 %v5392_v42, %v5349_v51  ;;  %v5307_v44 = vadd.f32 %v5306_v38, %v5263_v55  ;;  %v5350_v0 = vpop.f32.mrf.mxu1  ;;  %v9036_v51 = vor.u32 %v10000_v48, %v9035_v4  ;;  %v9100_v55 = vor.u32 %v10016_v26, %v9099_v40  ;;  %v9155_v48 = vld [vmem:[%s14770_s3 + $0x690] sm:$0xf]  ;;  %v9998_v26 = vld [vmem:[%s14770_s3 + $0x594] sm:$0xf0] }
 0x57b   : > { %5455 = vmatmul.bf16.gmra.mxu3 %v12137_v35  ;;  %v5351_v16 = vadd.f32 %v5350_v0, %v5307_v44  ;;  %5647 = vmatpush.bf16.msra.mxu0 %v9036_v51 }
 0x57c   : > { %5691 = vmatpush.bf16.msra.mxu1 %v9100_v55 }
 0x57e   : > { %v5280_v20 = vpop.f32.mrf.mxu3 }
 0x57f   : > { %v12987_v25 = vadd.f32 %v5280_v20, %v12686_v47  ;;  %v5180_v47 = vadd.f32 %v12360_v7, %v12470_v41  ;;  %v10030_v7 = vld [vmem:[%s14770_s3 + $0x694] sm:$0xf0] }
 0x580   : > { %v5394_v36 = vpop.f32.mrf.mxu2  ;;  %v5309_v38 = vpop.f32.mrf.mxu0  ;;  %v9156_v40 = vor.u32 %v10030_v7, %v9155_v48  ;;  %v14972_v48 = vld [vmem:[#allocation16_spill] sm:$0xff] }
 0x581   : > { %v12995_v42 = vadd.f32 %v5394_v36, %v5351_v16  ;;  %v5310_v44 = vadd.f32 %v5309_v38, %v12840_v53  ;;  %v5353_v0 = vpop.f32.mrf.mxu1  ;;  %v5224_v59 = vadd.f32 %v12564_v29, %v5180_v47  ;;  %v9091_v36 = vld [vmem:[%s14770_s3 + $0x610] sm:$0xf]  ;;  %v10014_v38 = vld [vmem:[%s14770_s3 + $0x614] sm:$0xf0] }
 0x582   : > { %5736 = vmatpush.bf16.msra.mxu2 %v9156_v40 }
 0x583   : > { %v5354_v50 = vadd.f32 %v5353_v0, %v5310_v44  ;;  %5489 = vmatmul.bf16.gmra.mxu0 %v12028_v12  ;;  %v5268_v16 = vadd.f32 %v12850_v58, %v5224_v59  ;;  %v9027_v58 = vld [vmem:[%s14770_s3 + $0x590] sm:$0xf]  ;;  %v9092_v44 = vor.u32 %v10014_v38, %v9091_v36  ;;  %v9996_v36 = vld [vmem:[%s14770_s3 + $0x584] sm:$0xf0] }
 0x584   : > { %5533 = vmatmul.bf16.gmra.mxu1 %v12535_v33  ;;  %v9028_v55 = vor.u32 %v9998_v26, %v9027_v58 }
 0x585   : > { %5577 = vmatmul.bf16.gmra.mxu2 %v14960_v3  ;;  %5692 = vmatpush.bf16.msra.mxu1 %v9092_v44 }
 0x586   : > { %5648 = vmatpush.bf16.msra.mxu0 %v9028_v55 }
 0x588   : > { %v5397_v4 = vpop.f32.mrf.mxu2  ;;  %v5311_v53 = vpop.f32.mrf.mxu0 }
 0x589   : > { %v13005_v6 = vadd.f32 %v5397_v4, %v5354_v50  ;;  %v5312_v20 = vadd.f32 %v5311_v53, %v5268_v16  ;;  %v5355_v51 = vpop.f32.mrf.mxu1  ;;  %v5185_v4 = vadd.f32 %v12407_v63, %v12470_v41 }
 0x58b   : > { %5460 = vmatmul.bf16.gmra.mxu3 %v12225_v62  ;;  %v5356_v29 = vadd.f32 %v5355_v51, %v5312_v20  ;;  %v5229_v7 = vadd.f32 %v12608_v13, %v5185_v4  ;;  %v13035_v20 = vpop.f32.mrf.mxu3  ;;  %v9147_v51 = vld [vmem:[%s14770_s3 + $0x680] sm:$0xf] }
 0x58c   : > { %v9019_v13 = vld [vmem:[%s14770_s3 + $0x580] sm:$0xf] }
 0x58d   : > { %v5273_v63 = vadd.f32 %v12891_v43, %v5229_v7  ;;  %v9020_v44 = vor.u32 %v9996_v36, %v9019_v13  ;;  %v10058_v7 = vld [vmem:[%s14770_s3 + $0x774] sm:$0xf0]  ;;  %v5190_v13 = vadd.f32 %v12424_v11, %v12470_v41 }
 0x58f   : > { %5649 = vmatpush.bf16.msra.mxu0 %v9020_v44 }
 0x590   : > { %v5399_v0 = vpop.f32.mrf.mxu2  ;;  %v5314_v50 = vpop.f32.mrf.mxu0 }
 0x591   : > { %v13026_v47 = vadd.f32 %v5399_v0, %v5356_v29  ;;  %v5315_v59 = vadd.f32 %v5314_v50, %v12882_v37  ;;  %v5358_v16 = vpop.f32.mrf.mxu1  ;;  %v10028_v37 = vld [vmem:[%s14770_s3 + $0x684] sm:$0xf0]  ;;  %v9083_v0 = vld [vmem:[%s14770_s3 + $0x600] sm:$0xf] }
 0x592   : > { %v9148_v29 = vor.u32 %v10028_v37, %v9147_v51  ;;  %v10012_v50 = vld [vmem:[%s14770_s3 + $0x604] sm:$0xf0] }
 0x593   : > { %v5359_v53 = vadd.f32 %v5358_v16, %v5315_v59  ;;  %5494 = vmatmul.bf16.gmra.mxu0 %v14972_v48  ;;  %v9084_v59 = vor.u32 %v10012_v50, %v9083_v0  ;;  %v8373_v50 = vld [vmem:[%s14770_s3 + $0x78] sm:$0xf0] }
 0x594   : > { %5538 = vmatmul.bf16.gmra.mxu1 %v12616_v45  ;;  %5737 = vmatpush.bf16.msra.mxu2 %v9148_v29 }
 0x595   : > { %5582 = vmatmul.bf16.gmra.mxu2 %v14964_v8  ;;  %5693 = vmatpush.bf16.msra.mxu1 %v9084_v59 }
 0x598   : > { %v5402_v40 = vpop.f32.mrf.mxu2  ;;  %v5316_v26 = vpop.f32.mrf.mxu0 }
 0x599   : > { %v13044_v58 = vadd.f32 %v5402_v40, %v5359_v53  ;;  %v5317_v55 = vadd.f32 %v5316_v26, %v5273_v63  ;;  %v5360_v38 = vpop.f32.mrf.mxu1  ;;  %v9267_v53 = vld [vmem:[%s14770_s3 + $0x770] sm:$0xf] }
 0x59a   : > { %v9268_v37 = vor.u32 %v10058_v7, %v9267_v53 }
 0x59b   : > { %5606 = vmatmul.bf16.vlgmr.msrb.gmra.mxu3 %v14950_v14  ;;  %v5361_v43 = vadd.f32 %v5360_v38, %v5317_v55  ;;  %v14973_v38 = vld [vmem:[#allocation3_spill] sm:$0xff] }
 0x59c   : > { %5774 = vmatpush.bf16.msra.mxu3 %v9268_v37  ;;  %v5234_v44 = vadd.f32 %v14973_v38, %v5190_v13  ;;  %v9849_v37 = vld [vmem:[%s14770_s3 + $0xf4] sm:$0xf]  ;;  %v14974_v13 = vld [vmem:[#allocation7_spill] sm:$0xff] }
 0x59e   : > { %v5285_v16 = vpop.f32.mrf.mxu3  ;;  %v5278_v59 = vadd.f32 %v12962_v21, %v5234_v44 }
 0x59f   : > { %v13060_v4 = vadd.f32 %v5285_v16, %v12717_v19  ;;  %v5200_v19 = vadd.f32 %v12467_v15, %v12470_v41  ;;  %v8501_v15 = vld [vmem:[%s14770_s3 + $0x178] sm:$0xf0] }
 0x5a0   : > { %v5404_v51 = vpop.f32.mrf.mxu2  ;;  %v5319_v40 = vpop.f32.mrf.mxu0 }
 0x5a1   : > { %v13068_v63 = vadd.f32 %v5404_v51, %v5361_v43  ;;  %v5320_v29 = vadd.f32 %v5319_v40, %v12920_v56  ;;  %v5363_v26 = vpop.f32.mrf.mxu1  ;;  %v5244_v55 = vadd.f32 %v12739_v57, %v5200_v19  ;;  %v9865_v56 = vld [vmem:[%s14770_s3 + $0x174] sm:$0xf]  ;;  %v8437_v40 = vld [vmem:[%s14770_s3 + $0xf8] sm:$0xf0] }
 0x5a2   : > { %v8504_v43 = vor.u32 %v9865_v56, %v8501_v15  ;;  %v9833_v57 = vld [vmem:[%s14770_s3 + $0x74] sm:$0xf]  ;;  %v8440_v19 = vor.u32 %v9849_v37, %v8437_v40  ;;  %v9863_v37 = vld [vmem:[%s14770_s3 + $0x164] sm:$0xf] }
 0x5a3   : > { %v5364_v36 = vadd.f32 %v5363_v26, %v5320_v29  ;;  %5499 = vmatmul.bf16.gmra.mxu0 %v12139_v2  ;;  %v8376_v53 = vor.u32 %v9833_v57, %v8373_v50  ;;  %v14977_v40 = vld [vmem:[#allocation25_spill] sm:$0xff] }
 0x5a4   : > { %5543 = vmatmul.bf16.gmra.mxu1 %v12715_v49  ;;  %5906 = vmatpush.bf16.msrb.mxu2 %v8504_v43 }
 0x5a5   : > { %5587 = vmatmul.bf16.gmra.mxu2 %v14967_v54  ;;  %5818 = vmatpush.bf16.msrb.mxu0 %v8376_v53 }
 0x5a6   : > { %v5287_v11 = vpop.f32.mrf.mxu3  ;;  %5862 = vmatpush.bf16.msrb.mxu1 %v8440_v19 }
 0x5a7   : > { %v13086_v0 = vadd.f32 %v5287_v11, %v5244_v55  ;;  %v10056_v55 = vld [vmem:[%s14770_s3 + $0x764] sm:$0xf0] }
 0x5a8   : > { %v5407_v16 = vpop.f32.mrf.mxu2  ;;  %v5321_v51 = vpop.f32.mrf.mxu0 }
 0x5a9   : > { %v13095_v7 = vadd.f32 %v5407_v16, %v5364_v36  ;;  %v5322_v29 = vadd.f32 %v5321_v51, %v5278_v59  ;;  %v5365_v26 = vpop.f32.mrf.mxu1  ;;  %v9259_v36 = vld [vmem:[%s14770_s3 + $0x760] sm:$0xf]  ;;  %v14975_v59 = vld [vmem:[#allocation37_spill] sm:$0xff]  ;;  %v14976_v51 = vld [vmem:[#allocation28_spill] sm:$0xff] }
 0x5aa   : > { %v9260_v56 = vor.u32 %v10056_v55, %v9259_v36  ;;  %v5195_v16 = vadd.f32 %v14975_v59, %v12470_v41  ;;  %v9831_v41 = vld [vmem:[%s14770_s3 + $0x64] sm:$0xf] }
 0x5ab   : > { %5611 = vmatmul.bf16.gmra.mxu3 %v14974_v13  ;;  %v5366_v21 = vadd.f32 %v5365_v26, %v5322_v29  ;;  %v8365_v29 = vld [vmem:[%s14770_s3 + $0x68] sm:$0xf0] }
 0x5ac   : > { %5775 = vmatpush.bf16.msra.mxu3 %v9260_v56  ;;  %v14978_v26 = vld [vmem:[#allocation4_spill] sm:$0xff]  ;;  %v8368_v36 = vor.u32 %v9831_v41, %v8365_v29  ;;  %v9847_v56 = vld [vmem:[%s14770_s3 + $0xe4] sm:$0xf] }
 0x5ad   : > { %v5239_v19 = vadd.f32 %v14978_v26, %v5195_v16 }
 0x5ae   : > { %v5431_v15 = vpop.f32.mrf.mxu3  ;;  %5819 = vmatpush.bf16.msrb.mxu0 %v8368_v36  ;;  %v9861_v36 = vld [vmem:[%s14770_s3 + $0x154] sm:$0xf] }
 0x5af   : > { %v13111_v38 = vadd.f32 %v5431_v15, %v12917_v5  ;;  %v8493_v5 = vld [vmem:[%s14770_s3 + $0x168] sm:$0xf0] }
 0x5b0   : > { %v5409_v44 = vpop.f32.mrf.mxu2  ;;  %v5324_v43 = vpop.f32.mrf.mxu0  ;;  %v8429_v15 = vld [vmem:[%s14770_s3 + $0xe8] sm:$0xf0] }
 0x5b1   : > { %v13113_v11 = vadd.f32 %v5409_v44, %v5366_v21  ;;  %v5325_v57 = vadd.f32 %v5324_v43, %v12987_v25  ;;  %v5368_v50 = vpop.f32.mrf.mxu1  ;;  %v8496_v25 = vor.u32 %v9863_v37, %v8493_v5  ;;  %v5283_v44 = vadd.f32 %v13035_v20, %v5239_v19  ;;  %v14979_v37 = vld [vmem:[#allocation12_spill] sm:$0xff]  ;;  %v10054_v20 = vld [vmem:[%s14770_s3 + $0x754] sm:$0xf0] }
 0x5b3   : > { %v5369_v53 = vadd.f32 %v5368_v50, %v5325_v57  ;;  %5504 = vmatmul.bf16.gmra.mxu0 %v14976_v51  ;;  %5907 = vmatpush.bf16.msrb.mxu2 %v8496_v25  ;;  %v8432_v57 = vor.u32 %v9847_v56, %v8429_v15  ;;  %v9251_v25 = vld [vmem:[%s14770_s3 + $0x750] sm:$0xf]  ;;  %v8485_v56 = vld [vmem:[%s14770_s3 + $0x158] sm:$0xf0] }
 0x5b4   : > { %5548 = vmatmul.bf16.gmra.mxu1 %v12794_v22  ;;  %v9252_v41 = vor.u32 %v10054_v20, %v9251_v25 }
 0x5b5   : > { %5592 = vmatmul.bf16.gmra.mxu2 %v14977_v40  ;;  %5863 = vmatpush.bf16.msrb.mxu1 %v8432_v57 }
 0x5b6   : > { %v5433_v21 = vpop.f32.mrf.mxu3  ;;  %5776 = vmatpush.bf16.msra.mxu3 %v9252_v41 }
 0x5b7   : > { %v13135_v55 = vadd.f32 %v5433_v21, %v12941_v1 }
 0x5b8   : > { %v5412_v43 = vpop.f32.mrf.mxu2  ;;  %v5326_v59 = vpop.f32.mrf.mxu0 }
 0x5b9   : > { %v13144_v50 = vadd.f32 %v5412_v43, %v5369_v53  ;;  %v5327_v16 = vadd.f32 %v5326_v59, %v5283_v44  ;;  %v5370_v1 = vpop.f32.mrf.mxu1  ;;  %v8488_v43 = vor.u32 %v9861_v36, %v8485_v56  ;;  %v9829_v59 = vld [vmem:[%s14770_s3 + $0x54] sm:$0xf]  ;;  %v9243_v36 = vld [vmem:[%s14770_s3 + $0x740] sm:$0xf]  ;;  %v10052_v56 = vld [vmem:[%s14770_s3 + $0x744] sm:$0xf0] }
 0x5bb   : > { %5616 = vmatmul.bf16.gmra.mxu3 %v14979_v37  ;;  %v5371_v5 = vadd.f32 %v5370_v1, %v5327_v16  ;;  %5908 = vmatpush.bf16.msrb.mxu2 %v8488_v43  ;;  %v8357_v16 = vld [vmem:[%s14770_s3 + $0x58] sm:$0xf0]  ;;  %v9244_v43 = vor.u32 %v10052_v56, %v9243_v36 }
 0x5bc   : > { %v8360_v1 = vor.u32 %v9829_v59, %v8357_v16 }
 0x5bd   : > { %5777 = vmatpush.bf16.msra.mxu3 %v9244_v43  ;;  %v9843_v43 = vld [vmem:[%s14770_s3 + $0xc4] sm:$0xf] }
 0x5be   : > { %v5436_v29 = vpop.f32.mrf.mxu3  ;;  %5820 = vmatpush.bf16.msrb.mxu0 %v8360_v1  ;;  %v9859_v1 = vld [vmem:[%s14770_s3 + $0x144] sm:$0xf] }
 0x5bf   : > { %v13154_v53 = vadd.f32 %v5436_v29, %v12971_v32  ;;  %v14980_v32 = vld [vmem:[#allocation33_spill] sm:$0xff] }
 0x5c0   : > { %v5414_v26 = vpop.f32.mrf.mxu2  ;;  %v5329_v21 = vpop.f32.mrf.mxu0 }
 0x5c1   : > { %v13156_v19 = vadd.f32 %v5414_v26, %v5371_v5  ;;  %v5330_v15 = vadd.f32 %v5329_v21, %v13060_v4  ;;  %v5373_v44 = vpop.f32.mrf.mxu1  ;;  %v9845_v4 = vld [vmem:[%s14770_s3 + $0xd4] sm:$0xf]  ;;  %v8421_v5 = vld [vmem:[%s14770_s3 + $0xd8] sm:$0xf0] }
 0x5c2   : > { %v8424_v20 = vor.u32 %v9845_v4, %v8421_v5  ;;  %v8477_v4 = vld [vmem:[%s14770_s3 + $0x148] sm:$0xf0] }
 0x5c3   : > { %v5374_v57 = vadd.f32 %v5373_v44, %v5330_v15  ;;  %5650 = vmatmul.bf16.vlgmr.msra.gmra.mxu0 %v14980_v32 }
 0x5c4   : > { %5694 = vmatmul.bf16.vlgmr.msra.gmra.mxu1 %v14966_v24 }
 0x5c5   : > { %5738 = vmatmul.bf16.vlgmr.msra.gmra.mxu2 %v11904_v52  ;;  %5864 = vmatpush.bf16.msrb.mxu1 %v8424_v20 }
 0x5c6   : > { %v5438_v25 = vpop.f32.mrf.mxu3 }
 0x5c7   : > { %v13181_v41 = vadd.f32 %v5438_v25, %v12995_v42  ;;  %v14981_v42 = vld [vmem:[#allocation17_spill] sm:$0xff] }
 0x5c8   : > { %v5417_v29 = vpop.f32.mrf.mxu2  ;;  %v5331_v21 = vpop.f32.mrf.mxu0 }
 0x5c9   : > { %v13183_v26 = vadd.f32 %v5417_v29, %v5374_v57  ;;  %v5332_v15 = vadd.f32 %v5331_v21, %v13086_v0  ;;  %v5375_v44 = vpop.f32.mrf.mxu1  ;;  %v8480_v0 = vor.u32 %v9859_v1, %v8477_v4  ;;  %v9827_v29 = vld [vmem:[%s14770_s3 + $0x44] sm:$0xf]  ;;  %v9235_v4 = vld [vmem:[%s14770_s3 + $0x730] sm:$0xf] }
 0x5cb   : > { %5621 = vmatmul.bf16.gmra.mxu3 %v14981_v42  ;;  %v5376_v59 = vadd.f32 %v5375_v44, %v5332_v15  ;;  %5909 = vmatpush.bf16.msrb.mxu2 %v8480_v0  ;;  %v14982_v44 = vld [vmem:[#allocation34_spill] sm:$0xff] }
 0x5ce   : > { %v5441_v16 = vpop.f32.mrf.mxu3 }
 0x5cf   : > { %v13194_v57 = vadd.f32 %v5441_v16, %v13005_v6  ;;  %v8349_v6 = vld [vmem:[%s14770_s3 + $0x48] sm:$0xf0] }
 0x5d0   : > { %v5419_v5 = vpop.f32.mrf.mxu2  ;;  %v5475_v20 = vpop.f32.mrf.mxu0  ;;  %v8352_v56 = vor.u32 %v9827_v29, %v8349_v6 }
 0x5d1   : > { %v13202_v25 = vadd.f32 %v5419_v5, %v5376_v59  ;;  %v5476_v21 = vadd.f32 %v5475_v20, %v13111_v38  ;;  %v5519_v36 = vpop.f32.mrf.mxu1  ;;  %v8413_v59 = vld [vmem:[%s14770_s3 + $0xc8] sm:$0xf0]  ;;  %v10050_v5 = vld [vmem:[%s14770_s3 + $0x734] sm:$0xf0] }
 0x5d2   : > { %v8416_v16 = vor.u32 %v9843_v43, %v8413_v59  ;;  %5821 = vmatpush.bf16.msrb.mxu0 %v8352_v56  ;;  %v9236_v20 = vor.u32 %v10050_v5, %v9235_v4  ;;  %v9857_v56 = vld [vmem:[%s14770_s3 + $0x134] sm:$0xf]  ;;  %v8469_v43 = vld [vmem:[%s14770_s3 + $0x138] sm:$0xf0] }
 0x5d3   : > { %v5520_v15 = vadd.f32 %v5519_v36, %v5476_v21  ;;  %5655 = vmatmul.bf16.gmra.mxu0 %v14982_v44  ;;  %v8472_v59 = vor.u32 %v9857_v56, %v8469_v43  ;;  %v9825_v4 = vld [vmem:[%s14770_s3 + $0x34] sm:$0xf]  ;;  %v8341_v5 = vld [vmem:[%s14770_s3 + $0x38] sm:$0xf0] }
 0x5d4   : > { %5699 = vmatmul.bf16.gmra.mxu1 %v14970_v61  ;;  %5778 = vmatpush.bf16.msra.mxu3 %v9236_v20  ;;  %v8405_v56 = vld [vmem:[%s14770_s3 + $0xb8] sm:$0xf0] }
 0x5d5   : > { %5743 = vmatmul.bf16.gmra.mxu2 %v11964_v10  ;;  %5865 = vmatpush.bf16.msrb.mxu1 %v8416_v16 }
 0x5d6   : > { %v5443_v38 = vpop.f32.mrf.mxu3  ;;  %5910 = vmatpush.bf16.msrb.mxu2 %v8472_v59 }
 0x5d7   : > { %v13221_v1 = vadd.f32 %v5443_v38, %v13026_v47 }
 0x5d8   : > { %v5563_v0 = vpop.f32.mrf.mxu2  ;;  %v5477_v6 = vpop.f32.mrf.mxu0 }
 0x5d9   : > { %v13229_v29 = vadd.f32 %v5563_v0, %v5520_v15  ;;  %v5478_v21 = vadd.f32 %v5477_v6, %v13135_v55  ;;  %v5521_v36 = vpop.f32.mrf.mxu1  ;;  %v9227_v15 = vld [vmem:[%s14770_s3 + $0x720] sm:$0xf]  ;;  %v10048_v55 = vld [vmem:[%s14770_s3 + $0x724] sm:$0xf0]  ;;  %v8344_v6 = vor.u32 %v9825_v4, %v8341_v5  ;;  %v14983_v5 = vld [vmem:[#allocation38_spill] sm:$0xff] }
 0x5da   : > { %v9228_v0 = vor.u32 %v10048_v55, %v9227_v15  ;;  %v10046_v15 = vld [vmem:[%s14770_s3 + $0x714] sm:$0xf0] }
 0x5db   : > { %5626 = vmatmul.bf16.gmra.mxu3 %v14965_v9  ;;  %v5522_v47 = vadd.f32 %v5521_v36, %v5478_v21  ;;  %5822 = vmatpush.bf16.msrb.mxu0 %v8344_v6 }
 0x5dc   : > { %5779 = vmatpush.bf16.msra.mxu3 %v9228_v0  ;;  %v9211_v0 = vld [vmem:[%s14770_s3 + $0x700] sm:$0xf] }
 0x5de   : > { %v5446_v16 = vpop.f32.mrf.mxu3 }
 0x5df   : > { %v13246_v38 = vadd.f32 %v5446_v16, %v13044_v58  ;;  %v9841_v58 = vld [vmem:[%s14770_s3 + $0xb4] sm:$0xf] }
 0x5e0   : > { %v5565_v20 = vpop.f32.mrf.mxu2  ;;  %v5480_v36 = vpop.f32.mrf.mxu0  ;;  %v8408_v16 = vor.u32 %v9841_v58, %v8405_v56 }
 0x5e1   : > { %v13254_v21 = vadd.f32 %v5565_v20, %v5522_v47  ;;  %v5481_v43 = vadd.f32 %v5480_v36, %v13154_v53  ;;  %v5524_v59 = vpop.f32.mrf.mxu1  ;;  %v9219_v47 = vld [vmem:[%s14770_s3 + $0x710] sm:$0xf]  ;;  %v10044_v20 = vld [vmem:[%s14770_s3 + $0x704] sm:$0xf0] }
 0x5e2   : > { %v9220_v55 = vor.u32 %v10046_v15, %v9219_v47  ;;  %5866 = vmatpush.bf16.msrb.mxu1 %v8408_v16  ;;  %v9212_v36 = vor.u32 %v10044_v20, %v9211_v0  ;;  %v14984_v47 = vld [vmem:[#allocation24_spill] sm:$0xff] }
 0x5e3   : > { %v5525_v4 = vadd.f32 %v5524_v59, %v5481_v43  ;;  %5660 = vmatmul.bf16.gmra.mxu0 %v14983_v5 }
 0x5e4   : > { %5704 = vmatmul.bf16.gmra.mxu1 %v14971_v27  ;;  %5780 = vmatpush.bf16.msra.mxu3 %v9220_v55  ;;  %v9855_v55 = vld [vmem:[%s14770_s3 + $0x124] sm:$0xf] }
 0x5e5   : > { %5748 = vmatmul.bf16.gmra.mxu2 %v12028_v12 }
 0x5e6   : > { %v5448_v53 = vpop.f32.mrf.mxu3 }
 0x5e7   : > { %v13279_v6 = vadd.f32 %v5448_v53, %v13068_v63  ;;  %v8461_v63 = vld [vmem:[%s14770_s3 + $0x128] sm:$0xf0] }
 0x5e8   : > { %v5568_v58 = vpop.f32.mrf.mxu2  ;;  %v5482_v43 = vpop.f32.mrf.mxu0  ;;  %5781 = vmatpush.bf16.msra.mxu3 %v9212_v36  ;;  %v8464_v53 = vor.u32 %v9855_v55, %v8461_v63 }
 0x5e9   : > { %v13281_v56 = vadd.f32 %v5568_v58, %v5525_v4  ;;  %v5483_v59 = vadd.f32 %v5482_v43, %v13181_v41  ;;  %v5526_v16 = vpop.f32.mrf.mxu1  ;;  %v9823_v4 = vld [vmem:[%s14770_s3 + $0x24] sm:$0xf]  ;;  %v8333_v41 = vld [vmem:[%s14770_s3 + $0x28] sm:$0xf0] }
 0x5ea   : > { %v8336_v20 = vor.u32 %v9823_v4, %v8333_v41  ;;  %5911 = vmatpush.bf16.msrb.mxu2 %v8464_v53  ;;  %v9839_v58 = vld [vmem:[%s14770_s3 + $0xa4] sm:$0xf]  ;;  %v8397_v43 = vld [vmem:[%s14770_s3 + $0xa8] sm:$0xf0] }
 0x5eb   : > { %5631 = vmatmul.bf16.gmra.mxu3 %v14984_v47  ;;  %v5527_v15 = vadd.f32 %v5526_v16, %v5483_v59  ;;  %v8400_v16 = vor.u32 %v9839_v58, %v8397_v43  ;;  %v14985_v53 = vld [vmem:[#allocation36_spill] sm:$0xff]  ;;  %v8453_v43 = vld [vmem:[%s14770_s3 + $0x118] sm:$0xf0] }
 0x5ec   : > { %5823 = vmatpush.bf16.msrb.mxu0 %v8336_v20 }
 0x5ed   : > { %5867 = vmatpush.bf16.msrb.mxu1 %v8400_v16 }
 0x5ee   : > { %v5451_v0 = vpop.f32.mrf.mxu3 }
 0x5ef   : > { %v13298_v36 = vadd.f32 %v5451_v0, %v13095_v7 }
 0x5f0   : > { %v5570_v59 = vpop.f32.mrf.mxu2  ;;  %v5485_v63 = vpop.f32.mrf.mxu0 }
 0x5f1   : > { %v13306_v55 = vadd.f32 %v5570_v59, %v5527_v15  ;;  %v5486_v4 = vadd.f32 %v5485_v63, %v13194_v57  ;;  %v5529_v41 = vpop.f32.mrf.mxu1  ;;  %v9853_v57 = vld [vmem:[%s14770_s3 + $0x114] sm:$0xf] }
 0x5f2   : > { %v8456_v63 = vor.u32 %v9853_v57, %v8453_v43 }
 0x5f3   : > { %v5530_v7 = vadd.f32 %v5529_v41, %v5486_v4  ;;  %5665 = vmatmul.bf16.gmra.mxu0 %v14985_v53  ;;  %v14986_v4 = vld [vmem:[#allocation27_spill] sm:$0xff]  ;;  %v9821_v41 = vld [vmem:[%s14770_s3 + $0x14] sm:$0xf] }
 0x5f4   : > { %5709 = vmatmul.bf16.gmra.mxu1 %v12067_v46  ;;  %5912 = vmatpush.bf16.msrb.mxu2 %v8456_v63 }
 0x5f5   : > { %5753 = vmatmul.bf16.gmra.mxu2 %v14972_v48 }
 0x5f6   : > { %v5453_v0 = vpop.f32.mrf.mxu3 }
 0x5f7   : > { %v13313_v40 = vadd.f32 %v5453_v0, %v13113_v11  ;;  %v9837_v0 = vld [vmem:[%s14770_s3 + $0x94] sm:$0xf] }
 0x5f8   : > { %v5573_v20 = vpop.f32.mrf.mxu2  ;;  %v5487_v15 = vpop.f32.mrf.mxu0 }
 0x5f9   : > { %v13315_v58 = vadd.f32 %v5573_v20, %v5530_v7  ;;  %v5488_v59 = vadd.f32 %v5487_v15, %v13221_v1  ;;  %v5531_v16 = vpop.f32.mrf.mxu1  ;;  %v8325_v7 = vld [vmem:[%s14770_s3 + $0x18] sm:$0xf0] }
 0x5fa   : > { %v8328_v20 = vor.u32 %v9821_v41, %v8325_v7  ;;  %v8389_v1 = vld [vmem:[%s14770_s3 + $0x98] sm:$0xf0]  ;;  %v14987_v41 = vld [vmem:[#allocation40_spill] sm:$0xff] }
 0x5fb   : > { %5636 = vmatmul.bf16.gmra.mxu3 %v14986_v4  ;;  %v5532_v11 = vadd.f32 %v5531_v16, %v5488_v59  ;;  %v8392_v57 = vor.u32 %v9837_v0, %v8389_v1  ;;  %v9819_v1 = vld [vmem:[%s14770_s3 + $0x4] sm:$0xf] }
 0x5fc   : > { %5824 = vmatpush.bf16.msrb.mxu0 %v8328_v20 }
 0x5fd   : > { %5868 = vmatpush.bf16.msrb.mxu1 %v8392_v57 }
 0x5fe   : > { %v5456_v15 = vpop.f32.mrf.mxu3 }
 0x5ff   : > { %v13338_v43 = vadd.f32 %v5456_v15, %v13144_v50 }
 0x600   : > { %v5575_v59 = vpop.f32.mrf.mxu2  ;;  %v5490_v63 = vpop.f32.mrf.mxu0 }
 0x601   : > { %v13340_v16 = vadd.f32 %v5575_v59, %v5532_v11  ;;  %v5491_v4 = vadd.f32 %v5490_v63, %v13246_v38  ;;  %v5534_v47 = vpop.f32.mrf.mxu1  ;;  %v9851_v11 = vld [vmem:[%s14770_s3 + $0x104] sm:$0xf]  ;;  %v8445_v38 = vld [vmem:[%s14770_s3 + $0x108] sm:$0xf0] }
 0x603   : > { %v5535_v9 = vadd.f32 %v5534_v47, %v5491_v4  ;;  %5670 = vmatmul.bf16.gmra.mxu0 %v14987_v41  ;;  %v8448_v47 = vor.u32 %v9851_v11, %v8445_v38 }
 0x604   : > { %5714 = vmatmul.bf16.gmra.mxu1 %v12137_v35 }
 0x605   : > { %5758 = vmatmul.bf16.gmra.mxu2 %v12139_v2 }
 0x606   : > { %v5458_v7 = vpop.f32.mrf.mxu3  ;;  %5913 = vmatpush.bf16.msrb.mxu2 %v8448_v47  ;;  %v8565_v47 = vld [vmem:[%s14770_s3 + $0x1f8] sm:$0xf0] }
 0x607   : > { %v13347_v50 = vadd.f32 %v5458_v7, %v13156_v19  ;;  %v8317_v19 = vld [vmem:[%s14770_s3 + $0x8] sm:$0xf0] }
 0x608   : > { %v5578_v0 = vpop.f32.mrf.mxu2  ;;  %v5492_v20 = vpop.f32.mrf.mxu0  ;;  %v8320_v59 = vor.u32 %v9819_v1, %v8317_v19  ;;  %v8381_v7 = vld [vmem:[%s14770_s3 + $0x88] sm:$0xf0] }
 0x609   : > { %v13355_v4 = vadd.f32 %v5578_v0, %v5535_v9  ;;  %v5493_v15 = vadd.f32 %v5492_v20, %v13279_v6  ;;  %v5536_v57 = vpop.f32.mrf.mxu1  ;;  %v9835_v9 = vld [vmem:[%s14770_s3 + $0x84] sm:$0xf]  ;;  %v9881_v6 = vld [vmem:[%s14770_s3 + $0x1f4] sm:$0xf] }
 0x60a   : > { %5825 = vmatpush.bf16.msrb.mxu0 %v8320_v59  ;;  %v8384_v11 = vor.u32 %v9835_v9, %v8381_v7  ;;  %v8568_v1 = vor.u32 %v9881_v6, %v8565_v47  ;;  %v14988_v9 = vld [vmem:[#allocation39_spill] sm:$0xff]  ;;  %v9929_v7 = vld [vmem:[%s14770_s3 + $0x374] sm:$0xf]  ;;  %v8629_v47 = vld [vmem:[%s14770_s3 + $0x278] sm:$0xf0] }
 0x60b   : > { %5782 = vmatmul.bf16.vlgmr.msra.gmra.mxu3 %v12430_v39  ;;  %v5537_v63 = vadd.f32 %v5536_v57, %v5493_v15  ;;  %v9897_v6 = vld [vmem:[%s14770_s3 + $0x274] sm:$0xf] }
 0x60c   : > { %5869 = vmatpush.bf16.msrb.mxu1 %v8384_v11  ;;  %5950 = vmatpush.bf16.msrb.mxu3 %v8568_v1  ;;  %v8632_v1 = vor.u32 %v9897_v6, %v8629_v47  ;;  %v8557_v6 = vld [vmem:[%s14770_s3 + $0x1e8] sm:$0xf0] }
 0x60e   : > { %v5461_v38 = vpop.f32.mrf.mxu3  ;;  %5994 = vmatpush.bf16.msra.mxu0 %v8632_v1 }
 0x60f   : > { %v13372_v0 = vadd.f32 %v5461_v38, %v13183_v26 }
 0x610   : > { %v5580_v20 = vpop.f32.mrf.mxu2  ;;  %v5495_v15 = vpop.f32.mrf.mxu0 }
 0x611   : > { %v13380_v19 = vadd.f32 %v5580_v20, %v5537_v63  ;;  %v5496_v57 = vadd.f32 %v5495_v15, %v13298_v36  ;;  %v5539_v59 = vpop.f32.mrf.mxu1  ;;  %v8757_v63 = vld [vmem:[%s14770_s3 + $0x378] sm:$0xf0] }
 0x612   : > { %v8760_v38 = vor.u32 %v9929_v7, %v8757_v63 }
 0x613   : > { %v5540_v26 = vadd.f32 %v5539_v59, %v5496_v57  ;;  %5675 = vmatmul.bf16.gmra.mxu0 %v14988_v9  ;;  %v9913_v59 = vld [vmem:[%s14770_s3 + $0x2f4] sm:$0xf] }
 0x614   : > { %5719 = vmatmul.bf16.gmra.mxu1 %v12225_v62  ;;  %6082 = vmatpush.bf16.msra.mxu2 %v8760_v38 }
 0x615   : > { %5763 = vmatmul.bf16.gmra.mxu2 %v14976_v51 }
 0x616   : > { %v5463_v11 = vpop.f32.mrf.mxu3 }
 0x617   : > { %v13393_v36 = vadd.f32 %v5463_v11, %v13202_v25  ;;  %v8693_v25 = vld [vmem:[%s14770_s3 + $0x2f8] sm:$0xf0] }
 0x618   : > { %v5583_v20 = vpop.f32.mrf.mxu2  ;;  %v5497_v57 = vpop.f32.mrf.mxu0  ;;  %v8696_v11 = vor.u32 %v9913_v59, %v8693_v25 }
 0x619   : > { %v13401_v15 = vadd.f32 %v5583_v20, %v5540_v26  ;;  %v5498_v7 = vadd.f32 %v5497_v57, %v13313_v40  ;;  %v5541_v63 = vpop.f32.mrf.mxu1  ;;  %v9879_v26 = vld [vmem:[%s14770_s3 + $0x1e4] sm:$0xf] }
 0x61a   : > { %6038 = vmatpush.bf16.msra.mxu1 %v8696_v11  ;;  %v8560_v47 = vor.u32 %v9879_v26, %v8557_v6  ;;  %v14989_v11 = vld [vmem:[#allocation31_spill] sm:$0xff]  ;;  %v14990_v26 = vld [vmem:[#allocation29_spill] sm:$0xff]  ;;  %v8621_v6 = vld [vmem:[%s14770_s3 + $0x268] sm:$0xf0] }
 0x61b   : > { %5787 = vmatmul.bf16.gmra.mxu3 %v12477_v34  ;;  %v5542_v38 = vadd.f32 %v5541_v63, %v5498_v7  ;;  %v9927_v63 = vld [vmem:[%s14770_s3 + $0x364] sm:$0xf] }
 0x61c   : > { %5951 = vmatpush.bf16.msrb.mxu3 %v8560_v47 }
 0x61e   : > { %v5607_v20 = vpop.f32.mrf.mxu3 }
 0x61f   : > { %v13418_v51 = vadd.f32 %v5607_v20, %v13229_v29  ;;  %v8749_v29 = vld [vmem:[%s14770_s3 + $0x368] sm:$0xf0] }
 0x620   : > { %v5585_v40 = vpop.f32.mrf.mxu2  ;;  %v5500_v57 = vpop.f32.mrf.mxu0 }
 0x621   : > { %v13420_v1 = vadd.f32 %v5585_v40, %v5542_v38  ;;  %v5501_v59 = vadd.f32 %v5500_v57, %v13338_v43  ;;  %v5544_v25 = vpop.f32.mrf.mxu1  ;;  %v8752_v38 = vor.u32 %v9927_v63, %v8749_v29  ;;  %v9895_v43 = vld [vmem:[%s14770_s3 + $0x264] sm:$0xf] }
 0x622   : > { %v8624_v20 = vor.u32 %v9895_v43, %v8621_v6  ;;  %v9911_v57 = vld [vmem:[%s14770_s3 + $0x2e4] sm:$0xf] }
 0x623   : > { %v5545_v7 = vadd.f32 %v5544_v25, %v5501_v59  ;;  %5680 = vmatmul.bf16.gmra.mxu0 %v12837_v31  ;;  %6083 = vmatpush.bf16.msra.mxu2 %v8752_v38  ;;  %v8685_v59 = vld [vmem:[%s14770_s3 + $0x2e8] sm:$0xf0]  ;;  %v9877_v38 = vld [vmem:[%s14770_s3 + $0x1d4] sm:$0xf] }
 0x624   : > { %5724 = vmatmul.bf16.gmra.mxu1 %v14989_v11  ;;  %5995 = vmatpush.bf16.msra.mxu0 %v8624_v20  ;;  %v8688_v63 = vor.u32 %v9911_v57, %v8685_v59 }
 0x625   : > { %5768 = vmatmul.bf16.gmra.mxu2 %v14990_v26 }
 0x626   : > { %v5609_v47 = vpop.f32.mrf.mxu3  ;;  %6039 = vmatpush.bf16.msra.mxu1 %v8688_v63  ;;  %v8741_v63 = vld [vmem:[%s14770_s3 + $0x358] sm:$0xf0] }
 0x627   : > { %v13439_v40 = vadd.f32 %v5609_v47, %v13254_v21  ;;  %v8549_v47 = vld [vmem:[%s14770_s3 + $0x1d8] sm:$0xf0] }
 0x628   : > { %v5588_v25 = vpop.f32.mrf.mxu2  ;;  %v5502_v26 = vpop.f32.mrf.mxu0  ;;  %v8552_v20 = vor.u32 %v9877_v38, %v8549_v47 }
 0x629   : > { %v13447_v29 = vadd.f32 %v5588_v25, %v5545_v7  ;;  %v5503_v43 = vadd.f32 %v5502_v26, %v13347_v50  ;;  %v5546_v6 = vpop.f32.mrf.mxu1  ;;  %v9925_v25 = vld [vmem:[%s14770_s3 + $0x354] sm:$0xf] }
 0x62a   : > { %5952 = vmatpush.bf16.msrb.mxu3 %v8552_v20  ;;  %v8744_v38 = vor.u32 %v9925_v25, %v8741_v63  ;;  %v8613_v20 = vld [vmem:[%s14770_s3 + $0x258] sm:$0xf0] }
 0x62b   : > { %5792 = vmatmul.bf16.gmra.mxu3 %v12535_v33  ;;  %v5547_v21 = vadd.f32 %v5546_v6, %v5503_v43 }
 0x62c   : > { %6084 = vmatpush.bf16.msra.mxu2 %v8744_v38 }
 0x62e   : > { %v5612_v57 = vpop.f32.mrf.mxu3 }
 0x62f   : > { %v13458_v7 = vadd.f32 %v5612_v57, %v13281_v56  ;;  %v14991_v56 = vld [vmem:[#allocation41_spill] sm:$0xff]  ;;  %v14992_v57 = vld [vmem:[#allocation42_spill] sm:$0xff] }
 0x630   : > { %v5590_v50 = vpop.f32.mrf.mxu2  ;;  %v5505_v59 = vpop.f32.mrf.mxu0 }
 0x631   : > { %v13460_v26 = vadd.f32 %v5590_v50, %v5547_v21  ;;  %v5506_v43 = vadd.f32 %v5505_v59, %v13372_v0  ;;  %v5549_v6 = vpop.f32.mrf.mxu1  ;;  %v9893_v21 = vld [vmem:[%s14770_s3 + $0x254] sm:$0xf]  ;;  %v14993_v50 = vld [vmem:[#allocation30_spill] sm:$0xff] }
 0x632   : > { %v8616_v11 = vor.u32 %v9893_v21, %v8613_v20  ;;  %v9909_v0 = vld [vmem:[%s14770_s3 + $0x2d4] sm:$0xf]  ;;  %v8677_v59 = vld [vmem:[%s14770_s3 + $0x2d8] sm:$0xf0]  ;;  %v9875_v21 = vld [vmem:[%s14770_s3 + $0x1c4] sm:$0xf] }
 0x633   : > { %v5550_v47 = vadd.f32 %v5549_v6, %v5506_v43  ;;  %5826 = vmatmul.bf16.vlgmr.msrb.gmra.mxu0 %v14991_v56  ;;  %v8680_v63 = vor.u32 %v9909_v0, %v8677_v59  ;;  %v8541_v20 = vld [vmem:[%s14770_s3 + $0x1c8] sm:$0xf0]  ;;  %v9923_v59 = vld [vmem:[%s14770_s3 + $0x344] sm:$0xf] }
 0x634   : > { %5870 = vmatmul.bf16.vlgmr.msrb.gmra.mxu1 %v14992_v57  ;;  %5996 = vmatpush.bf16.msra.mxu0 %v8616_v11  ;;  %v8544_v0 = vor.u32 %v9875_v21, %v8541_v20  ;;  %v9891_v21 = vld [vmem:[%s14770_s3 + $0x244] sm:$0xf] }
 0x635   : > { %5914 = vmatmul.bf16.vlgmr.msrb.gmra.mxu2 %v14993_v50  ;;  %6040 = vmatpush.bf16.msra.mxu1 %v8680_v63 }
 0x636   : > { %v5614_v25 = vpop.f32.mrf.mxu3  ;;  %5953 = vmatpush.bf16.msrb.mxu3 %v8544_v0 }
 0x637   : > { %v13485_v43 = vadd.f32 %v5614_v25, %v13306_v55  ;;  %v8733_v25 = vld [vmem:[%s14770_s3 + $0x348] sm:$0xf0] }
 0x638   : > { %v5593_v6 = vpop.f32.mrf.mxu2  ;;  %v5507_v56 = vpop.f32.mrf.mxu0 }
 0x639   : > { %v13487_v38 = vadd.f32 %v5593_v6, %v5550_v47  ;;  %v5508_v57 = vadd.f32 %v5507_v56, %v13393_v36  ;;  %v5551_v50 = vpop.f32.mrf.mxu1  ;;  %v8736_v36 = vor.u32 %v9923_v59, %v8733_v25  ;;  %v8669_v59 = vld [vmem:[%s14770_s3 + $0x2c8] sm:$0xf0] }
 0x63b   : > { %5797 = vmatmul.bf16.gmra.mxu3 %v12616_v45  ;;  %v5552_v55 = vadd.f32 %v5551_v50, %v5508_v57  ;;  %6085 = vmatpush.bf16.msra.mxu2 %v8736_v36  ;;  %v9873_v36 = vld [vmem:[%s14770_s3 + $0x1b4] sm:$0xf] }
 0x63e   : > { %v5617_v11 = vpop.f32.mrf.mxu3 }
 0x63f   : > { %v13498_v47 = vadd.f32 %v5617_v11, %v13315_v58  ;;  %v8605_v58 = vld [vmem:[%s14770_s3 + $0x248] sm:$0xf0]  ;;  %v14994_v11 = vld [vmem:[#allocation5_spill] sm:$0xff] }
 0x640   : > { %v5595_v63 = vpop.f32.mrf.mxu2  ;;  %v5651_v56 = vpop.f32.mrf.mxu0  ;;  %v8608_v50 = vor.u32 %v9891_v21, %v8605_v58 }
 0x641   : > { %v13506_v6 = vadd.f32 %v5595_v63, %v5552_v55  ;;  %v5652_v20 = vadd.f32 %v5651_v56, %v13418_v51  ;;  %v5695_v57 = vpop.f32.mrf.mxu1  ;;  %v9907_v55 = vld [vmem:[%s14770_s3 + $0x2c4] sm:$0xf]  ;;  %v8533_v56 = vld [vmem:[%s14770_s3 + $0x1b8] sm:$0xf0] }
 0x642   : > { %v8672_v25 = vor.u32 %v9907_v55, %v8669_v59  ;;  %5997 = vmatpush.bf16.msra.mxu0 %v8608_v50  ;;  %v8536_v58 = vor.u32 %v9873_v36, %v8533_v56  ;;  %v9921_v59 = vld [vmem:[%s14770_s3 + $0x334] sm:$0xf] }
 0x643   : > { %v5696_v0 = vadd.f32 %v5695_v57, %v5652_v20  ;;  %5831 = vmatmul.bf16.gmra.mxu0 %v14994_v11 }
 0x644   : > { %5875 = vmatmul.bf16.gmra.mxu1 %v11851_v60  ;;  %5954 = vmatpush.bf16.msrb.mxu3 %v8536_v58  ;;  %v8597_v58 = vld [vmem:[%s14770_s3 + $0x238] sm:$0xf0] }
 0x645   : > { %5919 = vmatmul.bf16.gmra.mxu2 %v12378_v30  ;;  %6041 = vmatpush.bf16.msra.mxu1 %v8672_v25  ;;  %v8725_v25 = vld [vmem:[%s14770_s3 + $0x338] sm:$0xf0] }
 0x646   : > { %v5619_v51 = vpop.f32.mrf.mxu3 }
 0x647   : > { %v13525_v63 = vadd.f32 %v5619_v51, %v13340_v16  ;;  %v8728_v51 = vor.u32 %v9921_v59, %v8725_v25 }
 0x648   : > { %v5739_v21 = vpop.f32.mrf.mxu2  ;;  %v5653_v57 = vpop.f32.mrf.mxu0 }
 0x649   : > { %v13533_v20 = vadd.f32 %v5739_v21, %v5696_v0  ;;  %v5654_v55 = vadd.f32 %v5653_v57, %v13439_v40  ;;  %v5697_v50 = vpop.f32.mrf.mxu1  ;;  %v9871_v0 = vld [vmem:[%s14770_s3 + $0x1a4] sm:$0xf]  ;;  %v8525_v40 = vld [vmem:[%s14770_s3 + $0x1a8] sm:$0xf0]  ;;  %6086 = vmatpush.bf16.msra.mxu2 %v8728_v51  ;;  %v9889_v21 = vld [vmem:[%s14770_s3 + $0x234] sm:$0xf] }
 0x64a   : > { %v8528_v57 = vor.u32 %v9871_v0, %v8525_v40  ;;  %v8661_v51 = vld [vmem:[%s14770_s3 + $0x2b8] sm:$0xf0] }
 0x64b   : > { %5802 = vmatmul.bf16.gmra.mxu3 %v12715_v49  ;;  %v5698_v16 = vadd.f32 %v5697_v50, %v5654_v55  ;;  %v8600_v50 = vor.u32 %v9889_v21, %v8597_v58  ;;  %v8517_v0 = vld [vmem:[%s14770_s3 + $0x198] sm:$0xf0]  ;;  %v9867_v58 = vld [vmem:[%s14770_s3 + $0x184] sm:$0xf] }
 0x64c   : > { %5955 = vmatpush.bf16.msrb.mxu3 %v8528_v57  ;;  %v8509_v57 = vld [vmem:[%s14770_s3 + $0x188] sm:$0xf0] }
 0x64d   : > { %5998 = vmatpush.bf16.msra.mxu0 %v8600_v50 }
 0x64e   : > { %v5622_v36 = vpop.f32.mrf.mxu3 }
 0x64f   : > { %v13550_v56 = vadd.f32 %v5622_v36, %v13355_v4  ;;  %v9905_v4 = vld [vmem:[%s14770_s3 + $0x2b4] sm:$0xf] }
 0x650   : > { %v5741_v55 = vpop.f32.mrf.mxu2  ;;  %v5656_v25 = vpop.f32.mrf.mxu0  ;;  %v8664_v30 = vor.u32 %v9905_v4, %v8661_v51 }
 0x651   : > { %v13558_v59 = vadd.f32 %v5741_v55, %v5698_v16  ;;  %v5657_v36 = vadd.f32 %v5656_v25, %v13458_v7  ;;  %v5700_v31 = vpop.f32.mrf.mxu1  ;;  %v9869_v16 = vld [vmem:[%s14770_s3 + $0x194] sm:$0xf] }
 0x652   : > { %v8520_v40 = vor.u32 %v9869_v16, %v8517_v0  ;;  %6042 = vmatpush.bf16.msra.mxu1 %v8664_v30  ;;  %v9919_v16 = vld [vmem:[%s14770_s3 + $0x324] sm:$0xf] }
 0x653   : > { %v5701_v21 = vadd.f32 %v5700_v31, %v5657_v36  ;;  %5836 = vmatmul.bf16.gmra.mxu0 %v14966_v24  ;;  %v8512_v31 = vor.u32 %v9867_v58, %v8509_v57  ;;  %v9887_v0 = vld [vmem:[%s14770_s3 + $0x224] sm:$0xf] }
 0x654   : > { %5880 = vmatmul.bf16.gmra.mxu1 %v11904_v52  ;;  %5956 = vmatpush.bf16.msrb.mxu3 %v8520_v40  ;;  %v9903_v57 = vld [vmem:[%s14770_s3 + $0x2a4] sm:$0xf] }
 0x655   : > { %5924 = vmatmul.bf16.gmra.mxu2 %v12430_v39 }
 0x656   : > { %v5624_v7 = vpop.f32.mrf.mxu3 }
 0x657   : > { %v13583_v55 = vadd.f32 %v5624_v7, %v13380_v19  ;;  %v8717_v19 = vld [vmem:[%s14770_s3 + $0x328] sm:$0xf0] }
 0x658   : > { %v5744_v50 = vpop.f32.mrf.mxu2  ;;  %v5658_v25 = vpop.f32.mrf.mxu0  ;;  %5957 = vmatpush.bf16.msrb.mxu3 %v8512_v31  ;;  %v8720_v40 = vor.u32 %v9919_v16, %v8717_v19  ;;  %v8653_v31 = vld [vmem:[%s14770_s3 + $0x2a8] sm:$0xf0] }
 0x659   : > { %v13585_v30 = vadd.f32 %v5744_v50, %v5701_v21  ;;  %v5659_v4 = vadd.f32 %v5658_v25, %v13485_v43  ;;  %v5702_v51 = vpop.f32.mrf.mxu1  ;;  %v8589_v43 = vld [vmem:[%s14770_s3 + $0x228] sm:$0xf0]  ;;  %v8656_v25 = vor.u32 %v9903_v57, %v8653_v31 }
 0x65a   : > { %v8592_v7 = vor.u32 %v9887_v0, %v8589_v43  ;;  %6087 = vmatpush.bf16.msra.mxu2 %v8720_v40 }
 0x65b   : > { %5807 = vmatmul.bf16.gmra.mxu3 %v12794_v22  ;;  %v5703_v36 = vadd.f32 %v5702_v51, %v5659_v4  ;;  %6043 = vmatpush.bf16.msra.mxu1 %v8656_v25  ;;  %v9885_v25 = vld [vmem:[%s14770_s3 + $0x214] sm:$0xf] }
 0x65c   : > { %5999 = vmatpush.bf16.msra.mxu0 %v8592_v7  ;;  %v8709_v7 = vld [vmem:[%s14770_s3 + $0x318] sm:$0xf0] }
 0x65e   : > { %v5627_v21 = vpop.f32.mrf.mxu3 }
 0x65f   : > { %v13602_v58 = vadd.f32 %v5627_v21, %v13401_v15 }
 0x660   : > { %v5746_v50 = vpop.f32.mrf.mxu2  ;;  %v5661_v51 = vpop.f32.mrf.mxu0 }
 0x661   : > { %v13610_v4 = vadd.f32 %v5746_v50, %v5703_v36  ;;  %v5662_v16 = vadd.f32 %v5661_v51, %v13498_v47  ;;  %v5705_v19 = vpop.f32.mrf.mxu1  ;;  %v9917_v47 = vld [vmem:[%s14770_s3 + $0x314] sm:$0xf]  ;;  %v8581_v51 = vld [vmem:[%s14770_s3 + $0x218] sm:$0xf0] }
 0x662   : > { %v8712_v50 = vor.u32 %v9917_v47, %v8709_v7 }
 0x663   : > { %v5706_v15 = vadd.f32 %v5705_v19, %v5662_v16  ;;  %5841 = vmatmul.bf16.gmra.mxu0 %v14970_v61  ;;  %v9901_v16 = vld [vmem:[%s14770_s3 + $0x294] sm:$0xf]  ;;  %v8584_v19 = vor.u32 %v9885_v25, %v8581_v51 }
 0x664   : > { %5885 = vmatmul.bf16.gmra.mxu1 %v11964_v10  ;;  %6088 = vmatpush.bf16.msra.mxu2 %v8712_v50 }
 0x665   : > { %5929 = vmatmul.bf16.gmra.mxu2 %v12477_v34  ;;  %6000 = vmatpush.bf16.msra.mxu0 %v8584_v19  ;;  %v8701_v19 = vld [vmem:[%s14770_s3 + $0x308] sm:$0xf0] }
 0x666   : > { %v5629_v0 = vpop.f32.mrf.mxu3 }
 0x667   : > { %v13617_v40 = vadd.f32 %v5629_v0, %v13420_v1 }
 0x668   : > { %v5749_v43 = vpop.f32.mrf.mxu2  ;;  %v5663_v36 = vpop.f32.mrf.mxu0 }
 0x669   : > { %v13619_v21 = vadd.f32 %v5749_v43, %v5706_v15  ;;  %v5664_v57 = vadd.f32 %v5663_v36, %v13525_v63  ;;  %v5707_v31 = vpop.f32.mrf.mxu1  ;;  %v8645_v63 = vld [vmem:[%s14770_s3 + $0x298] sm:$0xf0] }
 0x66a   : > { %v8648_v0 = vor.u32 %v9901_v16, %v8645_v63  ;;  %v9883_v63 = vld [vmem:[%s14770_s3 + $0x204] sm:$0xf] }
 0x66b   : > { %5812 = vmatmul.bf16.gmra.mxu3 %v12879_v18  ;;  %v5708_v1 = vadd.f32 %v5707_v31, %v5664_v57 }
 0x66c   : > { %6044 = vmatpush.bf16.msra.mxu1 %v8648_v0 }
 0x66e   : > { %v5632_v15 = vpop.f32.mrf.mxu3 }
 0x66f   : > { %v13642_v43 = vadd.f32 %v5632_v15, %v13447_v29 }
 0x670   : > { %v5751_v36 = vpop.f32.mrf.mxu2  ;;  %v5666_v7 = vpop.f32.mrf.mxu0 }
 0x671   : > { %v13644_v47 = vadd.f32 %v5751_v36, %v5708_v1  ;;  %v5667_v57 = vadd.f32 %v5666_v7, %v13550_v56  ;;  %v5710_v31 = vpop.f32.mrf.mxu1  ;;  %v9915_v56 = vld [vmem:[%s14770_s3 + $0x304] sm:$0xf]  ;;  %v8573_v36 = vld [vmem:[%s14770_s3 + $0x208] sm:$0xf0] }
 0x672   : > { %v8704_v0 = vor.u32 %v9915_v56, %v8701_v19  ;;  %v14995_v7 = vld [vmem:[#allocation43_spill] sm:$0xff] }
 0x673   : > { %v5711_v50 = vadd.f32 %v5710_v31, %v5667_v57  ;;  %5846 = vmatmul.bf16.gmra.mxu0 %v14971_v27  ;;  %v8576_v57 = vor.u32 %v9883_v63, %v8573_v36 }
 0x674   : > { %5890 = vmatmul.bf16.gmra.mxu1 %v12028_v12  ;;  %6089 = vmatpush.bf16.msra.mxu2 %v8704_v0 }
 0x675   : > { %5934 = vmatmul.bf16.gmra.mxu2 %v12535_v33  ;;  %6001 = vmatpush.bf16.msra.mxu0 %v8576_v57 }
 0x676   : > { %v5634_v25 = vpop.f32.mrf.mxu3 }
 0x677   : > { %v13651_v29 = vadd.f32 %v5634_v25, %v13460_v26  ;;  %v8637_v25 = vld [vmem:[%s14770_s3 + $0x288] sm:$0xf0] }
 0x678   : > { %v5754_v51 = vpop.f32.mrf.mxu2  ;;  %v5668_v1 = vpop.f32.mrf.mxu0 }
 0x679   : > { %v13653_v16 = vadd.f32 %v5754_v51, %v5711_v50  ;;  %v5669_v15 = vadd.f32 %v5668_v1, %v13583_v55  ;;  %v5712_v26 = vpop.f32.mrf.mxu1  ;;  %v9899_v50 = vld [vmem:[%s14770_s3 + $0x284] sm:$0xf] }
 0x67a   : > { %v8640_v55 = vor.u32 %v9899_v50, %v8637_v25 }
 0x67b   : > { %5958 = vmatmul.bf16.vlgmr.msrb.gmra.mxu3 %v14995_v7  ;;  %v5713_v31 = vadd.f32 %v5712_v26, %v5669_v15  ;;  %v9945_v15 = vld [vmem:[%s14770_s3 + $0x3f4] sm:$0xf]  ;;  %v8821_v26 = vld [vmem:[%s14770_s3 + $0x3f8] sm:$0xf0] }
 0x67c   : > { %6045 = vmatpush.bf16.msra.mxu1 %v8640_v55  ;;  %v8824_v7 = vor.u32 %v9945_v15, %v8821_v26  ;;  %v8885_v15 = vld [vmem:[%s14770_s3 + $0x478] sm:$0xf0]  ;;  %v9977_v26 = vld [vmem:[%s14770_s3 + $0x4f4] sm:$0xf] }
 0x67e   : > { %v5637_v51 = vpop.f32.mrf.mxu3  ;;  %6126 = vmatpush.bf16.msra.mxu3 %v8824_v7  ;;  %v8949_v7 = vld [vmem:[%s14770_s3 + $0x4f8] sm:$0xf0] }
 0x67f   : > { %v13676_v1 = vadd.f32 %v5637_v51, %v13487_v38  ;;  %v9993_v38 = vld [vmem:[%s14770_s3 + $0x574] sm:$0xf] }
 0x680   : > { %v5756_v56 = vpop.f32.mrf.mxu2  ;;  %v5671_v63 = vpop.f32.mrf.mxu0 }
 0x681   : > { %v13678_v19 = vadd.f32 %v5756_v56, %v5713_v31  ;;  %v5672_v0 = vadd.f32 %v5671_v63, %v13602_v58  ;;  %v5715_v36 = vpop.f32.mrf.mxu1  ;;  %v9013_v31 = vld [vmem:[%s14770_s3 + $0x578] sm:$0xf0]  ;;  %v9961_v63 = vld [vmem:[%s14770_s3 + $0x474] sm:$0xf] }
 0x682   : > { %v9016_v58 = vor.u32 %v9993_v38, %v9013_v31  ;;  %v9943_v31 = vld [vmem:[%s14770_s3 + $0x3e4] sm:$0xf] }
 0x683   : > { %v5716_v57 = vadd.f32 %v5715_v36, %v5672_v0  ;;  %5851 = vmatmul.bf16.gmra.mxu0 %v12067_v46  ;;  %v8888_v36 = vor.u32 %v9961_v63, %v8885_v15 }
 0x684   : > { %5895 = vmatmul.bf16.gmra.mxu1 %v14972_v48  ;;  %6258 = vmatpush.bf16.msrb.mxu2 %v9016_v58 }
 0x685   : > { %5939 = vmatmul.bf16.gmra.mxu2 %v12616_v45  ;;  %6170 = vmatpush.bf16.msrb.mxu0 %v8888_v36  ;;  %v9991_v36 = vld [vmem:[%s14770_s3 + $0x564] sm:$0xf] }
 0x686   : > { %v5639_v50 = vpop.f32.mrf.mxu3 }
 0x687   : > { %v13697_v25 = vadd.f32 %v5639_v50, %v13506_v6  ;;  %v8813_v50 = vld [vmem:[%s14770_s3 + $0x3e8] sm:$0xf0] }
 0x688   : > { %v5759_v55 = vpop.f32.mrf.mxu2  ;;  %v5673_v56 = vpop.f32.mrf.mxu0 }
 0x689   : > { %v13699_v51 = vadd.f32 %v5759_v55, %v5716_v57  ;;  %v5674_v6 = vadd.f32 %v5673_v56, %v13617_v40  ;;  %v5717_v0 = vpop.f32.mrf.mxu1  ;;  %v8952_v57 = vor.u32 %v9977_v26, %v8949_v7  ;;  %v8816_v40 = vor.u32 %v9943_v31, %v8813_v50 }
 0x68b   : > { %5963 = vmatmul.bf16.gmra.mxu3 %v14949_v23  ;;  %v5718_v38 = vadd.f32 %v5717_v0, %v5674_v6  ;;  %6214 = vmatpush.bf16.msrb.mxu1 %v8952_v57  ;;  %v8877_v57 = vld [vmem:[%s14770_s3 + $0x468] sm:$0xf0] }
 0x68c   : > { %6127 = vmatpush.bf16.msra.mxu3 %v8816_v40 }
 0x68e   : > { %v5783_v58 = vpop.f32.mrf.mxu3 }
 0x68f   : > { %v13722_v55 = vadd.f32 %v5783_v58, %v13533_v20  ;;  %v9005_v20 = vld [vmem:[%s14770_s3 + $0x568] sm:$0xf0] }
 0x690   : > { %v5761_v56 = vpop.f32.mrf.mxu2  ;;  %v5676_v15 = vpop.f32.mrf.mxu0  ;;  %v9008_v7 = vor.u32 %v9991_v36, %v9005_v20 }
 0x691   : > { %v13724_v63 = vadd.f32 %v5761_v56, %v5718_v38  ;;  %v5677_v26 = vadd.f32 %v5676_v15, %v13642_v43  ;;  %v5720_v6 = vpop.f32.mrf.mxu1  ;;  %v9959_v43 = vld [vmem:[%s14770_s3 + $0x464] sm:$0xf] }
 0x692   : > { %v8880_v31 = vor.u32 %v9959_v43, %v8877_v57  ;;  %6259 = vmatpush.bf16.msrb.mxu2 %v9008_v7  ;;  %v9975_v15 = vld [vmem:[%s14770_s3 + $0x4e4] sm:$0xf]  ;;  %v8805_v7 = vld [vmem:[%s14770_s3 + $0x3d8] sm:$0xf0] }
 0x693   : > { %v5721_v0 = vadd.f32 %v5720_v6, %v5677_v26  ;;  %5856 = vmatmul.bf16.gmra.mxu0 %v12137_v35  ;;  %v8941_v26 = vld [vmem:[%s14770_s3 + $0x4e8] sm:$0xf0] }
 0x694   : > { %5900 = vmatmul.bf16.gmra.mxu1 %v12139_v2  ;;  %6171 = vmatpush.bf16.msrb.mxu0 %v8880_v31  ;;  %v8944_v20 = vor.u32 %v9975_v15, %v8941_v26  ;;  %v8997_v15 = vld [vmem:[%s14770_s3 + $0x558] sm:$0xf0] }
 0x695   : > { %5944 = vmatmul.bf16.gmra.mxu2 %v12715_v49 }
 0x696   : > { %v5785_v38 = vpop.f32.mrf.mxu3  ;;  %6215 = vmatpush.bf16.msrb.mxu1 %v8944_v20 }
 0x697   : > { %v13743_v50 = vadd.f32 %v5785_v38, %v13558_v59 }
 0x698   : > { %v5764_v40 = vpop.f32.mrf.mxu2  ;;  %v5678_v56 = vpop.f32.mrf.mxu0 }
 0x699   : > { %v13745_v58 = vadd.f32 %v5764_v40, %v5721_v0  ;;  %v5679_v6 = vadd.f32 %v5678_v56, %v13651_v29  ;;  %v5722_v36 = vpop.f32.mrf.mxu1  ;;  %v9941_v0 = vld [vmem:[%s14770_s3 + $0x3d4] sm:$0xf] }
 0x69a   : > { %v8808_v43 = vor.u32 %v9941_v0, %v8805_v7  ;;  %v9989_v56 = vld [vmem:[%s14770_s3 + $0x554] sm:$0xf]  ;;  %v8869_v0 = vld [vmem:[%s14770_s3 + $0x458] sm:$0xf0]  ;;  %v14997_v7 = vld [vmem:[#allocation32_spill] sm:$0xff] }
 0x69b   : > { %5968 = vmatmul.bf16.gmra.mxu3 %v14953_v28  ;;  %v5723_v59 = vadd.f32 %v5722_v36, %v5679_v6  ;;  %v9000_v36 = vor.u32 %v9989_v56, %v8997_v15 }
 0x69c   : > { %6128 = vmatpush.bf16.msra.mxu3 %v8808_v43 }
 0x69d   : > { %6260 = vmatpush.bf16.msrb.mxu2 %v9000_v36  ;;  %v8797_v36 = vld [vmem:[%s14770_s3 + $0x3c8] sm:$0xf0] }
 0x69e   : > { %v5788_v57 = vpop.f32.mrf.mxu3 }
 0x69f   : > { %v13762_v38 = vadd.f32 %v5788_v57, %v13585_v30  ;;  %v14996_v30 = vld [vmem:[#allocation44_spill] sm:$0xff]  ;;  %v8933_v57 = vld [vmem:[%s14770_s3 + $0x4d8] sm:$0xf0] }
 0x6a0   : > { %v5766_v29 = vpop.f32.mrf.mxu2  ;;  %v5681_v40 = vpop.f32.mrf.mxu0 }
 0x6a1   : > { %v13764_v31 = vadd.f32 %v5766_v29, %v5723_v59  ;;  %v5682_v26 = vadd.f32 %v5681_v40, %v13676_v1  ;;  %v5725_v6 = vpop.f32.mrf.mxu1  ;;  %v9957_v59 = vld [vmem:[%s14770_s3 + $0x454] sm:$0xf] }
 0x6a2   : > { %v8872_v43 = vor.u32 %v9957_v59, %v8869_v0  ;;  %v9973_v1 = vld [vmem:[%s14770_s3 + $0x4d4] sm:$0xf] }
 0x6a3   : > { %v5726_v20 = vadd.f32 %v5725_v6, %v5682_v26  ;;  %6002 = vmatmul.bf16.vlgmr.msra.gmra.mxu0 %v14996_v30  ;;  %v8936_v40 = vor.u32 %v9973_v1, %v8933_v57  ;;  %v9939_v6 = vld [vmem:[%s14770_s3 + $0x3c4] sm:$0xf] }
 0x6a4   : > { %6046 = vmatmul.bf16.vlgmr.msra.gmra.mxu1 %v14997_v7  ;;  %6172 = vmatpush.bf16.msrb.mxu0 %v8872_v43  ;;  %v8800_v0 = vor.u32 %v9939_v6, %v8797_v36 }
 0x6a5   : > { %6090 = vmatmul.bf16.vlgmr.msra.gmra.mxu2 %v14994_v11  ;;  %6216 = vmatpush.bf16.msrb.mxu1 %v8936_v40  ;;  %v9987_v40 = vld [vmem:[%s14770_s3 + $0x544] sm:$0xf] }
 0x6a6   : > { %v5790_v29 = vpop.f32.mrf.mxu3  ;;  %6129 = vmatpush.bf16.msra.mxu3 %v8800_v0 }
 0x6a7   : > { %v13789_v56 = vadd.f32 %v5790_v29, %v13610_v4 }
 0x6a8   : > { %v5769_v15 = vpop.f32.mrf.mxu2  ;;  %v5683_v11 = vpop.f32.mrf.mxu0 }
 0x6a9   : > { %14998 = vst [vmem:[#allocation19_spill] sm:$0xff] %v13789_v56  ;;  %v13791_v26 = vadd.f32 %v5769_v15, %v5726_v20  ;;  %v5684_v30 = vadd.f32 %v5683_v11, %v13697_v25  ;;  %v5727_v59 = vpop.f32.mrf.mxu1  ;;  %v10274_v20 = vld [vmem:[%s14771_s4] sm:$0x3]  ;;  %v8989_v15 = vld [vmem:[%s14770_s3 + $0x548] sm:$0xf0] }
 0x6aa   : > { %v13804_v43 = vperm.slane %v10274_v20, 1  ;;  %v8992_v36 = vor.u32 %v9987_v40, %v8989_v15 }
 0x6ab   : > { %5973 = vmatmul.bf16.gmra.mxu3 %v14958_v17  ;;  %v5728_v4 = vadd.f32 %v5727_v59, %v5684_v30  ;;  %v8861_v30 = vld [vmem:[%s14770_s3 + $0x448] sm:$0xf0] }
 0x6ac   : > { %6261 = vmatpush.bf16.msrb.mxu2 %v8992_v36  ;;  %v8789_v36 = vld [vmem:[%s14770_s3 + $0x3b8] sm:$0xf0] }
 0x6ae   : > { %v5793_v7 = vpop.f32.mrf.mxu3 }
 0x6af   : > { %v13807_v1 = vadd.f32 %v5793_v7, %v13619_v21  ;;  %v9955_v21 = vld [vmem:[%s14770_s3 + $0x444] sm:$0xf]  ;;  %v8925_v7 = vld [vmem:[%s14770_s3 + $0x4c8] sm:$0xf0] }
 0x6b0   : > { %v5771_v57 = vpop.f32.mrf.mxu2  ;;  %v5827_v25 = vpop.f32.mrf.mxu0  ;;  %v8864_v59 = vor.u32 %v9955_v21, %v8861_v30 }
 0x6b1   : > { %14999 = vst [vmem:[#allocation8_spill] sm:$0xff] %v13807_v1  ;;  %v13809_v29 = vadd.f32 %v5771_v57, %v5728_v4  ;;  %v5828_v11 = vadd.f32 %v5827_v25, %v13804_v43  ;;  %v5871_v6 = vpop.f32.mrf.mxu1  ;;  %v9971_v4 = vld [vmem:[%s14770_s3 + $0x4c4] sm:$0xf] }
 0x6b2   : > { %v8928_v20 = vor.u32 %v9971_v4, %v8925_v7  ;;  %6173 = vmatpush.bf16.msrb.mxu0 %v8864_v59  ;;  %v8981_v4 = vld [vmem:[%s14770_s3 + $0x538] sm:$0xf0] }
 0x6b3   : > { %v5872_v0 = vadd.f32 %v5871_v6, %v5828_v11  ;;  %6007 = vmatmul.bf16.gmra.mxu0 %v14950_v14  ;;  %v9937_v6 = vld [vmem:[%s14770_s3 + $0x3b4] sm:$0xf] }
 0x6b4   : > { %6051 = vmatmul.bf16.gmra.mxu1 %v14980_v32  ;;  %v8792_v59 = vor.u32 %v9937_v6, %v8789_v36 }
 0x6b5   : > { %6095 = vmatmul.bf16.gmra.mxu2 %v14966_v24  ;;  %6217 = vmatpush.bf16.msrb.mxu1 %v8928_v20 }
 0x6b6   : > { %v5795_v57 = vpop.f32.mrf.mxu3  ;;  %6130 = vmatpush.bf16.msra.mxu3 %v8792_v59  ;;  %v9953_v59 = vld [vmem:[%s14770_s3 + $0x434] sm:$0xf] }
 0x6b7   : > { %v13834_v25 = vadd.f32 %v5795_v57, %v13644_v47  ;;  %v9935_v57 = vld [vmem:[%s14770_s3 + $0x3a4] sm:$0xf] }
 0x6b8   : > { %v5915_v40 = vpop.f32.mrf.mxu2  ;;  %v5829_v11 = vpop.f32.mrf.mxu0 }
 0x6b9   : > { %15000 = vst [vmem:[#allocation11_spill] sm:$0xff] %v13834_v25  ;;  %v13836_v15 = vadd.f32 %v5915_v40, %v5872_v0  ;;  %v5830_v21 = vadd.f32 %v5829_v11, %v13804_v43  ;;  %v5873_v30 = vpop.f32.mrf.mxu1  ;;  %v9985_v0 = vld [vmem:[%s14770_s3 + $0x534] sm:$0xf]  ;;  %v8781_v40 = vld [vmem:[%s14770_s3 + $0x3a8] sm:$0xf0] }
 0x6ba   : > { %v8984_v7 = vor.u32 %v9985_v0, %v8981_v4  ;;  %v8784_v6 = vor.u32 %v9935_v57, %v8781_v40  ;;  %v8853_v0 = vld [vmem:[%s14770_s3 + $0x438] sm:$0xf0] }
 0x6bb   : > { %5978 = vmatmul.bf16.gmra.mxu3 %v14960_v3  ;;  %v5874_v47 = vadd.f32 %v5873_v30, %v5830_v21  ;;  %v8773_v40 = vld [vmem:[%s14770_s3 + $0x398] sm:$0xf0] }
 0x6bc   : > { %6262 = vmatpush.bf16.msrb.mxu2 %v8984_v7  ;;  %6131 = vmatpush.bf16.msra.mxu3 %v8784_v6  ;;  %v9969_v7 = vld [vmem:[%s14770_s3 + $0x4b4] sm:$0xf] }
 0x6be   : > { %v5798_v20 = vpop.f32.mrf.mxu3 }
 0x6bf   : > { %v13859_v11 = vadd.f32 %v5798_v20, %v13653_v16  ;;  %v8856_v16 = vor.u32 %v9953_v59, %v8853_v0  ;;  %v9933_v20 = vld [vmem:[%s14770_s3 + $0x394] sm:$0xf]  ;;  %v9931_v59 = vld [vmem:[%s14770_s3 + $0x384] sm:$0xf]  ;;  %v8765_v0 = vld [vmem:[%s14770_s3 + $0x388] sm:$0xf0] }
 0x6c0   : > { %v5917_v36 = vpop.f32.mrf.mxu2  ;;  %v5832_v30 = vpop.f32.mrf.mxu0 }
 0x6c1   : > { %15001 = vst [vmem:[#allocation22_spill] sm:$0xff] %v13859_v11  ;;  %v13861_v21 = vadd.f32 %v5917_v36, %v5874_v47  ;;  %v5833_v4 = vadd.f32 %v5832_v30, %v13804_v43  ;;  %v5876_v25 = vpop.f32.mrf.mxu1  ;;  %v8917_v47 = vld [vmem:[%s14770_s3 + $0x4b8] sm:$0xf0]  ;;  %v8776_v36 = vor.u32 %v9933_v20, %v8773_v40  ;;  %6174 = vmatpush.bf16.msrb.mxu0 %v8856_v16  ;;  %v9983_v11 = vld [vmem:[%s14770_s3 + $0x524] sm:$0xf] }
 0x6c2   : > { %v8920_v57 = vor.u32 %v9969_v7, %v8917_v47  ;;  %v8768_v7 = vor.u32 %v9931_v59, %v8765_v0 }
 0x6c3   : > { %v5877_v6 = vadd.f32 %v5876_v25, %v5833_v4  ;;  %6012 = vmatmul.bf16.gmra.mxu0 %v14974_v13  ;;  %6132 = vmatpush.bf16.msra.mxu3 %v8776_v36 }
 0x6c4   : > { %6056 = vmatmul.bf16.gmra.mxu1 %v14982_v44 }
 0x6c5   : > { %6100 = vmatmul.bf16.gmra.mxu2 %v14970_v61  ;;  %6218 = vmatpush.bf16.msrb.mxu1 %v8920_v57 }
 0x6c6   : > { %v5800_v30 = vpop.f32.mrf.mxu3 }
 0x6c7   : > { %v13892_v25 = vadd.f32 %v5800_v30, %v13678_v19  ;;  %6133 = vmatpush.bf16.msra.mxu3 %v8768_v7  ;;  %v8973_v19 = vld [vmem:[%s14770_s3 + $0x528] sm:$0xf0] }
 0x6c8   : > { %v5920_v4 = vpop.f32.mrf.mxu2  ;;  %v5834_v20 = vpop.f32.mrf.mxu0  ;;  %v8976_v36 = vor.u32 %v9983_v11, %v8973_v19  ;;  %v8845_v30 = vld [vmem:[%s14770_s3 + $0x428] sm:$0xf0] }
 0x6c9   : > { %15002 = vst [vmem:[#allocation10_spill] sm:$0xff] %v13892_v25  ;;  %v13894_v47 = vadd.f32 %v5920_v4, %v5877_v6  ;;  %v5835_v16 = vadd.f32 %v5834_v20, %v13804_v43  ;;  %v5878_v57 = vpop.f32.mrf.mxu1  ;;  %v9951_v6 = vld [vmem:[%s14770_s3 + $0x424] sm:$0xf]  ;;  %v8909_v11 = vld [vmem:[%s14770_s3 + $0x4a8] sm:$0xf0] }
 0x6ca   : > { %v8848_v0 = vor.u32 %v9951_v6, %v8845_v30  ;;  %6263 = vmatpush.bf16.msrb.mxu2 %v8976_v36 }
 0x6cb   : > { %5983 = vmatmul.bf16.gmra.mxu3 %v14964_v8  ;;  %v5879_v40 = vadd.f32 %v5878_v57, %v5835_v16  ;;  %v9967_v57 = vld [vmem:[%s14770_s3 + $0x4a4] sm:$0xf] }
 0x6cc   : > { %6175 = vmatpush.bf16.msrb.mxu0 %v8848_v0  ;;  %v8912_v30 = vor.u32 %v9967_v57, %v8909_v11  ;;  %v8965_v57 = vld [vmem:[%s14770_s3 + $0x518] sm:$0xf0] }
 0x6ce   : > { %v5803_v59 = vpop.f32.mrf.mxu3  ;;  %6219 = vmatpush.bf16.msrb.mxu1 %v8912_v30  ;;  %v9949_v30 = vld [vmem:[%s14770_s3 + $0x414] sm:$0xf] }
 0x6cf   : > { %v13911_v4 = vadd.f32 %v5803_v59, %v13699_v51 }
 0x6d0   : > { %v5922_v7 = vpop.f32.mrf.mxu2  ;;  %v5837_v16 = vpop.f32.mrf.mxu0 }
 0x6d1   : > { %15003 = vst [vmem:[#allocation23_spill] sm:$0xff] %v13911_v4  ;;  %v13913_v20 = vadd.f32 %v5922_v7, %v5879_v40  ;;  %v5838_v19 = vadd.f32 %v5837_v16, %v13804_v43  ;;  %v5881_v6 = vpop.f32.mrf.mxu1  ;;  %v9981_v16 = vld [vmem:[%s14770_s3 + $0x514] sm:$0xf] }
 0x6d3   : > { %v5882_v51 = vadd.f32 %v5881_v6, %v5838_v19  ;;  %6017 = vmatmul.bf16.gmra.mxu0 %v14979_v37  ;;  %v8968_v6 = vor.u32 %v9981_v16, %v8965_v57 }
 0x6d4   : > { %6061 = vmatmul.bf16.gmra.mxu1 %v14983_v5 }
 0x6d5   : > { %6105 = vmatmul.bf16.gmra.mxu2 %v14971_v27 }
 0x6d6   : > { %v5805_v40 = vpop.f32.mrf.mxu3  ;;  %6264 = vmatpush.bf16.msrb.mxu2 %v8968_v6 }
 0x6d7   : > { %v13926_v36 = vadd.f32 %v5805_v40, %v13724_v63  ;;  %v9965_v40 = vld [vmem:[%s14770_s3 + $0x494] sm:$0xf] }
 0x6d8   : > { %v5925_v59 = vpop.f32.mrf.mxu2  ;;  %v5839_v7 = vpop.f32.mrf.mxu0 }
 0x6d9   : > { %15004 = vst [vmem:[#allocation14_spill] sm:$0xff] %v13926_v36  ;;  %v13928_v0 = vadd.f32 %v5925_v59, %v5882_v51  ;;  %v5840_v11 = vadd.f32 %v5839_v7, %v13804_v43  ;;  %v5883_v19 = vpop.f32.mrf.mxu1  ;;  %v8837_v51 = vld [vmem:[%s14770_s3 + $0x418] sm:$0xf0] }
 0x6da   : > { %v8840_v59 = vor.u32 %v9949_v30, %v8837_v51  ;;  %v8901_v7 = vld [vmem:[%s14770_s3 + $0x498] sm:$0xf0] }
 0x6db   : > { %5988 = vmatmul.bf16.gmra.mxu3 %v14967_v54  ;;  %v5884_v63 = vadd.f32 %v5883_v19, %v5840_v11  ;;  %v8904_v57 = vor.u32 %v9965_v40, %v8901_v7 }
 0x6dc   : > { %6176 = vmatpush.bf16.msrb.mxu0 %v8840_v59  ;;  %v9947_v59 = vld [vmem:[%s14770_s3 + $0x404] sm:$0xf] }
 0x6dd   : > { %6220 = vmatpush.bf16.msrb.mxu1 %v8904_v57 }
 0x6de   : > { %v5808_v16 = vpop.f32.mrf.mxu3 }
 0x6df   : > { %v13951_v11 = vadd.f32 %v5808_v16, %v13745_v58 }
 0x6e0   : > { %v5927_v19 = vpop.f32.mrf.mxu2  ;;  %v5842_v36 = vpop.f32.mrf.mxu0 }
 0x6e1   : > { %15005 = vst [vmem:[#allocation13_spill] sm:$0xff] %v13951_v11  ;;  %v13953_v6 = vadd.f32 %v5927_v19, %v5884_v63  ;;  %v5843_v4 = vadd.f32 %v5842_v36, %v13804_v43  ;;  %v5886_v25 = vpop.f32.mrf.mxu1  ;;  %v9979_v63 = vld [vmem:[%s14770_s3 + $0x504] sm:$0xf]  ;;  %v8957_v36 = vld [vmem:[%s14770_s3 + $0x508] sm:$0xf0] }
 0x6e3   : > { %v5887_v1 = vadd.f32 %v5886_v25, %v5843_v4  ;;  %6022 = vmatmul.bf16.gmra.mxu0 %v14981_v42  ;;  %v8960_v25 = vor.u32 %v9979_v63, %v8957_v36 }
 0x6e4   : > { %6066 = vmatmul.bf16.gmra.mxu1 %v14985_v53 }
 0x6e5   : > { %6110 = vmatmul.bf16.gmra.mxu2 %v12067_v46 }
 0x6e6   : > { %v5810_v30 = vpop.f32.mrf.mxu3  ;;  %6265 = vmatpush.bf16.msrb.mxu2 %v8960_v25  ;;  %v9077_v25 = vld [vmem:[%s14770_s3 + $0x5f8] sm:$0xf0] }
 0x6e7   : > { %v13960_v58 = vadd.f32 %v5810_v30, %v13764_v31  ;;  %v8829_v31 = vld [vmem:[%s14770_s3 + $0x408] sm:$0xf0] }
 0x6e8   : > { %v5930_v51 = vpop.f32.mrf.mxu2  ;;  %v5844_v40 = vpop.f32.mrf.mxu0  ;;  %v8832_v57 = vor.u32 %v9947_v59, %v8829_v31  ;;  %v8893_v30 = vld [vmem:[%s14770_s3 + $0x488] sm:$0xf0] }
 0x6e9   : > { %15006 = vst [vmem:[#allocation20_spill] sm:$0xff] %v13960_v58  ;;  %v13968_v4 = vadd.f32 %v5930_v51, %v5887_v1  ;;  %v5845_v7 = vadd.f32 %v5844_v40, %v13804_v43  ;;  %v5888_v16 = vpop.f32.mrf.mxu1  ;;  %v9963_v1 = vld [vmem:[%s14770_s3 + $0x484] sm:$0xf] }
 0x6ea   : > { %6177 = vmatpush.bf16.msrb.mxu0 %v8832_v57  ;;  %v8896_v63 = vor.u32 %v9963_v1, %v8893_v30  ;;  %v15008_v1 = vld [vmem:[#allocation21_spill] sm:$0xff]  ;;  %v10055_v58 = vld [vmem:[%s14770_s3 + $0x764] sm:$0xf] }
 0x6eb   : > { %6134 = vmatmul.bf16.vlgmr.msra.gmra.mxu3 %v11851_v60  ;;  %v5889_v19 = vadd.f32 %v5888_v16, %v5845_v7  ;;  %v10009_v60 = vld [vmem:[%s14770_s3 + $0x5f4] sm:$0xf] }
 0x6ec   : > { %6221 = vmatpush.bf16.msrb.mxu1 %v8896_v63  ;;  %v9080_v59 = vor.u32 %v10009_v60, %v9077_v25  ;;  %v10057_v30 = vld [vmem:[%s14770_s3 + $0x774] sm:$0xf] }
 0x6ed   : > { %v10025_v25 = vld [vmem:[%s14770_s3 + $0x674] sm:$0xf] }
 0x6ee   : > { %v5813_v36 = vpop.f32.mrf.mxu3  ;;  %6302 = vmatpush.bf16.msrb.mxu3 %v9080_v59 }
 0x6ef   : > { %v13985_v51 = vadd.f32 %v5813_v36, %v13791_v26 }
 0x6f0   : > { %v5932_v40 = vpop.f32.mrf.mxu2  ;;  %v5847_v7 = vpop.f32.mrf.mxu0 }
 0x6f1   : > { %15007 = vst [vmem:[#allocation6_spill] sm:$0xff] %v13985_v51  ;;  %v13993_v31 = vadd.f32 %v5932_v40, %v5889_v19  ;;  %v5848_v16 = vadd.f32 %v5847_v7, %v13804_v43  ;;  %v5891_v57 = vpop.f32.mrf.mxu1  ;;  %v9269_v19 = vld [vmem:[%s14770_s3 + $0x778] sm:$0xf0] }
 0x6f2   : > { %v9272_v36 = vor.u32 %v10057_v30, %v9269_v19  ;;  %v9141_v40 = vld [vmem:[%s14770_s3 + $0x678] sm:$0xf0]  ;;  %v10041_v30 = vld [vmem:[%s14770_s3 + $0x6f4] sm:$0xf] }
 0x6f3   : > { %v5892_v26 = vadd.f32 %v5891_v57, %v5848_v16  ;;  %6027 = vmatmul.bf16.gmra.mxu0 %v15008_v1  ;;  %v9144_v7 = vor.u32 %v10025_v25, %v9141_v40  ;;  %v9069_v25 = vld [vmem:[%s14770_s3 + $0x5e8] sm:$0xf0] }
 0x6f4   : > { %6071 = vmatmul.bf16.gmra.mxu1 %v14987_v41  ;;  %6434 = vmatpush.bf16.msra.mxu2 %v9272_v36 }
 0x6f5   : > { %6115 = vmatmul.bf16.gmra.mxu2 %v12137_v35  ;;  %6346 = vmatpush.bf16.msra.mxu0 %v9144_v7 }
 0x6f6   : > { %v5815_v63 = vpop.f32.mrf.mxu3 }
 0x6f7   : > { %v14006_v60 = vadd.f32 %v5815_v63, %v13809_v29  ;;  %v9205_v29 = vld [vmem:[%s14770_s3 + $0x6f8] sm:$0xf0] }
 0x6f8   : > { %v5935_v59 = vpop.f32.mrf.mxu2  ;;  %v5849_v57 = vpop.f32.mrf.mxu0 }
 0x6f9   : > { %15009 = vst [vmem:[#allocation26_spill] sm:$0xff] %v14006_v60  ;;  %v14014_v16 = vadd.f32 %v5935_v59, %v5892_v26  ;;  %v5850_v19 = vadd.f32 %v5849_v57, %v13804_v43  ;;  %v5893_v63 = vpop.f32.mrf.mxu1  ;;  %v9208_v60 = vor.u32 %v10041_v30, %v9205_v29  ;;  %v10007_v26 = vld [vmem:[%s14770_s3 + $0x5e4] sm:$0xf] }
 0x6fa   : > { %v9072_v40 = vor.u32 %v10007_v26, %v9069_v25  ;;  %v10023_v26 = vld [vmem:[%s14770_s3 + $0x664] sm:$0xf]  ;;  %v9133_v25 = vld [vmem:[%s14770_s3 + $0x668] sm:$0xf0] }
 0x6fb   : > { %6139 = vmatmul.bf16.gmra.mxu3 %v11904_v52  ;;  %v5894_v36 = vadd.f32 %v5893_v63, %v5850_v19  ;;  %6390 = vmatpush.bf16.msra.mxu1 %v9208_v60  ;;  %v15010_v63 = vld [vmem:[#allocation24_spill] sm:$0xff] }
 0x6fc   : > { %6303 = vmatpush.bf16.msrb.mxu3 %v9072_v40 }
 0x6fe   : > { %v5959_v59 = vpop.f32.mrf.mxu3 }
 0x6ff   : > { %v14031_v51 = vadd.f32 %v5959_v59, %v13836_v15  ;;  %v9261_v15 = vld [vmem:[%s14770_s3 + $0x768] sm:$0xf0]  ;;  %v9136_v59 = vor.u32 %v10023_v26, %v9133_v25 }
 0x700   : > { %v5937_v7 = vpop.f32.mrf.mxu2  ;;  %v5852_v30 = vpop.f32.mrf.mxu0 }
 0x701   : > { %v14033_v57 = vadd.f32 %v5937_v7, %v5894_v36  ;;  %v5853_v60 = vadd.f32 %v5852_v30, %v13804_v43  ;;  %v5896_v29 = vpop.f32.mrf.mxu1  ;;  %v9264_v36 = vor.u32 %v10055_v58, %v9261_v15  ;;  %v10039_v30 = vld [vmem:[%s14770_s3 + $0x6e4] sm:$0xf]  ;;  %v9197_v58 = vld [vmem:[%s14770_s3 + $0x6e8] sm:$0xf0]  ;;  %6347 = vmatpush.bf16.msra.mxu0 %v9136_v59 }
 0x703   : > { %v5897_v19 = vadd.f32 %v5896_v29, %v5853_v60  ;;  %6032 = vmatmul.bf16.gmra.mxu0 %v15010_v63  ;;  %6435 = vmatpush.bf16.msra.mxu2 %v9264_v36  ;;  %v9200_v29 = vor.u32 %v10039_v30, %v9197_v58  ;;  %v10005_v36 = vld [vmem:[%s14770_s3 + $0x5d4] sm:$0xf] }
 0x704   : > { %6076 = vmatmul.bf16.gmra.mxu1 %v14988_v9 }
 0x705   : > { %6120 = vmatmul.bf16.gmra.mxu2 %v12225_v62  ;;  %6391 = vmatpush.bf16.msra.mxu1 %v9200_v29  ;;  %v10053_v29 = vld [vmem:[%s14770_s3 + $0x754] sm:$0xf] }
 0x706   : > { %v5961_v40 = vpop.f32.mrf.mxu3 }
 0x707   : > { %v14052_v7 = vadd.f32 %v5961_v40, %v13861_v21  ;;  %v9061_v40 = vld [vmem:[%s14770_s3 + $0x5d8] sm:$0xf0] }
 0x708   : > { %v5940_v60 = vpop.f32.mrf.mxu2  ;;  %v5854_v11 = vpop.f32.mrf.mxu0  ;;  %v9064_v59 = vor.u32 %v10005_v36, %v9061_v40 }
 0x709   : > { %v14060_v15 = vadd.f32 %v5940_v60, %v5897_v19  ;;  %v5855_v26 = vadd.f32 %v5854_v11, %v13804_v43  ;;  %v5898_v25 = vpop.f32.mrf.mxu1 }
 0x70a   : > { %6304 = vmatpush.bf16.msrb.mxu3 %v9064_v59  ;;  %v9125_v59 = vld [vmem:[%s14770_s3 + $0x658] sm:$0xf0] }
 0x70b   : > { %6144 = vmatmul.bf16.gmra.mxu3 %v11964_v10  ;;  %v5899_v21 = vadd.f32 %v5898_v25, %v5855_v26  ;;  %v9253_v26 = vld [vmem:[%s14770_s3 + $0x758] sm:$0xf0] }
 0x70c   : > { %v9256_v40 = vor.u32 %v10053_v29, %v9253_v26 }
 0x70e   : > { %v5964_v30 = vpop.f32.mrf.mxu3  ;;  %6436 = vmatpush.bf16.msra.mxu2 %v9256_v40  ;;  %v10003_v40 = vld [vmem:[%s14770_s3 + $0x5c4] sm:$0xf] }
 0x70f   : > { %v14071_v19 = vadd.f32 %v5964_v30, %v13894_v47  ;;  %v15011_v47 = vld [vmem:[#allocation35_spill] sm:$0xff] }
 0x710   : > { %v5942_v11 = vpop.f32.mrf.mxu2  ;;  %v5857_v60 = vpop.f32.mrf.mxu0 }
 0x711   : > { %v14073_v58 = vadd.f32 %v5942_v11, %v5899_v21  ;;  %v5858_v25 = vadd.f32 %v5857_v60, %v13804_v43  ;;  %v5901_v36 = vpop.f32.mrf.mxu1  ;;  %v10021_v21 = vld [vmem:[%s14770_s3 + $0x654] sm:$0xf]  ;;  %v9189_v60 = vld [vmem:[%s14770_s3 + $0x6d8] sm:$0xf0] }
 0x712   : > { %v9128_v30 = vor.u32 %v10021_v21, %v9125_v59  ;;  %v10037_v11 = vld [vmem:[%s14770_s3 + $0x6d4] sm:$0xf] }
 0x713   : > { %v5902_v56 = vadd.f32 %v5901_v36, %v5858_v25  ;;  %6178 = vmatmul.bf16.vlgmr.msrb.gmra.mxu0 %v15011_v47  ;;  %v9192_v26 = vor.u32 %v10037_v11, %v9189_v60  ;;  %v9053_v47 = vld [vmem:[%s14770_s3 + $0x5c8] sm:$0xf0]  ;;  %v10051_v60 = vld [vmem:[%s14770_s3 + $0x744] sm:$0xf] }
 0x714   : > { %6222 = vmatmul.bf16.vlgmr.msrb.gmra.mxu1 %v14949_v23  ;;  %6348 = vmatpush.bf16.msra.mxu0 %v9128_v30  ;;  %v9056_v11 = vor.u32 %v10003_v40, %v9053_v47  ;;  %v10019_v40 = vld [vmem:[%s14770_s3 + $0x644] sm:$0xf] }
 0x715   : > { %6266 = vmatmul.bf16.vlgmr.msrb.gmra.mxu2 %v14950_v14  ;;  %6392 = vmatpush.bf16.msra.mxu1 %v9192_v26 }
 0x716   : > { %v5966_v29 = vpop.f32.mrf.mxu3  ;;  %6305 = vmatpush.bf16.msrb.mxu3 %v9056_v11 }
 0x717   : > { %v14098_v25 = vadd.f32 %v5966_v29, %v13913_v20  ;;  %v9245_v29 = vld [vmem:[%s14770_s3 + $0x748] sm:$0xf0] }
 0x718   : > { %v5945_v36 = vpop.f32.mrf.mxu2  ;;  %v5859_v14 = vpop.f32.mrf.mxu0 }
 0x719   : > { %v14100_v23 = vadd.f32 %v5945_v36, %v5902_v56  ;;  %v5860_v21 = vadd.f32 %v5859_v14, %v13804_v43  ;;  %v5903_v59 = vpop.f32.mrf.mxu1  ;;  %v9248_v43 = vor.u32 %v10051_v60, %v9245_v29 }
 0x71b   : > { %6149 = vmatmul.bf16.gmra.mxu3 %v12028_v12  ;;  %v5904_v20 = vadd.f32 %v5903_v59, %v5860_v21  ;;  %6437 = vmatpush.bf16.msra.mxu2 %v9248_v43  ;;  %v9045_v43 = vld [vmem:[%s14770_s3 + $0x5b8] sm:$0xf0] }
 0x71e   : > { %v5969_v30 = vpop.f32.mrf.mxu3 }
 0x71f   : > { %v14111_v56 = vadd.f32 %v5969_v30, %v13928_v0  ;;  %v9117_v0 = vld [vmem:[%s14770_s3 + $0x648] sm:$0xf0] }
 0x720   : > { %v5947_v26 = vpop.f32.mrf.mxu2  ;;  %v6003_v14 = vpop.f32.mrf.mxu0  ;;  %v9120_v59 = vor.u32 %v10019_v40, %v9117_v0  ;;  %v9181_v30 = vld [vmem:[%s14770_s3 + $0x6c8] sm:$0xf0] }
 0x721   : > { %v14119_v36 = vadd.f32 %v5947_v26, %v5904_v20  ;;  %v6004_v47 = vadd.f32 %v6003_v14, %v14031_v51  ;;  %v6047_v21 = vpop.f32.mrf.mxu1  ;;  %v10035_v20 = vld [vmem:[%s14770_s3 + $0x6c4] sm:$0xf]  ;;  %v10001_v26 = vld [vmem:[%s14770_s3 + $0x5b4] sm:$0xf] }
 0x722   : > { %v9184_v60 = vor.u32 %v10035_v20, %v9181_v30  ;;  %6349 = vmatpush.bf16.msra.mxu0 %v9120_v59  ;;  %v9048_v40 = vor.u32 %v10001_v26, %v9045_v43  ;;  %v9237_v59 = vld [vmem:[%s14770_s3 + $0x738] sm:$0xf0] }
 0x723   : > { %v6048_v11 = vadd.f32 %v6047_v21, %v6004_v47  ;;  %6183 = vmatmul.bf16.gmra.mxu0 %v12430_v39  ;;  %v10049_v21 = vld [vmem:[%s14770_s3 + $0x734] sm:$0xf]  ;;  %v9109_v26 = vld [vmem:[%s14770_s3 + $0x638] sm:$0xf0] }
 0x724   : > { %6227 = vmatmul.bf16.gmra.mxu1 %v14953_v28  ;;  %6306 = vmatpush.bf16.msrb.mxu3 %v9048_v40  ;;  %v9240_v20 = vor.u32 %v10049_v21, %v9237_v59 }
 0x725   : > { %6271 = vmatmul.bf16.gmra.mxu2 %v14974_v13  ;;  %6393 = vmatpush.bf16.msra.mxu1 %v9184_v60 }
 0x726   : > { %v5971_v51 = vpop.f32.mrf.mxu3  ;;  %6438 = vmatpush.bf16.msra.mxu2 %v9240_v20 }
 0x727   : > { %v14138_v29 = vadd.f32 %v5971_v51, %v13953_v6  ;;  %v10017_v51 = vld [vmem:[%s14770_s3 + $0x634] sm:$0xf] }
 0x728   : > { %v6091_v14 = vpop.f32.mrf.mxu2  ;;  %v6005_v13 = vpop.f32.mrf.mxu0  ;;  %v9112_v40 = vor.u32 %v10017_v51, %v9109_v26  ;;  %v9995_v51 = vld [vmem:[%s14770_s3 + $0x584] sm:$0xf]  ;;  %v9021_v26 = vld [vmem:[%s14770_s3 + $0x588] sm:$0xf0] }
 0x729   : > { %v14146_v28 = vadd.f32 %v6091_v14, %v6048_v11  ;;  %v6006_v0 = vadd.f32 %v6005_v13, %v14052_v7  ;;  %v6049_v47 = vpop.f32.mrf.mxu1  ;;  %v9999_v11 = vld [vmem:[%s14770_s3 + $0x5a4] sm:$0xf]  ;;  %v9037_v7 = vld [vmem:[%s14770_s3 + $0x5a8] sm:$0xf0] }
 0x72a   : > { %v9040_v43 = vor.u32 %v9999_v11, %v9037_v7  ;;  %6350 = vmatpush.bf16.msra.mxu0 %v9112_v40 }
 0x72b   : > { %6154 = vmatmul.bf16.gmra.mxu3 %v14972_v48  ;;  %v6050_v6 = vadd.f32 %v6049_v47, %v6006_v0  ;;  %v9173_v47 = vld [vmem:[%s14770_s3 + $0x6b8] sm:$0xf0] }
 0x72c   : > { %6307 = vmatpush.bf16.msrb.mxu3 %v9040_v43 }
 0x72e   : > { %v5974_v30 = vpop.f32.mrf.mxu3 }
 0x72f   : > { %v14163_v60 = vadd.f32 %v5974_v30, %v13968_v4  ;;  %v10033_v4 = vld [vmem:[%s14770_s3 + $0x6b4] sm:$0xf]  ;;  %v9029_v30 = vld [vmem:[%s14770_s3 + $0x598] sm:$0xf0] }
 0x730   : > { %v6093_v14 = vpop.f32.mrf.mxu2  ;;  %v6008_v0 = vpop.f32.mrf.mxu0  ;;  %v9176_v20 = vor.u32 %v10033_v4, %v9173_v47 }
 0x731   : > { %v14171_v13 = vadd.f32 %v6093_v14, %v6050_v6  ;;  %v6009_v21 = vadd.f32 %v6008_v0, %v14071_v19  ;;  %v6052_v59 = vpop.f32.mrf.mxu1  ;;  %v9997_v6 = vld [vmem:[%s14770_s3 + $0x594] sm:$0xf]  ;;  %v9024_v14 = vor.u32 %v9995_v51, %v9021_v26 }
 0x732   : > { %v9032_v11 = vor.u32 %v9997_v6, %v9029_v30  ;;  %6394 = vmatpush.bf16.msra.mxu1 %v9176_v20 }
 0x733   : > { %v6053_v7 = vadd.f32 %v6052_v59, %v6009_v21  ;;  %6188 = vmatmul.bf16.gmra.mxu0 %v12477_v34  ;;  %v10047_v21 = vld [vmem:[%s14770_s3 + $0x724] sm:$0xf] }
 0x734   : > { %6232 = vmatmul.bf16.gmra.mxu1 %v14958_v17  ;;  %6308 = vmatpush.bf16.msrb.mxu3 %v9032_v11  ;;  %v10015_v59 = vld [vmem:[%s14770_s3 + $0x624] sm:$0xf] }
 0x735   : > { %6276 = vmatmul.bf16.gmra.mxu2 %v14979_v37 }
 0x736   : > { %v5976_v19 = vpop.f32.mrf.mxu3 }
 0x737   : > { %v14196_v43 = vadd.f32 %v5976_v19, %v13993_v31  ;;  %v9229_v31 = vld [vmem:[%s14770_s3 + $0x728] sm:$0xf0] }
 0x738   : > { %v6096_v40 = vpop.f32.mrf.mxu2  ;;  %v6010_v17 = vpop.f32.mrf.mxu0  ;;  %6309 = vmatpush.bf16.msrb.mxu3 %v9024_v14  ;;  %v9232_v20 = vor.u32 %v10047_v21, %v9229_v31  ;;  %v9165_v19 = vld [vmem:[%s14770_s3 + $0x6a8] sm:$0xf0] }
 0x739   : > { %v14198_v0 = vadd.f32 %v6096_v40, %v6053_v7  ;;  %v6011_v37 = vadd.f32 %v6010_v17, %v14098_v25  ;;  %v6054_v4 = vpop.f32.mrf.mxu1  ;;  %v9101_v25 = vld [vmem:[%s14770_s3 + $0x628] sm:$0xf0]  ;;  %v10031_v7 = vld [vmem:[%s14770_s3 + $0x6a4] sm:$0xf] }
 0x73a   : > { %v9104_v30 = vor.u32 %v10015_v59, %v9101_v25  ;;  %6439 = vmatpush.bf16.msra.mxu2 %v9232_v20  ;;  %v9168_v26 = vor.u32 %v10031_v7, %v9165_v19  ;;  %v9221_v20 = vld [vmem:[%s14770_s3 + $0x718] sm:$0xf0]  ;;  %v10029_v19 = vld [vmem:[%s14770_s3 + $0x694] sm:$0xf] }
 0x73b   : > { %6159 = vmatmul.bf16.gmra.mxu3 %v12139_v2  ;;  %v6055_v47 = vadd.f32 %v6054_v4, %v6011_v37  ;;  %v9093_v7 = vld [vmem:[%s14770_s3 + $0x618] sm:$0xf0] }
 0x73c   : > { %6351 = vmatpush.bf16.msra.mxu0 %v9104_v30  ;;  %6395 = vmatpush.bf16.msra.mxu1 %v9168_v26  ;;  %v10013_v30 = vld [vmem:[%s14770_s3 + $0x614] sm:$0xf] }
 0x73e   : > { %v5979_v6 = vpop.f32.mrf.mxu3 }
 0x73f   : > { %v14215_v11 = vadd.f32 %v5979_v6, %v14014_v16  ;;  %v15012_v6 = vld [vmem:[#allocation28_spill] sm:$0xff] }
 0x740   : > { %v6098_v51 = vpop.f32.mrf.mxu2  ;;  %v6013_v40 = vpop.f32.mrf.mxu0 }
 0x741   : > { %v14223_v14 = vadd.f32 %v6098_v51, %v6055_v47  ;;  %v6014_v17 = vadd.f32 %v6013_v40, %v14111_v56  ;;  %v6057_v37 = vpop.f32.mrf.mxu1  ;;  %v10045_v56 = vld [vmem:[%s14770_s3 + $0x714] sm:$0xf]  ;;  %v9096_v51 = vor.u32 %v10013_v30, %v9093_v7 }
 0x743   : > { %v6058_v16 = vadd.f32 %v6057_v37, %v6014_v17  ;;  %6193 = vmatmul.bf16.gmra.mxu0 %v12535_v33 }
 0x744   : > { %6237 = vmatmul.bf16.gmra.mxu1 %v14960_v3  ;;  %6352 = vmatpush.bf16.msra.mxu0 %v9096_v51 }
 0x745   : > { %6281 = vmatmul.bf16.gmra.mxu2 %v14981_v42  ;;  %v9224_v42 = vor.u32 %v10045_v56, %v9221_v20 }
 0x746   : > { %v5981_v4 = vpop.f32.mrf.mxu3 }
 0x747   : > { %v14230_v21 = vadd.f32 %v5981_v4, %v14033_v57  ;;  %6440 = vmatpush.bf16.msra.mxu2 %v9224_v42 }
 0x748   : > { %v6101_v31 = vpop.f32.mrf.mxu2  ;;  %v6015_v47 = vpop.f32.mrf.mxu0 }
 0x749   : > { %v14232_v59 = vadd.f32 %v6101_v31, %v6058_v16  ;;  %v6016_v3 = vadd.f32 %v6015_v47, %v14138_v29  ;;  %v6059_v25 = vpop.f32.mrf.mxu1  ;;  %v9157_v29 = vld [vmem:[%s14770_s3 + $0x698] sm:$0xf0] }
 0x74a   : > { %v9160_v40 = vor.u32 %v10029_v19, %v9157_v29  ;;  %v10027_v29 = vld [vmem:[%s14770_s3 + $0x684] sm:$0xf] }
 0x74b   : > { %6164 = vmatmul.bf16.gmra.mxu3 %v15012_v6  ;;  %v6060_v57 = vadd.f32 %v6059_v25, %v6016_v3  ;;  %v9213_v25 = vld [vmem:[%s14770_s3 + $0x708] sm:$0xf0] }
 0x74c   : > { %6396 = vmatpush.bf16.msra.mxu1 %v9160_v40 }
 0x74e   : > { %v5984_v26 = vpop.f32.mrf.mxu3 }
 0x74f   : > { %v5985_v17 = vadd.f32 %v5984_v26, %v14060_v15  ;;  %v10043_v15 = vld [vmem:[%s14770_s3 + $0x704] sm:$0xf]  ;;  %v9149_v26 = vld [vmem:[%s14770_s3 + $0x688] sm:$0xf0] }
 0x750   : > { %v6103_v37 = vpop.f32.mrf.mxu2  ;;  %v6018_v4 = vpop.f32.mrf.mxu0  ;;  %v9216_v42 = vor.u32 %v10043_v15, %v9213_v25  ;;  %v9152_v40 = vor.u32 %v10027_v29, %v9149_v26  ;;  %v15013_v29 = vld [vmem:[#allocation25_spill] sm:$0xff]  ;;  %v15014_v26 = vld [vmem:[#allocation27_spill] sm:$0xff] }
 0x751   : > { %v14255_v16 = vadd.f32 %v6103_v37, %v6060_v57  ;;  %v6019_v31 = vadd.f32 %v6018_v4, %v14163_v60  ;;  %v6062_v47 = vpop.f32.mrf.mxu1 }
 0x752   : > { %6441 = vmatpush.bf16.msra.mxu2 %v9216_v42  ;;  %6397 = vmatpush.bf16.msra.mxu1 %v9152_v40 }
 0x753   : > { %v6063_v56 = vadd.f32 %v6062_v47, %v6019_v31  ;;  %6198 = vmatmul.bf16.gmra.mxu0 %v12616_v45 }
 0x754   : > { %6242 = vmatmul.bf16.gmra.mxu1 %v14964_v8  ;;  %v10011_v8 = vld [vmem:[%s14770_s3 + $0x604] sm:$0xf] }
 0x755   : > { %6286 = vmatmul.bf16.gmra.mxu2 %v15008_v1  ;;  %v9085_v1 = vld [vmem:[%s14770_s3 + $0x608] sm:$0xf0] }
 0x756   : > { %v5986_v20 = vpop.f32.mrf.mxu3  ;;  %v9088_v19 = vor.u32 %v10011_v8, %v9085_v1 }
 0x757   : > { %v5987_v3 = vadd.f32 %v5986_v20, %v14073_v58 }
 0x758   : > { %v6106_v60 = vpop.f32.mrf.mxu2  ;;  %v6020_v30 = vpop.f32.mrf.mxu0  ;;  %6353 = vmatpush.bf16.msra.mxu0 %v9088_v19 }
 0x759   : > { %v14268_v57 = vadd.f32 %v6106_v60, %v6063_v56  ;;  %v6021_v58 = vadd.f32 %v6020_v30, %v14196_v43  ;;  %v6064_v7 = vpop.f32.mrf.mxu1 }
 0x75b   : > { %6310 = vmatmul.bf16.vlgmr.msrb.gmra.mxu3 %v14980_v32  ;;  %v6065_v51 = vadd.f32 %v6064_v7, %v6021_v58 }
 0x75e   : > { %v5989_v37 = vpop.f32.mrf.mxu3 }
 0x75f   : > { %v5990_v4 = vadd.f32 %v5989_v37, %v14100_v23 }
 0x760   : > { %v6108_v43 = vpop.f32.mrf.mxu2  ;;  %v6023_v47 = vpop.f32.mrf.mxu0 }
 0x761   : > { %v14285_v31 = vadd.f32 %v6108_v43, %v6065_v51  ;;  %v6024_v32 = vadd.f32 %v6023_v47, %v14215_v11  ;;  %v6067_v56 = vpop.f32.mrf.mxu1 }
 0x763   : > { %v6068_v20 = vadd.f32 %v6067_v56, %v6024_v32  ;;  %6203 = vmatmul.bf16.gmra.mxu0 %v12715_v49 }
 0x764   : > { %6247 = vmatmul.bf16.gmra.mxu1 %v14967_v54 }
 0x765   : > { %6291 = vmatmul.bf16.gmra.mxu2 %v15010_v63 }
 0x766   : > { %v5991_v15 = vpop.f32.mrf.mxu3 }
 0x767   : > { %v5992_v25 = vadd.f32 %v5991_v15, %v14119_v36 }
 0x768   : > { %v6111_v60 = vpop.f32.mrf.mxu2  ;;  %v6025_v42 = vpop.f32.mrf.mxu0 }
 0x769   : > { %v14292_v23 = vadd.f32 %v6111_v60, %v6068_v20  ;;  %v6026_v30 = vadd.f32 %v6025_v42, %v14230_v21  ;;  %v6069_v8 = vpop.f32.mrf.mxu1 }
 0x76b   : > { %6315 = vmatmul.bf16.gmra.mxu3 %v14982_v44  ;;  %v6070_v11 = vadd.f32 %v6069_v8, %v6026_v30 }
 0x76e   : > { %v6135_v1 = vpop.f32.mrf.mxu3 }
 0x76f   : > { %v6136_v58 = vadd.f32 %v6135_v1, %v14146_v28 }
 0x770   : > { %v6113_v7 = vpop.f32.mrf.mxu2  ;;  %v6028_v63 = vpop.f32.mrf.mxu0 }
 0x771   : > { %v14297_v54 = vadd.f32 %v6113_v7, %v6070_v11  ;;  %v6029_v19 = vadd.f32 %v6028_v63, %v5985_v17  ;;  %v6072_v51 = vpop.f32.mrf.mxu1 }
 0x773   : > { %v6073_v36 = vadd.f32 %v6072_v51, %v6029_v19  ;;  %6208 = vmatmul.bf16.gmra.mxu0 %v12794_v22 }
 0x774   : > { %6252 = vmatmul.bf16.gmra.mxu1 %v15013_v29 }
 0x775   : > { %6296 = vmatmul.bf16.gmra.mxu2 %v15014_v26 }
 0x776   : > { %v6137_v21 = vpop.f32.mrf.mxu3 }
 0x777   : > { %v6138_v44 = vadd.f32 %v6137_v21, %v14171_v13 }
 0x778   : > { %v6116_v40 = vpop.f32.mrf.mxu2  ;;  %v6030_v28 = vpop.f32.mrf.mxu0 }
 0x779   : > { %v14303_v37 = vadd.f32 %v6116_v40, %v6073_v36  ;;  %v6031_v43 = vadd.f32 %v6030_v28, %v5987_v3  ;;  %v6074_v47 = vpop.f32.mrf.mxu1 }
 0x77b   : > { %6320 = vmatmul.bf16.gmra.mxu3 %v14983_v5  ;;  %v6075_v17 = vadd.f32 %v6074_v47, %v6031_v43 }
 0x77e   : > { %v6140_v32 = vpop.f32.mrf.mxu3 }
 0x77f   : > { %v6141_v56 = vadd.f32 %v6140_v32, %v14198_v0 }
 0x780   : > { %v6118_v20 = vpop.f32.mrf.mxu2  ;;  %v6033_v60 = vpop.f32.mrf.mxu0 }
 0x781   : > { %v14307_v15 = vadd.f32 %v6118_v20, %v6075_v17  ;;  %v6034_v42 = vadd.f32 %v6033_v60, %v5990_v4  ;;  %v6077_v30 = vpop.f32.mrf.mxu1 }
 0x783   : > { %v6078_v8 = vadd.f32 %v6077_v30, %v6034_v42  ;;  %6354 = vmatmul.bf16.vlgmr.msra.gmra.mxu0 %v14966_v24 }
 0x784   : > { %6398 = vmatmul.bf16.vlgmr.msra.gmra.mxu1 %v11904_v52 }
 0x785   : > { %6442 = vmatmul.bf16.vlgmr.msra.gmra.mxu2 %v12430_v39 }
 0x786   : > { %v6142_v13 = vpop.f32.mrf.mxu3 }
 0x787   : > { %v6143_v5 = vadd.f32 %v6142_v13, %v14223_v14 }
 0x788   : > { %v6121_v3 = vpop.f32.mrf.mxu2  ;;  %v6035_v0 = vpop.f32.mrf.mxu0 }
 0x789   : > { %v14313_v11 = vadd.f32 %v6121_v3, %v6078_v8  ;;  %v6036_v1 = vadd.f32 %v6035_v0, %v5992_v25  ;;  %v6079_v7 = vpop.f32.mrf.mxu1 }
 0x78b   : > { %6325 = vmatmul.bf16.gmra.mxu3 %v14985_v53  ;;  %v6080_v4 = vadd.f32 %v6079_v7, %v6036_v1 }
 0x78e   : > { %v6145_v63 = vpop.f32.mrf.mxu3 }
 0x78f   : > { %v6146_v19 = vadd.f32 %v6145_v63, %v14232_v59 }
 0x790   : > { %v6123_v24 = vpop.f32.mrf.mxu2  ;;  %v6179_v52 = vpop.f32.mrf.mxu0 }
 0x791   : > { %v14317_v51 = vadd.f32 %v6123_v24, %v6080_v4  ;;  %v6180_v39 = vadd.f32 %v6179_v52, %v6136_v58  ;;  %v6223_v36 = vpop.f32.mrf.mxu1  ;;  %v10066_v58 = vld [vmem:[%s14772_s5 + $0x38] sm:$0xff] }
 0x792   : > { %7234 = vmatpush.bf16.msra.mxu3 %v10066_v58 }
 0x793   : > { %v6224_v29 = vadd.f32 %v6223_v36, %v6180_v39  ;;  %6359 = vmatmul.bf16.gmra.mxu0 %v14970_v61 }
 0x794   : > { %6403 = vmatmul.bf16.gmra.mxu1 %v11964_v10 }
 0x795   : > { %6447 = vmatmul.bf16.gmra.mxu2 %v12477_v34 }
 0x796   : > { %v14322_v14 = vpop.f32.mrf.mxu3 }
 0x798   : > { %v6267_v53 = vpop.f32.mrf.mxu2  ;;  %v6181_v26 = vpop.f32.mrf.mxu0 }
 0x799   : > { %v14324_v25 = vadd.f32 %v6267_v53, %v6224_v29  ;;  %v6182_v59 = vadd.f32 %v6181_v26, %v6138_v44  ;;  %v6225_v21 = vpop.f32.mrf.mxu1  ;;  %v10063_v29 = vld [vmem:[%s14772_s5 + $0x20] sm:$0xff] }
 0x79b   : > { %6330 = vmatmul.bf16.gmra.mxu3 %v14987_v41  ;;  %v6226_v40 = vadd.f32 %v6225_v21, %v6182_v59 }
 0x79e   : > { %v6150_v61 = vpop.f32.mrf.mxu3 }
 0x79f   : > { %v6151_v10 = vadd.f32 %v6150_v61, %v14268_v57  ;;  %v10065_v57 = vld [vmem:[%s14772_s5 + $0x30] sm:$0xff] }
 0x7a0   : > { %v6269_v34 = vpop.f32.mrf.mxu2  ;;  %v6184_v43 = vpop.f32.mrf.mxu0  ;;  %7235 = vmatpush.bf16.msra.mxu3 %v10065_v57  ;;  %v10061_v57 = vld [vmem:[%s14772_s5 + $0x10] sm:$0xff] }
 0x7a1   : > { %v14331_v28 = vadd.f32 %v6269_v34, %v6226_v40  ;;  %v6185_v47 = vadd.f32 %v6184_v43, %v6141_v56  ;;  %v6228_v17 = vpop.f32.mrf.mxu1  ;;  %v10062_v34 = vld [vmem:[%s14772_s5 + $0x18] sm:$0xff] }
 0x7a3   : > { %v6229_v32 = vadd.f32 %v6228_v17, %v6185_v47  ;;  %6364 = vmatmul.bf16.gmra.mxu0 %v14971_v27  ;;  %v10098_v17 = vld [vmem:[%s14772_s5 + $0x138] sm:$0xff] }
 0x7a4   : > { %6408 = vmatmul.bf16.gmra.mxu1 %v12028_v12  ;;  %7310 = vmatpush.bf16.msrb.mxu2 %v10098_v17  ;;  %v10096_v17 = vld [vmem:[%s14772_s5 + $0x128] sm:$0xff] }
 0x7a5   : > { %6452 = vmatmul.bf16.gmra.mxu2 %v12535_v33 }
 0x7a6   : > { %v14336_v41 = vpop.f32.mrf.mxu3 }
 0x7a8   : > { %v6272_v44 = vpop.f32.mrf.mxu2  ;;  %v6186_v60 = vpop.f32.mrf.mxu0 }
 0x7a9   : > { %v14338_v20 = vadd.f32 %v6272_v44, %v6229_v32  ;;  %v6187_v42 = vadd.f32 %v6186_v60, %v6143_v5  ;;  %v6230_v56 = vpop.f32.mrf.mxu1 }
 0x7ab   : > { %6335 = vmatmul.bf16.gmra.mxu3 %v14988_v9  ;;  %v6231_v30 = vadd.f32 %v6230_v56, %v6187_v42  ;;  %v10064_v9 = vld [vmem:[%s14772_s5 + $0x28] sm:$0xff] }
 0x7ac   : > { %7236 = vmatpush.bf16.msra.mxu3 %v10064_v9 }
 0x7ae   : > { %v6155_v27 = vpop.f32.mrf.mxu3 }
 0x7af   : > { %v6156_v12 = vadd.f32 %v6155_v27, %v14292_v23 }
 0x7b0   : > { %v6274_v33 = vpop.f32.mrf.mxu2  ;;  %v6189_v13 = vpop.f32.mrf.mxu0  ;;  %7237 = vmatpush.bf16.msra.mxu3 %v10063_v29  ;;  %v10088_v29 = vld [vmem:[%s14772_s5 + $0xe8] sm:$0xff] }
 0x7b1   : > { %v14345_v8 = vadd.f32 %v6274_v33, %v6231_v30  ;;  %v6190_v3 = vadd.f32 %v6189_v13, %v6146_v19  ;;  %v6233_v0 = vpop.f32.mrf.mxu1  ;;  %v15015_v19 = vld [vmem:[#allocation15_spill] sm:$0xff]  ;;  %v15017_v33 = vld [vmem:[#allocation29_spill] sm:$0xff] }
 0x7b2   : > { %v10097_v13 = vld [vmem:[%s14772_s5 + $0x130] sm:$0xff] }
 0x7b3   : > { %v6234_v1 = vadd.f32 %v6233_v0, %v6190_v3  ;;  %6369 = vmatmul.bf16.gmra.mxu0 %v12067_v46  ;;  %7311 = vmatpush.bf16.msrb.mxu2 %v10097_v13 }
 0x7b4   : > { %6413 = vmatmul.bf16.gmra.mxu1 %v14972_v48  ;;  %7238 = vmatpush.bf16.msra.mxu3 %v10062_v34 }
 0x7b5   : > { %6457 = vmatmul.bf16.gmra.mxu2 %v12616_v45 }
 0x7b6   : > { %v14350_v5 = vpop.f32.mrf.mxu3 }
 0x7b7   : > { %7312 = vmatpush.bf16.msrb.mxu2 %v10096_v17 }
 0x7b8   : > { %v6277_v23 = vpop.f32.mrf.mxu2  ;;  %v14357_v4 = vpop.f32.mrf.mxu0  ;;  %7239 = vmatpush.bf16.msra.mxu3 %v10061_v57  ;;  %v10077_v57 = vld [vmem:[%s14772_s5 + $0x90] sm:$0xff] }
 0x7b9   : > { %v14355_v7 = vadd.f32 %v6277_v23, %v6234_v1  ;;  %v14359_v63 = vpop.f32.mrf.mxu1 }
 0x7bb   : > { %6340 = vmatmul.bf16.gmra.mxu3 %v15015_v19  ;;  %v10081_v19 = vld [vmem:[%s14772_s5 + $0xb0] sm:$0xff] }
 0x7be   : > { %v6160_v46 = vpop.f32.mrf.mxu3 }
 0x7bf   : > { %v6161_v48 = vadd.f32 %v6160_v46, %v14303_v37  ;;  %v10060_v46 = vld [vmem:[%s14772_s5 + $0x8] sm:$0xff] }
 0x7c0   : > { %v14363_v45 = vpop.f32.mrf.mxu2  ;;  %v6194_v24 = vpop.f32.mrf.mxu0  ;;  %7240 = vmatpush.bf16.msra.mxu3 %v10060_v46  ;;  %v10084_v46 = vld [vmem:[%s14772_s5 + $0xc8] sm:$0xff] }
 0x7c1   : > { %v6195_v52 = vadd.f32 %v6194_v24, %v6151_v10  ;;  %v6238_v39 = vpop.f32.mrf.mxu1 }
 0x7c3   : > { %v6239_v36 = vadd.f32 %v6238_v39, %v6195_v52  ;;  %6374 = vmatmul.bf16.gmra.mxu0 %v12137_v35 }
 0x7c4   : > { %6418 = vmatmul.bf16.gmra.mxu1 %v12139_v2 }
 0x7c5   : > { %6462 = vmatmul.bf16.gmra.mxu2 %v12715_v49 }
 0x7c6   : > { %v14371_v53 = vpop.f32.mrf.mxu3 }
 0x7c8   : > { %v6282_v37 = vpop.f32.mrf.mxu2  ;;  %v14375_v59 = vpop.f32.mrf.mxu0 }
 0x7c9   : > { %v14373_v26 = vadd.f32 %v6282_v37, %v6239_v36  ;;  %v14377_v21 = vpop.f32.mrf.mxu1  ;;  %v10080_v36 = vld [vmem:[%s14772_s5 + $0xa8] sm:$0xff] }
 0x7ce   : > { %v6165_v40 = vpop.f32.mrf.mxu3 }
 0x7cf   : > { %v6166_v35 = vadd.f32 %v6165_v40, %v14313_v11  ;;  %v10059_v40 = vld [vmem:[%s14772_s5] sm:$0xff] }
 0x7d0   : > { %v14380_v2 = vpop.f32.mrf.mxu2  ;;  %v6199_v49 = vpop.f32.mrf.mxu0  ;;  %7241 = vmatpush.bf16.msra.mxu3 %v10059_v40 }
 0x7d1   : > { %v6200_v58 = vadd.f32 %v6199_v49, %v6156_v12  ;;  %v6243_v61 = vpop.f32.mrf.mxu1  ;;  %v15016_v12 = vld [vmem:[#allocation31_spill] sm:$0xff] }
 0x7d2   : > { %v10087_v49 = vld [vmem:[%s14772_s5 + $0xe0] sm:$0xff] }
 0x7d3   : > { %v6244_v10 = vadd.f32 %v6243_v61, %v6200_v58  ;;  %6379 = vmatmul.bf16.gmra.mxu0 %v12225_v62 }
 0x7d4   : > { %6423 = vmatmul.bf16.gmra.mxu1 %v15012_v6  ;;  %v10082_v6 = vld [vmem:[%s14772_s5 + $0xb8] sm:$0xff] }
 0x7d5   : > { %6467 = vmatmul.bf16.gmra.mxu2 %v12794_v22  ;;  %v10090_v22 = vld [vmem:[%s14772_s5 + $0xf8] sm:$0xff]  ;;  %7272 = vmatpush.bf16.msrb.mxu0 %v10082_v6 }
 0x7d6   : > { %v6167_v32 = vpop.f32.mrf.mxu3  ;;  %7291 = vmatpush.bf16.msrb.mxu1 %v10090_v22 }
 0x7d8   : > { %v6287_v43 = vpop.f32.mrf.mxu2  ;;  %v14390_v11 = vpop.f32.mrf.mxu0 }
 0x7d9   : > { %v14388_v47 = vadd.f32 %v6287_v43, %v6244_v10  ;;  %v14395_v62 = vpop.f32.mrf.mxu1  ;;  %7273 = vmatpush.bf16.msrb.mxu0 %v10081_v19  ;;  %v6168_v10 = vadd.f32 %v6167_v32, %v14317_v51  ;;  %v10086_v51 = vld [vmem:[%s14772_s5 + $0xd8] sm:$0xff] }
 0x7dd   : > { %7274 = vmatpush.bf16.msrb.mxu0 %v10080_v36 }
 0x7de   : > { %v6311_v30 = vpop.f32.mrf.mxu3 }
 0x7e0   : > { %v14403_v44 = vpop.f32.mrf.mxu2  ;;  %v6204_v60 = vpop.f32.mrf.mxu0 }
 0x7e1   : > { %v6205_v42 = vadd.f32 %v6204_v60, %v6161_v48  ;;  %v6248_v56 = vpop.f32.mrf.mxu1  ;;  %v10078_v60 = vld [vmem:[%s14772_s5 + $0x98] sm:$0xff] }
 0x7e3   : > { %v6249_v27 = vadd.f32 %v6248_v56, %v6205_v42  ;;  %6384 = vmatmul.bf16.gmra.mxu0 %v15016_v12  ;;  %v10085_v42 = vld [vmem:[%s14772_s5 + $0xd0] sm:$0xff] }
 0x7e4   : > { %6428 = vmatmul.bf16.gmra.mxu1 %v15017_v33 }
 0x7e5   : > { %6472 = vmatmul.bf16.gmra.mxu2 %v12879_v18  ;;  %v10089_v18 = vld [vmem:[%s14772_s5 + $0xf0] sm:$0xff] }
 0x7e6   : > { %v6313_v23 = vpop.f32.mrf.mxu3  ;;  %7292 = vmatpush.bf16.msrb.mxu1 %v10089_v18  ;;  %v10076_v18 = vld [vmem:[%s14772_s5 + $0x88] sm:$0xff] }
 0x7e7   : > { %v6314_v36 = vadd.f32 %v6313_v23, %v14331_v28 }
 0x7e8   : > { %v6292_v3 = vpop.f32.mrf.mxu2  ;;  %v14416_v1 = vpop.f32.mrf.mxu0 }
 0x7e9   : > { %v14414_v0 = vadd.f32 %v6292_v3, %v6249_v27  ;;  %v14418_v9 = vpop.f32.mrf.mxu1  ;;  %v6312_v27 = vadd.f32 %v6311_v30, %v14324_v25  ;;  %v10095_v25 = vld [vmem:[%s14772_s5 + $0x120] sm:$0xff] }
 0x7ea   : > { %7293 = vmatpush.bf16.msrb.mxu1 %v10088_v29  ;;  %v10075_v30 = vld [vmem:[%s14772_s5 + $0x80] sm:$0xff]  ;;  %7313 = vmatpush.bf16.msrb.mxu2 %v10095_v25 }
 0x7eb   : > { %v10071_v25 = vld [vmem:[%s14772_s5 + $0x60] sm:$0xff] }
 0x7ee   : > { %v6316_v58 = vpop.f32.mrf.mxu3  ;;  %7294 = vmatpush.bf16.msrb.mxu1 %v10087_v49 }
 0x7f0   : > { %v14429_v48 = vpop.f32.mrf.mxu2  ;;  %v6209_v24 = vpop.f32.mrf.mxu0 }
 0x7f1   : > { %v6210_v52 = vadd.f32 %v6209_v24, %v6166_v35  ;;  %v6253_v39 = vpop.f32.mrf.mxu1  ;;  %v10079_v35 = vld [vmem:[%s14772_s5 + $0xa0] sm:$0xff] }
 0x7f2   : > { %7275 = vmatpush.bf16.msrb.mxu0 %v10079_v35  ;;  %7295 = vmatpush.bf16.msrb.mxu1 %v10086_v51  ;;  %v6478_v35 = vmax.f32 %v13722_v55, 0.0  ;;  %v10093_v55 = vld [vmem:[%s14772_s5 + $0x110] sm:$0xff] }
 0x7f3   : > { %v6254_v37 = vadd.f32 %v6253_v39, %v6210_v52  ;;  %v10083_v52 = vld [vmem:[%s14772_s5 + $0xc0] sm:$0xff] }
 0x7f6   : > { %7276 = vmatpush.bf16.msrb.mxu0 %v10078_v60  ;;  %v6318_v13 = vpop.f32.mrf.mxu3  ;;  %7296 = vmatpush.bf16.msrb.mxu1 %v10085_v42  ;;  %v6317_v60 = vadd.f32 %v6316_v58, %v14338_v20  ;;  %v6480_v42 = vmax.f32 %v13743_v50, 0.0 }
 0x7f8   : > { %v6297_v61 = vpop.f32.mrf.mxu2  ;;  %v6211_v43 = vpop.f32.mrf.mxu0 }
 0x7f9   : > { %v14447_v34 = vadd.f32 %v6297_v61, %v6254_v37  ;;  %v6255_v6 = vpop.f32.mrf.mxu1  ;;  %v6212_v22 = vadd.f32 %v6211_v43, %v6168_v10  ;;  %v10074_v10 = vld [vmem:[%s14772_s5 + $0x78] sm:$0xff] }
 0x7fa   : > { %7277 = vmatpush.bf16.msrb.mxu0 %v10077_v57  ;;  %7297 = vmatpush.bf16.msrb.mxu1 %v10084_v46  ;;  %v10094_v43 = vld [vmem:[%s14772_s5 + $0x118] sm:$0xff] }
 0x7fb   : > { %v6256_v32 = vadd.f32 %v6255_v6, %v6212_v22  ;;  %7253 = vmatpush.bf16.msrb.mxu3 %v10074_v10  ;;  %7314 = vmatpush.bf16.msrb.mxu2 %v10094_v43  ;;  %v10073_v6 = vld [vmem:[%s14772_s5 + $0x70] sm:$0xff]  ;;  %v10070_v43 = vld [vmem:[%s14772_s5 + $0x58] sm:$0xff] }
 0x7fe   : > { %7278 = vmatpush.bf16.msrb.mxu0 %v10076_v18  ;;  %7298 = vmatpush.bf16.msrb.mxu1 %v10083_v52  ;;  %v6321_v17 = vpop.f32.mrf.mxu3  ;;  %v6319_v52 = vadd.f32 %v6318_v13, %v14345_v8  ;;  %v10114_v8 = vld [vmem:[%s14772_s5 + $0x1b8] sm:$0xff] }
 0x7ff   : > { %7254 = vmatpush.bf16.msrb.mxu3 %v10073_v6  ;;  %7315 = vmatpush.bf16.msrb.mxu2 %v10093_v55  ;;  %v10122_v13 = vld [vmem:[%s14772_s5 + $0x1f8] sm:$0xff]  ;;  %v10069_v6 = vld [vmem:[%s14772_s5 + $0x50] sm:$0xff] }
 0x800   : > { %v6299_v56 = vpop.f32.mrf.mxu2  ;;  %v6355_v33 = vpop.f32.mrf.mxu0  ;;  %v10113_v55 = vld [vmem:[%s14772_s5 + $0x1b0] sm:$0xff] }
 0x801   : > { %v14465_v12 = vadd.f32 %v6299_v56, %v6256_v32  ;;  %v6399_v3 = vpop.f32.mrf.mxu1  ;;  %v6356_v19 = vadd.f32 %v6355_v33, %v6312_v27  ;;  %v10072_v33 = vld [vmem:[%s14772_s5 + $0x68] sm:$0xff] }
 0x802   : > { %7279 = vmatpush.bf16.msrb.mxu0 %v10075_v30  ;;  %v10091_v30 = vld [vmem:[%s14772_s5 + $0x100] sm:$0xff]  ;;  %7367 = vmatpush.bf16.msra.mxu1 %v10122_v13 }
 0x803   : > { %v6400_v24 = vadd.f32 %v6399_v3, %v6356_v19  ;;  %v10092_v3 = vld [vmem:[%s14772_s5 + $0x108] sm:$0xff]  ;;  %7255 = vmatpush.bf16.msrb.mxu3 %v10072_v33 }
 0x804   : > { %7316 = vmatpush.bf16.msrb.mxu2 %v10092_v3 }
 0x806   : > { %v14504_v20 = vpop.f32.mrf.mxu3  ;;  %7348 = vmatpush.bf16.msra.mxu0 %v10114_v8 }
 0x807   : > { %7256 = vmatpush.bf16.msrb.mxu3 %v10071_v25 }
 0x808   : > { %v6443_v39 = vpop.f32.mrf.mxu2  ;;  %v6357_v37 = vpop.f32.mrf.mxu0  ;;  %7317 = vmatpush.bf16.msrb.mxu2 %v10091_v30 }
 0x809   : > { %v6444_v29 = vadd.f32 %v6443_v39, %v6400_v24  ;;  %v6401_v40 = vpop.f32.mrf.mxu1  ;;  %v6358_v61 = vadd.f32 %v6357_v37, %v6314_v36 }
 0x80a   : > { %7349 = vmatpush.bf16.msra.mxu0 %v10113_v55 }
 0x80b   : > { %v6479_v49 = vmax.f32 %v6444_v29, 0.0  ;;  %v6402_v23 = vadd.f32 %v6401_v40, %v6358_v61  ;;  %7257 = vmatpush.bf16.msrb.mxu3 %v10070_v43  ;;  %v15019_v43 = vld [vmem:[#allocation8_spill] sm:$0xff] }
 0x80c   : > { %v6486_v8 = vmax.f32 %v15019_v43, 0.0 }
 0x80d   : > { %v6506_v28 = vpack.c.bf16 %v6479_v49, %v6478_v35  ;;  %v6482_v49 = vmax.f32 %v13762_v38, 0.0  ;;  %v6148_v38 = vadd.f32 %v14322_v14, %v14255_v16  ;;  %v6322_v16 = vadd.f32 %v6321_v17, %v14355_v7  ;;  %v10120_v7 = vld [vmem:[%s14772_s5 + $0x1e8] sm:$0xff] }
 0x80f   : > { %v6524_v58 = vunpack.c.l.b16 %v6506_v28  ;;  %v6525_v18 = vunpack.c.h.b16 %v6506_v28  ;;  %7258 = vmatpush.bf16.msrb.mxu3 %v10069_v6  ;;  %v10130_v6 = vld [vmem:[%s14772_s5 + $0x238] sm:$0xff] }
 0x810   : > { %v6445_v22 = vpop.f32.mrf.mxu2  ;;  %v6360_v32 = vpop.f32.mrf.mxu0  ;;  %7386 = vmatpush.bf16.msra.mxu2 %v10130_v6  ;;  %v6158_v6 = vadd.f32 %v14350_v5, %v14297_v54  ;;  %v15022_v5 = vld [vmem:[#allocation10_spill] sm:$0xff] }
 0x811   : > { %v6446_v51 = vadd.f32 %v6445_v22, %v6402_v23  ;;  %v6404_v57 = vpop.f32.mrf.mxu1  ;;  %v6361_v27 = vadd.f32 %v6360_v32, %v6317_v60  ;;  %v10121_v22 = vld [vmem:[%s14772_s5 + $0x1f0] sm:$0xff]  ;;  %v6192_v60 = vadd.f32 %v14357_v4, %v6148_v38  ;;  %v10112_v4 = vld [vmem:[%s14772_s5 + $0x1a8] sm:$0xff]  ;;  %v10110_v38 = vld [vmem:[%s14772_s5 + $0x198] sm:$0xff] }
 0x812   : > { %7368 = vmatpush.bf16.msra.mxu1 %v10121_v22  ;;  %7350 = vmatpush.bf16.msra.mxu0 %v10112_v4  ;;  %v6153_v22 = vadd.f32 %v14336_v41, %v14285_v31  ;;  %v10129_v31 = vld [vmem:[%s14772_s5 + $0x230] sm:$0xff] }
 0x813   : > { %v6481_v56 = vmax.f32 %v6446_v51, 0.0  ;;  %v6405_v50 = vadd.f32 %v6404_v57, %v6361_v27  ;;  %v6326_v51 = vpop.f32.mrf.mxu3  ;;  %v6236_v17 = vadd.f32 %v14359_v63, %v6192_v60  ;;  %v10119_v63 = vld [vmem:[%s14772_s5 + $0x1e0] sm:$0xff] }
 0x814   : > { %v6327_v41 = vadd.f32 %v6326_v51, %v14373_v26  ;;  %7387 = vmatpush.bf16.msra.mxu2 %v10129_v31  ;;  %v10116_v26 = vld [vmem:[%s14772_s5 + $0x1c8] sm:$0xff] }
 0x815   : > { %v6507_v19 = vpack.c.bf16 %v6481_v56, %v6480_v42  ;;  %v15018_v56 = vld [vmem:[#allocation19_spill] sm:$0xff] }
 0x816   : > { %v6484_v27 = vmax.f32 %v15018_v56, 0.0  ;;  %7369 = vmatpush.bf16.msra.mxu1 %v10120_v7 }
 0x817   : > { %v6526_v46 = vunpack.c.l.b16 %v6507_v19  ;;  %v6527_v24 = vunpack.c.h.b16 %v6507_v19  ;;  %v10068_v19 = vld [vmem:[%s14772_s5 + $0x48] sm:$0xff] }
 0x818   : > { %v6448_v39 = vpop.f32.mrf.mxu2  ;;  %v6362_v40 = vpop.f32.mrf.mxu0  ;;  %7259 = vmatpush.bf16.msrb.mxu3 %v10068_v19 }
 0x819   : > { %v6532_v36 = vpack.c.b16 %v6526_v46, %v6524_v58  ;;  %v14513_v29 = vpack.c.b16 %v6527_v24, %v6525_v18  ;;  %v6449_v37 = vadd.f32 %v6448_v39, %v6405_v50  ;;  %v6406_v35 = vpop.f32.mrf.mxu1  ;;  %v6363_v10 = vadd.f32 %v6362_v40, %v6319_v52  ;;  %v10067_v52 = vld [vmem:[%s14772_s5 + $0x40] sm:$0xff] }
 0x81a   : > { %v6280_v18 = vadd.f32 %v14363_v45, %v6236_v17  ;;  %v10111_v39 = vld [vmem:[%s14772_s5 + $0x1a0] sm:$0xff]  ;;  %7370 = vmatpush.bf16.msra.mxu1 %v10119_v63  ;;  %v10108_v17 = vld [vmem:[%s14772_s5 + $0x188] sm:$0xff] }
 0x81b   : > { %v6483_v61 = vmax.f32 %v6449_v37, 0.0  ;;  %7242 = vmatmul.bf16.vlgmr.msra.gmra.mxu3 %v6532_v36  ;;  %v6407_v23 = vadd.f32 %v6406_v35, %v6363_v10  ;;  %7351 = vmatpush.bf16.msra.mxu0 %v10111_v39  ;;  %v10107_v63 = vld [vmem:[%s14772_s5 + $0x180] sm:$0xff] }
 0x81c   : > { %v6324_v45 = vadd.f32 %v14504_v20, %v6280_v18  ;;  %7260 = vmatpush.bf16.msrb.mxu3 %v10067_v52  ;;  %v10106_v20 = vld [vmem:[%s14772_s5 + $0x178] sm:$0xff]  ;;  %v10128_v18 = vld [vmem:[%s14772_s5 + $0x228] sm:$0xff] }
 0x81d   : > { %v6508_v28 = vpack.c.bf16 %v6483_v61, %v6482_v49  ;;  %v6328_v61 = vpop.f32.mrf.mxu3  ;;  %7388 = vmatpush.bf16.msra.mxu2 %v10128_v18 }
 0x81f   : > { %v6544_v46 = vunpack.c.l.b16 %v6508_v28  ;;  %v6545_v24 = vunpack.c.h.b16 %v6508_v28  ;;  %7352 = vmatpush.bf16.msra.mxu0 %v10110_v38  ;;  %v10126_v38 = vld [vmem:[%s14772_s5 + $0x218] sm:$0xff] }
 0x820   : > { %v6450_v32 = vpop.f32.mrf.mxu2  ;;  %v6365_v57 = vpop.f32.mrf.mxu0  ;;  %7329 = vmatpush.bf16.msra.mxu3 %v10106_v20 }
 0x821   : > { %v6451_v14 = vadd.f32 %v6450_v32, %v6407_v23  ;;  %v6409_v42 = vpop.f32.mrf.mxu1  ;;  %v6366_v3 = vadd.f32 %v6365_v57, %v6322_v16  ;;  %v10118_v23 = vld [vmem:[%s14772_s5 + $0x1d8] sm:$0xff]  ;;  %v10105_v32 = vld [vmem:[%s14772_s5 + $0x170] sm:$0xff]  ;;  %v6197_v57 = vadd.f32 %v14375_v59, %v6153_v22  ;;  %v10104_v59 = vld [vmem:[%s14772_s5 + $0x168] sm:$0xff] }
 0x822   : > { %7371 = vmatpush.bf16.msra.mxu1 %v10118_v23  ;;  %v10109_v16 = vld [vmem:[%s14772_s5 + $0x190] sm:$0xff] }
 0x823   : > { %v6485_v33 = vmax.f32 %v6451_v14, 0.0  ;;  %v6410_v30 = vadd.f32 %v6409_v42, %v6366_v3  ;;  %v10117_v14 = vld [vmem:[%s14772_s5 + $0x1d0] sm:$0xff]  ;;  %7353 = vmatpush.bf16.msra.mxu0 %v10109_v16  ;;  %v15020_v3 = vld [vmem:[#allocation11_spill] sm:$0xff]  ;;  %v6241_v51 = vadd.f32 %v14377_v21, %v6197_v57  ;;  %v6202_v16 = vadd.f32 %v14390_v11, %v6158_v6  ;;  %v10124_v11 = vld [vmem:[%s14772_s5 + $0x208] sm:$0xff] }
 0x824   : > { %7330 = vmatpush.bf16.msra.mxu3 %v10105_v32  ;;  %v6488_v19 = vmax.f32 %v15020_v3, 0.0  ;;  %v10103_v21 = vld [vmem:[%s14772_s5 + $0x160] sm:$0xff]  ;;  %v10125_v32 = vld [vmem:[%s14772_s5 + $0x210] sm:$0xff] }
 0x825   : > { %v6509_v58 = vpack.c.bf16 %v6485_v33, %v6484_v27  ;;  %v6246_v3 = vadd.f32 %v14395_v62, %v6202_v16  ;;  %v10135_v16 = vld [vmem:[%s14772_s5 + $0x260] sm:$0xff] }
 0x826   : > { %7372 = vmatpush.bf16.msra.mxu1 %v10117_v14 }
 0x827   : > { %v6546_v50 = vunpack.c.l.b16 %v6509_v58  ;;  %v6547_v25 = vunpack.c.h.b16 %v6509_v58  ;;  %v6331_v58 = vpop.f32.mrf.mxu3  ;;  %7354 = vmatpush.bf16.msra.mxu0 %v10108_v17 }
 0x828   : > { %v6453_v36 = vpop.f32.mrf.mxu2  ;;  %v6367_v49 = vpop.f32.mrf.mxu0  ;;  %7331 = vmatpush.bf16.msra.mxu3 %v10104_v59  ;;  %v6332_v57 = vadd.f32 %v6331_v58, %v14388_v47  ;;  %v10123_v58 = vld [vmem:[%s14772_s5 + $0x200] sm:$0xff] }
 0x829   : > { %v6552_v37 = vpack.c.b16 %v6546_v50, %v6544_v46  ;;  %v6553_v40 = vpack.c.b16 %v6547_v25, %v6545_v24  ;;  %v6454_v35 = vadd.f32 %v6453_v36, %v6410_v30  ;;  %v6411_v10 = vpop.f32.mrf.mxu1  ;;  %v6368_v28 = vadd.f32 %v6367_v49, %v6324_v45  ;;  %v10115_v45 = vld [vmem:[%s14772_s5 + $0x1c0] sm:$0xff] }
 0x82a   : > { %v6285_v24 = vadd.f32 %v14380_v2, %v6241_v51  ;;  %7373 = vmatpush.bf16.msra.mxu1 %v10116_v26  ;;  %v10099_v51 = vld [vmem:[%s14772_s5 + $0x140] sm:$0xff] }
 0x82b   : > { %v6487_v13 = vmax.f32 %v6454_v35, 0.0  ;;  %7280 = vmatmul.bf16.vlgmr.msrb.gmra.mxu0 %v6552_v37  ;;  %7299 = vmatmul.bf16.vlgmr.msrb.gmra.mxu1 %v6553_v40  ;;  %v6412_v60 = vadd.f32 %v6411_v10, %v6368_v28  ;;  %v10127_v37 = vld [vmem:[%s14772_s5 + $0x220] sm:$0xff] }
 0x82c   : > { %v6329_v2 = vadd.f32 %v6328_v61, %v6285_v24  ;;  %7332 = vmatpush.bf16.msra.mxu3 %v10103_v21  ;;  %7355 = vmatpush.bf16.msra.mxu0 %v10107_v63  ;;  %v10102_v61 = vld [vmem:[%s14772_s5 + $0x158] sm:$0xff] }
 0x82d   : > { %v6510_v55 = vpack.c.bf16 %v6487_v13, %v6486_v8  ;;  %7389 = vmatpush.bf16.msra.mxu2 %v10127_v37  ;;  %v15021_v8 = vld [vmem:[#allocation22_spill] sm:$0xff] }
 0x82e   : > { %7374 = vmatpush.bf16.msra.mxu1 %v10115_v45  ;;  %v6490_v13 = vmax.f32 %v15021_v8, 0.0  ;;  %v10138_v45 = vld [vmem:[%s14772_s5 + $0x278] sm:$0xff] }
 0x82f   : > { %v6528_v50 = vunpack.c.l.b16 %v6510_v55  ;;  %v6529_v25 = vunpack.c.h.b16 %v6510_v55  ;;  %v6333_v55 = vpop.f32.mrf.mxu3 }
 0x830   : > { %v6455_v42 = vpop.f32.mrf.mxu2  ;;  %v6370_v27 = vpop.f32.mrf.mxu0  ;;  %7333 = vmatpush.bf16.msra.mxu3 %v10102_v61 }
 0x831   : > { %v6456_v56 = vadd.f32 %v6455_v42, %v6412_v60  ;;  %v6414_v33 = vpop.f32.mrf.mxu1  ;;  %v6371_v7 = vadd.f32 %v6370_v27, %v6327_v41  ;;  %7390 = vmatpush.bf16.msra.mxu2 %v10126_v38  ;;  %v10101_v60 = vld [vmem:[%s14772_s5 + $0x150] sm:$0xff]  ;;  %v6492_v41 = vmax.f32 %v15022_v5, 0.0 }
 0x833   : > { %v6489_v4 = vmax.f32 %v6456_v56, 0.0  ;;  %v6415_v39 = vadd.f32 %v6414_v33, %v6371_v7  ;;  %v10100_v33 = vld [vmem:[%s14772_s5 + $0x148] sm:$0xff] }
 0x834   : > { %7334 = vmatpush.bf16.msra.mxu3 %v10101_v60 }
 0x835   : > { %v6511_v46 = vpack.c.bf16 %v6489_v4, %v6488_v19  ;;  %7391 = vmatpush.bf16.msra.mxu2 %v10125_v32  ;;  %v6290_v19 = vadd.f32 %v14403_v44, %v6246_v3 }
 0x837   : > { %v6530_v30 = vunpack.c.l.b16 %v6511_v46  ;;  %v6531_v52 = vunpack.c.h.b16 %v6511_v46  ;;  %v6336_v18 = vpop.f32.mrf.mxu3  ;;  %v6334_v46 = vadd.f32 %v6333_v55, %v6290_v19 }
 0x838   : > { %v6458_v36 = vpop.f32.mrf.mxu2  ;;  %v6372_v35 = vpop.f32.mrf.mxu0  ;;  %7335 = vmatpush.bf16.msra.mxu3 %v10100_v33  ;;  %v10134_v33 = vld [vmem:[%s14772_s5 + $0x258] sm:$0xff] }
 0x839   : > { %v6459_v40 = vadd.f32 %v6458_v36, %v6415_v39  ;;  %v6534_v49 = vpack.c.b16 %v6530_v30, %v6528_v50  ;;  %v14616_v10 = vpack.c.b16 %v6531_v52, %v6529_v25  ;;  %v6416_v43 = vpop.f32.mrf.mxu1  ;;  %v6373_v20 = vadd.f32 %v6372_v35, %v6329_v2  ;;  %7392 = vmatpush.bf16.msra.mxu2 %v10124_v11  ;;  %v15023_v52 = vld [vmem:[#allocation23_spill] sm:$0xff] }
 0x83a   : > { %v6494_v39 = vmax.f32 %v15023_v52, 0.0  ;;  %v6163_v36 = vadd.f32 %v14371_v53, %v14307_v15  ;;  %v10136_v15 = vld [vmem:[%s14772_s5 + $0x268] sm:$0xff] }
 0x83b   : > { %v6491_v28 = vmax.f32 %v6459_v40, 0.0  ;;  %7247 = vmatmul.bf16.gmra.mxu3 %v6534_v49  ;;  %7318 = vmatmul.bf16.vlgmr.msrb.gmra.mxu2 %v6534_v49  ;;  %v6417_v22 = vadd.f32 %v6416_v43, %v6373_v20  ;;  %v10137_v40 = vld [vmem:[%s14772_s5 + $0x270] sm:$0xff]  ;;  %v15024_v20 = vld [vmem:[#allocation14_spill] sm:$0xff] }
 0x83c   : > { %7336 = vmatpush.bf16.msra.mxu3 %v10099_v51  ;;  %v6207_v35 = vadd.f32 %v14416_v1, %v6163_v36  ;;  %v6496_v61 = vmax.f32 %v15024_v20, 0.0  ;;  %v15026_v51 = vld [vmem:[#allocation20_spill] sm:$0xff] }
 0x83d   : > { %v6512_v23 = vpack.c.bf16 %v6491_v28, %v6490_v13  ;;  %7393 = vmatpush.bf16.msra.mxu2 %v10123_v58  ;;  %v6500_v58 = vmax.f32 %v15026_v51, 0.0 }
 0x83e   : > { %v6251_v53 = vadd.f32 %v14418_v9, %v6207_v35 }
 0x83f   : > { %v6548_v4 = vunpack.c.l.b16 %v6512_v23  ;;  %v6549_v7 = vunpack.c.h.b16 %v6512_v23  ;;  %v6338_v13 = vpop.f32.mrf.mxu3 }
 0x840   : > { %v6460_v14 = vpop.f32.mrf.mxu2  ;;  %v6375_v31 = vpop.f32.mrf.mxu0  ;;  %v6295_v1 = vadd.f32 %v14429_v48, %v6251_v53 }
 0x841   : > { %v6461_v42 = vadd.f32 %v6460_v14, %v6417_v22  ;;  %v6419_v54 = vpop.f32.mrf.mxu1  ;;  %v6376_v27 = vadd.f32 %v6375_v31, %v6332_v57 }
 0x842   : > { %v6339_v57 = vadd.f32 %v6338_v13, %v6295_v1 }
 0x843   : > { %v6493_v56 = vmax.f32 %v6461_v42, 0.0  ;;  %v6420_v26 = vadd.f32 %v6419_v54, %v6376_v27 }
 0x845   : > { %v6513_v47 = vpack.c.bf16 %v6493_v56, %v6492_v41  ;;  %v15025_v41 = vld [vmem:[#allocation13_spill] sm:$0xff] }
 0x846   : > { %v6498_v48 = vmax.f32 %v15025_v41, 0.0 }
 0x847   : > { %v6550_v59 = vunpack.c.l.b16 %v6513_v47  ;;  %v6551_v17 = vunpack.c.h.b16 %v6513_v47  ;;  %v6341_v11 = vpop.f32.mrf.mxu3  ;;  %v10133_v47 = vld [vmem:[%s14772_s5 + $0x250] sm:$0xff] }
 0x848   : > { %v6463_v62 = vpop.f32.mrf.mxu2  ;;  %v6377_v50 = vpop.f32.mrf.mxu0 }
 0x849   : > { %v6464_v24 = vadd.f32 %v6463_v62, %v6420_v26  ;;  %v6554_v44 = vpack.c.b16 %v6550_v59, %v6548_v4  ;;  %v6555_v25 = vpack.c.b16 %v6551_v17, %v6549_v7  ;;  %v6421_v30 = vpop.f32.mrf.mxu1  ;;  %v6378_v63 = vadd.f32 %v6377_v50, %v6334_v46  ;;  %v10132_v26 = vld [vmem:[%s14772_s5 + $0x248] sm:$0xff]  ;;  %v10131_v50 = vld [vmem:[%s14772_s5 + $0x240] sm:$0xff] }
 0x84a   : > { %v6342_v7 = vadd.f32 %v6341_v11, %v14447_v34 }
 0x84b   : > { %v6495_v21 = vmax.f32 %v6464_v24, 0.0  ;;  %7261 = vmatmul.bf16.vlgmr.msrb.gmra.mxu3 %v14513_v29  ;;  %7285 = vmatmul.bf16.gmra.mxu0 %v6554_v44  ;;  %v6422_v37 = vadd.f32 %v6421_v30, %v6378_v63  ;;  %v6337_v29 = vadd.f32 %v6336_v18, %v14414_v0 }
 0x84c   : > { %7304 = vmatmul.bf16.gmra.mxu1 %v6555_v25  ;;  %7405 = vmatpush.bf16.msrb.mxu3 %v10138_v45 }
 0x84d   : > { %v6514_v2 = vpack.c.bf16 %v6495_v21, %v6494_v39 }
 0x84f   : > { %v6562_v0 = vunpack.c.l.b16 %v6514_v2  ;;  %v6563_v55 = vunpack.c.h.b16 %v6514_v2 }
 0x850   : > { %v6465_v49 = vpop.f32.mrf.mxu2  ;;  %v6380_v8 = vpop.f32.mrf.mxu0  ;;  %7406 = vmatpush.bf16.msrb.mxu3 %v10137_v40  ;;  %v15027_v40 = vld [vmem:[#allocation6_spill] sm:$0xff] }
 0x851   : > { %v6466_v43 = vadd.f32 %v6465_v49, %v6422_v37  ;;  %v6424_v28 = vpop.f32.mrf.mxu1  ;;  %v6381_v23 = vadd.f32 %v6380_v8, %v6337_v29  ;;  %v6502_v35 = vmax.f32 %v15027_v40, 0.0  ;;  %v10150_v40 = vld [vmem:[%s14774_s7 + $0x58] sm:$0xff] }
 0x853   : > { %v6497_v38 = vmax.f32 %v6466_v43, 0.0  ;;  %v6425_v32 = vadd.f32 %v6424_v28, %v6381_v23 }
 0x854   : > { %7407 = vmatpush.bf16.msrb.mxu3 %v10136_v15 }
 0x855   : > { %v6515_v6 = vpack.c.bf16 %v6497_v38, %v6496_v61 }
 0x857   : > { %v6564_v22 = vunpack.c.l.b16 %v6515_v6  ;;  %v6565_v60 = vunpack.c.h.b16 %v6515_v6 }
 0x858   : > { %v6468_v14 = vpop.f32.mrf.mxu2  ;;  %v6382_v31 = vpop.f32.mrf.mxu0  ;;  %7408 = vmatpush.bf16.msrb.mxu3 %v10135_v16 }
 0x859   : > { %v6469_v42 = vadd.f32 %v6468_v14, %v6425_v32  ;;  %v6566_v54 = vpack.c.b16 %v6564_v22, %v6562_v0  ;;  %v14671_v9 = vpack.c.b16 %v6565_v60, %v6563_v55  ;;  %v6426_v5 = vpop.f32.mrf.mxu1  ;;  %v6383_v27 = vadd.f32 %v6382_v31, %v6339_v57 }
 0x85b   : > { %v6499_v56 = vmax.f32 %v6469_v42, 0.0  ;;  %7266 = vmatmul.bf16.gmra.mxu3 %v14616_v10  ;;  %7323 = vmatmul.bf16.gmra.mxu2 %v6566_v54  ;;  %v6427_v19 = vadd.f32 %v6426_v5, %v6383_v27  ;;  %v10146_v5 = vld [vmem:[%s14774_s7 + $0x38] sm:$0xff]  ;;  %v10144_v27 = vld [vmem:[%s14774_s7 + $0x28] sm:$0xff] }
 0x85c   : > { %7356 = vmatmul.bf16.vlgmr.msra.gmra.mxu0 %v6554_v44  ;;  %7375 = vmatmul.bf16.vlgmr.msra.gmra.mxu1 %v6555_v25  ;;  %v6343_v44 = vpop.f32.mrf.mxu3 }
 0x85d   : > { %v6516_v3 = vpack.c.bf16 %v6499_v56, %v6498_v48  ;;  %7409 = vmatpush.bf16.msrb.mxu3 %v10134_v33  ;;  %v6344_v63 = vadd.f32 %v6343_v44, %v14465_v12  ;;  %v15028_v12 = vld [vmem:[#allocation26_spill] sm:$0xff]  ;;  %7576 = vmatpush.bf16.msrb.mxu0 %v10146_v5 }
 0x85e   : > { %v6504_v61 = vmax.f32 %v15028_v12, 0.0 }
 0x85f   : > { %v6572_v34 = vunpack.c.l.b16 %v6516_v3  ;;  %v6573_v25 = vunpack.c.h.b16 %v6516_v3  ;;  %v10143_v3 = vld [vmem:[%s14774_s7 + $0x20] sm:$0xff] }
 0x860   : > { %v6470_v4 = vpop.f32.mrf.mxu2  ;;  %v6385_v17 = vpop.f32.mrf.mxu0 }
 0x861   : > { %v6471_v59 = vadd.f32 %v6470_v4, %v6427_v19  ;;  %7410 = vmatpush.bf16.msrb.mxu3 %v10133_v47  ;;  %v6386_v62 = vadd.f32 %v6385_v17, %v6342_v7  ;;  %v6429_v46 = vpop.f32.mrf.mxu1  ;;  %v10181_v4 = vld [vmem:[%s14773_s6] ss:$0 sm:$0xff]  ;;  %v10154_v7 = vld [vmem:[%s14774_s7 + $0x78] sm:$0xff] }
 0x862   : > { %7590 = vmatpush.bf16.msrb.mxu1 %v10154_v7 }
 0x863   : > { %v6501_v18 = vmax.f32 %v6471_v59, 0.0  ;;  %v6430_v39 = vadd.f32 %v6429_v46, %v6386_v62  ;;  %v10142_v59 = vld [vmem:[%s14774_s7 + $0x18] sm:$0xff]  ;;  %v10141_v62 = vld [vmem:[%s14774_s7 + $0x10] sm:$0xff] }
 0x865   : > { %v6517_v24 = vpack.c.bf16 %v6501_v18, %v6500_v58  ;;  %7411 = vmatpush.bf16.msrb.mxu3 %v10132_v26  ;;  %v10153_v18 = vld [vmem:[%s14774_s7 + $0x70] sm:$0xff] }
 0x866   : > { %7591 = vmatpush.bf16.msrb.mxu1 %v10153_v18 }
 0x867   : > { %v6574_v30 = vunpack.c.l.b16 %v6517_v24  ;;  %v6575_v52 = vunpack.c.h.b16 %v6517_v24 }
 0x868   : > { %v6473_v21 = vpop.f32.mrf.mxu2  ;;  %v6387_v2 = vpop.f32.mrf.mxu0 }
 0x869   : > { %v6474_v45 = vadd.f32 %v6473_v21, %v6430_v39  ;;  %v6576_v36 = vpack.c.b16 %v6574_v30, %v6572_v34  ;;  %v6577_v37 = vpack.c.b16 %v6575_v52, %v6573_v25  ;;  %7412 = vmatpush.bf16.msrb.mxu3 %v10131_v50  ;;  %v6388_v29 = vadd.f32 %v6387_v2, %v6344_v63  ;;  %v6431_v8 = vpop.f32.mrf.mxu1  ;;  %v10152_v34 = vld [vmem:[%s14774_s7 + $0x68] sm:$0xff]  ;;  %v10151_v21 = vld [vmem:[%s14774_s7 + $0x60] sm:$0xff] }
 0x86a   : > { %v10140_v25 = vld [vmem:[%s14774_s7 + $0x8] sm:$0xff]  ;;  %7592 = vmatpush.bf16.msrb.mxu1 %v10152_v34  ;;  %v10139_v63 = vld [vmem:[%s14774_s7] sm:$0xff] }
 0x86b   : > { %v6503_v49 = vmax.f32 %v6474_v45, 0.0  ;;  %7337 = vmatmul.bf16.vlgmr.msra.gmra.mxu3 %v14616_v10  ;;  %7394 = vmatmul.bf16.vlgmr.msra.gmra.mxu2 %v6566_v54  ;;  %v6432_v13 = vadd.f32 %v6431_v8, %v6388_v29 }
 0x86c   : > { %7361 = vmatmul.bf16.gmra.mxu0 %v6576_v36  ;;  %7380 = vmatmul.bf16.gmra.mxu1 %v6577_v37 }
 0x86d   : > { %v6518_v43 = vpack.c.bf16 %v6503_v49, %v6502_v35 }
 0x86e   : > { %7593 = vmatpush.bf16.msrb.mxu1 %v10151_v21 }
 0x86f   : > { %v6582_v15 = vunpack.c.l.b16 %v6518_v43  ;;  %v6583_v53 = vunpack.c.h.b16 %v6518_v43 }
 0x870   : > { %v6475_v28 = vpop.f32.mrf.mxu2 }
 0x871   : > { %v6476_v20 = vadd.f32 %v6475_v28, %v6432_v13  ;;  %v10149_v13 = vld [vmem:[%s14774_s7 + $0x50] sm:$0xff] }
 0x872   : > { %7594 = vmatpush.bf16.msrb.mxu1 %v10150_v40 }
 0x873   : > { %v6505_v38 = vmax.f32 %v6476_v20, 0.0 }
 0x875   : > { %v6519_v23 = vpack.c.bf16 %v6505_v38, %v6504_v61 }
 0x876   : > { %7595 = vmatpush.bf16.msrb.mxu1 %v10149_v13 }
 0x877   : > { %v6584_v6 = vunpack.c.l.b16 %v6519_v23  ;;  %v6585_v1 = vunpack.c.h.b16 %v6519_v23 }
 0x879   : > { %v6586_v0 = vpack.c.b16 %v6584_v6, %v6582_v15  ;;  %v6587_v55 = vpack.c.b16 %v6585_v1, %v6583_v53  ;;  %v10148_v6 = vld [vmem:[%s14774_s7 + $0x48] sm:$0xff] }
 0x87a   : > { %7596 = vmatpush.bf16.msrb.mxu1 %v10148_v6 }
 0x87b   : > { %7342 = vmatmul.bf16.gmra.mxu3 %v14671_v9  ;;  %7399 = vmatmul.bf16.gmra.mxu2 %v6586_v0 }
 0x88b   : > { %7413 = vmatmul.bf16.vlgmr.msrb.gmra.mxu3 %v14671_v9  ;;  %v10145_v9 = vld [vmem:[%s14774_s7 + $0x30] sm:$0xff] }
 0x88c   : > { %7577 = vmatpush.bf16.msrb.mxu0 %v10145_v9 }
 0x890   : > { %7578 = vmatpush.bf16.msrb.mxu0 %v10144_v27 }
 0x894   : > { %7579 = vmatpush.bf16.msrb.mxu0 %v10143_v3 }
 0x898   : > { %7580 = vmatpush.bf16.msrb.mxu0 %v10142_v59 }
 0x89b   : > { %7418 = vmatmul.bf16.gmra.mxu3 %v6587_v55 }
 0x89c   : > { %7581 = vmatpush.bf16.msrb.mxu0 %v10141_v62 }
 0x89e   : > { %v7243_v10 = vpop.f32.mrf.mxu3 }
 0x89f   : > { %v7244_v26 = vadd.f32 %v10181_v4, %v7243_v10 }
 0x8a0   : > { %7582 = vmatpush.bf16.msrb.mxu0 %v10140_v25 }
 0x8a4   : > { %7583 = vmatpush.bf16.msrb.mxu0 %v10139_v63 }
 0x8a6   : > { %v7245_v22 = vpop.f32.mrf.mxu3 }
 0x8a7   : > { %v7246_v50 = vadd.f32 %v10181_v4, %v7245_v22 }
 0x8a8   : > { %v7281_v57 = vpop.f32.mrf.mxu0  ;;  %v7300_v42 = vpop.f32.mrf.mxu1 }
 0x8b0   : > { %v7283_v41 = vpop.f32.mrf.mxu0  ;;  %v7302_v48 = vpop.f32.mrf.mxu1 }
 0x8be   : > { %v7248_v60 = vpop.f32.mrf.mxu3  ;;  %v7319_v54 = vpop.f32.mrf.mxu2 }
 0x8bf   : > { %v7249_v49 = vadd.f32 %v10181_v4, %v7248_v60  ;;  %v10147_v60 = vld [vmem:[%s14774_s7 + $0x40] sm:$0xff] }
 0x8c0   : > { %7597 = vmatpush.bf16.msrb.mxu1 %v10147_v60 }
 0x8c6   : > { %v14695_v32 = vpop.f32.mrf.mxu3  ;;  %v7321_v33 = vpop.f32.mrf.mxu2 }
 0x8c7   : > { %v7251_v23 = vadd.f32 %v10181_v4, %v14695_v32 }
 0x8c8   : > { %v7286_v11 = vpop.f32.mrf.mxu0 }
 0x8c9   : > { %v7305_v47 = vpop.f32.mrf.mxu1 }
 0x8ce   : > { %v7262_v16 = vpop.f32.mrf.mxu3 }
 0x8cf   : > { %v7263_v58 = vadd.f32 %v7262_v16, %v7244_v26 }
 0x8d0   : > { %v7288_v51 = vpop.f32.mrf.mxu0 }
 0x8d1   : > { %v7307_v24 = vpop.f32.mrf.mxu1  ;;  %v7282_v44 = vadd.f32 %v7281_v57, %v7263_v58 }
 0x8d3   : > { %v7301_v39 = vadd.f32 %v7300_v42, %v7282_v44 }
 0x8d5   : > { %v7320_v37 = vadd.f32 %v7319_v54, %v7301_v39 }
 0x8d6   : > { %v7264_v14 = vpop.f32.mrf.mxu3 }
 0x8d7   : > { %v7265_v30 = vadd.f32 %v7264_v14, %v7246_v50 }
 0x8d9   : > { %v7357_v45 = vpop.f32.mrf.mxu0  ;;  %v7284_v36 = vadd.f32 %v7283_v41, %v7265_v30  ;;  %v7376_v35 = vpop.f32.mrf.mxu1 }
 0x8db   : > { %v7303_v43 = vadd.f32 %v7302_v48, %v7284_v36 }
 0x8dd   : > { %v7322_v61 = vadd.f32 %v7321_v33, %v7303_v43 }
 0x8de   : > { %v7267_v31 = vpop.f32.mrf.mxu3  ;;  %v7324_v17 = vpop.f32.mrf.mxu2 }
 0x8df   : > { %v7268_v8 = vadd.f32 %v7267_v31, %v7249_v49 }
 0x8e1   : > { %v7359_v38 = vpop.f32.mrf.mxu0  ;;  %v7287_v15 = vadd.f32 %v7286_v11, %v7268_v8  ;;  %v7378_v55 = vpop.f32.mrf.mxu1 }
 0x8e3   : > { %v7306_v10 = vadd.f32 %v7305_v47, %v7287_v15 }
 0x8e5   : > { %v7325_v42 = vadd.f32 %v7324_v17, %v7306_v10 }
 0x8e6   : > { %v7269_v56 = vpop.f32.mrf.mxu3  ;;  %v7326_v52 = vpop.f32.mrf.mxu2 }
 0x8e7   : > { %v7270_v1 = vadd.f32 %v7269_v56, %v7251_v23 }
 0x8e9   : > { %v7289_v14 = vadd.f32 %v7288_v51, %v7270_v1  ;;  %v7362_v5 = vpop.f32.mrf.mxu0  ;;  %v7381_v27 = vpop.f32.mrf.mxu1 }
 0x8eb   : > { %v7308_v41 = vadd.f32 %v7307_v24, %v7289_v14 }
 0x8ed   : > { %v7327_v11 = vadd.f32 %v7326_v52, %v7308_v41 }
 0x8ee   : > { %v7338_v19 = vpop.f32.mrf.mxu3  ;;  %v7395_v28 = vpop.f32.mrf.mxu2 }
 0x8ef   : > { %v7339_v29 = vadd.f32 %v7338_v19, %v7320_v37 }
 0x8f1   : > { %v7358_v12 = vadd.f32 %v7357_v45, %v7339_v29  ;;  %v7364_v58 = vpop.f32.mrf.mxu0  ;;  %v7383_v44 = vpop.f32.mrf.mxu1  ;;  %v10182_v29 = vld [vmem:[%s14775_s8] ss:$0 sm:$0xff] }
 0x8f3   : > { %v7377_v0 = vadd.f32 %v7376_v35, %v7358_v12 }
 0x8f5   : > { %v7396_v57 = vadd.f32 %v7395_v28, %v7377_v0 }
 0x8f6   : > { %v7340_v46 = vpop.f32.mrf.mxu3  ;;  %v7397_v32 = vpop.f32.mrf.mxu2 }
 0x8f7   : > { %v7341_v53 = vadd.f32 %v7340_v46, %v7322_v61 }
 0x8f9   : > { %v7360_v22 = vadd.f32 %v7359_v38, %v7341_v53 }
 0x8fb   : > { %v7379_v31 = vadd.f32 %v7378_v55, %v7360_v22 }
 0x8fd   : > { %v7398_v48 = vadd.f32 %v7397_v32, %v7379_v31 }
 0x8fe   : > { %v7343_v2 = vpop.f32.mrf.mxu3  ;;  %v7400_v59 = vpop.f32.mrf.mxu2 }
 0x8ff   : > { %v7344_v9 = vadd.f32 %v7343_v2, %v7325_v42 }
 0x901   : > { %v7363_v3 = vadd.f32 %v7362_v5, %v7344_v9 }
 0x903   : > { %v7382_v26 = vadd.f32 %v7381_v27, %v7363_v3 }
 0x905   : > { %v7401_v24 = vadd.f32 %v7400_v59, %v7382_v26 }
 0x906   : > { %v7345_v20 = vpop.f32.mrf.mxu3  ;;  %v7402_v30 = vpop.f32.mrf.mxu2 }
 0x907   : > { %v7346_v19 = vadd.f32 %v7345_v20, %v7327_v11 }
 0x909   : > { %v7365_v17 = vadd.f32 %v7364_v58, %v7346_v19 }
 0x90b   : > { %v7384_v34 = vadd.f32 %v7383_v44, %v7365_v17 }
 0x90d   : > { %v7403_v52 = vadd.f32 %v7402_v30, %v7384_v34 }
 0x90e   : > { %v7414_v16 = vpop.f32.mrf.mxu3 }
 0x90f   : > { %v7415_v54 = vadd.f32 %v7414_v16, %v7396_v57 }
 0x911   : > { %v7424_v56 = vmax.f32 %v7415_v54, 0.0 }
 0x913   : > { %v7428_v4 = vpack.c.bf16 %v7424_v56, %v7424_v56 }
 0x915   : > { %v7434_v18 = vunpack.c.l.b16 %v7428_v4 }
 0x916   : > { %v7416_v33 = vpop.f32.mrf.mxu3 }
 0x917   : > { %v7417_v47 = vadd.f32 %v7416_v33, %v7398_v48 }
 0x919   : > { %v7425_v7 = vmax.f32 %v7417_v47, 0.0 }
 0x91b   : > { %v7429_v51 = vpack.c.bf16 %v7425_v7, %v7425_v7 }
 0x91d   : > { %v7435_v62 = vunpack.c.l.b16 %v7429_v51 }
 0x91e   : > { %v7419_v46 = vpop.f32.mrf.mxu3 }
 0x91f   : > { %v7436_v50 = vpack.c.b16 %v7435_v62, %v7434_v18  ;;  %v7420_v25 = vadd.f32 %v7419_v46, %v7401_v24 }
 0x921   : > { %7584 = vmatmul.bf16.vlgmr.msrb.gmra.mxu0 %v7436_v50  ;;  %v7426_v39 = vmax.f32 %v7420_v25, 0.0 }
 0x923   : > { %v7430_v45 = vpack.c.bf16 %v7426_v39, %v7426_v39 }
 0x925   : > { %v7440_v37 = vunpack.c.l.b16 %v7430_v45 }
 0x926   : > { %v7421_v21 = vpop.f32.mrf.mxu3 }
 0x927   : > { %v7422_v63 = vadd.f32 %v7421_v21, %v7403_v52 }
 0x929   : > { %v7427_v2 = vmax.f32 %v7422_v63, 0.0 }
 0x92b   : > { %v7431_v36 = vpack.c.bf16 %v7427_v2, %v7427_v2 }
 0x92d   : > { %v7441_v40 = vunpack.c.l.b16 %v7431_v36 }
 0x92f   : > { %v7442_v35 = vpack.c.b16 %v7441_v40, %v7440_v37 }
 0x931   : > { %7598 = vmatmul.bf16.vlgmr.msrb.gmra.mxu1 %v7442_v35 }
 0x99e   : > { %v7585_v49 = vpop.f32.mrf.mxu0 }
 0x99f   : > { %v7586_v43 = vadd.f32 %v10182_v29, %v7585_v49 }
 0x9a6   : > { %v7587_v28 = vpop.f32.mrf.mxu0 }
 0x9a7   : > { %v7588_v20 = vadd.f32 %v10182_v29, %v7587_v28 }
 0x9ae   : > { %v7599_v8 = vpop.f32.mrf.mxu1 }
 0x9af   : > { %v7600_v13 = vadd.f32 %v7599_v8, %v7586_v43 }
 0x9b1   : > { %7604 = vst [vmem:[%s693_s23] sm:$0xff] %v7600_v13 }
 0x9b6   : > { %v7601_v12 = vpop.f32.mrf.mxu1 }
 0x9b7   : > { %v7602_v61 = vadd.f32 %v7601_v12, %v7588_v20 }
 0x9b9   : > { %7605 = vst [vmem:[%s693_s23 + $0x8] sm:$0xff] %v7602_v61 }
 0x9ba PF: > { %p16_p9 = scmp.ge.s32.totalorder %s10366_s13, 4   ;;  %s15029_s30 = smov %s10293_s10 }
 0x9bb   : > { %s15030_s10 = smov %s10375_s16  ;;  %s15031_s11 = smov %s10366_s13 }
 0x9bc   :  { %18 = sbr.rel (!%p16_p9) target bundleno = 2 (0x2), region = 132 }

</bundles_post_ra>
